<compile_context>
chip_gen: v6e
topology: v6e:2x2x1
jax: 0.10.0
libtpu: 0.0.40
codegen_flags: <defaults>
</compile_context>

<pallas_src>
import functools

import jax
import jax.numpy as jnp
from jax.experimental import pallas as pl
from jax.experimental.pallas import tpu as pltpu

_EPS = 1e-5


# ----------------------------------------------------------------------------
# Pallas kernels
# ----------------------------------------------------------------------------
def _conv_row_kernel(x_ref, w_ref, b_ref, y_ref, st_ref, acc_ref,
                     *, n_kw, ow, act):
    """Direct convolution, one output row per (n, oh) grid point.

    grid = (N, OH, KH); KH is the reduction ('arbitrary') axis.
      x_ref  : (Wp, Cin)           one padded input row (row index = oh + kh)
      w_ref  : (KH*KW, Cin, Cout)  full tap-major weights, VMEM resident
      b_ref  : (1, Cout)           bias
      y_ref  : (OW, Cout)          output row (revisited across kh)
      st_ref : (2, Cout)           per-row [sum, sum_sq] of the f32 conv output
      acc_ref: (OW, Cout) f32 scratch accumulator
    """
    kh = pl.program_id(2)

    @pl.when(kh == 0)
    def _init():
        acc_ref[...] = jnp.zeros_like(acc_ref)

    acc = acc_ref[...]
    for kw in range(n_kw):
        xs = x_ref[pl.ds(kw, ow), :]                       # (OW, Cin) bf16
        acc = acc + jnp.dot(xs, w_ref[kh * n_kw + kw],
                            preferred_element_type=jnp.float32)
    acc_ref[...] = acc

    @pl.when(kh == pl.num_programs(2) - 1)
    def _finalize():
        yv = acc_ref[...] + b_ref[...]                     # (OW, Cout) f32
        st_ref[0:1, :] = jnp.sum(yv, axis=0, keepdims=True)
        st_ref[1:2, :] = jnp.sum(yv * yv, axis=0, keepdims=True)
        if act == "sigmoid":
            yv = jax.nn.sigmoid(yv)
        y_ref[...] = yv.astype(y_ref.dtype)


def _bn_relu_kernel(y_ref, s_ref, t_ref, o_ref):
    y = y_ref[...].astype(jnp.float32)
    o_ref[...] = jnp.maximum(y * s_ref[...] + t_ref[...], 0.0).astype(o_ref.dtype)


def _bn_add_kernel(y_ref, s_ref, t_ref, r_ref, o_ref):
    y = y_ref[...].astype(jnp.float32)
    o_ref[...] = (y * s_ref[...] + t_ref[...]
                  + r_ref[...].astype(jnp.float32)).astype(o_ref.dtype)


# ----------------------------------------------------------------------------
# Convolution wrappers (stride-1 valid conv in Pallas; layout glue in XLA)
# ----------------------------------------------------------------------------
def _conv_valid(xp, w_taps, b, kh_taps, kw_taps, *, act="none",
                out_dtype=jnp.bfloat16):
    """Valid, stride-1 convolution on a pre-padded NHWC input (bf16)."""
    N, Hp, Wp, Cin = xp.shape
    Cout = w_taps.shape[-1]
    OH = Hp - kh_taps + 1
    OW = Wp - kw_taps + 1

    kernel = functools.partial(_conv_row_kernel, n_kw=kw_taps, ow=OW, act=act)
    y, stats = pl.pallas_call(
        kernel,
        out_shape=(
            jax.ShapeDtypeStruct((N, OH, OW, Cout), out_dtype),
            jax.ShapeDtypeStruct((N, OH, 2, Cout), jnp.float32),
        ),
        grid_spec=pltpu.PrefetchScalarGridSpec(
            num_scalar_prefetch=0,
            grid=(N, OH, kh_taps),
            in_specs=[
                # one padded input row per step; row index = oh + kh
                pl.BlockSpec((None, None, Wp, Cin),
                             lambda n, oh, kh: (n, oh + kh, 0, 0)),
                # full weights, resident in VMEM for the whole kernel
                pl.BlockSpec((kh_taps * kw_taps, Cin, Cout),
                             lambda n, oh, kh: (0, 0, 0)),
                pl.BlockSpec((1, Cout), lambda n, oh, kh: (0, 0)),
            ],
            out_specs=[
                pl.BlockSpec((None, None, OW, Cout),
                             lambda n, oh, kh: (n, oh, 0, 0)),
                pl.BlockSpec((None, None, 2, Cout),
                             lambda n, oh, kh: (n, oh, 0, 0)),
            ],
            scratch_shapes=[pltpu.VMEM((OW, Cout), jnp.float32)],
        ),
        compiler_params=pltpu.CompilerParams(
            dimension_semantics=("parallel", "parallel", "arbitrary")),
    )(xp.astype(jnp.bfloat16), w_taps, b.reshape(1, Cout).astype(jnp.float32))
    return y, stats


def conv2d(x, w, b, stride, padding, *, act="none", out_dtype=jnp.bfloat16):
    """x: (N,H,W,Cin) NHWC.  w: (Cout,Cin,KH,KW) PyTorch layout.  b: (Cout,)."""
    N, H, W, Cin = x.shape
    Cout, _, KH, KW = w.shape
    x = x.astype(jnp.bfloat16)
    wt = jnp.transpose(w, (2, 3, 1, 0)).astype(jnp.bfloat16)  # (KH,KW,Cin,Cout)
    xp = jnp.pad(x, ((0, 0), (padding, padding), (padding, padding), (0, 0)))

    if stride == 1:
        w_taps = wt.reshape(KH * KW, Cin, Cout)
        return _conv_valid(xp, w_taps, b, KH, KW, act=act, out_dtype=out_dtype)

    if stride != 2:
        raise NotImplementedError("Generator only uses stride 1 / 2")

    # ---- stride 2: space-to-depth so the Pallas kernel stays stride-1 ------
    Hp, Wp = xp.shape[1], xp.shape[2]
    xp = jnp.pad(xp, ((0, 0), (0, Hp % 2), (0, Wp % 2), (0, 0)))
    Hp2, Wp2 = xp.shape[1] // 2, xp.shape[2] // 2
    xph = xp.reshape(N, Hp2, 2, Wp2, 2, Cin)
    xph = jnp.transpose(xph, (0, 1, 3, 2, 4, 5)).reshape(N, Hp2, Wp2, 4 * Cin)

    KH2, KW2 = (KH + 1) // 2, (KW + 1) // 2
    wpad = jnp.pad(wt, ((0, 2 * KH2 - KH), (0, 2 * KW2 - KW), (0, 0), (0, 0)))
    w_eq = wpad.reshape(KH2, 2, KW2, 2, Cin, Cout)
    w_eq = jnp.transpose(w_eq, (0, 2, 1, 3, 4, 5))
    w_eq = w_eq.reshape(KH2 * KW2, 4 * Cin, Cout)
    return _conv_valid(xph, w_eq, b, KH2, KW2, act=act, out_dtype=out_dtype)


def conv_transpose2d(x, w, b, stride, padding, output_padding=0, *,
                     act="none", out_dtype=jnp.bfloat16):
    """x: (N,H,W,Cin).  w: (Cin,Cout,KH,KW) (PyTorch ConvTranspose2d layout)."""
    Cin, Cout, KH, KW = w.shape
    N, H, W, _ = x.shape
    x = x.astype(jnp.bfloat16)
    if stride > 1:
        # TODO(synk): sub-pixel (output-phase) decomposition would avoid feeding
        # the MXU the 75% inserted zeros; simple correct lowering kept here.
        xd = jnp.zeros((N, (H - 1) * stride + 1, (W - 1) * stride + 1, Cin),
                       x.dtype)
        xd = xd.at[:, ::stride, ::stride, :].set(x)
    else:
        xd = x
    pe = KH - 1 - padding
    xp = jnp.pad(xd, ((0, 0),
                      (pe, pe + output_padding),
                      (pe, pe + output_padding),
                      (0, 0)))
    # equivalent forward conv: swap in/out channels, flip kernel spatially
    w_eq = jnp.transpose(w[:, :, ::-1, ::-1], (1, 0, 2, 3))  # (Cout,Cin,KH,KW)
    return conv2d(xp, w_eq, b, stride=1, padding=0, act=act,
                  out_dtype=out_dtype)


# ----------------------------------------------------------------------------
# BatchNorm (training-mode batch stats) + ReLU / + residual add
# ----------------------------------------------------------------------------
def _row_tile(m, cap=512):
    if m <= cap:
        return m
    for t in range(cap, 7, -8):
        if m % t == 0:
            return t
    return m


def _bn_scale_shift(y, stats, gamma, beta):
    n, h, w, _ = y.shape
    count = n * h * w
    s = jnp.sum(stats[:, :, 0, :], axis=(0, 1))
    sq = jnp.sum(stats[:, :, 1, :], axis=(0, 1))
    mean = s / count
    var = jnp.maximum(sq / count - mean * mean, 0.0)   # biased (training-mode)
    scale = gamma * jax.lax.rsqrt(var + _EPS)
    shift = beta - mean * scale
    return scale, shift


def _bn_apply(y, scale, shift, res=None):
    n, h, w, c = y.shape
    m = n * h * w
    tm = _row_tile(m)
    in_specs = [
        pl.BlockSpec((tm, c), lambda i: (i, 0)),
        pl.BlockSpec((1, c), lambda i: (0, 0)),
        pl.BlockSpec((1, c), lambda i: (0, 0)),
    ]
    args = [y.reshape(m, c),
            scale.reshape(1, c).astype(jnp.float32),
            shift.reshape(1, c).astype(jnp.float32)]
    if res is None:
        kernel = _bn_relu_kernel
    else:
        kernel = _bn_add_kernel
        in_specs.append(pl.BlockSpec((tm, c), lambda i: (i, 0)))
        args.append(res.reshape(m, c))
    out = pl.pallas_call(
        kernel,
        out_shape=jax.ShapeDtypeStruct((m, c), jnp.bfloat16),
        grid_spec=pltpu.PrefetchScalarGridSpec(
            num_scalar_prefetch=0,
            grid=(m // tm,),
            in_specs=in_specs,
            out_specs=pl.BlockSpec((tm, c), lambda i: (i, 0)),
        ),
        compiler_params=pltpu.CompilerParams(
            dimension_semantics=("parallel",)),
    )(*args)
    return out.reshape(n, h, w, c)


def bn_relu(y, stats, gamma, beta):
    scale, shift = _bn_scale_shift(y, stats, gamma, beta)
    return _bn_apply(y, scale, shift)


def bn_add(y, stats, gamma, beta, res):
    scale, shift = _bn_scale_shift(y, stats, gamma, beta)
    return _bn_apply(y, scale, shift, res=res)


# ----------------------------------------------------------------------------
# Model: parameter init + forward
# ----------------------------------------------------------------------------
def _conv_params(key, cout, cin, kh, kw, scale=0.05):
    k1, k2 = jax.random.split(key)
    w = jax.random.normal(k1, (cout, cin, kh, kw), jnp.float32) * scale
    b = jax.random.normal(k2, (cout,), jnp.float32) * scale
    return w, b


def _convT_params(key, cin, cout, kh, kw, scale=0.05):
    k1, k2 = jax.random.split(key)
    w = jax.random.normal(k1, (cin, cout, kh, kw), jnp.float32) * scale
    b = jax.random.normal(k2, (cout,), jnp.float32) * scale
    return w, b


def _bn_params(c):
    # PyTorch BatchNorm2d default init: weight=1, bias=0
    return jnp.ones((c,), jnp.float32), jnp.zeros((c,), jnp.float32)


def init_generator_params(key):
    keys = list(jax.random.split(key, 64))
    nk = iter(keys)
    p = {}
    p["c1_w"], p["c1_b"] = _conv_params(next(nk), 64, 3, 7, 7)
    p["n1_g"], p["n1_b"] = _bn_params(64)
    p["c2_w"], p["c2_b"] = _conv_params(next(nk), 128, 64, 3, 3)
    p["c3_w"], p["c3_b"] = _conv_params(next(nk), 128, 128, 3, 3)
    p["n2_g"], p["n2_b"] = _bn_params(128)
    p["c4_w"], p["c4_b"] = _conv_params(next(nk), 256, 128, 3, 3)
    p["c5_w"], p["c5_b"] = _conv_params(next(nk), 256, 256, 3, 3)
    p["n3_g"], p["n3_b"] = _bn_params(256)
    res = []
    for _ in range(8):
        rp = {}
        rp["w1"], rp["b1"] = _conv_params(next(nk), 256, 256, 3, 3)
        rp["g1"], rp["be1"] = _bn_params(256)
        rp["w2"], rp["b2"] = _conv_params(next(nk), 256, 256, 3, 3)
        rp["g2"], rp["be2"] = _bn_params(256)
        res.append(rp)
    p["res"] = res
    p["c6_w"], p["c6_b"] = _convT_params(next(nk), 256, 128, 3, 3)
    p["c7_w"], p["c7_b"] = _convT_params(next(nk), 128, 128, 3, 3)
    p["n4_g"], p["n4_b"] = _bn_params(128)
    p["c8_w"], p["c8_b"] = _convT_params(next(nk), 128, 64, 3, 3)
    p["c9_w"], p["c9_b"] = _convT_params(next(nk), 64, 64, 3, 3)
    p["n5_g"], p["n5_b"] = _bn_params(64)
    p["c10_w"], p["c10_b"] = _conv_params(next(nk), 3, 64, 7, 7)
    return p


def residual_block(x, rp):
    y, st = conv2d(x, rp["w1"], rp["b1"], stride=1, padding=1)
    h = bn_relu(y, st, rp["g1"], rp["be1"])
    y, st = conv2d(h, rp["w2"], rp["b2"], stride=1, padding=1)
    return bn_add(y, st, rp["g2"], rp["be2"], x)


@jax.jit
def generator_forward(params, x_nchw):
    x = jnp.transpose(x_nchw, (0, 2, 3, 1)).astype(jnp.bfloat16)  # -> NHWC

    y, st = conv2d(x, params["c1_w"], params["c1_b"], stride=1, padding=3)
    h = bn_relu(y, st, params["n1_g"], params["n1_b"])

    y, _ = conv2d(h, params["c2_w"], params["c2_b"], stride=2, padding=1)
    y, st = conv2d(y, params["c3_w"], params["c3_b"], stride=1, padding=1)
    h = bn_relu(y, st, params["n2_g"], params["n2_b"])

    y, _ = conv2d(h, params["c4_w"], params["c4_b"], stride=2, padding=1)
    y, st = conv2d(y, params["c5_w"], params["c5_b"], stride=1, padding=1)
    h = bn_relu(y, st, params["n3_g"], params["n3_b"])

    for rp in params["res"]:
        h = residual_block(h, rp)

    y, _ = conv_transpose2d(h, params["c6_w"], params["c6_b"],
                            stride=2, padding=1, output_padding=1)
    y, st = conv_transpose2d(y, params["c7_w"], params["c7_b"],
                             stride=1, padding=1, output_padding=0)
    h = bn_relu(y, st, params["n4_g"], params["n4_b"])

    y, _ = conv_transpose2d(h, params["c8_w"], params["c8_b"],
                            stride=2, padding=1, output_padding=1)
    y, st = conv_transpose2d(y, params["c9_w"], params["c9_b"],
                             stride=1, padding=1, output_padding=0)
    h = bn_relu(y, st, params["n5_g"], params["n5_b"])

    # final 7x7 conv + sigmoid: pad Cout 3 -> 128 (lane-dense stores), fuse the
    # sigmoid into the conv epilogue, slice the 3 real channels afterwards.
    w10 = jnp.pad(params["c10_w"], ((0, 125), (0, 0), (0, 0), (0, 0)))
    b10 = jnp.pad(params["c10_b"], ((0, 125),))
    y, _ = conv2d(h, w10, b10, stride=1, padding=3,
                  act="sigmoid", out_dtype=jnp.float32)
    out = y[..., :3]
    return jnp.transpose(out, (0, 3, 1, 2))  # back to NCHW


if __name__ == "__main__":
    key = jax.random.PRNGKey(0)
    pkey, xkey = jax.random.split(key)
    params = init_generator_params(pkey)
    # small NCHW input consistent with the module (3 input channels)
    x = jax.random.normal(xkey, (2, 3, 16, 16), jnp.float32)
    out = generator_forward(params, x)
    out = jax.block_until_ready(out)
    assert out.shape == (2, 3, 16, 16), out.shape
    assert bool(jnp.all(jnp.isfinite(out)))
    assert bool(jnp.all((out >= 0.0) & (out <= 1.0)))
    print("KERNEL_OK")
</pallas_src>

<mosaic_0001>
module attributes {stable_mosaic.version = 11 : i64} {
  func.func @_conv_row_kernel(%arg0: i32, %arg1: i32, %arg2: i32, %arg3: memref<1x1x22x3xbf16, #tpu.memory_space<vmem>>, %arg4: memref<49x3x64xbf16, #tpu.memory_space<vmem>>, %arg5: memref<1x64xf32, #tpu.memory_space<vmem>>, %arg6: memref<1x1x16x64xbf16, #tpu.memory_space<vmem>>, %arg7: memref<1x1x2x64xf32, #tpu.memory_space<vmem>>, %arg8: memref<16x64xf32, #tpu.memory_space<vmem>>) attributes {dimension_semantics = [#tpu.dimension_semantics<parallel>, #tpu.dimension_semantics<parallel>, #tpu.dimension_semantics<arbitrary>], iteration_bounds = array<i64: 2, 16, 7>, scalar_prefetch = 0 : i64, scratch_operands = 1 : i64, tpu.core_type = #tpu.core_type<tc>, window_params = [{transform_indices = @transform_0, window_bounds = array<i64: 1, 1, 22, 3>}, {pipeline_mode = #tpu.pipeline_mode<synchronous>, transform_indices = @transform_1, window_bounds = array<i64: 49, 3, 64>}, {pipeline_mode = #tpu.pipeline_mode<synchronous>, transform_indices = @transform_2, window_bounds = array<i64: 1, 64>}, {transform_indices = @transform_3, window_bounds = array<i64: 1, 1, 16, 64>}, {transform_indices = @transform_4, window_bounds = array<i64: 1, 1, 2, 64>}]} {
    %c0_i32 = arith.constant 0 : i32
    %0 = arith.cmpi eq, %arg2, %c0_i32 : i32
    %1 = arith.extui %0 : i1 to i32
    %c0_i32_0 = arith.constant 0 : i32
    %2 = arith.cmpi ne, %1, %c0_i32_0 : i32
    scf.if %2 {
      %cst_55 = arith.constant 0.000000e+00 : f32
      %71 = vector.broadcast %cst_55 : f32 to vector<16x64xf32>
      %c0_56 = arith.constant 0 : index
      %c0_57 = arith.constant 0 : index
      %72 = vector.load %arg8[%c0_56, %c0_57] : memref<16x64xf32, #tpu.memory_space<vmem>>, vector<16x64xf32>
      tpu.vector_store %arg8[%c0_56, %c0_57], %71 {strides = array<i32>} : memref<16x64xf32, #tpu.memory_space<vmem>>, vector<16x64xf32>,
    } else {
    }
    %c0 = arith.constant 0 : index
    %c0_1 = arith.constant 0 : index
    %3 = vector.load %arg8[%c0, %c0_1] : memref<16x64xf32, #tpu.memory_space<vmem>>, vector<16x64xf32>
    %c0_2 = arith.constant 0 : index
    %c0_3 = arith.constant 0 : index
    %c0_4 = arith.constant 0 : index
    %c0_5 = arith.constant 0 : index
    %4 = vector.load %arg3[%c0_2, %c0_3, %c0_4, %c0_5] : memref<1x1x22x3xbf16, #tpu.memory_space<vmem>>, vector<1x1x16x3xbf16>
    %5 = vector.shape_cast %4 : vector<1x1x16x3xbf16> to vector<16x3xbf16>
    %c7_i32 = arith.constant 7 : i32
    %6 = arith.muli %arg2, %c7_i32 : i32
    %c0_i32_6 = arith.constant 0 : i32
    %7 = arith.addi %6, %c0_i32_6 : i32
    %8 = arith.index_cast %7 : i32 to index
    %c0_7 = arith.constant 0 : index
    %c0_8 = arith.constant 0 : index
    %9 = vector.load %arg4[%8, %c0_7, %c0_8] : memref<49x3x64xbf16, #tpu.memory_space<vmem>>, vector<1x3x64xbf16>
    %10 = vector.shape_cast %9 : vector<1x3x64xbf16> to vector<3x64xbf16>
    %cst = arith.constant dense<0.000000e+00> : vector<16x64xf32>
    %11 = tpu.matmul %5, %10, %cst {dimension_numbers = #tpu.dot_dimension_numbers<[1], [0], [0], [1], [0, 0, 1, 1], [], []>} : vector<16x3xbf16>, vector<3x64xbf16>, vector<16x64xf32> -> vector<16x64xf32>
    %12 = arith.addf %3, %11 : vector<16x64xf32>
    %c0_9 = arith.constant 0 : index
    %c0_10 = arith.constant 0 : index
    %c1 = arith.constant 1 : index
    %c0_11 = arith.constant 0 : index
    %13 = vector.load %arg3[%c0_9, %c0_10, %c1, %c0_11] : memref<1x1x22x3xbf16, #tpu.memory_space<vmem>>, vector<1x1x16x3xbf16>
    %14 = vector.shape_cast %13 : vector<1x1x16x3xbf16> to vector<16x3xbf16>
    %c7_i32_12 = arith.constant 7 : i32
    %15 = arith.muli %arg2, %c7_i32_12 : i32
    %c1_i32 = arith.constant 1 : i32
    %16 = arith.addi %15, %c1_i32 : i32
    %17 = arith.index_cast %16 : i32 to index
    %c0_13 = arith.constant 0 : index
    %c0_14 = arith.constant 0 : index
    %18 = vector.load %arg4[%17, %c0_13, %c0_14] : memref<49x3x64xbf16, #tpu.memory_space<vmem>>, vector<1x3x64xbf16>
    %19 = vector.shape_cast %18 : vector<1x3x64xbf16> to vector<3x64xbf16>
    %cst_15 = arith.constant dense<0.000000e+00> : vector<16x64xf32>
    %20 = tpu.matmul %14, %19, %cst_15 {dimension_numbers = #tpu.dot_dimension_numbers<[1], [0], [0], [1], [0, 0, 1, 1], [], []>} : vector<16x3xbf16>, vector<3x64xbf16>, vector<16x64xf32> -> vector<16x64xf32>
    %21 = arith.addf %12, %20 : vector<16x64xf32>
    %c0_16 = arith.constant 0 : index
    %c0_17 = arith.constant 0 : index
    %c2 = arith.constant 2 : index
    %c0_18 = arith.constant 0 : index
    %22 = vector.load %arg3[%c0_16, %c0_17, %c2, %c0_18] : memref<1x1x22x3xbf16, #tpu.memory_space<vmem>>, vector<1x1x16x3xbf16>
    %23 = vector.shape_cast %22 : vector<1x1x16x3xbf16> to vector<16x3xbf16>
    %c7_i32_19 = arith.constant 7 : i32
    %24 = arith.muli %arg2, %c7_i32_19 : i32
    %c2_i32 = arith.constant 2 : i32
    %25 = arith.addi %24, %c2_i32 : i32
    %26 = arith.index_cast %25 : i32 to index
    %c0_20 = arith.constant 0 : index
    %c0_21 = arith.constant 0 : index
    %27 = vector.load %arg4[%26, %c0_20, %c0_21] : memref<49x3x64xbf16, #tpu.memory_space<vmem>>, vector<1x3x64xbf16>
    %28 = vector.shape_cast %27 : vector<1x3x64xbf16> to vector<3x64xbf16>
    %cst_22 = arith.constant dense<0.000000e+00> : vector<16x64xf32>
    %29 = tpu.matmul %23, %28, %cst_22 {dimension_numbers = #tpu.dot_dimension_numbers<[1], [0], [0], [1], [0, 0, 1, 1], [], []>} : vector<16x3xbf16>, vector<3x64xbf16>, vector<16x64xf32> -> vector<16x64xf32>
    %30 = arith.addf %21, %29 : vector<16x64xf32>
    %c0_23 = arith.constant 0 : index
    %c0_24 = arith.constant 0 : index
    %c3 = arith.constant 3 : index
    %c0_25 = arith.constant 0 : index
    %31 = vector.load %arg3[%c0_23, %c0_24, %c3, %c0_25] : memref<1x1x22x3xbf16, #tpu.memory_space<vmem>>, vector<1x1x16x3xbf16>
    %32 = vector.shape_cast %31 : vector<1x1x16x3xbf16> to vector<16x3xbf16>
    %c7_i32_26 = arith.constant 7 : i32
    %33 = arith.muli %arg2, %c7_i32_26 : i32
    %c3_i32 = arith.constant 3 : i32
    %34 = arith.addi %33, %c3_i32 : i32
    %35 = arith.index_cast %34 : i32 to index
    %c0_27 = arith.constant 0 : index
    %c0_28 = arith.constant 0 : index
    %36 = vector.load %arg4[%35, %c0_27, %c0_28] : memref<49x3x64xbf16, #tpu.memory_space<vmem>>, vector<1x3x64xbf16>
    %37 = vector.shape_cast %36 : vector<1x3x64xbf16> to vector<3x64xbf16>
    %cst_29 = arith.constant dense<0.000000e+00> : vector<16x64xf32>
    %38 = tpu.matmul %32, %37, %cst_29 {dimension_numbers = #tpu.dot_dimension_numbers<[1], [0], [0], [1], [0, 0, 1, 1], [], []>} : vector<16x3xbf16>, vector<3x64xbf16>, vector<16x64xf32> -> vector<16x64xf32>
    %39 = arith.addf %30, %38 : vector<16x64xf32>
    %c0_30 = arith.constant 0 : index
    %c0_31 = arith.constant 0 : index
    %c4 = arith.constant 4 : index
    %c0_32 = arith.constant 0 : index
    %40 = vector.load %arg3[%c0_30, %c0_31, %c4, %c0_32] : memref<1x1x22x3xbf16, #tpu.memory_space<vmem>>, vector<1x1x16x3xbf16>
    %41 = vector.shape_cast %40 : vector<1x1x16x3xbf16> to vector<16x3xbf16>
    %c7_i32_33 = arith.constant 7 : i32
    %42 = arith.muli %arg2, %c7_i32_33 : i32
    %c4_i32 = arith.constant 4 : i32
    %43 = arith.addi %42, %c4_i32 : i32
    %44 = arith.index_cast %43 : i32 to index
    %c0_34 = arith.constant 0 : index
    %c0_35 = arith.constant 0 : index
    %45 = vector.load %arg4[%44, %c0_34, %c0_35] : memref<49x3x64xbf16, #tpu.memory_space<vmem>>, vector<1x3x64xbf16>
    %46 = vector.shape_cast %45 : vector<1x3x64xbf16> to vector<3x64xbf16>
    %cst_36 = arith.constant dense<0.000000e+00> : vector<16x64xf32>
    %47 = tpu.matmul %41, %46, %cst_36 {dimension_numbers = #tpu.dot_dimension_numbers<[1], [0], [0], [1], [0, 0, 1, 1], [], []>} : vector<16x3xbf16>, vector<3x64xbf16>, vector<16x64xf32> -> vector<16x64xf32>
    %48 = arith.addf %39, %47 : vector<16x64xf32>
    %c0_37 = arith.constant 0 : index
    %c0_38 = arith.constant 0 : index
    %c5 = arith.constant 5 : index
    %c0_39 = arith.constant 0 : index
    %49 = vector.load %arg3[%c0_37, %c0_38, %c5, %c0_39] : memref<1x1x22x3xbf16, #tpu.memory_space<vmem>>, vector<1x1x16x3xbf16>
    %50 = vector.shape_cast %49 : vector<1x1x16x3xbf16> to vector<16x3xbf16>
    %c7_i32_40 = arith.constant 7 : i32
    %51 = arith.muli %arg2, %c7_i32_40 : i32
    %c5_i32 = arith.constant 5 : i32
    %52 = arith.addi %51, %c5_i32 : i32
    %53 = arith.index_cast %52 : i32 to index
    %c0_41 = arith.constant 0 : index
    %c0_42 = arith.constant 0 : index
    %54 = vector.load %arg4[%53, %c0_41, %c0_42] : memref<49x3x64xbf16, #tpu.memory_space<vmem>>, vector<1x3x64xbf16>
    %55 = vector.shape_cast %54 : vector<1x3x64xbf16> to vector<3x64xbf16>
    %cst_43 = arith.constant dense<0.000000e+00> : vector<16x64xf32>
    %56 = tpu.matmul %50, %55, %cst_43 {dimension_numbers = #tpu.dot_dimension_numbers<[1], [0], [0], [1], [0, 0, 1, 1], [], []>} : vector<16x3xbf16>, vector<3x64xbf16>, vector<16x64xf32> -> vector<16x64xf32>
    %57 = arith.addf %48, %56 : vector<16x64xf32>
    %c0_44 = arith.constant 0 : index
    %c0_45 = arith.constant 0 : index
    %c6 = arith.constant 6 : index
    %c0_46 = arith.constant 0 : index
    %58 = vector.load %arg3[%c0_44, %c0_45, %c6, %c0_46] : memref<1x1x22x3xbf16, #tpu.memory_space<vmem>>, vector<1x1x16x3xbf16>
    %59 = vector.shape_cast %58 : vector<1x1x16x3xbf16> to vector<16x3xbf16>
    %c7_i32_47 = arith.constant 7 : i32
    %60 = arith.muli %arg2, %c7_i32_47 : i32
    %c6_i32 = arith.constant 6 : i32
    %61 = arith.addi %60, %c6_i32 : i32
    %62 = arith.index_cast %61 : i32 to index
    %c0_48 = arith.constant 0 : index
    %c0_49 = arith.constant 0 : index
    %63 = vector.load %arg4[%62, %c0_48, %c0_49] : memref<49x3x64xbf16, #tpu.memory_space<vmem>>, vector<1x3x64xbf16>
    %64 = vector.shape_cast %63 : vector<1x3x64xbf16> to vector<3x64xbf16>
    %cst_50 = arith.constant dense<0.000000e+00> : vector<16x64xf32>
    %65 = tpu.matmul %59, %64, %cst_50 {dimension_numbers = #tpu.dot_dimension_numbers<[1], [0], [0], [1], [0, 0, 1, 1], [], []>} : vector<16x3xbf16>, vector<3x64xbf16>, vector<16x64xf32> -> vector<16x64xf32>
    %66 = arith.addf %57, %65 : vector<16x64xf32>
    %c0_51 = arith.constant 0 : index
    %c0_52 = arith.constant 0 : index
    %67 = vector.load %arg8[%c0_51, %c0_52] : memref<16x64xf32, #tpu.memory_space<vmem>>, vector<16x64xf32>
    tpu.vector_store %arg8[%c0_51, %c0_52], %66 {strides = array<i32>} : memref<16x64xf32, #tpu.memory_space<vmem>>, vector<16x64xf32>,
    %c6_i32_53 = arith.constant 6 : i32
    %68 = arith.cmpi eq, %arg2, %c6_i32_53 : i32
    %69 = arith.extui %68 : i1 to i32
    %c0_i32_54 = arith.constant 0 : i32
    %70 = arith.cmpi ne, %69, %c0_i32_54 : i32
    scf.if %70 {
      %c0_55 = arith.constant 0 : index
      %c0_56 = arith.constant 0 : index
      %71 = vector.load %arg8[%c0_55, %c0_56] : memref<16x64xf32, #tpu.memory_space<vmem>>, vector<16x64xf32>
      %c0_57 = arith.constant 0 : index
      %c0_58 = arith.constant 0 : index
      %72 = vector.load %arg5[%c0_57, %c0_58] : memref<1x64xf32, #tpu.memory_space<vmem>>, vector<1x64xf32>
      %73 = vector.broadcast %72 : vector<1x64xf32> to vector<16x64xf32>
      %74 = arith.addf %71, %73 : vector<16x64xf32>
      %cst_59 = arith.constant dense<0.000000e+00> : vector<64xf32>
      %75 = vector.multi_reduction <add>, %74, %cst_59 [0] : vector<16x64xf32> to vector<64xf32>
      %76 = vector.shape_cast %75 : vector<64xf32> to vector<1x64xf32>
      %c0_60 = arith.constant 0 : index
      %c0_61 = arith.constant 0 : index
      %c0_62 = arith.constant 0 : index
      %c0_63 = arith.constant 0 : index
      %77 = vector.load %arg7[%c0_60, %c0_61, %c0_62, %c0_63] : memref<1x1x2x64xf32, #tpu.memory_space<vmem>>, vector<1x1x1x64xf32>
      %78 = vector.shape_cast %77 : vector<1x1x1x64xf32> to vector<1x64xf32>
      %79 = vector.shape_cast %76 : vector<1x64xf32> to vector<1x1x1x64xf32>
      tpu.vector_store %arg7[%c0_60, %c0_61, %c0_62, %c0_63], %79 {strides = array<i32>} : memref<1x1x2x64xf32, #tpu.memory_space<vmem>>, vector<1x1x1x64xf32>,
      %80 = arith.mulf %74, %74 : vector<16x64xf32>
      %cst_64 = arith.constant dense<0.000000e+00> : vector<64xf32>
      %81 = vector.multi_reduction <add>, %80, %cst_64 [0] : vector<16x64xf32> to vector<64xf32>
      %82 = vector.shape_cast %81 : vector<64xf32> to vector<1x64xf32>
      %c0_65 = arith.constant 0 : index
      %c0_66 = arith.constant 0 : index
      %c1_67 = arith.constant 1 : index
      %c0_68 = arith.constant 0 : index
      %83 = vector.load %arg7[%c0_65, %c0_66, %c1_67, %c0_68] : memref<1x1x2x64xf32, #tpu.memory_space<vmem>>, vector<1x1x1x64xf32>
      %84 = vector.shape_cast %83 : vector<1x1x1x64xf32> to vector<1x64xf32>
      %85 = vector.shape_cast %82 : vector<1x64xf32> to vector<1x1x1x64xf32>
      tpu.vector_store %arg7[%c0_65, %c0_66, %c1_67, %c0_68], %85 {strides = array<i32>} : memref<1x1x2x64xf32, #tpu.memory_space<vmem>>, vector<1x1x1x64xf32>,
      %86 = arith.truncf %74 : vector<16x64xf32> to vector<16x64xbf16>
      %c0_69 = arith.constant 0 : index
      %c0_70 = arith.constant 0 : index
      %c0_71 = arith.constant 0 : index
      %c0_72 = arith.constant 0 : index
      %87 = vector.load %arg6[%c0_69, %c0_70, %c0_71, %c0_72] : memref<1x1x16x64xbf16, #tpu.memory_space<vmem>>, vector<1x1x16x64xbf16>
      %88 = vector.shape_cast %87 : vector<1x1x16x64xbf16> to vector<16x64xbf16>
      %89 = vector.shape_cast %86 : vector<16x64xbf16> to vector<1x1x16x64xbf16>
      tpu.vector_store %arg6[%c0_69, %c0_70, %c0_71, %c0_72], %89 {strides = array<i32>} : memref<1x1x16x64xbf16, #tpu.memory_space<vmem>>, vector<1x1x16x64xbf16>,
    } else {
    }
    return
  }
  func.func @transform_0(%arg0: i32, %arg1: i32, %arg2: i32) -> (i32, i32, i32, i32) {
    %0 = arith.addi %arg1, %arg2 : i32
    %c0_i32 = arith.constant 0 : i32
    %c0_i32_0 = arith.constant 0 : i32
    %c0_i32_1 = arith.constant 0 : i32
    return %arg0, %0, %c0_i32, %c0_i32_0 : i32, i32, i32, i32
  }
  func.func @transform_1(%arg0: i32, %arg1: i32, %arg2: i32) -> (i32, i32, i32) {
    %c0_i32 = arith.constant 0 : i32
    %c0_i32_0 = arith.constant 0 : i32
    %c0_i32_1 = arith.constant 0 : i32
    %c0_i32_2 = arith.constant 0 : i32
    return %c0_i32, %c0_i32_0, %c0_i32_1 : i32, i32, i32
  }
  func.func @transform_2(%arg0: i32, %arg1: i32, %arg2: i32) -> (i32, i32) {
    %c0_i32 = arith.constant 0 : i32
    %c0_i32_0 = arith.constant 0 : i32
    %c0_i32_1 = arith.constant 0 : i32
    return %c0_i32, %c0_i32_0 : i32, i32
  }
  func.func @transform_3(%arg0: i32, %arg1: i32, %arg2: i32) -> (i32, i32, i32, i32) {
    %c0_i32 = arith.constant 0 : i32
    %c0_i32_0 = arith.constant 0 : i32
    %c0_i32_1 = arith.constant 0 : i32
    return %arg0, %arg1, %c0_i32, %c0_i32_0 : i32, i32, i32, i32
  }
  func.func @transform_4(%arg0: i32, %arg1: i32, %arg2: i32) -> (i32, i32, i32, i32) {
    %c0_i32 = arith.constant 0 : i32
    %c0_i32_0 = arith.constant 0 : i32
    %c0_i32_1 = arith.constant 0 : i32
    return %arg0, %arg1, %c0_i32, %c0_i32_0 : i32, i32, i32, i32
  }
}

module attributes {stable_mosaic.version = 11 : i64} {
  func.func @_bn_relu_kernel(%arg0: i32, %arg1: memref<512x64xbf16, #tpu.memory_space<vmem>>, %arg2: memref<1x64xf32, #tpu.memory_space<vmem>>, %arg3: memref<1x64xf32, #tpu.memory_space<vmem>>, %arg4: memref<512x64xbf16, #tpu.memory_space<vmem>>) attributes {dimension_semantics = [#tpu.dimension_semantics<parallel>], iteration_bounds = array<i64: 1>, scalar_prefetch = 0 : i64, scratch_operands = 0 : i64, tpu.core_type = #tpu.core_type<tc>, window_params = [{transform_indices = @transform_0, window_bounds = array<i64: 512, 64>}, {pipeline_mode = #tpu.pipeline_mode<synchronous>, transform_indices = @transform_1, window_bounds = array<i64: 1, 64>}, {pipeline_mode = #tpu.pipeline_mode<synchronous>, transform_indices = @transform_2, window_bounds = array<i64: 1, 64>}, {transform_indices = @transform_3, window_bounds = array<i64: 512, 64>}]} {
    %c0 = arith.constant 0 : index
    %c0_0 = arith.constant 0 : index
    %0 = vector.load %arg1[%c0, %c0_0] : memref<512x64xbf16, #tpu.memory_space<vmem>>, vector<512x64xbf16>
    %1 = arith.extf %0 : vector<512x64xbf16> to vector<512x64xf32>
    %c0_1 = arith.constant 0 : index
    %c0_2 = arith.constant 0 : index
    %2 = vector.load %arg2[%c0_1, %c0_2] : memref<1x64xf32, #tpu.memory_space<vmem>>, vector<1x64xf32>
    %3 = vector.broadcast %2 : vector<1x64xf32> to vector<512x64xf32>
    %4 = arith.mulf %1, %3 : vector<512x64xf32>
    %c0_3 = arith.constant 0 : index
    %c0_4 = arith.constant 0 : index
    %5 = vector.load %arg3[%c0_3, %c0_4] : memref<1x64xf32, #tpu.memory_space<vmem>>, vector<1x64xf32>
    %6 = vector.broadcast %5 : vector<1x64xf32> to vector<512x64xf32>
    %7 = arith.addf %4, %6 : vector<512x64xf32>
    %cst = arith.constant 0.000000e+00 : f32
    %8 = vector.broadcast %cst : f32 to vector<512x64xf32>
    %9 = arith.maximumf %7, %8 : vector<512x64xf32>
    %10 = arith.truncf %9 : vector<512x64xf32> to vector<512x64xbf16>
    %c0_5 = arith.constant 0 : index
    %c0_6 = arith.constant 0 : index
    %11 = vector.load %arg4[%c0_5, %c0_6] : memref<512x64xbf16, #tpu.memory_space<vmem>>, vector<512x64xbf16>
    tpu.vector_store %arg4[%c0_5, %c0_6], %10 {strides = array<i32>} : memref<512x64xbf16, #tpu.memory_space<vmem>>, vector<512x64xbf16>,
    return
  }
  func.func @transform_0(%arg0: i32) -> (i32, i32) {
    %c0_i32 = arith.constant 0 : i32
    %c0_i32_0 = arith.constant 0 : i32
    return %arg0, %c0_i32 : i32, i32
  }
  func.func @transform_1(%arg0: i32) -> (i32, i32) {
    %c0_i32 = arith.constant 0 : i32
    %c0_i32_0 = arith.constant 0 : i32
    %c0_i32_1 = arith.constant 0 : i32
    return %c0_i32, %c0_i32_0 : i32, i32
  }
  func.func @transform_2(%arg0: i32) -> (i32, i32) {
    %c0_i32 = arith.constant 0 : i32
    %c0_i32_0 = arith.constant 0 : i32
    %c0_i32_1 = arith.constant 0 : i32
    return %c0_i32, %c0_i32_0 : i32, i32
  }
  func.func @transform_3(%arg0: i32) -> (i32, i32) {
    %c0_i32 = arith.constant 0 : i32
    %c0_i32_0 = arith.constant 0 : i32
    return %arg0, %c0_i32 : i32, i32
  }
}

module attributes {stable_mosaic.version = 11 : i64} {
  func.func @_conv_row_kernel(%arg0: i32, %arg1: i32, %arg2: i32, %arg3: memref<1x1x9x256xbf16, #tpu.memory_space<vmem>>, %arg4: memref<4x256x128xbf16, #tpu.memory_space<vmem>>, %arg5: memref<1x128xf32, #tpu.memory_space<vmem>>, %arg6: memref<1x1x8x128xbf16, #tpu.memory_space<vmem>>, %arg7: memref<1x1x2x128xf32, #tpu.memory_space<vmem>>, %arg8: memref<8x128xf32, #tpu.memory_space<vmem>>) attributes {dimension_semantics = [#tpu.dimension_semantics<parallel>, #tpu.dimension_semantics<parallel>, #tpu.dimension_semantics<arbitrary>], iteration_bounds = array<i64: 2, 8, 2>, scalar_prefetch = 0 : i64, scratch_operands = 1 : i64, tpu.core_type = #tpu.core_type<tc>, window_params = [{transform_indices = @transform_0, window_bounds = array<i64: 1, 1, 9, 256>}, {pipeline_mode = #tpu.pipeline_mode<synchronous>, transform_indices = @transform_1, window_bounds = array<i64: 4, 256, 128>}, {pipeline_mode = #tpu.pipeline_mode<synchronous>, transform_indices = @transform_2, window_bounds = array<i64: 1, 128>}, {transform_indices = @transform_3, window_bounds = array<i64: 1, 1, 8, 128>}, {transform_indices = @transform_4, window_bounds = array<i64: 1, 1, 2, 128>}]} {
    %c0_i32 = arith.constant 0 : i32
    %0 = arith.cmpi eq, %arg2, %c0_i32 : i32
    %1 = arith.extui %0 : i1 to i32
    %c0_i32_0 = arith.constant 0 : i32
    %2 = arith.cmpi ne, %1, %c0_i32_0 : i32
    scf.if %2 {
      %cst_20 = arith.constant 0.000000e+00 : f32
      %26 = vector.broadcast %cst_20 : f32 to vector<8x128xf32>
      %c0_21 = arith.constant 0 : index
      %c0_22 = arith.constant 0 : index
      %27 = vector.load %arg8[%c0_21, %c0_22] : memref<8x128xf32, #tpu.memory_space<vmem>>, vector<8x128xf32>
      tpu.vector_store %arg8[%c0_21, %c0_22], %26 {strides = array<i32>} : memref<8x128xf32, #tpu.memory_space<vmem>>, vector<8x128xf32>,
    } else {
    }
    %c0 = arith.constant 0 : index
    %c0_1 = arith.constant 0 : index
    %3 = vector.load %arg8[%c0, %c0_1] : memref<8x128xf32, #tpu.memory_space<vmem>>, vector<8x128xf32>
    %c0_2 = arith.constant 0 : index
    %c0_3 = arith.constant 0 : index
    %c0_4 = arith.constant 0 : index
    %c0_5 = arith.constant 0 : index
    %4 = vector.load %arg3[%c0_2, %c0_3, %c0_4, %c0_5] : memref<1x1x9x256xbf16, #tpu.memory_space<vmem>>, vector<1x1x8x256xbf16>
    %5 = vector.shape_cast %4 : vector<1x1x8x256xbf16> to vector<8x256xbf16>
    %c2_i32 = arith.constant 2 : i32
    %6 = arith.muli %arg2, %c2_i32 : i32
    %c0_i32_6 = arith.constant 0 : i32
    %7 = arith.addi %6, %c0_i32_6 : i32
    %8 = arith.index_cast %7 : i32 to index
    %c0_7 = arith.constant 0 : index
    %c0_8 = arith.constant 0 : index
    %9 = vector.load %arg4[%8, %c0_7, %c0_8] : memref<4x256x128xbf16, #tpu.memory_space<vmem>>, vector<1x256x128xbf16>
    %10 = vector.shape_cast %9 : vector<1x256x128xbf16> to vector<256x128xbf16>
    %cst = arith.constant dense<0.000000e+00> : vector<8x128xf32>
    %11 = tpu.matmul %5, %10, %cst {dimension_numbers = #tpu.dot_dimension_numbers<[1], [0], [0], [1], [0, 0, 1, 1], [], []>} : vector<8x256xbf16>, vector<256x128xbf16>, vector<8x128xf32> -> vector<8x128xf32>
    %12 = arith.addf %3, %11 : vector<8x128xf32>
    %c0_9 = arith.constant 0 : index
    %c0_10 = arith.constant 0 : index
    %c1 = arith.constant 1 : index
    %c0_11 = arith.constant 0 : index
    %13 = vector.load %arg3[%c0_9, %c0_10, %c1, %c0_11] : memref<1x1x9x256xbf16, #tpu.memory_space<vmem>>, vector<1x1x8x256xbf16>
    %14 = vector.shape_cast %13 : vector<1x1x8x256xbf16> to vector<8x256xbf16>
    %c2_i32_12 = arith.constant 2 : i32
    %15 = arith.muli %arg2, %c2_i32_12 : i32
    %c1_i32 = arith.constant 1 : i32
    %16 = arith.addi %15, %c1_i32 : i32
    %17 = arith.index_cast %16 : i32 to index
    %c0_13 = arith.constant 0 : index
    %c0_14 = arith.constant 0 : index
    %18 = vector.load %arg4[%17, %c0_13, %c0_14] : memref<4x256x128xbf16, #tpu.memory_space<vmem>>, vector<1x256x128xbf16>
    %19 = vector.shape_cast %18 : vector<1x256x128xbf16> to vector<256x128xbf16>
    %cst_15 = arith.constant dense<0.000000e+00> : vector<8x128xf32>
    %20 = tpu.matmul %14, %19, %cst_15 {dimension_numbers = #tpu.dot_dimension_numbers<[1], [0], [0], [1], [0, 0, 1, 1], [], []>} : vector<8x256xbf16>, vector<256x128xbf16>, vector<8x128xf32> -> vector<8x128xf32>
    %21 = arith.addf %12, %20 : vector<8x128xf32>
    %c0_16 = arith.constant 0 : index
    %c0_17 = arith.constant 0 : index
    %22 = vector.load %arg8[%c0_16, %c0_17] : memref<8x128xf32, #tpu.memory_space<vmem>>, vector<8x128xf32>
    tpu.vector_store %arg8[%c0_16, %c0_17], %21 {strides = array<i32>} : memref<8x128xf32, #tpu.memory_space<vmem>>, vector<8x128xf32>,
    %c1_i32_18 = arith.constant 1 : i32
    %23 = arith.cmpi eq, %arg2, %c1_i32_18 : i32
    %24 = arith.extui %23 : i1 to i32
    %c0_i32_19 = arith.constant 0 : i32
    %25 = arith.cmpi ne, %24, %c0_i32_19 : i32
    scf.if %25 {
      %c0_20 = arith.constant 0 : index
      %c0_21 = arith.constant 0 : index
      %26 = vector.load %arg8[%c0_20, %c0_21] : memref<8x128xf32, #tpu.memory_space<vmem>>, vector<8x128xf32>
      %c0_22 = arith.constant 0 : index
      %c0_23 = arith.constant 0 : index
      %27 = vector.load %arg5[%c0_22, %c0_23] : memref<1x128xf32, #tpu.memory_space<vmem>>, vector<1x128xf32>
      %28 = vector.broadcast %27 : vector<1x128xf32> to vector<8x128xf32>
      %29 = arith.addf %26, %28 : vector<8x128xf32>
      %cst_24 = arith.constant dense<0.000000e+00> : vector<128xf32>
      %30 = vector.multi_reduction <add>, %29, %cst_24 [0] : vector<8x128xf32> to vector<128xf32>
      %31 = vector.shape_cast %30 : vector<128xf32> to vector<1x128xf32>
      %c0_25 = arith.constant 0 : index
      %c0_26 = arith.constant 0 : index
      %c0_27 = arith.constant 0 : index
      %c0_28 = arith.constant 0 : index
      %32 = vector.load %arg7[%c0_25, %c0_26, %c0_27, %c0_28] : memref<1x1x2x128xf32, #tpu.memory_space<vmem>>, vector<1x1x1x128xf32>
      %33 = vector.shape_cast %32 : vector<1x1x1x128xf32> to vector<1x128xf32>
      %34 = vector.shape_cast %31 : vector<1x128xf32> to vector<1x1x1x128xf32>
      tpu.vector_store %arg7[%c0_25, %c0_26, %c0_27, %c0_28], %34 {strides = array<i32>} : memref<1x1x2x128xf32, #tpu.memory_space<vmem>>, vector<1x1x1x128xf32>,
      %35 = arith.mulf %29, %29 : vector<8x128xf32>
      %cst_29 = arith.constant dense<0.000000e+00> : vector<128xf32>
      %36 = vector.multi_reduction <add>, %35, %cst_29 [0] : vector<8x128xf32> to vector<128xf32>
      %37 = vector.shape_cast %36 : vector<128xf32> to vector<1x128xf32>
      %c0_30 = arith.constant 0 : index
      %c0_31 = arith.constant 0 : index
      %c1_32 = arith.constant 1 : index
      %c0_33 = arith.constant 0 : index
      %38 = vector.load %arg7[%c0_30, %c0_31, %c1_32, %c0_33] : memref<1x1x2x128xf32, #tpu.memory_space<vmem>>, vector<1x1x1x128xf32>
      %39 = vector.shape_cast %38 : vector<1x1x1x128xf32> to vector<1x128xf32>
      %40 = vector.shape_cast %37 : vector<1x128xf32> to vector<1x1x1x128xf32>
      tpu.vector_store %arg7[%c0_30, %c0_31, %c1_32, %c0_33], %40 {strides = array<i32>} : memref<1x1x2x128xf32, #tpu.memory_space<vmem>>, vector<1x1x1x128xf32>,
      %41 = arith.truncf %29 : vector<8x128xf32> to vector<8x128xbf16>
      %c0_34 = arith.constant 0 : index
      %c0_35 = arith.constant 0 : index
      %c0_36 = arith.constant 0 : index
      %c0_37 = arith.constant 0 : index
      %42 = vector.load %arg6[%c0_34, %c0_35, %c0_36, %c0_37] : memref<1x1x8x128xbf16, #tpu.memory_space<vmem>>, vector<1x1x8x128xbf16>
      %43 = vector.shape_cast %42 : vector<1x1x8x128xbf16> to vector<8x128xbf16>
      %44 = vector.shape_cast %41 : vector<8x128xbf16> to vector<1x1x8x128xbf16>
      tpu.vector_store %arg6[%c0_34, %c0_35, %c0_36, %c0_37], %44 {strides = array<i32>} : memref<1x1x8x128xbf16, #tpu.memory_space<vmem>>, vector<1x1x8x128xbf16>,
    } else {
    }
    return
  }
  func.func @transform_0(%arg0: i32, %arg1: i32, %arg2: i32) -> (i32, i32, i32, i32) {
    %0 = arith.addi %arg1, %arg2 : i32
    %c0_i32 = arith.constant 0 : i32
    %c0_i32_0 = arith.constant 0 : i32
    %c0_i32_1 = arith.constant 0 : i32
    return %arg0, %0, %c0_i32, %c0_i32_0 : i32, i32, i32, i32
  }
  func.func @transform_1(%arg0: i32, %arg1: i32, %arg2: i32) -> (i32, i32, i32) {
    %c0_i32 = arith.constant 0 : i32
    %c0_i32_0 = arith.constant 0 : i32
    %c0_i32_1 = arith.constant 0 : i32
    %c0_i32_2 = arith.constant 0 : i32
    return %c0_i32, %c0_i32_0, %c0_i32_1 : i32, i32, i32
  }
  func.func @transform_2(%arg0: i32, %arg1: i32, %arg2: i32) -> (i32, i32) {
    %c0_i32 = arith.constant 0 : i32
    %c0_i32_0 = arith.constant 0 : i32
    %c0_i32_1 = arith.constant 0 : i32
    return %c0_i32, %c0_i32_0 : i32, i32
  }
  func.func @transform_3(%arg0: i32, %arg1: i32, %arg2: i32) -> (i32, i32, i32, i32) {
    %c0_i32 = arith.constant 0 : i32
    %c0_i32_0 = arith.constant 0 : i32
    %c0_i32_1 = arith.constant 0 : i32
    return %arg0, %arg1, %c0_i32, %c0_i32_0 : i32, i32, i32, i32
  }
  func.func @transform_4(%arg0: i32, %arg1: i32, %arg2: i32) -> (i32, i32, i32, i32) {
    %c0_i32 = arith.constant 0 : i32
    %c0_i32_0 = arith.constant 0 : i32
    %c0_i32_1 = arith.constant 0 : i32
    return %arg0, %arg1, %c0_i32, %c0_i32_0 : i32, i32, i32, i32
  }
}

module attributes {stable_mosaic.version = 11 : i64} {
  func.func @_conv_row_kernel(%arg0: i32, %arg1: i32, %arg2: i32, %arg3: memref<1x1x10x128xbf16, #tpu.memory_space<vmem>>, %arg4: memref<9x128x128xbf16, #tpu.memory_space<vmem>>, %arg5: memref<1x128xf32, #tpu.memory_space<vmem>>, %arg6: memref<1x1x8x128xbf16, #tpu.memory_space<vmem>>, %arg7: memref<1x1x2x128xf32, #tpu.memory_space<vmem>>, %arg8: memref<8x128xf32, #tpu.memory_space<vmem>>) attributes {dimension_semantics = [#tpu.dimension_semantics<parallel>, #tpu.dimension_semantics<parallel>, #tpu.dimension_semantics<arbitrary>], iteration_bounds = array<i64: 2, 8, 3>, scalar_prefetch = 0 : i64, scratch_operands = 1 : i64, tpu.core_type = #tpu.core_type<tc>, window_params = [{transform_indices = @transform_0, window_bounds = array<i64: 1, 1, 10, 128>}, {pipeline_mode = #tpu.pipeline_mode<synchronous>, transform_indices = @transform_1, window_bounds = array<i64: 9, 128, 128>}, {pipeline_mode = #tpu.pipeline_mode<synchronous>, transform_indices = @transform_2, window_bounds = array<i64: 1, 128>}, {transform_indices = @transform_3, window_bounds = array<i64: 1, 1, 8, 128>}, {transform_indices = @transform_4, window_bounds = array<i64: 1, 1, 2, 128>}]} {
    %c0_i32 = arith.constant 0 : i32
    %0 = arith.cmpi eq, %arg2, %c0_i32 : i32
    %1 = arith.extui %0 : i1 to i32
    %c0_i32_0 = arith.constant 0 : i32
    %2 = arith.cmpi ne, %1, %c0_i32_0 : i32
    scf.if %2 {
      %cst_27 = arith.constant 0.000000e+00 : f32
      %35 = vector.broadcast %cst_27 : f32 to vector<8x128xf32>
      %c0_28 = arith.constant 0 : index
      %c0_29 = arith.constant 0 : index
      %36 = vector.load %arg8[%c0_28, %c0_29] : memref<8x128xf32, #tpu.memory_space<vmem>>, vector<8x128xf32>
      tpu.vector_store %arg8[%c0_28, %c0_29], %35 {strides = array<i32>} : memref<8x128xf32, #tpu.memory_space<vmem>>, vector<8x128xf32>,
    } else {
    }
    %c0 = arith.constant 0 : index
    %c0_1 = arith.constant 0 : index
    %3 = vector.load %arg8[%c0, %c0_1] : memref<8x128xf32, #tpu.memory_space<vmem>>, vector<8x128xf32>
    %c0_2 = arith.constant 0 : index
    %c0_3 = arith.constant 0 : index
    %c0_4 = arith.constant 0 : index
    %c0_5 = arith.constant 0 : index
    %4 = vector.load %arg3[%c0_2, %c0_3, %c0_4, %c0_5] : memref<1x1x10x128xbf16, #tpu.memory_space<vmem>>, vector<1x1x8x128xbf16>
    %5 = vector.shape_cast %4 : vector<1x1x8x128xbf16> to vector<8x128xbf16>
    %c3_i32 = arith.constant 3 : i32
    %6 = arith.muli %arg2, %c3_i32 : i32
    %c0_i32_6 = arith.constant 0 : i32
    %7 = arith.addi %6, %c0_i32_6 : i32
    %8 = arith.index_cast %7 : i32 to index
    %c0_7 = arith.constant 0 : index
    %c0_8 = arith.constant 0 : index
    %9 = vector.load %arg4[%8, %c0_7, %c0_8] : memref<9x128x128xbf16, #tpu.memory_space<vmem>>, vector<1x128x128xbf16>
    %10 = vector.shape_cast %9 : vector<1x128x128xbf16> to vector<128x128xbf16>
    %cst = arith.constant dense<0.000000e+00> : vector<8x128xf32>
    %11 = tpu.matmul %5, %10, %cst {dimension_numbers = #tpu.dot_dimension_numbers<[1], [0], [0], [1], [0, 0, 1, 1], [], []>} : vector<8x128xbf16>, vector<128x128xbf16>, vector<8x128xf32> -> vector<8x128xf32>
    %12 = arith.addf %3, %11 : vector<8x128xf32>
    %c0_9 = arith.constant 0 : index
    %c0_10 = arith.constant 0 : index
    %c1 = arith.constant 1 : index
    %c0_11 = arith.constant 0 : index
    %13 = vector.load %arg3[%c0_9, %c0_10, %c1, %c0_11] : memref<1x1x10x128xbf16, #tpu.memory_space<vmem>>, vector<1x1x8x128xbf16>
    %14 = vector.shape_cast %13 : vector<1x1x8x128xbf16> to vector<8x128xbf16>
    %c3_i32_12 = arith.constant 3 : i32
    %15 = arith.muli %arg2, %c3_i32_12 : i32
    %c1_i32 = arith.constant 1 : i32
    %16 = arith.addi %15, %c1_i32 : i32
    %17 = arith.index_cast %16 : i32 to index
    %c0_13 = arith.constant 0 : index
    %c0_14 = arith.constant 0 : index
    %18 = vector.load %arg4[%17, %c0_13, %c0_14] : memref<9x128x128xbf16, #tpu.memory_space<vmem>>, vector<1x128x128xbf16>
    %19 = vector.shape_cast %18 : vector<1x128x128xbf16> to vector<128x128xbf16>
    %cst_15 = arith.constant dense<0.000000e+00> : vector<8x128xf32>
    %20 = tpu.matmul %14, %19, %cst_15 {dimension_numbers = #tpu.dot_dimension_numbers<[1], [0], [0], [1], [0, 0, 1, 1], [], []>} : vector<8x128xbf16>, vector<128x128xbf16>, vector<8x128xf32> -> vector<8x128xf32>
    %21 = arith.addf %12, %20 : vector<8x128xf32>
    %c0_16 = arith.constant 0 : index
    %c0_17 = arith.constant 0 : index
    %c2 = arith.constant 2 : index
    %c0_18 = arith.constant 0 : index
    %22 = vector.load %arg3[%c0_16, %c0_17, %c2, %c0_18] : memref<1x1x10x128xbf16, #tpu.memory_space<vmem>>, vector<1x1x8x128xbf16>
    %23 = vector.shape_cast %22 : vector<1x1x8x128xbf16> to vector<8x128xbf16>
    %c3_i32_19 = arith.constant 3 : i32
    %24 = arith.muli %arg2, %c3_i32_19 : i32
    %c2_i32 = arith.constant 2 : i32
    %25 = arith.addi %24, %c2_i32 : i32
    %26 = arith.index_cast %25 : i32 to index
    %c0_20 = arith.constant 0 : index
    %c0_21 = arith.constant 0 : index
    %27 = vector.load %arg4[%26, %c0_20, %c0_21] : memref<9x128x128xbf16, #tpu.memory_space<vmem>>, vector<1x128x128xbf16>
    %28 = vector.shape_cast %27 : vector<1x128x128xbf16> to vector<128x128xbf16>
    %cst_22 = arith.constant dense<0.000000e+00> : vector<8x128xf32>
    %29 = tpu.matmul %23, %28, %cst_22 {dimension_numbers = #tpu.dot_dimension_numbers<[1], [0], [0], [1], [0, 0, 1, 1], [], []>} : vector<8x128xbf16>, vector<128x128xbf16>, vector<8x128xf32> -> vector<8x128xf32>
    %30 = arith.addf %21, %29 : vector<8x128xf32>
    %c0_23 = arith.constant 0 : index
    %c0_24 = arith.constant 0 : index
    %31 = vector.load %arg8[%c0_23, %c0_24] : memref<8x128xf32, #tpu.memory_space<vmem>>, vector<8x128xf32>
    tpu.vector_store %arg8[%c0_23, %c0_24], %30 {strides = array<i32>} : memref<8x128xf32, #tpu.memory_space<vmem>>, vector<8x128xf32>,
    %c2_i32_25 = arith.constant 2 : i32
    %32 = arith.cmpi eq, %arg2, %c2_i32_25 : i32
    %33 = arith.extui %32 : i1 to i32
    %c0_i32_26 = arith.constant 0 : i32
    %34 = arith.cmpi ne, %33, %c0_i32_26 : i32
    scf.if %34 {
      %c0_27 = arith.constant 0 : index
      %c0_28 = arith.constant 0 : index
      %35 = vector.load %arg8[%c0_27, %c0_28] : memref<8x128xf32, #tpu.memory_space<vmem>>, vector<8x128xf32>
      %c0_29 = arith.constant 0 : index
      %c0_30 = arith.constant 0 : index
      %36 = vector.load %arg5[%c0_29, %c0_30] : memref<1x128xf32, #tpu.memory_space<vmem>>, vector<1x128xf32>
      %37 = vector.broadcast %36 : vector<1x128xf32> to vector<8x128xf32>
      %38 = arith.addf %35, %37 : vector<8x128xf32>
      %cst_31 = arith.constant dense<0.000000e+00> : vector<128xf32>
      %39 = vector.multi_reduction <add>, %38, %cst_31 [0] : vector<8x128xf32> to vector<128xf32>
      %40 = vector.shape_cast %39 : vector<128xf32> to vector<1x128xf32>
      %c0_32 = arith.constant 0 : index
      %c0_33 = arith.constant 0 : index
      %c0_34 = arith.constant 0 : index
      %c0_35 = arith.constant 0 : index
      %41 = vector.load %arg7[%c0_32, %c0_33, %c0_34, %c0_35] : memref<1x1x2x128xf32, #tpu.memory_space<vmem>>, vector<1x1x1x128xf32>
      %42 = vector.shape_cast %41 : vector<1x1x1x128xf32> to vector<1x128xf32>
      %43 = vector.shape_cast %40 : vector<1x128xf32> to vector<1x1x1x128xf32>
      tpu.vector_store %arg7[%c0_32, %c0_33, %c0_34, %c0_35], %43 {strides = array<i32>} : memref<1x1x2x128xf32, #tpu.memory_space<vmem>>, vector<1x1x1x128xf32>,
      %44 = arith.mulf %38, %38 : vector<8x128xf32>
      %cst_36 = arith.constant dense<0.000000e+00> : vector<128xf32>
      %45 = vector.multi_reduction <add>, %44, %cst_36 [0] : vector<8x128xf32> to vector<128xf32>
      %46 = vector.shape_cast %45 : vector<128xf32> to vector<1x128xf32>
      %c0_37 = arith.constant 0 : index
      %c0_38 = arith.constant 0 : index
      %c1_39 = arith.constant 1 : index
      %c0_40 = arith.constant 0 : index
      %47 = vector.load %arg7[%c0_37, %c0_38, %c1_39, %c0_40] : memref<1x1x2x128xf32, #tpu.memory_space<vmem>>, vector<1x1x1x128xf32>
      %48 = vector.shape_cast %47 : vector<1x1x1x128xf32> to vector<1x128xf32>
      %49 = vector.shape_cast %46 : vector<1x128xf32> to vector<1x1x1x128xf32>
      tpu.vector_store %arg7[%c0_37, %c0_38, %c1_39, %c0_40], %49 {strides = array<i32>} : memref<1x1x2x128xf32, #tpu.memory_space<vmem>>, vector<1x1x1x128xf32>,
      %50 = arith.truncf %38 : vector<8x128xf32> to vector<8x128xbf16>
      %c0_41 = arith.constant 0 : index
      %c0_42 = arith.constant 0 : index
      %c0_43 = arith.constant 0 : index
      %c0_44 = arith.constant 0 : index
      %51 = vector.load %arg6[%c0_41, %c0_42, %c0_43, %c0_44] : memref<1x1x8x128xbf16, #tpu.memory_space<vmem>>, vector<1x1x8x128xbf16>
      %52 = vector.shape_cast %51 : vector<1x1x8x128xbf16> to vector<8x128xbf16>
      %53 = vector.shape_cast %50 : vector<8x128xbf16> to vector<1x1x8x128xbf16>
      tpu.vector_store %arg6[%c0_41, %c0_42, %c0_43, %c0_44], %53 {strides = array<i32>} : memref<1x1x8x128xbf16, #tpu.memory_space<vmem>>, vector<1x1x8x128xbf16>,
    } else {
    }
    return
  }
  func.func @transform_0(%arg0: i32, %arg1: i32, %arg2: i32) -> (i32, i32, i32, i32) {
    %0 = arith.addi %arg1, %arg2 : i32
    %c0_i32 = arith.constant 0 : i32
    %c0_i32_0 = arith.constant 0 : i32
    %c0_i32_1 = arith.constant 0 : i32
    return %arg0, %0, %c0_i32, %c0_i32_0 : i32, i32, i32, i32
  }
  func.func @transform_1(%arg0: i32, %arg1: i32, %arg2: i32) -> (i32, i32, i32) {
    %c0_i32 = arith.constant 0 : i32
    %c0_i32_0 = arith.constant 0 : i32
    %c0_i32_1 = arith.constant 0 : i32
    %c0_i32_2 = arith.constant 0 : i32
    return %c0_i32, %c0_i32_0, %c0_i32_1 : i32, i32, i32
  }
  func.func @transform_2(%arg0: i32, %arg1: i32, %arg2: i32) -> (i32, i32) {
    %c0_i32 = arith.constant 0 : i32
    %c0_i32_0 = arith.constant 0 : i32
    %c0_i32_1 = arith.constant 0 : i32
    return %c0_i32, %c0_i32_0 : i32, i32
  }
  func.func @transform_3(%arg0: i32, %arg1: i32, %arg2: i32) -> (i32, i32, i32, i32) {
    %c0_i32 = arith.constant 0 : i32
    %c0_i32_0 = arith.constant 0 : i32
    %c0_i32_1 = arith.constant 0 : i32
    return %arg0, %arg1, %c0_i32, %c0_i32_0 : i32, i32, i32, i32
  }
  func.func @transform_4(%arg0: i32, %arg1: i32, %arg2: i32) -> (i32, i32, i32, i32) {
    %c0_i32 = arith.constant 0 : i32
    %c0_i32_0 = arith.constant 0 : i32
    %c0_i32_1 = arith.constant 0 : i32
    return %arg0, %arg1, %c0_i32, %c0_i32_0 : i32, i32, i32, i32
  }
}

module attributes {stable_mosaic.version = 11 : i64} {
  func.func @_bn_relu_kernel(%arg0: i32, %arg1: memref<128x128xbf16, #tpu.memory_space<vmem>>, %arg2: memref<1x128xf32, #tpu.memory_space<vmem>>, %arg3: memref<1x128xf32, #tpu.memory_space<vmem>>, %arg4: memref<128x128xbf16, #tpu.memory_space<vmem>>) attributes {dimension_semantics = [#tpu.dimension_semantics<parallel>], iteration_bounds = array<i64: 1>, scalar_prefetch = 0 : i64, scratch_operands = 0 : i64, tpu.core_type = #tpu.core_type<tc>, window_params = [{transform_indices = @transform_0, window_bounds = array<i64: 128, 128>}, {pipeline_mode = #tpu.pipeline_mode<synchronous>, transform_indices = @transform_1, window_bounds = array<i64: 1, 128>}, {pipeline_mode = #tpu.pipeline_mode<synchronous>, transform_indices = @transform_2, window_bounds = array<i64: 1, 128>}, {transform_indices = @transform_3, window_bounds = array<i64: 128, 128>}]} {
    %c0 = arith.constant 0 : index
    %c0_0 = arith.constant 0 : index
    %0 = vector.load %arg1[%c0, %c0_0] : memref<128x128xbf16, #tpu.memory_space<vmem>>, vector<128x128xbf16>
    %1 = arith.extf %0 : vector<128x128xbf16> to vector<128x128xf32>
    %c0_1 = arith.constant 0 : index
    %c0_2 = arith.constant 0 : index
    %2 = vector.load %arg2[%c0_1, %c0_2] : memref<1x128xf32, #tpu.memory_space<vmem>>, vector<1x128xf32>
    %3 = vector.broadcast %2 : vector<1x128xf32> to vector<128x128xf32>
    %4 = arith.mulf %1, %3 : vector<128x128xf32>
    %c0_3 = arith.constant 0 : index
    %c0_4 = arith.constant 0 : index
    %5 = vector.load %arg3[%c0_3, %c0_4] : memref<1x128xf32, #tpu.memory_space<vmem>>, vector<1x128xf32>
    %6 = vector.broadcast %5 : vector<1x128xf32> to vector<128x128xf32>
    %7 = arith.addf %4, %6 : vector<128x128xf32>
    %cst = arith.constant 0.000000e+00 : f32
    %8 = vector.broadcast %cst : f32 to vector<128x128xf32>
    %9 = arith.maximumf %7, %8 : vector<128x128xf32>
    %10 = arith.truncf %9 : vector<128x128xf32> to vector<128x128xbf16>
    %c0_5 = arith.constant 0 : index
    %c0_6 = arith.constant 0 : index
    %11 = vector.load %arg4[%c0_5, %c0_6] : memref<128x128xbf16, #tpu.memory_space<vmem>>, vector<128x128xbf16>
    tpu.vector_store %arg4[%c0_5, %c0_6], %10 {strides = array<i32>} : memref<128x128xbf16, #tpu.memory_space<vmem>>, vector<128x128xbf16>,
    return
  }
  func.func @transform_0(%arg0: i32) -> (i32, i32) {
    %c0_i32 = arith.constant 0 : i32
    %c0_i32_0 = arith.constant 0 : i32
    return %arg0, %c0_i32 : i32, i32
  }
  func.func @transform_1(%arg0: i32) -> (i32, i32) {
    %c0_i32 = arith.constant 0 : i32
    %c0_i32_0 = arith.constant 0 : i32
    %c0_i32_1 = arith.constant 0 : i32
    return %c0_i32, %c0_i32_0 : i32, i32
  }
  func.func @transform_2(%arg0: i32) -> (i32, i32) {
    %c0_i32 = arith.constant 0 : i32
    %c0_i32_0 = arith.constant 0 : i32
    %c0_i32_1 = arith.constant 0 : i32
    return %c0_i32, %c0_i32_0 : i32, i32
  }
  func.func @transform_3(%arg0: i32) -> (i32, i32) {
    %c0_i32 = arith.constant 0 : i32
    %c0_i32_0 = arith.constant 0 : i32
    return %arg0, %c0_i32 : i32, i32
  }
}

module attributes {stable_mosaic.version = 11 : i64} {
  func.func @_conv_row_kernel(%arg0: i32, %arg1: i32, %arg2: i32, %arg3: memref<1x1x5x512xbf16, #tpu.memory_space<vmem>>, %arg4: memref<4x512x256xbf16, #tpu.memory_space<vmem>>, %arg5: memref<1x256xf32, #tpu.memory_space<vmem>>, %arg6: memref<1x1x4x256xbf16, #tpu.memory_space<vmem>>, %arg7: memref<1x1x2x256xf32, #tpu.memory_space<vmem>>, %arg8: memref<4x256xf32, #tpu.memory_space<vmem>>) attributes {dimension_semantics = [#tpu.dimension_semantics<parallel>, #tpu.dimension_semantics<parallel>, #tpu.dimension_semantics<arbitrary>], iteration_bounds = array<i64: 2, 4, 2>, scalar_prefetch = 0 : i64, scratch_operands = 1 : i64, tpu.core_type = #tpu.core_type<tc>, window_params = [{transform_indices = @transform_0, window_bounds = array<i64: 1, 1, 5, 512>}, {pipeline_mode = #tpu.pipeline_mode<synchronous>, transform_indices = @transform_1, window_bounds = array<i64: 4, 512, 256>}, {pipeline_mode = #tpu.pipeline_mode<synchronous>, transform_indices = @transform_2, window_bounds = array<i64: 1, 256>}, {transform_indices = @transform_3, window_bounds = array<i64: 1, 1, 4, 256>}, {transform_indices = @transform_4, window_bounds = array<i64: 1, 1, 2, 256>}]} {
    %c0_i32 = arith.constant 0 : i32
    %0 = arith.cmpi eq, %arg2, %c0_i32 : i32
    %1 = arith.extui %0 : i1 to i32
    %c0_i32_0 = arith.constant 0 : i32
    %2 = arith.cmpi ne, %1, %c0_i32_0 : i32
    scf.if %2 {
      %cst_20 = arith.constant 0.000000e+00 : f32
      %26 = vector.broadcast %cst_20 : f32 to vector<4x256xf32>
      %c0_21 = arith.constant 0 : index
      %c0_22 = arith.constant 0 : index
      %27 = vector.load %arg8[%c0_21, %c0_22] : memref<4x256xf32, #tpu.memory_space<vmem>>, vector<4x256xf32>
      tpu.vector_store %arg8[%c0_21, %c0_22], %26 {strides = array<i32>} : memref<4x256xf32, #tpu.memory_space<vmem>>, vector<4x256xf32>,
    } else {
    }
    %c0 = arith.constant 0 : index
    %c0_1 = arith.constant 0 : index
    %3 = vector.load %arg8[%c0, %c0_1] : memref<4x256xf32, #tpu.memory_space<vmem>>, vector<4x256xf32>
    %c0_2 = arith.constant 0 : index
    %c0_3 = arith.constant 0 : index
    %c0_4 = arith.constant 0 : index
    %c0_5 = arith.constant 0 : index
    %4 = vector.load %arg3[%c0_2, %c0_3, %c0_4, %c0_5] : memref<1x1x5x512xbf16, #tpu.memory_space<vmem>>, vector<1x1x4x512xbf16>
    %5 = vector.shape_cast %4 : vector<1x1x4x512xbf16> to vector<4x512xbf16>
    %c2_i32 = arith.constant 2 : i32
    %6 = arith.muli %arg2, %c2_i32 : i32
    %c0_i32_6 = arith.constant 0 : i32
    %7 = arith.addi %6, %c0_i32_6 : i32
    %8 = arith.index_cast %7 : i32 to index
    %c0_7 = arith.constant 0 : index
    %c0_8 = arith.constant 0 : index
    %9 = vector.load %arg4[%8, %c0_7, %c0_8] : memref<4x512x256xbf16, #tpu.memory_space<vmem>>, vector<1x512x256xbf16>
    %10 = vector.shape_cast %9 : vector<1x512x256xbf16> to vector<512x256xbf16>
    %cst = arith.constant dense<0.000000e+00> : vector<4x256xf32>
    %11 = tpu.matmul %5, %10, %cst {dimension_numbers = #tpu.dot_dimension_numbers<[1], [0], [0], [1], [0, 0, 1, 1], [], []>} : vector<4x512xbf16>, vector<512x256xbf16>, vector<4x256xf32> -> vector<4x256xf32>
    %12 = arith.addf %3, %11 : vector<4x256xf32>
    %c0_9 = arith.constant 0 : index
    %c0_10 = arith.constant 0 : index
    %c1 = arith.constant 1 : index
    %c0_11 = arith.constant 0 : index
    %13 = vector.load %arg3[%c0_9, %c0_10, %c1, %c0_11] : memref<1x1x5x512xbf16, #tpu.memory_space<vmem>>, vector<1x1x4x512xbf16>
    %14 = vector.shape_cast %13 : vector<1x1x4x512xbf16> to vector<4x512xbf16>
    %c2_i32_12 = arith.constant 2 : i32
    %15 = arith.muli %arg2, %c2_i32_12 : i32
    %c1_i32 = arith.constant 1 : i32
    %16 = arith.addi %15, %c1_i32 : i32
    %17 = arith.index_cast %16 : i32 to index
    %c0_13 = arith.constant 0 : index
    %c0_14 = arith.constant 0 : index
    %18 = vector.load %arg4[%17, %c0_13, %c0_14] : memref<4x512x256xbf16, #tpu.memory_space<vmem>>, vector<1x512x256xbf16>
    %19 = vector.shape_cast %18 : vector<1x512x256xbf16> to vector<512x256xbf16>
    %cst_15 = arith.constant dense<0.000000e+00> : vector<4x256xf32>
    %20 = tpu.matmul %14, %19, %cst_15 {dimension_numbers = #tpu.dot_dimension_numbers<[1], [0], [0], [1], [0, 0, 1, 1], [], []>} : vector<4x512xbf16>, vector<512x256xbf16>, vector<4x256xf32> -> vector<4x256xf32>
    %21 = arith.addf %12, %20 : vector<4x256xf32>
    %c0_16 = arith.constant 0 : index
    %c0_17 = arith.constant 0 : index
    %22 = vector.load %arg8[%c0_16, %c0_17] : memref<4x256xf32, #tpu.memory_space<vmem>>, vector<4x256xf32>
    tpu.vector_store %arg8[%c0_16, %c0_17], %21 {strides = array<i32>} : memref<4x256xf32, #tpu.memory_space<vmem>>, vector<4x256xf32>,
    %c1_i32_18 = arith.constant 1 : i32
    %23 = arith.cmpi eq, %arg2, %c1_i32_18 : i32
    %24 = arith.extui %23 : i1 to i32
    %c0_i32_19 = arith.constant 0 : i32
    %25 = arith.cmpi ne, %24, %c0_i32_19 : i32
    scf.if %25 {
      %c0_20 = arith.constant 0 : index
      %c0_21 = arith.constant 0 : index
      %26 = vector.load %arg8[%c0_20, %c0_21] : memref<4x256xf32, #tpu.memory_space<vmem>>, vector<4x256xf32>
      %c0_22 = arith.constant 0 : index
      %c0_23 = arith.constant 0 : index
      %27 = vector.load %arg5[%c0_22, %c0_23] : memref<1x256xf32, #tpu.memory_space<vmem>>, vector<1x256xf32>
      %28 = vector.broadcast %27 : vector<1x256xf32> to vector<4x256xf32>
      %29 = arith.addf %26, %28 : vector<4x256xf32>
      %cst_24 = arith.constant dense<0.000000e+00> : vector<256xf32>
      %30 = vector.multi_reduction <add>, %29, %cst_24 [0] : vector<4x256xf32> to vector<256xf32>
      %31 = vector.shape_cast %30 : vector<256xf32> to vector<1x256xf32>
      %c0_25 = arith.constant 0 : index
      %c0_26 = arith.constant 0 : index
      %c0_27 = arith.constant 0 : index
      %c0_28 = arith.constant 0 : index
      %32 = vector.load %arg7[%c0_25, %c0_26, %c0_27, %c0_28] : memref<1x1x2x256xf32, #tpu.memory_space<vmem>>, vector<1x1x1x256xf32>
      %33 = vector.shape_cast %32 : vector<1x1x1x256xf32> to vector<1x256xf32>
      %34 = vector.shape_cast %31 : vector<1x256xf32> to vector<1x1x1x256xf32>
      tpu.vector_store %arg7[%c0_25, %c0_26, %c0_27, %c0_28], %34 {strides = array<i32>} : memref<1x1x2x256xf32, #tpu.memory_space<vmem>>, vector<1x1x1x256xf32>,
      %35 = arith.mulf %29, %29 : vector<4x256xf32>
      %cst_29 = arith.constant dense<0.000000e+00> : vector<256xf32>
      %36 = vector.multi_reduction <add>, %35, %cst_29 [0] : vector<4x256xf32> to vector<256xf32>
      %37 = vector.shape_cast %36 : vector<256xf32> to vector<1x256xf32>
      %c0_30 = arith.constant 0 : index
      %c0_31 = arith.constant 0 : index
      %c1_32 = arith.constant 1 : index
      %c0_33 = arith.constant 0 : index
      %38 = vector.load %arg7[%c0_30, %c0_31, %c1_32, %c0_33] : memref<1x1x2x256xf32, #tpu.memory_space<vmem>>, vector<1x1x1x256xf32>
      %39 = vector.shape_cast %38 : vector<1x1x1x256xf32> to vector<1x256xf32>
      %40 = vector.shape_cast %37 : vector<1x256xf32> to vector<1x1x1x256xf32>
      tpu.vector_store %arg7[%c0_30, %c0_31, %c1_32, %c0_33], %40 {strides = array<i32>} : memref<1x1x2x256xf32, #tpu.memory_space<vmem>>, vector<1x1x1x256xf32>,
      %41 = arith.truncf %29 : vector<4x256xf32> to vector<4x256xbf16>
      %c0_34 = arith.constant 0 : index
      %c0_35 = arith.constant 0 : index
      %c0_36 = arith.constant 0 : index
      %c0_37 = arith.constant 0 : index
      %42 = vector.load %arg6[%c0_34, %c0_35, %c0_36, %c0_37] : memref<1x1x4x256xbf16, #tpu.memory_space<vmem>>, vector<1x1x4x256xbf16>
      %43 = vector.shape_cast %42 : vector<1x1x4x256xbf16> to vector<4x256xbf16>
      %44 = vector.shape_cast %41 : vector<4x256xbf16> to vector<1x1x4x256xbf16>
      tpu.vector_store %arg6[%c0_34, %c0_35, %c0_36, %c0_37], %44 {strides = array<i32>} : memref<1x1x4x256xbf16, #tpu.memory_space<vmem>>, vector<1x1x4x256xbf16>,
    } else {
    }
    return
  }
  func.func @transform_0(%arg0: i32, %arg1: i32, %arg2: i32) -> (i32, i32, i32, i32) {
    %0 = arith.addi %arg1, %arg2 : i32
    %c0_i32 = arith.constant 0 : i32
    %c0_i32_0 = arith.constant 0 : i32
    %c0_i32_1 = arith.constant 0 : i32
    return %arg0, %0, %c0_i32, %c0_i32_0 : i32, i32, i32, i32
  }
  func.func @transform_1(%arg0: i32, %arg1: i32, %arg2: i32) -> (i32, i32, i32) {
    %c0_i32 = arith.constant 0 : i32
    %c0_i32_0 = arith.constant 0 : i32
    %c0_i32_1 = arith.constant 0 : i32
    %c0_i32_2 = arith.constant 0 : i32
    return %c0_i32, %c0_i32_0, %c0_i32_1 : i32, i32, i32
  }
  func.func @transform_2(%arg0: i32, %arg1: i32, %arg2: i32) -> (i32, i32) {
    %c0_i32 = arith.constant 0 : i32
    %c0_i32_0 = arith.constant 0 : i32
    %c0_i32_1 = arith.constant 0 : i32
    return %c0_i32, %c0_i32_0 : i32, i32
  }
  func.func @transform_3(%arg0: i32, %arg1: i32, %arg2: i32) -> (i32, i32, i32, i32) {
    %c0_i32 = arith.constant 0 : i32
    %c0_i32_0 = arith.constant 0 : i32
    %c0_i32_1 = arith.constant 0 : i32
    return %arg0, %arg1, %c0_i32, %c0_i32_0 : i32, i32, i32, i32
  }
  func.func @transform_4(%arg0: i32, %arg1: i32, %arg2: i32) -> (i32, i32, i32, i32) {
    %c0_i32 = arith.constant 0 : i32
    %c0_i32_0 = arith.constant 0 : i32
    %c0_i32_1 = arith.constant 0 : i32
    return %arg0, %arg1, %c0_i32, %c0_i32_0 : i32, i32, i32, i32
  }
}

module attributes {stable_mosaic.version = 11 : i64} {
  func.func @_conv_row_kernel(%arg0: i32, %arg1: i32, %arg2: i32, %arg3: memref<1x1x6x256xbf16, #tpu.memory_space<vmem>>, %arg4: memref<9x256x256xbf16, #tpu.memory_space<vmem>>, %arg5: memref<1x256xf32, #tpu.memory_space<vmem>>, %arg6: memref<1x1x4x256xbf16, #tpu.memory_space<vmem>>, %arg7: memref<1x1x2x256xf32, #tpu.memory_space<vmem>>, %arg8: memref<4x256xf32, #tpu.memory_space<vmem>>) attributes {dimension_semantics = [#tpu.dimension_semantics<parallel>, #tpu.dimension_semantics<parallel>, #tpu.dimension_semantics<arbitrary>], iteration_bounds = array<i64: 2, 4, 3>, scalar_prefetch = 0 : i64, scratch_operands = 1 : i64, tpu.core_type = #tpu.core_type<tc>, window_params = [{transform_indices = @transform_0, window_bounds = array<i64: 1, 1, 6, 256>}, {pipeline_mode = #tpu.pipeline_mode<synchronous>, transform_indices = @transform_1, window_bounds = array<i64: 9, 256, 256>}, {pipeline_mode = #tpu.pipeline_mode<synchronous>, transform_indices = @transform_2, window_bounds = array<i64: 1, 256>}, {transform_indices = @transform_3, window_bounds = array<i64: 1, 1, 4, 256>}, {transform_indices = @transform_4, window_bounds = array<i64: 1, 1, 2, 256>}]} {
    %c0_i32 = arith.constant 0 : i32
    %0 = arith.cmpi eq, %arg2, %c0_i32 : i32
    %1 = arith.extui %0 : i1 to i32
    %c0_i32_0 = arith.constant 0 : i32
    %2 = arith.cmpi ne, %1, %c0_i32_0 : i32
    scf.if %2 {
      %cst_27 = arith.constant 0.000000e+00 : f32
      %35 = vector.broadcast %cst_27 : f32 to vector<4x256xf32>
      %c0_28 = arith.constant 0 : index
      %c0_29 = arith.constant 0 : index
      %36 = vector.load %arg8[%c0_28, %c0_29] : memref<4x256xf32, #tpu.memory_space<vmem>>, vector<4x256xf32>
      tpu.vector_store %arg8[%c0_28, %c0_29], %35 {strides = array<i32>} : memref<4x256xf32, #tpu.memory_space<vmem>>, vector<4x256xf32>,
    } else {
    }
    %c0 = arith.constant 0 : index
    %c0_1 = arith.constant 0 : index
    %3 = vector.load %arg8[%c0, %c0_1] : memref<4x256xf32, #tpu.memory_space<vmem>>, vector<4x256xf32>
    %c0_2 = arith.constant 0 : index
    %c0_3 = arith.constant 0 : index
    %c0_4 = arith.constant 0 : index
    %c0_5 = arith.constant 0 : index
    %4 = vector.load %arg3[%c0_2, %c0_3, %c0_4, %c0_5] : memref<1x1x6x256xbf16, #tpu.memory_space<vmem>>, vector<1x1x4x256xbf16>
    %5 = vector.shape_cast %4 : vector<1x1x4x256xbf16> to vector<4x256xbf16>
    %c3_i32 = arith.constant 3 : i32
    %6 = arith.muli %arg2, %c3_i32 : i32
    %c0_i32_6 = arith.constant 0 : i32
    %7 = arith.addi %6, %c0_i32_6 : i32
    %8 = arith.index_cast %7 : i32 to index
    %c0_7 = arith.constant 0 : index
    %c0_8 = arith.constant 0 : index
    %9 = vector.load %arg4[%8, %c0_7, %c0_8] : memref<9x256x256xbf16, #tpu.memory_space<vmem>>, vector<1x256x256xbf16>
    %10 = vector.shape_cast %9 : vector<1x256x256xbf16> to vector<256x256xbf16>
    %cst = arith.constant dense<0.000000e+00> : vector<4x256xf32>
    %11 = tpu.matmul %5, %10, %cst {dimension_numbers = #tpu.dot_dimension_numbers<[1], [0], [0], [1], [0, 0, 1, 1], [], []>} : vector<4x256xbf16>, vector<256x256xbf16>, vector<4x256xf32> -> vector<4x256xf32>
    %12 = arith.addf %3, %11 : vector<4x256xf32>
    %c0_9 = arith.constant 0 : index
    %c0_10 = arith.constant 0 : index
    %c1 = arith.constant 1 : index
    %c0_11 = arith.constant 0 : index
    %13 = vector.load %arg3[%c0_9, %c0_10, %c1, %c0_11] : memref<1x1x6x256xbf16, #tpu.memory_space<vmem>>, vector<1x1x4x256xbf16>
    %14 = vector.shape_cast %13 : vector<1x1x4x256xbf16> to vector<4x256xbf16>
    %c3_i32_12 = arith.constant 3 : i32
    %15 = arith.muli %arg2, %c3_i32_12 : i32
    %c1_i32 = arith.constant 1 : i32
    %16 = arith.addi %15, %c1_i32 : i32
    %17 = arith.index_cast %16 : i32 to index
    %c0_13 = arith.constant 0 : index
    %c0_14 = arith.constant 0 : index
    %18 = vector.load %arg4[%17, %c0_13, %c0_14] : memref<9x256x256xbf16, #tpu.memory_space<vmem>>, vector<1x256x256xbf16>
    %19 = vector.shape_cast %18 : vector<1x256x256xbf16> to vector<256x256xbf16>
    %cst_15 = arith.constant dense<0.000000e+00> : vector<4x256xf32>
    %20 = tpu.matmul %14, %19, %cst_15 {dimension_numbers = #tpu.dot_dimension_numbers<[1], [0], [0], [1], [0, 0, 1, 1], [], []>} : vector<4x256xbf16>, vector<256x256xbf16>, vector<4x256xf32> -> vector<4x256xf32>
    %21 = arith.addf %12, %20 : vector<4x256xf32>
    %c0_16 = arith.constant 0 : index
    %c0_17 = arith.constant 0 : index
    %c2 = arith.constant 2 : index
    %c0_18 = arith.constant 0 : index
    %22 = vector.load %arg3[%c0_16, %c0_17, %c2, %c0_18] : memref<1x1x6x256xbf16, #tpu.memory_space<vmem>>, vector<1x1x4x256xbf16>
    %23 = vector.shape_cast %22 : vector<1x1x4x256xbf16> to vector<4x256xbf16>
    %c3_i32_19 = arith.constant 3 : i32
    %24 = arith.muli %arg2, %c3_i32_19 : i32
    %c2_i32 = arith.constant 2 : i32
    %25 = arith.addi %24, %c2_i32 : i32
    %26 = arith.index_cast %25 : i32 to index
    %c0_20 = arith.constant 0 : index
    %c0_21 = arith.constant 0 : index
    %27 = vector.load %arg4[%26, %c0_20, %c0_21] : memref<9x256x256xbf16, #tpu.memory_space<vmem>>, vector<1x256x256xbf16>
    %28 = vector.shape_cast %27 : vector<1x256x256xbf16> to vector<256x256xbf16>
    %cst_22 = arith.constant dense<0.000000e+00> : vector<4x256xf32>
    %29 = tpu.matmul %23, %28, %cst_22 {dimension_numbers = #tpu.dot_dimension_numbers<[1], [0], [0], [1], [0, 0, 1, 1], [], []>} : vector<4x256xbf16>, vector<256x256xbf16>, vector<4x256xf32> -> vector<4x256xf32>
    %30 = arith.addf %21, %29 : vector<4x256xf32>
    %c0_23 = arith.constant 0 : index
    %c0_24 = arith.constant 0 : index
    %31 = vector.load %arg8[%c0_23, %c0_24] : memref<4x256xf32, #tpu.memory_space<vmem>>, vector<4x256xf32>
    tpu.vector_store %arg8[%c0_23, %c0_24], %30 {strides = array<i32>} : memref<4x256xf32, #tpu.memory_space<vmem>>, vector<4x256xf32>,
    %c2_i32_25 = arith.constant 2 : i32
    %32 = arith.cmpi eq, %arg2, %c2_i32_25 : i32
    %33 = arith.extui %32 : i1 to i32
    %c0_i32_26 = arith.constant 0 : i32
    %34 = arith.cmpi ne, %33, %c0_i32_26 : i32
    scf.if %34 {
      %c0_27 = arith.constant 0 : index
      %c0_28 = arith.constant 0 : index
      %35 = vector.load %arg8[%c0_27, %c0_28] : memref<4x256xf32, #tpu.memory_space<vmem>>, vector<4x256xf32>
      %c0_29 = arith.constant 0 : index
      %c0_30 = arith.constant 0 : index
      %36 = vector.load %arg5[%c0_29, %c0_30] : memref<1x256xf32, #tpu.memory_space<vmem>>, vector<1x256xf32>
      %37 = vector.broadcast %36 : vector<1x256xf32> to vector<4x256xf32>
      %38 = arith.addf %35, %37 : vector<4x256xf32>
      %cst_31 = arith.constant dense<0.000000e+00> : vector<256xf32>
      %39 = vector.multi_reduction <add>, %38, %cst_31 [0] : vector<4x256xf32> to vector<256xf32>
      %40 = vector.shape_cast %39 : vector<256xf32> to vector<1x256xf32>
      %c0_32 = arith.constant 0 : index
      %c0_33 = arith.constant 0 : index
      %c0_34 = arith.constant 0 : index
      %c0_35 = arith.constant 0 : index
      %41 = vector.load %arg7[%c0_32, %c0_33, %c0_34, %c0_35] : memref<1x1x2x256xf32, #tpu.memory_space<vmem>>, vector<1x1x1x256xf32>
      %42 = vector.shape_cast %41 : vector<1x1x1x256xf32> to vector<1x256xf32>
      %43 = vector.shape_cast %40 : vector<1x256xf32> to vector<1x1x1x256xf32>
      tpu.vector_store %arg7[%c0_32, %c0_33, %c0_34, %c0_35], %43 {strides = array<i32>} : memref<1x1x2x256xf32, #tpu.memory_space<vmem>>, vector<1x1x1x256xf32>,
      %44 = arith.mulf %38, %38 : vector<4x256xf32>
      %cst_36 = arith.constant dense<0.000000e+00> : vector<256xf32>
      %45 = vector.multi_reduction <add>, %44, %cst_36 [0] : vector<4x256xf32> to vector<256xf32>
      %46 = vector.shape_cast %45 : vector<256xf32> to vector<1x256xf32>
      %c0_37 = arith.constant 0 : index
      %c0_38 = arith.constant 0 : index
      %c1_39 = arith.constant 1 : index
      %c0_40 = arith.constant 0 : index
      %47 = vector.load %arg7[%c0_37, %c0_38, %c1_39, %c0_40] : memref<1x1x2x256xf32, #tpu.memory_space<vmem>>, vector<1x1x1x256xf32>
      %48 = vector.shape_cast %47 : vector<1x1x1x256xf32> to vector<1x256xf32>
      %49 = vector.shape_cast %46 : vector<1x256xf32> to vector<1x1x1x256xf32>
      tpu.vector_store %arg7[%c0_37, %c0_38, %c1_39, %c0_40], %49 {strides = array<i32>} : memref<1x1x2x256xf32, #tpu.memory_space<vmem>>, vector<1x1x1x256xf32>,
      %50 = arith.truncf %38 : vector<4x256xf32> to vector<4x256xbf16>
      %c0_41 = arith.constant 0 : index
      %c0_42 = arith.constant 0 : index
      %c0_43 = arith.constant 0 : index
      %c0_44 = arith.constant 0 : index
      %51 = vector.load %arg6[%c0_41, %c0_42, %c0_43, %c0_44] : memref<1x1x4x256xbf16, #tpu.memory_space<vmem>>, vector<1x1x4x256xbf16>
      %52 = vector.shape_cast %51 : vector<1x1x4x256xbf16> to vector<4x256xbf16>
      %53 = vector.shape_cast %50 : vector<4x256xbf16> to vector<1x1x4x256xbf16>
      tpu.vector_store %arg6[%c0_41, %c0_42, %c0_43, %c0_44], %53 {strides = array<i32>} : memref<1x1x4x256xbf16, #tpu.memory_space<vmem>>, vector<1x1x4x256xbf16>,
    } else {
    }
    return
  }
  func.func @transform_0(%arg0: i32, %arg1: i32, %arg2: i32) -> (i32, i32, i32, i32) {
    %0 = arith.addi %arg1, %arg2 : i32
    %c0_i32 = arith.constant 0 : i32
    %c0_i32_0 = arith.constant 0 : i32
    %c0_i32_1 = arith.constant 0 : i32
    return %arg0, %0, %c0_i32, %c0_i32_0 : i32, i32, i32, i32
  }
  func.func @transform_1(%arg0: i32, %arg1: i32, %arg2: i32) -> (i32, i32, i32) {
    %c0_i32 = arith.constant 0 : i32
    %c0_i32_0 = arith.constant 0 : i32
    %c0_i32_1 = arith.constant 0 : i32
    %c0_i32_2 = arith.constant 0 : i32
    return %c0_i32, %c0_i32_0, %c0_i32_1 : i32, i32, i32
  }
  func.func @transform_2(%arg0: i32, %arg1: i32, %arg2: i32) -> (i32, i32) {
    %c0_i32 = arith.constant 0 : i32
    %c0_i32_0 = arith.constant 0 : i32
    %c0_i32_1 = arith.constant 0 : i32
    return %c0_i32, %c0_i32_0 : i32, i32
  }
  func.func @transform_3(%arg0: i32, %arg1: i32, %arg2: i32) -> (i32, i32, i32, i32) {
    %c0_i32 = arith.constant 0 : i32
    %c0_i32_0 = arith.constant 0 : i32
    %c0_i32_1 = arith.constant 0 : i32
    return %arg0, %arg1, %c0_i32, %c0_i32_0 : i32, i32, i32, i32
  }
  func.func @transform_4(%arg0: i32, %arg1: i32, %arg2: i32) -> (i32, i32, i32, i32) {
    %c0_i32 = arith.constant 0 : i32
    %c0_i32_0 = arith.constant 0 : i32
    %c0_i32_1 = arith.constant 0 : i32
    return %arg0, %arg1, %c0_i32, %c0_i32_0 : i32, i32, i32, i32
  }
}

module attributes {stable_mosaic.version = 11 : i64} {
  func.func @_bn_relu_kernel(%arg0: i32, %arg1: memref<32x256xbf16, #tpu.memory_space<vmem>>, %arg2: memref<1x256xf32, #tpu.memory_space<vmem>>, %arg3: memref<1x256xf32, #tpu.memory_space<vmem>>, %arg4: memref<32x256xbf16, #tpu.memory_space<vmem>>) attributes {dimension_semantics = [#tpu.dimension_semantics<parallel>], iteration_bounds = array<i64: 1>, scalar_prefetch = 0 : i64, scratch_operands = 0 : i64, tpu.core_type = #tpu.core_type<tc>, window_params = [{transform_indices = @transform_0, window_bounds = array<i64: 32, 256>}, {pipeline_mode = #tpu.pipeline_mode<synchronous>, transform_indices = @transform_1, window_bounds = array<i64: 1, 256>}, {pipeline_mode = #tpu.pipeline_mode<synchronous>, transform_indices = @transform_2, window_bounds = array<i64: 1, 256>}, {transform_indices = @transform_3, window_bounds = array<i64: 32, 256>}]} {
    %c0 = arith.constant 0 : index
    %c0_0 = arith.constant 0 : index
    %0 = vector.load %arg1[%c0, %c0_0] : memref<32x256xbf16, #tpu.memory_space<vmem>>, vector<32x256xbf16>
    %1 = arith.extf %0 : vector<32x256xbf16> to vector<32x256xf32>
    %c0_1 = arith.constant 0 : index
    %c0_2 = arith.constant 0 : index
    %2 = vector.load %arg2[%c0_1, %c0_2] : memref<1x256xf32, #tpu.memory_space<vmem>>, vector<1x256xf32>
    %3 = vector.broadcast %2 : vector<1x256xf32> to vector<32x256xf32>
    %4 = arith.mulf %1, %3 : vector<32x256xf32>
    %c0_3 = arith.constant 0 : index
    %c0_4 = arith.constant 0 : index
    %5 = vector.load %arg3[%c0_3, %c0_4] : memref<1x256xf32, #tpu.memory_space<vmem>>, vector<1x256xf32>
    %6 = vector.broadcast %5 : vector<1x256xf32> to vector<32x256xf32>
    %7 = arith.addf %4, %6 : vector<32x256xf32>
    %cst = arith.constant 0.000000e+00 : f32
    %8 = vector.broadcast %cst : f32 to vector<32x256xf32>
    %9 = arith.maximumf %7, %8 : vector<32x256xf32>
    %10 = arith.truncf %9 : vector<32x256xf32> to vector<32x256xbf16>
    %c0_5 = arith.constant 0 : index
    %c0_6 = arith.constant 0 : index
    %11 = vector.load %arg4[%c0_5, %c0_6] : memref<32x256xbf16, #tpu.memory_space<vmem>>, vector<32x256xbf16>
    tpu.vector_store %arg4[%c0_5, %c0_6], %10 {strides = array<i32>} : memref<32x256xbf16, #tpu.memory_space<vmem>>, vector<32x256xbf16>,
    return
  }
  func.func @transform_0(%arg0: i32) -> (i32, i32) {
    %c0_i32 = arith.constant 0 : i32
    %c0_i32_0 = arith.constant 0 : i32
    return %arg0, %c0_i32 : i32, i32
  }
  func.func @transform_1(%arg0: i32) -> (i32, i32) {
    %c0_i32 = arith.constant 0 : i32
    %c0_i32_0 = arith.constant 0 : i32
    %c0_i32_1 = arith.constant 0 : i32
    return %c0_i32, %c0_i32_0 : i32, i32
  }
  func.func @transform_2(%arg0: i32) -> (i32, i32) {
    %c0_i32 = arith.constant 0 : i32
    %c0_i32_0 = arith.constant 0 : i32
    %c0_i32_1 = arith.constant 0 : i32
    return %c0_i32, %c0_i32_0 : i32, i32
  }
  func.func @transform_3(%arg0: i32) -> (i32, i32) {
    %c0_i32 = arith.constant 0 : i32
    %c0_i32_0 = arith.constant 0 : i32
    return %arg0, %c0_i32 : i32, i32
  }
}

module attributes {stable_mosaic.version = 11 : i64} {
  func.func @_bn_add_kernel(%arg0: i32, %arg1: memref<32x256xbf16, #tpu.memory_space<vmem>>, %arg2: memref<1x256xf32, #tpu.memory_space<vmem>>, %arg3: memref<1x256xf32, #tpu.memory_space<vmem>>, %arg4: memref<32x256xbf16, #tpu.memory_space<vmem>>, %arg5: memref<32x256xbf16, #tpu.memory_space<vmem>>) attributes {dimension_semantics = [#tpu.dimension_semantics<parallel>], iteration_bounds = array<i64: 1>, scalar_prefetch = 0 : i64, scratch_operands = 0 : i64, tpu.core_type = #tpu.core_type<tc>, window_params = [{transform_indices = @transform_0, window_bounds = array<i64: 32, 256>}, {pipeline_mode = #tpu.pipeline_mode<synchronous>, transform_indices = @transform_1, window_bounds = array<i64: 1, 256>}, {pipeline_mode = #tpu.pipeline_mode<synchronous>, transform_indices = @transform_2, window_bounds = array<i64: 1, 256>}, {transform_indices = @transform_3, window_bounds = array<i64: 32, 256>}, {transform_indices = @transform_4, window_bounds = array<i64: 32, 256>}]} {
    %c0 = arith.constant 0 : index
    %c0_0 = arith.constant 0 : index
    %0 = vector.load %arg1[%c0, %c0_0] : memref<32x256xbf16, #tpu.memory_space<vmem>>, vector<32x256xbf16>
    %1 = arith.extf %0 : vector<32x256xbf16> to vector<32x256xf32>
    %c0_1 = arith.constant 0 : index
    %c0_2 = arith.constant 0 : index
    %2 = vector.load %arg2[%c0_1, %c0_2] : memref<1x256xf32, #tpu.memory_space<vmem>>, vector<1x256xf32>
    %3 = vector.broadcast %2 : vector<1x256xf32> to vector<32x256xf32>
    %4 = arith.mulf %1, %3 : vector<32x256xf32>
    %c0_3 = arith.constant 0 : index
    %c0_4 = arith.constant 0 : index
    %5 = vector.load %arg3[%c0_3, %c0_4] : memref<1x256xf32, #tpu.memory_space<vmem>>, vector<1x256xf32>
    %6 = vector.broadcast %5 : vector<1x256xf32> to vector<32x256xf32>
    %7 = arith.addf %4, %6 : vector<32x256xf32>
    %c0_5 = arith.constant 0 : index
    %c0_6 = arith.constant 0 : index
    %8 = vector.load %arg4[%c0_5, %c0_6] : memref<32x256xbf16, #tpu.memory_space<vmem>>, vector<32x256xbf16>
    %9 = arith.extf %8 : vector<32x256xbf16> to vector<32x256xf32>
    %10 = arith.addf %7, %9 : vector<32x256xf32>
    %11 = arith.truncf %10 : vector<32x256xf32> to vector<32x256xbf16>
    %c0_7 = arith.constant 0 : index
    %c0_8 = arith.constant 0 : index
    %12 = vector.load %arg5[%c0_7, %c0_8] : memref<32x256xbf16, #tpu.memory_space<vmem>>, vector<32x256xbf16>
    tpu.vector_store %arg5[%c0_7, %c0_8], %11 {strides = array<i32>} : memref<32x256xbf16, #tpu.memory_space<vmem>>, vector<32x256xbf16>,
    return
  }
  func.func @transform_0(%arg0: i32) -> (i32, i32) {
    %c0_i32 = arith.constant 0 : i32
    %c0_i32_0 = arith.constant 0 : i32
    return %arg0, %c0_i32 : i32, i32
  }
  func.func @transform_1(%arg0: i32) -> (i32, i32) {
    %c0_i32 = arith.constant 0 : i32
    %c0_i32_0 = arith.constant 0 : i32
    %c0_i32_1 = arith.constant 0 : i32
    return %c0_i32, %c0_i32_0 : i32, i32
  }
  func.func @transform_2(%arg0: i32) -> (i32, i32) {
    %c0_i32 = arith.constant 0 : i32
    %c0_i32_0 = arith.constant 0 : i32
    %c0_i32_1 = arith.constant 0 : i32
    return %c0_i32, %c0_i32_0 : i32, i32
  }
  func.func @transform_3(%arg0: i32) -> (i32, i32) {
    %c0_i32 = arith.constant 0 : i32
    %c0_i32_0 = arith.constant 0 : i32
    return %arg0, %c0_i32 : i32, i32
  }
  func.func @transform_4(%arg0: i32) -> (i32, i32) {
    %c0_i32 = arith.constant 0 : i32
    %c0_i32_0 = arith.constant 0 : i32
    return %arg0, %c0_i32 : i32, i32
  }
}

module attributes {stable_mosaic.version = 11 : i64} {
  func.func @_conv_row_kernel(%arg0: i32, %arg1: i32, %arg2: i32, %arg3: memref<1x1x10x256xbf16, #tpu.memory_space<vmem>>, %arg4: memref<9x256x128xbf16, #tpu.memory_space<vmem>>, %arg5: memref<1x128xf32, #tpu.memory_space<vmem>>, %arg6: memref<1x1x8x128xbf16, #tpu.memory_space<vmem>>, %arg7: memref<1x1x2x128xf32, #tpu.memory_space<vmem>>, %arg8: memref<8x128xf32, #tpu.memory_space<vmem>>) attributes {dimension_semantics = [#tpu.dimension_semantics<parallel>, #tpu.dimension_semantics<parallel>, #tpu.dimension_semantics<arbitrary>], iteration_bounds = array<i64: 2, 8, 3>, scalar_prefetch = 0 : i64, scratch_operands = 1 : i64, tpu.core_type = #tpu.core_type<tc>, window_params = [{transform_indices = @transform_0, window_bounds = array<i64: 1, 1, 10, 256>}, {pipeline_mode = #tpu.pipeline_mode<synchronous>, transform_indices = @transform_1, window_bounds = array<i64: 9, 256, 128>}, {pipeline_mode = #tpu.pipeline_mode<synchronous>, transform_indices = @transform_2, window_bounds = array<i64: 1, 128>}, {transform_indices = @transform_3, window_bounds = array<i64: 1, 1, 8, 128>}, {transform_indices = @transform_4, window_bounds = array<i64: 1, 1, 2, 128>}]} {
    %c0_i32 = arith.constant 0 : i32
    %0 = arith.cmpi eq, %arg2, %c0_i32 : i32
    %1 = arith.extui %0 : i1 to i32
    %c0_i32_0 = arith.constant 0 : i32
    %2 = arith.cmpi ne, %1, %c0_i32_0 : i32
    scf.if %2 {
      %cst_27 = arith.constant 0.000000e+00 : f32
      %35 = vector.broadcast %cst_27 : f32 to vector<8x128xf32>
      %c0_28 = arith.constant 0 : index
      %c0_29 = arith.constant 0 : index
      %36 = vector.load %arg8[%c0_28, %c0_29] : memref<8x128xf32, #tpu.memory_space<vmem>>, vector<8x128xf32>
      tpu.vector_store %arg8[%c0_28, %c0_29], %35 {strides = array<i32>} : memref<8x128xf32, #tpu.memory_space<vmem>>, vector<8x128xf32>,
    } else {
    }
    %c0 = arith.constant 0 : index
    %c0_1 = arith.constant 0 : index
    %3 = vector.load %arg8[%c0, %c0_1] : memref<8x128xf32, #tpu.memory_space<vmem>>, vector<8x128xf32>
    %c0_2 = arith.constant 0 : index
    %c0_3 = arith.constant 0 : index
    %c0_4 = arith.constant 0 : index
    %c0_5 = arith.constant 0 : index
    %4 = vector.load %arg3[%c0_2, %c0_3, %c0_4, %c0_5] : memref<1x1x10x256xbf16, #tpu.memory_space<vmem>>, vector<1x1x8x256xbf16>
    %5 = vector.shape_cast %4 : vector<1x1x8x256xbf16> to vector<8x256xbf16>
    %c3_i32 = arith.constant 3 : i32
    %6 = arith.muli %arg2, %c3_i32 : i32
    %c0_i32_6 = arith.constant 0 : i32
    %7 = arith.addi %6, %c0_i32_6 : i32
    %8 = arith.index_cast %7 : i32 to index
    %c0_7 = arith.constant 0 : index
    %c0_8 = arith.constant 0 : index
    %9 = vector.load %arg4[%8, %c0_7, %c0_8] : memref<9x256x128xbf16, #tpu.memory_space<vmem>>, vector<1x256x128xbf16>
    %10 = vector.shape_cast %9 : vector<1x256x128xbf16> to vector<256x128xbf16>
    %cst = arith.constant dense<0.000000e+00> : vector<8x128xf32>
    %11 = tpu.matmul %5, %10, %cst {dimension_numbers = #tpu.dot_dimension_numbers<[1], [0], [0], [1], [0, 0, 1, 1], [], []>} : vector<8x256xbf16>, vector<256x128xbf16>, vector<8x128xf32> -> vector<8x128xf32>
    %12 = arith.addf %3, %11 : vector<8x128xf32>
    %c0_9 = arith.constant 0 : index
    %c0_10 = arith.constant 0 : index
    %c1 = arith.constant 1 : index
    %c0_11 = arith.constant 0 : index
    %13 = vector.load %arg3[%c0_9, %c0_10, %c1, %c0_11] : memref<1x1x10x256xbf16, #tpu.memory_space<vmem>>, vector<1x1x8x256xbf16>
    %14 = vector.shape_cast %13 : vector<1x1x8x256xbf16> to vector<8x256xbf16>
    %c3_i32_12 = arith.constant 3 : i32
    %15 = arith.muli %arg2, %c3_i32_12 : i32
    %c1_i32 = arith.constant 1 : i32
    %16 = arith.addi %15, %c1_i32 : i32
    %17 = arith.index_cast %16 : i32 to index
    %c0_13 = arith.constant 0 : index
    %c0_14 = arith.constant 0 : index
    %18 = vector.load %arg4[%17, %c0_13, %c0_14] : memref<9x256x128xbf16, #tpu.memory_space<vmem>>, vector<1x256x128xbf16>
    %19 = vector.shape_cast %18 : vector<1x256x128xbf16> to vector<256x128xbf16>
    %cst_15 = arith.constant dense<0.000000e+00> : vector<8x128xf32>
    %20 = tpu.matmul %14, %19, %cst_15 {dimension_numbers = #tpu.dot_dimension_numbers<[1], [0], [0], [1], [0, 0, 1, 1], [], []>} : vector<8x256xbf16>, vector<256x128xbf16>, vector<8x128xf32> -> vector<8x128xf32>
    %21 = arith.addf %12, %20 : vector<8x128xf32>
    %c0_16 = arith.constant 0 : index
    %c0_17 = arith.constant 0 : index
    %c2 = arith.constant 2 : index
    %c0_18 = arith.constant 0 : index
    %22 = vector.load %arg3[%c0_16, %c0_17, %c2, %c0_18] : memref<1x1x10x256xbf16, #tpu.memory_space<vmem>>, vector<1x1x8x256xbf16>
    %23 = vector.shape_cast %22 : vector<1x1x8x256xbf16> to vector<8x256xbf16>
    %c3_i32_19 = arith.constant 3 : i32
    %24 = arith.muli %arg2, %c3_i32_19 : i32
    %c2_i32 = arith.constant 2 : i32
    %25 = arith.addi %24, %c2_i32 : i32
    %26 = arith.index_cast %25 : i32 to index
    %c0_20 = arith.constant 0 : index
    %c0_21 = arith.constant 0 : index
    %27 = vector.load %arg4[%26, %c0_20, %c0_21] : memref<9x256x128xbf16, #tpu.memory_space<vmem>>, vector<1x256x128xbf16>
    %28 = vector.shape_cast %27 : vector<1x256x128xbf16> to vector<256x128xbf16>
    %cst_22 = arith.constant dense<0.000000e+00> : vector<8x128xf32>
    %29 = tpu.matmul %23, %28, %cst_22 {dimension_numbers = #tpu.dot_dimension_numbers<[1], [0], [0], [1], [0, 0, 1, 1], [], []>} : vector<8x256xbf16>, vector<256x128xbf16>, vector<8x128xf32> -> vector<8x128xf32>
    %30 = arith.addf %21, %29 : vector<8x128xf32>
    %c0_23 = arith.constant 0 : index
    %c0_24 = arith.constant 0 : index
    %31 = vector.load %arg8[%c0_23, %c0_24] : memref<8x128xf32, #tpu.memory_space<vmem>>, vector<8x128xf32>
    tpu.vector_store %arg8[%c0_23, %c0_24], %30 {strides = array<i32>} : memref<8x128xf32, #tpu.memory_space<vmem>>, vector<8x128xf32>,
    %c2_i32_25 = arith.constant 2 : i32
    %32 = arith.cmpi eq, %arg2, %c2_i32_25 : i32
    %33 = arith.extui %32 : i1 to i32
    %c0_i32_26 = arith.constant 0 : i32
    %34 = arith.cmpi ne, %33, %c0_i32_26 : i32
    scf.if %34 {
      %c0_27 = arith.constant 0 : index
      %c0_28 = arith.constant 0 : index
      %35 = vector.load %arg8[%c0_27, %c0_28] : memref<8x128xf32, #tpu.memory_space<vmem>>, vector<8x128xf32>
      %c0_29 = arith.constant 0 : index
      %c0_30 = arith.constant 0 : index
      %36 = vector.load %arg5[%c0_29, %c0_30] : memref<1x128xf32, #tpu.memory_space<vmem>>, vector<1x128xf32>
      %37 = vector.broadcast %36 : vector<1x128xf32> to vector<8x128xf32>
      %38 = arith.addf %35, %37 : vector<8x128xf32>
      %cst_31 = arith.constant dense<0.000000e+00> : vector<128xf32>
      %39 = vector.multi_reduction <add>, %38, %cst_31 [0] : vector<8x128xf32> to vector<128xf32>
      %40 = vector.shape_cast %39 : vector<128xf32> to vector<1x128xf32>
      %c0_32 = arith.constant 0 : index
      %c0_33 = arith.constant 0 : index
      %c0_34 = arith.constant 0 : index
      %c0_35 = arith.constant 0 : index
      %41 = vector.load %arg7[%c0_32, %c0_33, %c0_34, %c0_35] : memref<1x1x2x128xf32, #tpu.memory_space<vmem>>, vector<1x1x1x128xf32>
      %42 = vector.shape_cast %41 : vector<1x1x1x128xf32> to vector<1x128xf32>
      %43 = vector.shape_cast %40 : vector<1x128xf32> to vector<1x1x1x128xf32>
      tpu.vector_store %arg7[%c0_32, %c0_33, %c0_34, %c0_35], %43 {strides = array<i32>} : memref<1x1x2x128xf32, #tpu.memory_space<vmem>>, vector<1x1x1x128xf32>,
      %44 = arith.mulf %38, %38 : vector<8x128xf32>
      %cst_36 = arith.constant dense<0.000000e+00> : vector<128xf32>
      %45 = vector.multi_reduction <add>, %44, %cst_36 [0] : vector<8x128xf32> to vector<128xf32>
      %46 = vector.shape_cast %45 : vector<128xf32> to vector<1x128xf32>
      %c0_37 = arith.constant 0 : index
      %c0_38 = arith.constant 0 : index
      %c1_39 = arith.constant 1 : index
      %c0_40 = arith.constant 0 : index
      %47 = vector.load %arg7[%c0_37, %c0_38, %c1_39, %c0_40] : memref<1x1x2x128xf32, #tpu.memory_space<vmem>>, vector<1x1x1x128xf32>
      %48 = vector.shape_cast %47 : vector<1x1x1x128xf32> to vector<1x128xf32>
      %49 = vector.shape_cast %46 : vector<1x128xf32> to vector<1x1x1x128xf32>
      tpu.vector_store %arg7[%c0_37, %c0_38, %c1_39, %c0_40], %49 {strides = array<i32>} : memref<1x1x2x128xf32, #tpu.memory_space<vmem>>, vector<1x1x1x128xf32>,
      %50 = arith.truncf %38 : vector<8x128xf32> to vector<8x128xbf16>
      %c0_41 = arith.constant 0 : index
      %c0_42 = arith.constant 0 : index
      %c0_43 = arith.constant 0 : index
      %c0_44 = arith.constant 0 : index
      %51 = vector.load %arg6[%c0_41, %c0_42, %c0_43, %c0_44] : memref<1x1x8x128xbf16, #tpu.memory_space<vmem>>, vector<1x1x8x128xbf16>
      %52 = vector.shape_cast %51 : vector<1x1x8x128xbf16> to vector<8x128xbf16>
      %53 = vector.shape_cast %50 : vector<8x128xbf16> to vector<1x1x8x128xbf16>
      tpu.vector_store %arg6[%c0_41, %c0_42, %c0_43, %c0_44], %53 {strides = array<i32>} : memref<1x1x8x128xbf16, #tpu.memory_space<vmem>>, vector<1x1x8x128xbf16>,
    } else {
    }
    return
  }
  func.func @transform_0(%arg0: i32, %arg1: i32, %arg2: i32) -> (i32, i32, i32, i32) {
    %0 = arith.addi %arg1, %arg2 : i32
    %c0_i32 = arith.constant 0 : i32
    %c0_i32_0 = arith.constant 0 : i32
    %c0_i32_1 = arith.constant 0 : i32
    return %arg0, %0, %c0_i32, %c0_i32_0 : i32, i32, i32, i32
  }
  func.func @transform_1(%arg0: i32, %arg1: i32, %arg2: i32) -> (i32, i32, i32) {
    %c0_i32 = arith.constant 0 : i32
    %c0_i32_0 = arith.constant 0 : i32
    %c0_i32_1 = arith.constant 0 : i32
    %c0_i32_2 = arith.constant 0 : i32
    return %c0_i32, %c0_i32_0, %c0_i32_1 : i32, i32, i32
  }
  func.func @transform_2(%arg0: i32, %arg1: i32, %arg2: i32) -> (i32, i32) {
    %c0_i32 = arith.constant 0 : i32
    %c0_i32_0 = arith.constant 0 : i32
    %c0_i32_1 = arith.constant 0 : i32
    return %c0_i32, %c0_i32_0 : i32, i32
  }
  func.func @transform_3(%arg0: i32, %arg1: i32, %arg2: i32) -> (i32, i32, i32, i32) {
    %c0_i32 = arith.constant 0 : i32
    %c0_i32_0 = arith.constant 0 : i32
    %c0_i32_1 = arith.constant 0 : i32
    return %arg0, %arg1, %c0_i32, %c0_i32_0 : i32, i32, i32, i32
  }
  func.func @transform_4(%arg0: i32, %arg1: i32, %arg2: i32) -> (i32, i32, i32, i32) {
    %c0_i32 = arith.constant 0 : i32
    %c0_i32_0 = arith.constant 0 : i32
    %c0_i32_1 = arith.constant 0 : i32
    return %arg0, %arg1, %c0_i32, %c0_i32_0 : i32, i32, i32, i32
  }
}

module attributes {stable_mosaic.version = 11 : i64} {
  func.func @_conv_row_kernel(%arg0: i32, %arg1: i32, %arg2: i32, %arg3: memref<1x1x18x128xbf16, #tpu.memory_space<vmem>>, %arg4: memref<9x128x64xbf16, #tpu.memory_space<vmem>>, %arg5: memref<1x64xf32, #tpu.memory_space<vmem>>, %arg6: memref<1x1x16x64xbf16, #tpu.memory_space<vmem>>, %arg7: memref<1x1x2x64xf32, #tpu.memory_space<vmem>>, %arg8: memref<16x64xf32, #tpu.memory_space<vmem>>) attributes {dimension_semantics = [#tpu.dimension_semantics<parallel>, #tpu.dimension_semantics<parallel>, #tpu.dimension_semantics<arbitrary>], iteration_bounds = array<i64: 2, 16, 3>, scalar_prefetch = 0 : i64, scratch_operands = 1 : i64, tpu.core_type = #tpu.core_type<tc>, window_params = [{transform_indices = @transform_0, window_bounds = array<i64: 1, 1, 18, 128>}, {pipeline_mode = #tpu.pipeline_mode<synchronous>, transform_indices = @transform_1, window_bounds = array<i64: 9, 128, 64>}, {pipeline_mode = #tpu.pipeline_mode<synchronous>, transform_indices = @transform_2, window_bounds = array<i64: 1, 64>}, {transform_indices = @transform_3, window_bounds = array<i64: 1, 1, 16, 64>}, {transform_indices = @transform_4, window_bounds = array<i64: 1, 1, 2, 64>}]} {
    %c0_i32 = arith.constant 0 : i32
    %0 = arith.cmpi eq, %arg2, %c0_i32 : i32
    %1 = arith.extui %0 : i1 to i32
    %c0_i32_0 = arith.constant 0 : i32
    %2 = arith.cmpi ne, %1, %c0_i32_0 : i32
    scf.if %2 {
      %cst_27 = arith.constant 0.000000e+00 : f32
      %35 = vector.broadcast %cst_27 : f32 to vector<16x64xf32>
      %c0_28 = arith.constant 0 : index
      %c0_29 = arith.constant 0 : index
      %36 = vector.load %arg8[%c0_28, %c0_29] : memref<16x64xf32, #tpu.memory_space<vmem>>, vector<16x64xf32>
      tpu.vector_store %arg8[%c0_28, %c0_29], %35 {strides = array<i32>} : memref<16x64xf32, #tpu.memory_space<vmem>>, vector<16x64xf32>,
    } else {
    }
    %c0 = arith.constant 0 : index
    %c0_1 = arith.constant 0 : index
    %3 = vector.load %arg8[%c0, %c0_1] : memref<16x64xf32, #tpu.memory_space<vmem>>, vector<16x64xf32>
    %c0_2 = arith.constant 0 : index
    %c0_3 = arith.constant 0 : index
    %c0_4 = arith.constant 0 : index
    %c0_5 = arith.constant 0 : index
    %4 = vector.load %arg3[%c0_2, %c0_3, %c0_4, %c0_5] : memref<1x1x18x128xbf16, #tpu.memory_space<vmem>>, vector<1x1x16x128xbf16>
    %5 = vector.shape_cast %4 : vector<1x1x16x128xbf16> to vector<16x128xbf16>
    %c3_i32 = arith.constant 3 : i32
    %6 = arith.muli %arg2, %c3_i32 : i32
    %c0_i32_6 = arith.constant 0 : i32
    %7 = arith.addi %6, %c0_i32_6 : i32
    %8 = arith.index_cast %7 : i32 to index
    %c0_7 = arith.constant 0 : index
    %c0_8 = arith.constant 0 : index
    %9 = vector.load %arg4[%8, %c0_7, %c0_8] : memref<9x128x64xbf16, #tpu.memory_space<vmem>>, vector<1x128x64xbf16>
    %10 = vector.shape_cast %9 : vector<1x128x64xbf16> to vector<128x64xbf16>
    %cst = arith.constant dense<0.000000e+00> : vector<16x64xf32>
    %11 = tpu.matmul %5, %10, %cst {dimension_numbers = #tpu.dot_dimension_numbers<[1], [0], [0], [1], [0, 0, 1, 1], [], []>} : vector<16x128xbf16>, vector<128x64xbf16>, vector<16x64xf32> -> vector<16x64xf32>
    %12 = arith.addf %3, %11 : vector<16x64xf32>
    %c0_9 = arith.constant 0 : index
    %c0_10 = arith.constant 0 : index
    %c1 = arith.constant 1 : index
    %c0_11 = arith.constant 0 : index
    %13 = vector.load %arg3[%c0_9, %c0_10, %c1, %c0_11] : memref<1x1x18x128xbf16, #tpu.memory_space<vmem>>, vector<1x1x16x128xbf16>
    %14 = vector.shape_cast %13 : vector<1x1x16x128xbf16> to vector<16x128xbf16>
    %c3_i32_12 = arith.constant 3 : i32
    %15 = arith.muli %arg2, %c3_i32_12 : i32
    %c1_i32 = arith.constant 1 : i32
    %16 = arith.addi %15, %c1_i32 : i32
    %17 = arith.index_cast %16 : i32 to index
    %c0_13 = arith.constant 0 : index
    %c0_14 = arith.constant 0 : index
    %18 = vector.load %arg4[%17, %c0_13, %c0_14] : memref<9x128x64xbf16, #tpu.memory_space<vmem>>, vector<1x128x64xbf16>
    %19 = vector.shape_cast %18 : vector<1x128x64xbf16> to vector<128x64xbf16>
    %cst_15 = arith.constant dense<0.000000e+00> : vector<16x64xf32>
    %20 = tpu.matmul %14, %19, %cst_15 {dimension_numbers = #tpu.dot_dimension_numbers<[1], [0], [0], [1], [0, 0, 1, 1], [], []>} : vector<16x128xbf16>, vector<128x64xbf16>, vector<16x64xf32> -> vector<16x64xf32>
    %21 = arith.addf %12, %20 : vector<16x64xf32>
    %c0_16 = arith.constant 0 : index
    %c0_17 = arith.constant 0 : index
    %c2 = arith.constant 2 : index
    %c0_18 = arith.constant 0 : index
    %22 = vector.load %arg3[%c0_16, %c0_17, %c2, %c0_18] : memref<1x1x18x128xbf16, #tpu.memory_space<vmem>>, vector<1x1x16x128xbf16>
    %23 = vector.shape_cast %22 : vector<1x1x16x128xbf16> to vector<16x128xbf16>
    %c3_i32_19 = arith.constant 3 : i32
    %24 = arith.muli %arg2, %c3_i32_19 : i32
    %c2_i32 = arith.constant 2 : i32
    %25 = arith.addi %24, %c2_i32 : i32
    %26 = arith.index_cast %25 : i32 to index
    %c0_20 = arith.constant 0 : index
    %c0_21 = arith.constant 0 : index
    %27 = vector.load %arg4[%26, %c0_20, %c0_21] : memref<9x128x64xbf16, #tpu.memory_space<vmem>>, vector<1x128x64xbf16>
    %28 = vector.shape_cast %27 : vector<1x128x64xbf16> to vector<128x64xbf16>
    %cst_22 = arith.constant dense<0.000000e+00> : vector<16x64xf32>
    %29 = tpu.matmul %23, %28, %cst_22 {dimension_numbers = #tpu.dot_dimension_numbers<[1], [0], [0], [1], [0, 0, 1, 1], [], []>} : vector<16x128xbf16>, vector<128x64xbf16>, vector<16x64xf32> -> vector<16x64xf32>
    %30 = arith.addf %21, %29 : vector<16x64xf32>
    %c0_23 = arith.constant 0 : index
    %c0_24 = arith.constant 0 : index
    %31 = vector.load %arg8[%c0_23, %c0_24] : memref<16x64xf32, #tpu.memory_space<vmem>>, vector<16x64xf32>
    tpu.vector_store %arg8[%c0_23, %c0_24], %30 {strides = array<i32>} : memref<16x64xf32, #tpu.memory_space<vmem>>, vector<16x64xf32>,
    %c2_i32_25 = arith.constant 2 : i32
    %32 = arith.cmpi eq, %arg2, %c2_i32_25 : i32
    %33 = arith.extui %32 : i1 to i32
    %c0_i32_26 = arith.constant 0 : i32
    %34 = arith.cmpi ne, %33, %c0_i32_26 : i32
    scf.if %34 {
      %c0_27 = arith.constant 0 : index
      %c0_28 = arith.constant 0 : index
      %35 = vector.load %arg8[%c0_27, %c0_28] : memref<16x64xf32, #tpu.memory_space<vmem>>, vector<16x64xf32>
      %c0_29 = arith.constant 0 : index
      %c0_30 = arith.constant 0 : index
      %36 = vector.load %arg5[%c0_29, %c0_30] : memref<1x64xf32, #tpu.memory_space<vmem>>, vector<1x64xf32>
      %37 = vector.broadcast %36 : vector<1x64xf32> to vector<16x64xf32>
      %38 = arith.addf %35, %37 : vector<16x64xf32>
      %cst_31 = arith.constant dense<0.000000e+00> : vector<64xf32>
      %39 = vector.multi_reduction <add>, %38, %cst_31 [0] : vector<16x64xf32> to vector<64xf32>
      %40 = vector.shape_cast %39 : vector<64xf32> to vector<1x64xf32>
      %c0_32 = arith.constant 0 : index
      %c0_33 = arith.constant 0 : index
      %c0_34 = arith.constant 0 : index
      %c0_35 = arith.constant 0 : index
      %41 = vector.load %arg7[%c0_32, %c0_33, %c0_34, %c0_35] : memref<1x1x2x64xf32, #tpu.memory_space<vmem>>, vector<1x1x1x64xf32>
      %42 = vector.shape_cast %41 : vector<1x1x1x64xf32> to vector<1x64xf32>
      %43 = vector.shape_cast %40 : vector<1x64xf32> to vector<1x1x1x64xf32>
      tpu.vector_store %arg7[%c0_32, %c0_33, %c0_34, %c0_35], %43 {strides = array<i32>} : memref<1x1x2x64xf32, #tpu.memory_space<vmem>>, vector<1x1x1x64xf32>,
      %44 = arith.mulf %38, %38 : vector<16x64xf32>
      %cst_36 = arith.constant dense<0.000000e+00> : vector<64xf32>
      %45 = vector.multi_reduction <add>, %44, %cst_36 [0] : vector<16x64xf32> to vector<64xf32>
      %46 = vector.shape_cast %45 : vector<64xf32> to vector<1x64xf32>
      %c0_37 = arith.constant 0 : index
      %c0_38 = arith.constant 0 : index
      %c1_39 = arith.constant 1 : index
      %c0_40 = arith.constant 0 : index
      %47 = vector.load %arg7[%c0_37, %c0_38, %c1_39, %c0_40] : memref<1x1x2x64xf32, #tpu.memory_space<vmem>>, vector<1x1x1x64xf32>
      %48 = vector.shape_cast %47 : vector<1x1x1x64xf32> to vector<1x64xf32>
      %49 = vector.shape_cast %46 : vector<1x64xf32> to vector<1x1x1x64xf32>
      tpu.vector_store %arg7[%c0_37, %c0_38, %c1_39, %c0_40], %49 {strides = array<i32>} : memref<1x1x2x64xf32, #tpu.memory_space<vmem>>, vector<1x1x1x64xf32>,
      %50 = arith.truncf %38 : vector<16x64xf32> to vector<16x64xbf16>
      %c0_41 = arith.constant 0 : index
      %c0_42 = arith.constant 0 : index
      %c0_43 = arith.constant 0 : index
      %c0_44 = arith.constant 0 : index
      %51 = vector.load %arg6[%c0_41, %c0_42, %c0_43, %c0_44] : memref<1x1x16x64xbf16, #tpu.memory_space<vmem>>, vector<1x1x16x64xbf16>
      %52 = vector.shape_cast %51 : vector<1x1x16x64xbf16> to vector<16x64xbf16>
      %53 = vector.shape_cast %50 : vector<16x64xbf16> to vector<1x1x16x64xbf16>
      tpu.vector_store %arg6[%c0_41, %c0_42, %c0_43, %c0_44], %53 {strides = array<i32>} : memref<1x1x16x64xbf16, #tpu.memory_space<vmem>>, vector<1x1x16x64xbf16>,
    } else {
    }
    return
  }
  func.func @transform_0(%arg0: i32, %arg1: i32, %arg2: i32) -> (i32, i32, i32, i32) {
    %0 = arith.addi %arg1, %arg2 : i32
    %c0_i32 = arith.constant 0 : i32
    %c0_i32_0 = arith.constant 0 : i32
    %c0_i32_1 = arith.constant 0 : i32
    return %arg0, %0, %c0_i32, %c0_i32_0 : i32, i32, i32, i32
  }
  func.func @transform_1(%arg0: i32, %arg1: i32, %arg2: i32) -> (i32, i32, i32) {
    %c0_i32 = arith.constant 0 : i32
    %c0_i32_0 = arith.constant 0 : i32
    %c0_i32_1 = arith.constant 0 : i32
    %c0_i32_2 = arith.constant 0 : i32
    return %c0_i32, %c0_i32_0, %c0_i32_1 : i32, i32, i32
  }
  func.func @transform_2(%arg0: i32, %arg1: i32, %arg2: i32) -> (i32, i32) {
    %c0_i32 = arith.constant 0 : i32
    %c0_i32_0 = arith.constant 0 : i32
    %c0_i32_1 = arith.constant 0 : i32
    return %c0_i32, %c0_i32_0 : i32, i32
  }
  func.func @transform_3(%arg0: i32, %arg1: i32, %arg2: i32) -> (i32, i32, i32, i32) {
    %c0_i32 = arith.constant 0 : i32
    %c0_i32_0 = arith.constant 0 : i32
    %c0_i32_1 = arith.constant 0 : i32
    return %arg0, %arg1, %c0_i32, %c0_i32_0 : i32, i32, i32, i32
  }
  func.func @transform_4(%arg0: i32, %arg1: i32, %arg2: i32) -> (i32, i32, i32, i32) {
    %c0_i32 = arith.constant 0 : i32
    %c0_i32_0 = arith.constant 0 : i32
    %c0_i32_1 = arith.constant 0 : i32
    return %arg0, %arg1, %c0_i32, %c0_i32_0 : i32, i32, i32, i32
  }
}

module attributes {stable_mosaic.version = 11 : i64} {
  func.func @_conv_row_kernel(%arg0: i32, %arg1: i32, %arg2: i32, %arg3: memref<1x1x18x64xbf16, #tpu.memory_space<vmem>>, %arg4: memref<9x64x64xbf16, #tpu.memory_space<vmem>>, %arg5: memref<1x64xf32, #tpu.memory_space<vmem>>, %arg6: memref<1x1x16x64xbf16, #tpu.memory_space<vmem>>, %arg7: memref<1x1x2x64xf32, #tpu.memory_space<vmem>>, %arg8: memref<16x64xf32, #tpu.memory_space<vmem>>) attributes {dimension_semantics = [#tpu.dimension_semantics<parallel>, #tpu.dimension_semantics<parallel>, #tpu.dimension_semantics<arbitrary>], iteration_bounds = array<i64: 2, 16, 3>, scalar_prefetch = 0 : i64, scratch_operands = 1 : i64, tpu.core_type = #tpu.core_type<tc>, window_params = [{transform_indices = @transform_0, window_bounds = array<i64: 1, 1, 18, 64>}, {pipeline_mode = #tpu.pipeline_mode<synchronous>, transform_indices = @transform_1, window_bounds = array<i64: 9, 64, 64>}, {pipeline_mode = #tpu.pipeline_mode<synchronous>, transform_indices = @transform_2, window_bounds = array<i64: 1, 64>}, {transform_indices = @transform_3, window_bounds = array<i64: 1, 1, 16, 64>}, {transform_indices = @transform_4, window_bounds = array<i64: 1, 1, 2, 64>}]} {
    %c0_i32 = arith.constant 0 : i32
    %0 = arith.cmpi eq, %arg2, %c0_i32 : i32
    %1 = arith.extui %0 : i1 to i32
    %c0_i32_0 = arith.constant 0 : i32
    %2 = arith.cmpi ne, %1, %c0_i32_0 : i32
    scf.if %2 {
      %cst_27 = arith.constant 0.000000e+00 : f32
      %35 = vector.broadcast %cst_27 : f32 to vector<16x64xf32>
      %c0_28 = arith.constant 0 : index
      %c0_29 = arith.constant 0 : index
      %36 = vector.load %arg8[%c0_28, %c0_29] : memref<16x64xf32, #tpu.memory_space<vmem>>, vector<16x64xf32>
      tpu.vector_store %arg8[%c0_28, %c0_29], %35 {strides = array<i32>} : memref<16x64xf32, #tpu.memory_space<vmem>>, vector<16x64xf32>,
    } else {
    }
    %c0 = arith.constant 0 : index
    %c0_1 = arith.constant 0 : index
    %3 = vector.load %arg8[%c0, %c0_1] : memref<16x64xf32, #tpu.memory_space<vmem>>, vector<16x64xf32>
    %c0_2 = arith.constant 0 : index
    %c0_3 = arith.constant 0 : index
    %c0_4 = arith.constant 0 : index
    %c0_5 = arith.constant 0 : index
    %4 = vector.load %arg3[%c0_2, %c0_3, %c0_4, %c0_5] : memref<1x1x18x64xbf16, #tpu.memory_space<vmem>>, vector<1x1x16x64xbf16>
    %5 = vector.shape_cast %4 : vector<1x1x16x64xbf16> to vector<16x64xbf16>
    %c3_i32 = arith.constant 3 : i32
    %6 = arith.muli %arg2, %c3_i32 : i32
    %c0_i32_6 = arith.constant 0 : i32
    %7 = arith.addi %6, %c0_i32_6 : i32
    %8 = arith.index_cast %7 : i32 to index
    %c0_7 = arith.constant 0 : index
    %c0_8 = arith.constant 0 : index
    %9 = vector.load %arg4[%8, %c0_7, %c0_8] : memref<9x64x64xbf16, #tpu.memory_space<vmem>>, vector<1x64x64xbf16>
    %10 = vector.shape_cast %9 : vector<1x64x64xbf16> to vector<64x64xbf16>
    %cst = arith.constant dense<0.000000e+00> : vector<16x64xf32>
    %11 = tpu.matmul %5, %10, %cst {dimension_numbers = #tpu.dot_dimension_numbers<[1], [0], [0], [1], [0, 0, 1, 1], [], []>} : vector<16x64xbf16>, vector<64x64xbf16>, vector<16x64xf32> -> vector<16x64xf32>
    %12 = arith.addf %3, %11 : vector<16x64xf32>
    %c0_9 = arith.constant 0 : index
    %c0_10 = arith.constant 0 : index
    %c1 = arith.constant 1 : index
    %c0_11 = arith.constant 0 : index
    %13 = vector.load %arg3[%c0_9, %c0_10, %c1, %c0_11] : memref<1x1x18x64xbf16, #tpu.memory_space<vmem>>, vector<1x1x16x64xbf16>
    %14 = vector.shape_cast %13 : vector<1x1x16x64xbf16> to vector<16x64xbf16>
    %c3_i32_12 = arith.constant 3 : i32
    %15 = arith.muli %arg2, %c3_i32_12 : i32
    %c1_i32 = arith.constant 1 : i32
    %16 = arith.addi %15, %c1_i32 : i32
    %17 = arith.index_cast %16 : i32 to index
    %c0_13 = arith.constant 0 : index
    %c0_14 = arith.constant 0 : index
    %18 = vector.load %arg4[%17, %c0_13, %c0_14] : memref<9x64x64xbf16, #tpu.memory_space<vmem>>, vector<1x64x64xbf16>
    %19 = vector.shape_cast %18 : vector<1x64x64xbf16> to vector<64x64xbf16>
    %cst_15 = arith.constant dense<0.000000e+00> : vector<16x64xf32>
    %20 = tpu.matmul %14, %19, %cst_15 {dimension_numbers = #tpu.dot_dimension_numbers<[1], [0], [0], [1], [0, 0, 1, 1], [], []>} : vector<16x64xbf16>, vector<64x64xbf16>, vector<16x64xf32> -> vector<16x64xf32>
    %21 = arith.addf %12, %20 : vector<16x64xf32>
    %c0_16 = arith.constant 0 : index
    %c0_17 = arith.constant 0 : index
    %c2 = arith.constant 2 : index
    %c0_18 = arith.constant 0 : index
    %22 = vector.load %arg3[%c0_16, %c0_17, %c2, %c0_18] : memref<1x1x18x64xbf16, #tpu.memory_space<vmem>>, vector<1x1x16x64xbf16>
    %23 = vector.shape_cast %22 : vector<1x1x16x64xbf16> to vector<16x64xbf16>
    %c3_i32_19 = arith.constant 3 : i32
    %24 = arith.muli %arg2, %c3_i32_19 : i32
    %c2_i32 = arith.constant 2 : i32
    %25 = arith.addi %24, %c2_i32 : i32
    %26 = arith.index_cast %25 : i32 to index
    %c0_20 = arith.constant 0 : index
    %c0_21 = arith.constant 0 : index
    %27 = vector.load %arg4[%26, %c0_20, %c0_21] : memref<9x64x64xbf16, #tpu.memory_space<vmem>>, vector<1x64x64xbf16>
    %28 = vector.shape_cast %27 : vector<1x64x64xbf16> to vector<64x64xbf16>
    %cst_22 = arith.constant dense<0.000000e+00> : vector<16x64xf32>
    %29 = tpu.matmul %23, %28, %cst_22 {dimension_numbers = #tpu.dot_dimension_numbers<[1], [0], [0], [1], [0, 0, 1, 1], [], []>} : vector<16x64xbf16>, vector<64x64xbf16>, vector<16x64xf32> -> vector<16x64xf32>
    %30 = arith.addf %21, %29 : vector<16x64xf32>
    %c0_23 = arith.constant 0 : index
    %c0_24 = arith.constant 0 : index
    %31 = vector.load %arg8[%c0_23, %c0_24] : memref<16x64xf32, #tpu.memory_space<vmem>>, vector<16x64xf32>
    tpu.vector_store %arg8[%c0_23, %c0_24], %30 {strides = array<i32>} : memref<16x64xf32, #tpu.memory_space<vmem>>, vector<16x64xf32>,
    %c2_i32_25 = arith.constant 2 : i32
    %32 = arith.cmpi eq, %arg2, %c2_i32_25 : i32
    %33 = arith.extui %32 : i1 to i32
    %c0_i32_26 = arith.constant 0 : i32
    %34 = arith.cmpi ne, %33, %c0_i32_26 : i32
    scf.if %34 {
      %c0_27 = arith.constant 0 : index
      %c0_28 = arith.constant 0 : index
      %35 = vector.load %arg8[%c0_27, %c0_28] : memref<16x64xf32, #tpu.memory_space<vmem>>, vector<16x64xf32>
      %c0_29 = arith.constant 0 : index
      %c0_30 = arith.constant 0 : index
      %36 = vector.load %arg5[%c0_29, %c0_30] : memref<1x64xf32, #tpu.memory_space<vmem>>, vector<1x64xf32>
      %37 = vector.broadcast %36 : vector<1x64xf32> to vector<16x64xf32>
      %38 = arith.addf %35, %37 : vector<16x64xf32>
      %cst_31 = arith.constant dense<0.000000e+00> : vector<64xf32>
      %39 = vector.multi_reduction <add>, %38, %cst_31 [0] : vector<16x64xf32> to vector<64xf32>
      %40 = vector.shape_cast %39 : vector<64xf32> to vector<1x64xf32>
      %c0_32 = arith.constant 0 : index
      %c0_33 = arith.constant 0 : index
      %c0_34 = arith.constant 0 : index
      %c0_35 = arith.constant 0 : index
      %41 = vector.load %arg7[%c0_32, %c0_33, %c0_34, %c0_35] : memref<1x1x2x64xf32, #tpu.memory_space<vmem>>, vector<1x1x1x64xf32>
      %42 = vector.shape_cast %41 : vector<1x1x1x64xf32> to vector<1x64xf32>
      %43 = vector.shape_cast %40 : vector<1x64xf32> to vector<1x1x1x64xf32>
      tpu.vector_store %arg7[%c0_32, %c0_33, %c0_34, %c0_35], %43 {strides = array<i32>} : memref<1x1x2x64xf32, #tpu.memory_space<vmem>>, vector<1x1x1x64xf32>,
      %44 = arith.mulf %38, %38 : vector<16x64xf32>
      %cst_36 = arith.constant dense<0.000000e+00> : vector<64xf32>
      %45 = vector.multi_reduction <add>, %44, %cst_36 [0] : vector<16x64xf32> to vector<64xf32>
      %46 = vector.shape_cast %45 : vector<64xf32> to vector<1x64xf32>
      %c0_37 = arith.constant 0 : index
      %c0_38 = arith.constant 0 : index
      %c1_39 = arith.constant 1 : index
      %c0_40 = arith.constant 0 : index
      %47 = vector.load %arg7[%c0_37, %c0_38, %c1_39, %c0_40] : memref<1x1x2x64xf32, #tpu.memory_space<vmem>>, vector<1x1x1x64xf32>
      %48 = vector.shape_cast %47 : vector<1x1x1x64xf32> to vector<1x64xf32>
      %49 = vector.shape_cast %46 : vector<1x64xf32> to vector<1x1x1x64xf32>
      tpu.vector_store %arg7[%c0_37, %c0_38, %c1_39, %c0_40], %49 {strides = array<i32>} : memref<1x1x2x64xf32, #tpu.memory_space<vmem>>, vector<1x1x1x64xf32>,
      %50 = arith.truncf %38 : vector<16x64xf32> to vector<16x64xbf16>
      %c0_41 = arith.constant 0 : index
      %c0_42 = arith.constant 0 : index
      %c0_43 = arith.constant 0 : index
      %c0_44 = arith.constant 0 : index
      %51 = vector.load %arg6[%c0_41, %c0_42, %c0_43, %c0_44] : memref<1x1x16x64xbf16, #tpu.memory_space<vmem>>, vector<1x1x16x64xbf16>
      %52 = vector.shape_cast %51 : vector<1x1x16x64xbf16> to vector<16x64xbf16>
      %53 = vector.shape_cast %50 : vector<16x64xbf16> to vector<1x1x16x64xbf16>
      tpu.vector_store %arg6[%c0_41, %c0_42, %c0_43, %c0_44], %53 {strides = array<i32>} : memref<1x1x16x64xbf16, #tpu.memory_space<vmem>>, vector<1x1x16x64xbf16>,
    } else {
    }
    return
  }
  func.func @transform_0(%arg0: i32, %arg1: i32, %arg2: i32) -> (i32, i32, i32, i32) {
    %0 = arith.addi %arg1, %arg2 : i32
    %c0_i32 = arith.constant 0 : i32
    %c0_i32_0 = arith.constant 0 : i32
    %c0_i32_1 = arith.constant 0 : i32
    return %arg0, %0, %c0_i32, %c0_i32_0 : i32, i32, i32, i32
  }
  func.func @transform_1(%arg0: i32, %arg1: i32, %arg2: i32) -> (i32, i32, i32) {
    %c0_i32 = arith.constant 0 : i32
    %c0_i32_0 = arith.constant 0 : i32
    %c0_i32_1 = arith.constant 0 : i32
    %c0_i32_2 = arith.constant 0 : i32
    return %c0_i32, %c0_i32_0, %c0_i32_1 : i32, i32, i32
  }
  func.func @transform_2(%arg0: i32, %arg1: i32, %arg2: i32) -> (i32, i32) {
    %c0_i32 = arith.constant 0 : i32
    %c0_i32_0 = arith.constant 0 : i32
    %c0_i32_1 = arith.constant 0 : i32
    return %c0_i32, %c0_i32_0 : i32, i32
  }
  func.func @transform_3(%arg0: i32, %arg1: i32, %arg2: i32) -> (i32, i32, i32, i32) {
    %c0_i32 = arith.constant 0 : i32
    %c0_i32_0 = arith.constant 0 : i32
    %c0_i32_1 = arith.constant 0 : i32
    return %arg0, %arg1, %c0_i32, %c0_i32_0 : i32, i32, i32, i32
  }
  func.func @transform_4(%arg0: i32, %arg1: i32, %arg2: i32) -> (i32, i32, i32, i32) {
    %c0_i32 = arith.constant 0 : i32
    %c0_i32_0 = arith.constant 0 : i32
    %c0_i32_1 = arith.constant 0 : i32
    return %arg0, %arg1, %c0_i32, %c0_i32_0 : i32, i32, i32, i32
  }
}

module attributes {stable_mosaic.version = 11 : i64} {
  func.func @_conv_row_kernel(%arg0: i32, %arg1: i32, %arg2: i32, %arg3: memref<1x1x22x64xbf16, #tpu.memory_space<vmem>>, %arg4: memref<49x64x128xbf16, #tpu.memory_space<vmem>>, %arg5: memref<1x128xf32, #tpu.memory_space<vmem>>, %arg6: memref<1x1x16x128xf32, #tpu.memory_space<vmem>>, %arg7: memref<1x1x2x128xf32, #tpu.memory_space<vmem>>, %arg8: memref<16x128xf32, #tpu.memory_space<vmem>>) attributes {dimension_semantics = [#tpu.dimension_semantics<parallel>, #tpu.dimension_semantics<parallel>, #tpu.dimension_semantics<arbitrary>], iteration_bounds = array<i64: 2, 16, 7>, scalar_prefetch = 0 : i64, scratch_operands = 1 : i64, tpu.core_type = #tpu.core_type<tc>, window_params = [{transform_indices = @transform_0, window_bounds = array<i64: 1, 1, 22, 64>}, {pipeline_mode = #tpu.pipeline_mode<synchronous>, transform_indices = @transform_1, window_bounds = array<i64: 49, 64, 128>}, {pipeline_mode = #tpu.pipeline_mode<synchronous>, transform_indices = @transform_2, window_bounds = array<i64: 1, 128>}, {transform_indices = @transform_3, window_bounds = array<i64: 1, 1, 16, 128>}, {transform_indices = @transform_4, window_bounds = array<i64: 1, 1, 2, 128>}]} {
    %c0_i32 = arith.constant 0 : i32
    %0 = arith.cmpi eq, %arg2, %c0_i32 : i32
    %1 = arith.extui %0 : i1 to i32
    %c0_i32_0 = arith.constant 0 : i32
    %2 = arith.cmpi ne, %1, %c0_i32_0 : i32
    scf.if %2 {
      %cst_55 = arith.constant 0.000000e+00 : f32
      %71 = vector.broadcast %cst_55 : f32 to vector<16x128xf32>
      %c0_56 = arith.constant 0 : index
      %c0_57 = arith.constant 0 : index
      %72 = vector.load %arg8[%c0_56, %c0_57] : memref<16x128xf32, #tpu.memory_space<vmem>>, vector<16x128xf32>
      tpu.vector_store %arg8[%c0_56, %c0_57], %71 {strides = array<i32>} : memref<16x128xf32, #tpu.memory_space<vmem>>, vector<16x128xf32>,
    } else {
    }
    %c0 = arith.constant 0 : index
    %c0_1 = arith.constant 0 : index
    %3 = vector.load %arg8[%c0, %c0_1] : memref<16x128xf32, #tpu.memory_space<vmem>>, vector<16x128xf32>
    %c0_2 = arith.constant 0 : index
    %c0_3 = arith.constant 0 : index
    %c0_4 = arith.constant 0 : index
    %c0_5 = arith.constant 0 : index
    %4 = vector.load %arg3[%c0_2, %c0_3, %c0_4, %c0_5] : memref<1x1x22x64xbf16, #tpu.memory_space<vmem>>, vector<1x1x16x64xbf16>
    %5 = vector.shape_cast %4 : vector<1x1x16x64xbf16> to vector<16x64xbf16>
    %c7_i32 = arith.constant 7 : i32
    %6 = arith.muli %arg2, %c7_i32 : i32
    %c0_i32_6 = arith.constant 0 : i32
    %7 = arith.addi %6, %c0_i32_6 : i32
    %8 = arith.index_cast %7 : i32 to index
    %c0_7 = arith.constant 0 : index
    %c0_8 = arith.constant 0 : index
    %9 = vector.load %arg4[%8, %c0_7, %c0_8] : memref<49x64x128xbf16, #tpu.memory_space<vmem>>, vector<1x64x128xbf16>
    %10 = vector.shape_cast %9 : vector<1x64x128xbf16> to vector<64x128xbf16>
    %cst = arith.constant dense<0.000000e+00> : vector<16x128xf32>
    %11 = tpu.matmul %5, %10, %cst {dimension_numbers = #tpu.dot_dimension_numbers<[1], [0], [0], [1], [0, 0, 1, 1], [], []>} : vector<16x64xbf16>, vector<64x128xbf16>, vector<16x128xf32> -> vector<16x128xf32>
    %12 = arith.addf %3, %11 : vector<16x128xf32>
    %c0_9 = arith.constant 0 : index
    %c0_10 = arith.constant 0 : index
    %c1 = arith.constant 1 : index
    %c0_11 = arith.constant 0 : index
    %13 = vector.load %arg3[%c0_9, %c0_10, %c1, %c0_11] : memref<1x1x22x64xbf16, #tpu.memory_space<vmem>>, vector<1x1x16x64xbf16>
    %14 = vector.shape_cast %13 : vector<1x1x16x64xbf16> to vector<16x64xbf16>
    %c7_i32_12 = arith.constant 7 : i32
    %15 = arith.muli %arg2, %c7_i32_12 : i32
    %c1_i32 = arith.constant 1 : i32
    %16 = arith.addi %15, %c1_i32 : i32
    %17 = arith.index_cast %16 : i32 to index
    %c0_13 = arith.constant 0 : index
    %c0_14 = arith.constant 0 : index
    %18 = vector.load %arg4[%17, %c0_13, %c0_14] : memref<49x64x128xbf16, #tpu.memory_space<vmem>>, vector<1x64x128xbf16>
    %19 = vector.shape_cast %18 : vector<1x64x128xbf16> to vector<64x128xbf16>
    %cst_15 = arith.constant dense<0.000000e+00> : vector<16x128xf32>
    %20 = tpu.matmul %14, %19, %cst_15 {dimension_numbers = #tpu.dot_dimension_numbers<[1], [0], [0], [1], [0, 0, 1, 1], [], []>} : vector<16x64xbf16>, vector<64x128xbf16>, vector<16x128xf32> -> vector<16x128xf32>
    %21 = arith.addf %12, %20 : vector<16x128xf32>
    %c0_16 = arith.constant 0 : index
    %c0_17 = arith.constant 0 : index
    %c2 = arith.constant 2 : index
    %c0_18 = arith.constant 0 : index
    %22 = vector.load %arg3[%c0_16, %c0_17, %c2, %c0_18] : memref<1x1x22x64xbf16, #tpu.memory_space<vmem>>, vector<1x1x16x64xbf16>
    %23 = vector.shape_cast %22 : vector<1x1x16x64xbf16> to vector<16x64xbf16>
    %c7_i32_19 = arith.constant 7 : i32
    %24 = arith.muli %arg2, %c7_i32_19 : i32
    %c2_i32 = arith.constant 2 : i32
    %25 = arith.addi %24, %c2_i32 : i32
    %26 = arith.index_cast %25 : i32 to index
    %c0_20 = arith.constant 0 : index
    %c0_21 = arith.constant 0 : index
    %27 = vector.load %arg4[%26, %c0_20, %c0_21] : memref<49x64x128xbf16, #tpu.memory_space<vmem>>, vector<1x64x128xbf16>
    %28 = vector.shape_cast %27 : vector<1x64x128xbf16> to vector<64x128xbf16>
    %cst_22 = arith.constant dense<0.000000e+00> : vector<16x128xf32>
    %29 = tpu.matmul %23, %28, %cst_22 {dimension_numbers = #tpu.dot_dimension_numbers<[1], [0], [0], [1], [0, 0, 1, 1], [], []>} : vector<16x64xbf16>, vector<64x128xbf16>, vector<16x128xf32> -> vector<16x128xf32>
    %30 = arith.addf %21, %29 : vector<16x128xf32>
    %c0_23 = arith.constant 0 : index
    %c0_24 = arith.constant 0 : index
    %c3 = arith.constant 3 : index
    %c0_25 = arith.constant 0 : index
    %31 = vector.load %arg3[%c0_23, %c0_24, %c3, %c0_25] : memref<1x1x22x64xbf16, #tpu.memory_space<vmem>>, vector<1x1x16x64xbf16>
    %32 = vector.shape_cast %31 : vector<1x1x16x64xbf16> to vector<16x64xbf16>
    %c7_i32_26 = arith.constant 7 : i32
    %33 = arith.muli %arg2, %c7_i32_26 : i32
    %c3_i32 = arith.constant 3 : i32
    %34 = arith.addi %33, %c3_i32 : i32
    %35 = arith.index_cast %34 : i32 to index
    %c0_27 = arith.constant 0 : index
    %c0_28 = arith.constant 0 : index
    %36 = vector.load %arg4[%35, %c0_27, %c0_28] : memref<49x64x128xbf16, #tpu.memory_space<vmem>>, vector<1x64x128xbf16>
    %37 = vector.shape_cast %36 : vector<1x64x128xbf16> to vector<64x128xbf16>
    %cst_29 = arith.constant dense<0.000000e+00> : vector<16x128xf32>
    %38 = tpu.matmul %32, %37, %cst_29 {dimension_numbers = #tpu.dot_dimension_numbers<[1], [0], [0], [1], [0, 0, 1, 1], [], []>} : vector<16x64xbf16>, vector<64x128xbf16>, vector<16x128xf32> -> vector<16x128xf32>
    %39 = arith.addf %30, %38 : vector<16x128xf32>
    %c0_30 = arith.constant 0 : index
    %c0_31 = arith.constant 0 : index
    %c4 = arith.constant 4 : index
    %c0_32 = arith.constant 0 : index
    %40 = vector.load %arg3[%c0_30, %c0_31, %c4, %c0_32] : memref<1x1x22x64xbf16, #tpu.memory_space<vmem>>, vector<1x1x16x64xbf16>
    %41 = vector.shape_cast %40 : vector<1x1x16x64xbf16> to vector<16x64xbf16>
    %c7_i32_33 = arith.constant 7 : i32
    %42 = arith.muli %arg2, %c7_i32_33 : i32
    %c4_i32 = arith.constant 4 : i32
    %43 = arith.addi %42, %c4_i32 : i32
    %44 = arith.index_cast %43 : i32 to index
    %c0_34 = arith.constant 0 : index
    %c0_35 = arith.constant 0 : index
    %45 = vector.load %arg4[%44, %c0_34, %c0_35] : memref<49x64x128xbf16, #tpu.memory_space<vmem>>, vector<1x64x128xbf16>
    %46 = vector.shape_cast %45 : vector<1x64x128xbf16> to vector<64x128xbf16>
    %cst_36 = arith.constant dense<0.000000e+00> : vector<16x128xf32>
    %47 = tpu.matmul %41, %46, %cst_36 {dimension_numbers = #tpu.dot_dimension_numbers<[1], [0], [0], [1], [0, 0, 1, 1], [], []>} : vector<16x64xbf16>, vector<64x128xbf16>, vector<16x128xf32> -> vector<16x128xf32>
    %48 = arith.addf %39, %47 : vector<16x128xf32>
    %c0_37 = arith.constant 0 : index
    %c0_38 = arith.constant 0 : index
    %c5 = arith.constant 5 : index
    %c0_39 = arith.constant 0 : index
    %49 = vector.load %arg3[%c0_37, %c0_38, %c5, %c0_39] : memref<1x1x22x64xbf16, #tpu.memory_space<vmem>>, vector<1x1x16x64xbf16>
    %50 = vector.shape_cast %49 : vector<1x1x16x64xbf16> to vector<16x64xbf16>
    %c7_i32_40 = arith.constant 7 : i32
    %51 = arith.muli %arg2, %c7_i32_40 : i32
    %c5_i32 = arith.constant 5 : i32
    %52 = arith.addi %51, %c5_i32 : i32
    %53 = arith.index_cast %52 : i32 to index
    %c0_41 = arith.constant 0 : index
    %c0_42 = arith.constant 0 : index
    %54 = vector.load %arg4[%53, %c0_41, %c0_42] : memref<49x64x128xbf16, #tpu.memory_space<vmem>>, vector<1x64x128xbf16>
    %55 = vector.shape_cast %54 : vector<1x64x128xbf16> to vector<64x128xbf16>
    %cst_43 = arith.constant dense<0.000000e+00> : vector<16x128xf32>
    %56 = tpu.matmul %50, %55, %cst_43 {dimension_numbers = #tpu.dot_dimension_numbers<[1], [0], [0], [1], [0, 0, 1, 1], [], []>} : vector<16x64xbf16>, vector<64x128xbf16>, vector<16x128xf32> -> vector<16x128xf32>
    %57 = arith.addf %48, %56 : vector<16x128xf32>
    %c0_44 = arith.constant 0 : index
    %c0_45 = arith.constant 0 : index
    %c6 = arith.constant 6 : index
    %c0_46 = arith.constant 0 : index
    %58 = vector.load %arg3[%c0_44, %c0_45, %c6, %c0_46] : memref<1x1x22x64xbf16, #tpu.memory_space<vmem>>, vector<1x1x16x64xbf16>
    %59 = vector.shape_cast %58 : vector<1x1x16x64xbf16> to vector<16x64xbf16>
    %c7_i32_47 = arith.constant 7 : i32
    %60 = arith.muli %arg2, %c7_i32_47 : i32
    %c6_i32 = arith.constant 6 : i32
    %61 = arith.addi %60, %c6_i32 : i32
    %62 = arith.index_cast %61 : i32 to index
    %c0_48 = arith.constant 0 : index
    %c0_49 = arith.constant 0 : index
    %63 = vector.load %arg4[%62, %c0_48, %c0_49] : memref<49x64x128xbf16, #tpu.memory_space<vmem>>, vector<1x64x128xbf16>
    %64 = vector.shape_cast %63 : vector<1x64x128xbf16> to vector<64x128xbf16>
    %cst_50 = arith.constant dense<0.000000e+00> : vector<16x128xf32>
    %65 = tpu.matmul %59, %64, %cst_50 {dimension_numbers = #tpu.dot_dimension_numbers<[1], [0], [0], [1], [0, 0, 1, 1], [], []>} : vector<16x64xbf16>, vector<64x128xbf16>, vector<16x128xf32> -> vector<16x128xf32>
    %66 = arith.addf %57, %65 : vector<16x128xf32>
    %c0_51 = arith.constant 0 : index
    %c0_52 = arith.constant 0 : index
    %67 = vector.load %arg8[%c0_51, %c0_52] : memref<16x128xf32, #tpu.memory_space<vmem>>, vector<16x128xf32>
    tpu.vector_store %arg8[%c0_51, %c0_52], %66 {strides = array<i32>} : memref<16x128xf32, #tpu.memory_space<vmem>>, vector<16x128xf32>,
    %c6_i32_53 = arith.constant 6 : i32
    %68 = arith.cmpi eq, %arg2, %c6_i32_53 : i32
    %69 = arith.extui %68 : i1 to i32
    %c0_i32_54 = arith.constant 0 : i32
    %70 = arith.cmpi ne, %69, %c0_i32_54 : i32
    scf.if %70 {
      %c0_55 = arith.constant 0 : index
      %c0_56 = arith.constant 0 : index
      %71 = vector.load %arg8[%c0_55, %c0_56] : memref<16x128xf32, #tpu.memory_space<vmem>>, vector<16x128xf32>
      %c0_57 = arith.constant 0 : index
      %c0_58 = arith.constant 0 : index
      %72 = vector.load %arg5[%c0_57, %c0_58] : memref<1x128xf32, #tpu.memory_space<vmem>>, vector<1x128xf32>
      %73 = vector.broadcast %72 : vector<1x128xf32> to vector<16x128xf32>
      %74 = arith.addf %71, %73 : vector<16x128xf32>
      %cst_59 = arith.constant dense<0.000000e+00> : vector<128xf32>
      %75 = vector.multi_reduction <add>, %74, %cst_59 [0] : vector<16x128xf32> to vector<128xf32>
      %76 = vector.shape_cast %75 : vector<128xf32> to vector<1x128xf32>
      %c0_60 = arith.constant 0 : index
      %c0_61 = arith.constant 0 : index
      %c0_62 = arith.constant 0 : index
      %c0_63 = arith.constant 0 : index
      %77 = vector.load %arg7[%c0_60, %c0_61, %c0_62, %c0_63] : memref<1x1x2x128xf32, #tpu.memory_space<vmem>>, vector<1x1x1x128xf32>
      %78 = vector.shape_cast %77 : vector<1x1x1x128xf32> to vector<1x128xf32>
      %79 = vector.shape_cast %76 : vector<1x128xf32> to vector<1x1x1x128xf32>
      tpu.vector_store %arg7[%c0_60, %c0_61, %c0_62, %c0_63], %79 {strides = array<i32>} : memref<1x1x2x128xf32, #tpu.memory_space<vmem>>, vector<1x1x1x128xf32>,
      %80 = arith.mulf %74, %74 : vector<16x128xf32>
      %cst_64 = arith.constant dense<0.000000e+00> : vector<128xf32>
      %81 = vector.multi_reduction <add>, %80, %cst_64 [0] : vector<16x128xf32> to vector<128xf32>
      %82 = vector.shape_cast %81 : vector<128xf32> to vector<1x128xf32>
      %c0_65 = arith.constant 0 : index
      %c0_66 = arith.constant 0 : index
      %c1_67 = arith.constant 1 : index
      %c0_68 = arith.constant 0 : index
      %83 = vector.load %arg7[%c0_65, %c0_66, %c1_67, %c0_68] : memref<1x1x2x128xf32, #tpu.memory_space<vmem>>, vector<1x1x1x128xf32>
      %84 = vector.shape_cast %83 : vector<1x1x1x128xf32> to vector<1x128xf32>
      %85 = vector.shape_cast %82 : vector<1x128xf32> to vector<1x1x1x128xf32>
      tpu.vector_store %arg7[%c0_65, %c0_66, %c1_67, %c0_68], %85 {strides = array<i32>} : memref<1x1x2x128xf32, #tpu.memory_space<vmem>>, vector<1x1x1x128xf32>,
      %86 = arith.negf %74 : vector<16x128xf32>
      %87 = math.exp %86 : vector<16x128xf32>
      %cst_69 = arith.constant 1.000000e+00 : f32
      %88 = vector.broadcast %cst_69 : f32 to vector<16x128xf32>
      %89 = arith.addf %88, %87 : vector<16x128xf32>
      %90 = arith.divf %88, %89 : vector<16x128xf32>
      %c0_70 = arith.constant 0 : index
      %c0_71 = arith.constant 0 : index
      %c0_72 = arith.constant 0 : index
      %c0_73 = arith.constant 0 : index
      %91 = vector.load %arg6[%c0_70, %c0_71, %c0_72, %c0_73] : memref<1x1x16x128xf32, #tpu.memory_space<vmem>>, vector<1x1x16x128xf32>
      %92 = vector.shape_cast %91 : vector<1x1x16x128xf32> to vector<16x128xf32>
      %93 = vector.shape_cast %90 : vector<16x128xf32> to vector<1x1x16x128xf32>
      tpu.vector_store %arg6[%c0_70, %c0_71, %c0_72, %c0_73], %93 {strides = array<i32>} : memref<1x1x16x128xf32, #tpu.memory_space<vmem>>, vector<1x1x16x128xf32>,
    } else {
    }
    return
  }
  func.func @transform_0(%arg0: i32, %arg1: i32, %arg2: i32) -> (i32, i32, i32, i32) {
    %0 = arith.addi %arg1, %arg2 : i32
    %c0_i32 = arith.constant 0 : i32
    %c0_i32_0 = arith.constant 0 : i32
    %c0_i32_1 = arith.constant 0 : i32
    return %arg0, %0, %c0_i32, %c0_i32_0 : i32, i32, i32, i32
  }
  func.func @transform_1(%arg0: i32, %arg1: i32, %arg2: i32) -> (i32, i32, i32) {
    %c0_i32 = arith.constant 0 : i32
    %c0_i32_0 = arith.constant 0 : i32
    %c0_i32_1 = arith.constant 0 : i32
    %c0_i32_2 = arith.constant 0 : i32
    return %c0_i32, %c0_i32_0, %c0_i32_1 : i32, i32, i32
  }
  func.func @transform_2(%arg0: i32, %arg1: i32, %arg2: i32) -> (i32, i32) {
    %c0_i32 = arith.constant 0 : i32
    %c0_i32_0 = arith.constant 0 : i32
    %c0_i32_1 = arith.constant 0 : i32
    return %c0_i32, %c0_i32_0 : i32, i32
  }
  func.func @transform_3(%arg0: i32, %arg1: i32, %arg2: i32) -> (i32, i32, i32, i32) {
    %c0_i32 = arith.constant 0 : i32
    %c0_i32_0 = arith.constant 0 : i32
    %c0_i32_1 = arith.constant 0 : i32
    return %arg0, %arg1, %c0_i32, %c0_i32_0 : i32, i32, i32, i32
  }
  func.func @transform_4(%arg0: i32, %arg1: i32, %arg2: i32) -> (i32, i32, i32, i32) {
    %c0_i32 = arith.constant 0 : i32
    %c0_i32_0 = arith.constant 0 : i32
    %c0_i32_1 = arith.constant 0 : i32
    return %arg0, %arg1, %c0_i32, %c0_i32_0 : i32, i32, i32, i32
  }
}

</mosaic_0001>

<bundles_post_ra>
// kernel: generator_forward.47
= control target key start
LH: loop header
LB: loop body
LE: loop exit
PB: predicated region body
PF: predicated region fallthrough
CT: control target
= control target key end

     0   :  { %s1501_s0 = inlined_call_operand.vmem [shape: bf16[2,22,22,3], index: 0, kind: input, shape index: {}]   ;;  %s1502_s1 = inlined_call_operand.vmem [shape: bf16[49,3,64], index: 1, kind: input, shape index: {}]   ;;  %s1503_s2 = inlined_call_operand.hbm [shape: f32[1,64], index: 2, kind: input, shape index: {}]   ;;  %s1504_s3 = inlined_call_operand.vmem [shape: bf16[2,16,16,64], index: 3, kind: output, shape index: {0}]   ;;  %s1505_s4 = inlined_call_operand.vmem [shape: f32[2,16,2,64], index: 4, kind: output, shape index: {1}]  }
   0x1   :  { %1506 = sst [smem:[#allocation8_spill]] %s1503_s2 }
   0x2   :  { %10 = vsyncpa [#allocation4], 0  ;;  %s1310_s15 = smov 0   ;;  %s1312_s16 = smov 0  }
   0x3   :  { %s1314_s17 = smov 0   ;;  %s1316_s18 = smov 0  }
   0x4   :  { %s1318_s19 = smov 0   ;;  %s1320_s20 = smov 0  }
   0x5   :  { %s1322_s21 = smov 0  }
   0x6 LB: > { %s1006_s22 = sadd.s32 4294967295, %s1278_s21   ;;  %s28_s23 = sadd.s32 1, %s1266_s18  ;;  %s1278_s21 = sphi %s1322_s21, %s16_s21   ;;  %s1274_s20 = sphi %s1320_s20, %s1519_s20   ;;  %s1270_s19 = sphi %s1318_s19, %s1518_s19   ;;  %s1266_s18 = sphi %s1316_s18, %s1517_s18   ;;  %s1262_s17 = sphi %s1314_s17, %s1516_s17   ;;  %s1258_s16 = sphi %s1312_s16, %s1515_s16   ;;  %s1254_s15 = sphi %s1310_s15, %s1514_s15  }
   0x7   : > { %p29_p0 = scmp.ge.s32.totalorder %s28_s23, 7  ;;  %s31_s24 = sadd.s32 1, %s1270_s19 }
   0x8   : > { %s35_s25 = sadd.s32 1, %s1274_s20  ;;  %p1008_p1 = scmp.ge.s32.totalorder %s1278_s21, 1 }
   0x9   : > { %s1521_s23 = smov (%p29_p0, %s28_s23), 0  ;;  %s1523_s24 = smov (!%p29_p0, %s31_s24), %s1270_s19 }
   0xa   : > { %p168_p2 = scmp.lt.s32.totalorder %s1278_s21, 225  ;;  %p33_p3 = scmp.ge.s32.totalorder %s1523_s24, 16 }
   0xb   : > { %p1354_p4 = scmp.eq.s32.totalorder %s1006_s22, 0  ;;  %s1280_s28 = smov [#allocation3]  }
   0xc   : > { %p1358_p5 = pnand %p1008_p1, %p168_p2  ;;  %s1525_s24 = smov (%p33_p3, %s1523_s24), 0 }
   0xd   : > { %1509 = sst [smem:[#allocation6_spill]] %s1525_s24  ;;  %s1527_s25 = smov (!%p33_p3, %s35_s25), %s1274_s20 }
   0xe   : > { %p1119_p6 = pneg %p1358_p5  ;;  %s184_s29 = sshll.u32 %s1280_s28, 4  ;;  %s185_s29 = int_to_ptr.vmem [resolvable:$true] %s184_s29 }
   0xf   : > { %p37_p7 = scmp.ge.s32.totalorder %s1527_s25, 2  ;;  %s1205_s30 = scalar_lea.vmem %s185_s29, 16 }
  0x10   : > { %p1120_p8 = pnand %p1354_p4, %p1119_p6  ;;  %p1206_p10 = scmp.ne.s32.totalorder %s185_s29, %s1205_s30 }
  0x11   : > { %s1529_s25 = smov (%p37_p7, %s1527_s25), 0  ;;  %s1212_s5 = scalar_lea.vmem %s185_s29, 32 }
  0x12   : > { %1510 = sst [smem:[#allocation7_spill]] %s1529_s25  ;;  %p1196_p9 = pneg %p1120_p8 }
  0x13   : > { %p1213_p13 = scmp.lt.s32.totalorder %s185_s29, %s185_s29  ;;  %p1214_p0 = scmp.lt.s32.totalorder %s1212_s5, %s1205_s30 }
  0x14   : > { %p1208_p11 = pnand %p1206_p10, %p1196_p9 }
  0x15   : > { %p1215_p1 = por %p1214_p0, %p1213_p13 }
  0x16   : > { %p1209_p12 = pneg %p1208_p11 }
  0x18   : > { %p1216_p2 = pnand %p1215_p1, %p1209_p12 }
  0x1a   : > { %1219 = shalt.err (!%p1216_p2)
}
  0x1b   : > { %s1511_s2 = sld [smem:[#allocation8_spill]] }
  0x1d   : > { %211 = sbr.rel (%p1358_p5) target bundleno = 312 (0x138), region = 32 }
  0x21   : > { %1122 = dma.hbm_to_vmem [thread:$0]  (!%p1120_p8), %s1511_s2, 16, %s185_s29, [#allocation4]  }
  0x22   : > { %1249 = dma.done.wait (%p1354_p4), [#allocation4], 16  }
  0x23   : > { %1251 = vsyncadd (%p1354_p4), [#allocation4], 4294967280  ;;  %s254_s8 = sadd.s32 %s1254_s15, %s1258_s16  ;;  %p255_p3 = scmp.lt.s32.totalorder %s1262_s17, 1 }
  0x24   : > { %p257_p6 = scmp.lt.s32.totalorder %s254_s8, 21  ;;  %p267_p7 = scmp.lt.s32.totalorder %s1258_s16, 15 }
  0x25   : > { %s1531_s17 = smov (!%p255_p3, %s1262_s17), 1  ;;  %p1019_p4 = scmp.ne.s32.totalorder %s1254_s15, 0 }
  0x26   : > { %s1533_s8 = smov (!%p257_p6, %s254_s8), 21  ;;  %s1114_s9 = smul.u32 66, %s1531_s17 }
  0x27   : > { %s1113_s10 = smul.u32 3, %s1533_s8  ;;  %s1015_s11 = sshll.u32 %s1531_s17, 5 }
  0x28   : > { %s1535_s16 = smov (!%p267_p7, %s1258_s16), 15  ;;  %s1017_s13 = sshll.u32 %s1531_s17, 4 }
  0x29   : > { %s261_s12 = sadd.s32 %s1114_s9, %s1113_s10  ;;  %s1014_s22 = sshll.u32 %s1535_s16, 1 }
  0x2a   : > { %s1013_s14 = sshll.u32 %s261_s12, 2  ;;  %s271_s29 = sadd.s32 %s1015_s11, %s1014_s22 }
  0x2b   : > { %s1389_s28 = scalar_lea.vmem %s1501_s0, %s1013_s14  ;;  %s1016_s30 = sshll.u32 %s271_s29, 2 }
  0x2c   : > { %s279_s5 = sadd.s32 %s1017_s13, %s1535_s16  ;;  %s1394_s2 = scalar_lea.vmem %s1504_s3, %s1016_s30 }
  0x2d   : > { %s1018_s8 = sshll.u32 %s279_s5, 1  ;;  %286 = sbr.rel (%p1019_p4) target bundleno = 52 (0x34), region = 40 }
  0x2e   : > { %s1399_s17 = scalar_lea.vmem %s1505_s4, %s1018_s8 }
  0x32   : > { %vm287_vm0 = vcmask 523264   ;;  %v1281_v0 = vmov 0.0  }
  0x33   : > { %288 = vst.msk [vmem:[#allocation2] sm:$0xff] %vm287_vm0, %v1281_v0  ;;  %289 = vst.msk [vmem:[#allocation2 + $0x8] sm:$0xff] %vm287_vm0, %v1281_v0 }
  0x34 PF: > { %s1054_s16 = smul.u32 14, %s1254_s15  ;;  %vm307_vm1 = vcmask 1040384   ;;  %vm308_vm2 = vcmask 1041408   ;;  %v1282_v1 = vmov 0.0   ;;  %v1283_v2 = vmov 65535   ;;  %v1186_v12 = vld [vmem:[%s1389_s28] sm:$0xff]  }
  0x35   : > { %1071 = vmatprep.subr.bf16.mxu0 %v1282_v1  ;;  %v309_v3 = vsel %vm307_vm1, 4294967295, %v1283_v2  ;;  %1077 = vmatprep.subr.bf16.mxu1 %v1282_v1  ;;  %vm1284_vm3 = vmmov 0   ;;  %v357_v5 = vld [vmem:[%s1389_s28] sm:$0xf]  ;;  %v1418_v6 = vld [vmem:[%s1389_s28 + $0x4] sm:$0xf] }
  0x36   : > { %s1408_s9 = scalar_lea.vmem %s1502_s1, %s1054_s16  ;;  %v1410_v4 = vsel %vm308_vm2, %v309_v3, 0  ;;  %1073 = vmatprep.mubr.msk.bf16.mxu0 %vm1284_vm3, %v1282_v1  ;;  %1079 = vmatprep.mubr.msk.bf16.mxu1 %vm1284_vm3, %v1282_v1  ;;  %v1025_v9 = vcombine.low %v357_v5, %v1418_v6  ;;  %v1188_v13 = vld [vmem:[%s1389_s28 + $0x8] ss:$0 sps:$4 sm:$0x11]   ;;  %vm303_vm4 = vcmask 23552   ;;  %vm442_vm6 = vcmask 1046528  }
  0x37   : > { %v297_v7 = vld [vmem:[%s1408_s9] sm:$0x3]  ;;  %v1024_v8 = vld [vmem:[%s1408_s9 + $0x2] sm:$0x3]  ;;  %v1029_v16 = vld [vmem:[%s1408_s9 + $0x4] sm:$0x3] }
  0x38   : > { %v312_v10 = vand.u32 %v1410_v4, %v297_v7  ;;  %v389_v11 = vand.u32 %v1024_v8, %v1410_v4  ;;  %v374_v14 = vshrl.u32 %v1025_v9, 16  ;;  %v376_v15 = vshll.u32 %v1025_v9, 16  ;;  %v1033_v17 = vld [vmem:[%s1408_s9 + $0x6] sm:$0x3]  ;;  %v434_v20 = vld [vmem:[%s1389_s28] sm:$0xe] }
  0x39   : > { %v381_v18 = vshll.u32 %v1188_v13, 16  ;;  %v450_v19 = vand.u32 %v1029_v16, %v1410_v4  ;;  %v1030_v22 = vcombine.low %v434_v20, %v1418_v6  ;;  %v1190_v23 = vld [vmem:[%s1389_s28 + $0x8] ss:$0 sps:$4 sm:$0x33]   ;;  %vm372_vm5 = vsmask.f32 7424 }
  0x3a   : > { %1072 = vmatpush3.bf16.msra.mxu0 %v312_v10  ;;  %1078 = vmatpush3.bf16.msra.mxu1 %v389_v11  ;;  %v378_v21 = vrot.slane %v376_v15, 1  ;;  %v525_v26 = vand.u32 %v1033_v17, %v1410_v4  ;;  %v1037_v29 = vld [vmem:[%s1408_s9 + $0x8] sm:$0x3]  ;;  %v570_v30 = vld [vmem:[%s1389_s28] sm:$0xc]  ;;  %v444_v32 = vrot.slane %v1188_v13, 1 }
  0x3b   : > { %1083 = vmatprep.subr.bf16.mxu0 %v1282_v1  ;;  %1089 = vmatprep.subr.bf16.mxu1 %v1282_v1  ;;  %v383_v24 = vrot.slane %v381_v18, 1  ;;  %v505_v27 = vshrl.u32 %v1030_v22, 16  ;;  %v508_v28 = vshll.u32 %v1030_v22, 16  ;;  %v443_v31 = vrot.slane %v1030_v22, 1  ;;  %v1041_v44 = vld [vmem:[%s1408_s9 + $0xa] sm:$0x3] }
  0x3c   : > { %v379_v25 = vor.u32 %v378_v21, %v374_v14  ;;  %v513_v33 = vshrl.u32 %v1190_v23, 16  ;;  %v516_v34 = vshll.u32 %v1190_v23, 16  ;;  %v1192_v38 = vld [vmem:[%s1389_s28 + $0x8] ss:$0 sps:$4 sm:$0x77]   ;;  %v1038_v41 = vcombine.low %v570_v30, %v1418_v6  ;;  %v290_v11 = vld [vmem:[#allocation2] sm:$0xff] }
  0x3d   : > { %1074 = vmatmul.mubr.msk.bf16.vlgmr.msra.gmra.mxu0 %vm303_vm4, %v1186_v12  ;;  %v507_v36 = vrot.slane %v505_v27, 1  ;;  %v510_v37 = vrot.slane %v508_v28, 2  ;;  %vm503_vm7 = vsmask.f32 6400  ;;  %v586_v43 = vand.u32 %v1037_v29, %v1410_v4  ;;  %v1045_v59 = vld [vmem:[%s1408_s9 + $0xc] sm:$0x3] }
  0x3e   : > { %1084 = vmatpush3.bf16.msra.mxu0 %v450_v19  ;;  %1085 = vmatprep.mubr.msk.bf16.mxu0 %vm1284_vm3, %v1282_v1  ;;  %v384_v35 = vsel %vm372_vm5, %v379_v25, %v383_v24  ;;  %v515_v39 = vrot.slane %v513_v33, 1  ;;  %v518_v40 = vrot.slane %v516_v34, 2  ;;  %v649_v45 = vshrl.u32 %v1192_v38, 16  ;;  %v706_v60 = vld [vmem:[%s1389_s28] sm:$0x8]  ;;  %v291_v16 = vld [vmem:[#allocation2 + $0x8] sm:$0xff] }
  0x3f   : > { %1095 = vmatprep.subr.bf16.mxu0 %v1282_v1  ;;  %1080 = vmatmul.mubr.msk.bf16.vlgmr.msra.gmra.mxu1 %vm303_vm4, %v384_v35  ;;  %v511_v42 = vor.u32 %v510_v37, %v507_v36  ;;  %v652_v46 = vshll.u32 %v1192_v38, 16  ;;  %v445_v47 = vsel %vm442_vm6, %v443_v31, %v444_v32  ;;  %v641_v49 = vshrl.u32 %v1038_v41, 16  ;;  %p1048_p5 = scmp.ne.s32.totalorder %s1254_s15, 6 }
  0x40   : > { %1090 = vmatpush3.bf16.msra.mxu1 %v525_v26  ;;  %1091 = vmatprep.mubr.msk.bf16.mxu1 %vm1284_vm3, %v1282_v1  ;;  %v519_v48 = vor.u32 %v518_v40, %v515_v39  ;;  %v644_v50 = vshll.u32 %v1038_v41, 16  ;;  %v661_v51 = vand.u32 %v1041_v44, %v1410_v4  ;;  %v651_v52 = vrot.slane %v649_v45, 2 }
  0x41   : > { %1101 = vmatprep.subr.bf16.mxu1 %v1282_v1  ;;  %v643_v54 = vrot.slane %v641_v49, 2  ;;  %v654_v56 = vrot.slane %v652_v46, 3  ;;  %v579_v57 = vrot.slane %v1038_v41, 2  ;;  %v580_v58 = vrot.slane %v1190_v23, 2 }
  0x42   : > { %v520_v53 = vsel %vm503_vm7, %v511_v42, %v519_v48  ;;  %v646_v55 = vrot.slane %v644_v50, 3  ;;  %vm578_vm8 = vcmask 1045504   ;;  %vm639_vm9 = vsmask.f32 5376 }
  0x43   : > { %v655_v62 = vor.u32 %v654_v56, %v651_v52  ;;  %v581_v63 = vsel %vm578_vm8, %v579_v57, %v580_v58  ;;  %v722_v0 = vand.u32 %v1045_v59, %v1410_v4  ;;  %v1046_v2 = vcombine.low %v706_v60, %v1418_v6 }
  0x44   : > { %v647_v61 = vor.u32 %v646_v55, %v643_v54  ;;  %v716_v7 = vrot.slane %v1192_v38, 3  ;;  %vm714_vm10 = vcmask 1044480   ;;  %vm767_vm11 = vcmask 523264  }
  0x45   : > { %1086 = vmatmul.mubr.msk.bf16.vlgmr.msra.gmra.mxu0 %vm303_vm4, %v445_v47  ;;  %v715_v5 = vrot.slane %v1046_v2, 3 }
  0x46   : > { %1096 = vmatpush3.bf16.msra.mxu0 %v586_v43  ;;  %1097 = vmatprep.mubr.msk.bf16.mxu0 %vm1284_vm3, %v1282_v1  ;;  %v656_v3 = vsel %vm639_vm9, %v647_v61, %v655_v62 }
  0x47   : > { %1107 = vmatprep.subr.bf16.mxu0 %v1282_v1  ;;  %1092 = vmatmul.mubr.msk.bf16.vlgmr.msra.gmra.mxu1 %vm303_vm4, %v520_v53  ;;  %v717_v8 = vsel %vm714_vm10, %v715_v5, %v716_v7 }
  0x48   : > { %1102 = vmatpush3.bf16.msra.mxu1 %v661_v51  ;;  %1103 = vmatprep.mubr.msk.bf16.mxu1 %vm1284_vm3, %v1282_v1 }
  0x4d   : > { %1098 = vmatmul.mubr.msk.bf16.vlgmr.msra.gmra.mxu0 %vm303_vm4, %v581_v63 }
  0x4e   : > { %1108 = vmatpush3.bf16.msra.mxu0 %v722_v0  ;;  %1109 = vmatprep.mubr.msk.bf16.mxu0 %vm1284_vm3, %v1282_v1 }
  0x4f   : > { %1104 = vmatmul.mubr.msk.bf16.vlgmr.msra.gmra.mxu1 %vm303_vm4, %v656_v3 }
  0x55   : > { %1110 = vmatmul.mubr.msk.bf16.vlgmr.msra.gmra.mxu0 %vm303_vm4, %v717_v8 }
  0xfd   : > { %v348_v9 = vpop.f32.mrf.mxu0 }
  0xfe   : > { %v355_v14 = vadd.f32 %v348_v9, %v290_v11 }
  0xff   : > { %v1075_v10 = vpop.f32.mrf.mxu0  ;;  %v425_v4 = vpop.f32.mrf.mxu1 }
 0x100   : > { %v432_v19 = vadd.f32 %v425_v4, %v355_v14 }
 0x101   : > { %v351_v6 = vpop.f32.mrf.mxu0  ;;  %v1081_v12 = vpop.f32.mrf.mxu1 }
 0x102   : > { %v356_v20 = vadd.f32 %v351_v6, %v291_v16 }
 0x103   : > { %v1076_v13 = vpop.f32.mrf.mxu0  ;;  %v428_v15 = vpop.f32.mrf.mxu1 }
 0x104   : > { %v433_v26 = vadd.f32 %v428_v15, %v356_v20 }
 0x105   : > { %v486_v17 = vpop.f32.mrf.mxu0  ;;  %v1082_v1 = vpop.f32.mrf.mxu1 }
 0x106   : > { %v493_v23 = vadd.f32 %v486_v17, %v432_v19 }
 0x107   : > { %v1087_v18 = vpop.f32.mrf.mxu0  ;;  %v561_v21 = vpop.f32.mrf.mxu1 }
 0x108   : > { %v568_v29 = vadd.f32 %v561_v21, %v493_v23 }
 0x109   : > { %v489_v22 = vpop.f32.mrf.mxu0  ;;  %v1093_v24 = vpop.f32.mrf.mxu1 }
 0x10a   : > { %v494_v30 = vadd.f32 %v489_v22, %v433_v26 }
 0x10b   : > { %v1088_v25 = vpop.f32.mrf.mxu0  ;;  %v564_v27 = vpop.f32.mrf.mxu1 }
 0x10c   : > { %v569_v36 = vadd.f32 %v564_v27, %v494_v30 }
 0x10d   : > { %v622_v28 = vpop.f32.mrf.mxu0  ;;  %v1094_v31 = vpop.f32.mrf.mxu1 }
 0x10e   : > { %v629_v33 = vadd.f32 %v622_v28, %v568_v29 }
 0x10f   : > { %v1099_v32 = vpop.f32.mrf.mxu0  ;;  %v697_v34 = vpop.f32.mrf.mxu1 }
 0x110   : > { %v704_v39 = vadd.f32 %v697_v34, %v629_v33 }
 0x111   : > { %v625_v35 = vpop.f32.mrf.mxu0  ;;  %v1105_v37 = vpop.f32.mrf.mxu1 }
 0x112   : > { %v630_v40 = vadd.f32 %v625_v35, %v569_v36 }
 0x113   : > { %v1100_v38 = vpop.f32.mrf.mxu0  ;;  %v700_v41 = vpop.f32.mrf.mxu1 }
 0x114   : > { %v705_v46 = vadd.f32 %v700_v41, %v630_v40 }
 0x115   : > { %v758_v42 = vpop.f32.mrf.mxu0  ;;  %v1106_v43 = vpop.f32.mrf.mxu1 }
 0x116   : > { %v765_v44 = vadd.f32 %v758_v42, %v704_v39 }
 0x117   : > { %v1111_v45 = vpop.f32.mrf.mxu0 }
 0x118   : > { %768 = vst.msk [vmem:[#allocation2] sm:$0xff] %vm767_vm11, %v765_v44  ;;  %773 = sbr.rel (%p1048_p5) target bundleno = 312 (0x138), region = 44 }
 0x119   : > { %v761_v47 = vpop.f32.mrf.mxu0 }
 0x11a   : > { %v766_v48 = vadd.f32 %v761_v47, %v705_v46 }
 0x11b   : > { %v1112_v49 = vpop.f32.mrf.mxu0 }
 0x11c   : > { %769 = vst.msk [vmem:[#allocation2 + $0x8] sm:$0xff] %vm767_vm11, %v766_v48 }
 0x11d   : > { %v1049_v52 = vld [vmem:[#allocation3] ss:$0 sm:$0xff]  ;;  %vm816_vm12 = vcmask 519168   ;;  %vm794_vm13 = vcmask 516096  }
 0x11f   : > { %v774_v50 = vld [vmem:[#allocation2] sm:$0xff] }
 0x120   : > { %v783_v53 = vadd.f32 %v1049_v52, %v774_v50 }
 0x122   : > { %v785_v55 = vsel %vm767_vm11, %v783_v53, 0.0  ;;  %v796_v57 = vmul.f32 %v783_v53, %v783_v53  ;;  %v1055_v60 = vpack.c.bf16 %v783_v53, %v783_v53 }
 0x123   : > { %v775_v51 = vld [vmem:[#allocation2 + $0x8] sm:$0xff] }
 0x124   : > { %v784_v54 = vadd.f32 %v1049_v52, %v775_v51  ;;  %v798_v62 = vsel %vm767_vm11, %v796_v57, 0.0  ;;  %817 = vst.msk [vmem:[%s1394_s2] sm:$0xf] %vm816_vm12, %v1055_v60 }
 0x126   : > { %v786_v56 = vsel %vm767_vm11, %v784_v54, 0.0  ;;  %v797_v58 = vmul.f32 %v784_v54, %v784_v54  ;;  %v1056_v61 = vpack.c.bf16 %v784_v54, %v784_v54 }
 0x127   : > { %v787_v59 = vadd.f32 %v786_v56, %v785_v55 }
 0x128   : > { %v799_v63 = vsel %vm767_vm11, %v797_v58, 0.0  ;;  %818 = vst.msk [vmem:[%s1394_s2 + $0x4] sm:$0xf] %vm816_vm12, %v1056_v61 }
 0x129   : > { %v788_v0 = vrot.slane %v787_v59, 4  ;;  %v800_v2 = vadd.f32 %v799_v63, %v798_v62 }
 0x12b   : > { %v789_v3 = vadd.f32 %v788_v0, %v787_v59  ;;  %v801_v5 = vrot.slane %v800_v2, 4 }
 0x12d   : > { %v790_v7 = vrot.slane %v789_v3, 2  ;;  %v802_v8 = vadd.f32 %v801_v5, %v800_v2 }
 0x12f   : > { %v791_v9 = vadd.f32 %v790_v7, %v789_v3  ;;  %v803_v10 = vrot.slane %v802_v8, 2 }
 0x131   : > { %v792_v4 = vrot.slane %v791_v9, 1  ;;  %v804_v11 = vadd.f32 %v803_v10, %v802_v8 }
 0x133   : > { %v793_v6 = vadd.f32 %v792_v4, %v791_v9  ;;  %v805_v12 = vrot.slane %v804_v11, 1 }
 0x135   : > { %795 = vst.msk [vmem:[%s1399_s17] sm:$0x1] %vm794_vm13, %v793_v6  ;;  %v806_v13 = vadd.f32 %v805_v12, %v804_v11 }
 0x137   : > { %807 = vst.msk [vmem:[%s1399_s17 + $0x1] sm:$0x1] %vm794_vm13, %v806_v13 }
 0x138 PF: > { %s16_s21 = sadd.s32 1, %s1278_s21   ;;  %s1512_s2 = sld [smem:[#allocation6_spill]] }
 0x139   : > { %p13_p8 = scmp.ge.s32.totalorder %s16_s21, 226   ;;  %s1513_s10 = sld [smem:[#allocation7_spill]] }
 0x13a   : > { %s1514_s15 = smov %s1266_s18  ;;  %s1515_s16 = smov %s1270_s19 }
 0x13b   : > { %s1516_s17 = smov %s1274_s20  ;;  %s1517_s18 = smov %s1521_s23 }
 0x13c   :  { %15 = sbr.rel (!%p13_p8) target bundleno = 6 (0x6), region = 94 }
 0x13e   : > { %s1518_s19 = smov %s1512_s2 }
 0x13f   : > { %s1519_s20 = smov %s1513_s10 }
 0x141   :  { %870 = vsyncpa [#allocation4], 1 }
 0x142   :  { %872 = vsyncpa [#allocation4 + $0x1], 1 }

// kernel: generator_forward.48
= control target key start
LH: loop header
LB: loop body
LE: loop exit
PB: predicated region body
PF: predicated region fallthrough
CT: control target
= control target key end

     0   :  { %vm604_vm0 = vcmask 519168   ;;  %s1472_s0 = inlined_call_operand.vmem [shape: bf16[512,64], index: 0, kind: input, shape index: {}]   ;;  %s1473_s1 = inlined_call_operand.vmem [shape: f32[1,64], index: 1, kind: input, shape index: {}]   ;;  %s1474_s2 = inlined_call_operand.vmem [shape: f32[1,64], index: 2, kind: input, shape index: {}]   ;;  %s1475_s3 = inlined_call_operand.vmem [shape: bf16[512,64], index: 3, kind: output, shape index: {}]  }
   0x1   :  { %v804_v0 = vld [vmem:[%s1472_s0] sm:$0xff]   ;;  %v931_v4 = vld [vmem:[%s1472_s0 + $0x8] sm:$0xff]   ;;  %v932_v5 = vld [vmem:[%s1472_s0 + $0x10] sm:$0xff]  }
   0x2   :  { %v988_v1 = vld [vmem:[%s1473_s1] ss:$0 sm:$0xff]  ;;  %v805_v2 = vunpack.c.l.bf16 %v804_v0  ;;  %v806_v3 = vunpack.c.h.bf16 %v804_v0  ;;  %v933_v6 = vld [vmem:[%s1472_s0 + $0x18] sm:$0xff]   ;;  %v809_v8 = vunpack.c.l.bf16 %v931_v4  ;;  %v810_v9 = vunpack.c.h.bf16 %v931_v4  ;;  %v935_v41 = vld [vmem:[%s1472_s0 + $0x28] sm:$0xff]  }
   0x3   :  { %v1002_v7 = vld [vmem:[%s1474_s2] ss:$0 sm:$0xff]  ;;  %v813_v10 = vunpack.c.l.bf16 %v932_v5  ;;  %v814_v11 = vunpack.c.h.bf16 %v932_v5  ;;  %v817_v14 = vunpack.c.l.bf16 %v933_v6  ;;  %v818_v15 = vunpack.c.h.bf16 %v933_v6  ;;  %v936_v42 = vld [vmem:[%s1472_s0 + $0x30] sm:$0xff]   ;;  %v937_v47 = vld [vmem:[%s1472_s0 + $0x38] sm:$0xff]  }
   0x4   :  { %v149_v12 = vmul.f32 %v805_v2, %v988_v1  ;;  %v150_v13 = vmul.f32 %v806_v3, %v988_v1  ;;  %v151_v16 = vmul.f32 %v809_v8, %v988_v1  ;;  %v152_v17 = vmul.f32 %v810_v9, %v988_v1  ;;  %v934_v36 = vld [vmem:[%s1472_s0 + $0x20] sm:$0xff]  }
   0x5   :  { %v153_v18 = vmul.f32 %v813_v10, %v988_v1  ;;  %v154_v19 = vmul.f32 %v814_v11, %v988_v1  ;;  %v155_v22 = vmul.f32 %v817_v14, %v988_v1  ;;  %v156_v23 = vmul.f32 %v818_v15, %v988_v1 }
   0x6   :  { %v220_v20 = vadd.f32 %v1002_v7, %v149_v12  ;;  %v221_v21 = vadd.f32 %v1002_v7, %v150_v13  ;;  %v222_v24 = vadd.f32 %v1002_v7, %v151_v16  ;;  %v223_v25 = vadd.f32 %v1002_v7, %v152_v17 }
   0x7   :  { %v224_v26 = vadd.f32 %v1002_v7, %v153_v18  ;;  %v225_v27 = vadd.f32 %v1002_v7, %v154_v19  ;;  %v226_v30 = vadd.f32 %v1002_v7, %v155_v22  ;;  %v227_v31 = vadd.f32 %v1002_v7, %v156_v23  ;;  %v938_v18 = vld [vmem:[%s1472_s0 + $0x40] sm:$0xff]   ;;  %v939_v23 = vld [vmem:[%s1472_s0 + $0x48] sm:$0xff]  }
   0x8   :  { %v284_v28 = vmax.f32 %v220_v20, 0.0  ;;  %v285_v29 = vmax.f32 %v221_v21, 0.0  ;;  %v286_v32 = vmax.f32 %v222_v24, 0.0  ;;  %v287_v33 = vmax.f32 %v223_v25, 0.0  ;;  %v940_v24 = vld [vmem:[%s1472_s0 + $0x50] sm:$0xff]  }
   0x9   :  { %v288_v34 = vmax.f32 %v224_v26, 0.0  ;;  %v289_v35 = vmax.f32 %v225_v27, 0.0  ;;  %v290_v39 = vmax.f32 %v226_v30, 0.0  ;;  %v291_v40 = vmax.f32 %v227_v31, 0.0 }
   0xa   :  { %v739_v37 = vpack.c.bf16 %v284_v28, %v284_v28  ;;  %v740_v38 = vpack.c.bf16 %v285_v29, %v285_v29  ;;  %v741_v43 = vpack.c.bf16 %v286_v32, %v286_v32  ;;  %v742_v44 = vpack.c.bf16 %v287_v33, %v287_v33  ;;  %v941_v29 = vld [vmem:[%s1472_s0 + $0x58] sm:$0xff]  }
   0xb   :  { %v743_v45 = vpack.c.bf16 %v288_v34, %v288_v34  ;;  %v744_v46 = vpack.c.bf16 %v289_v35, %v289_v35  ;;  %v745_v48 = vpack.c.bf16 %v290_v39, %v290_v39  ;;  %v746_v49 = vpack.c.bf16 %v291_v40, %v291_v40 }
   0xc   :  { %605 = vst.msk [vmem:[%s1475_s3] sm:$0xf] %vm604_vm0, %v739_v37  ;;  %606 = vst.msk [vmem:[%s1475_s3 + $0x4] sm:$0xf] %vm604_vm0, %v740_v38  ;;  %v821_v50 = vunpack.c.l.bf16 %v934_v36  ;;  %v822_v51 = vunpack.c.h.bf16 %v934_v36  ;;  %v825_v52 = vunpack.c.l.bf16 %v935_v41  ;;  %v826_v53 = vunpack.c.h.bf16 %v935_v41 }
   0xd   :  { %607 = vst.msk [vmem:[%s1475_s3 + $0x8] sm:$0xf] %vm604_vm0, %v741_v43  ;;  %608 = vst.msk [vmem:[%s1475_s3 + $0xc] sm:$0xf] %vm604_vm0, %v742_v44  ;;  %v829_v54 = vunpack.c.l.bf16 %v936_v42  ;;  %v830_v55 = vunpack.c.h.bf16 %v936_v42  ;;  %v833_v58 = vunpack.c.l.bf16 %v937_v47  ;;  %v834_v59 = vunpack.c.h.bf16 %v937_v47 }
   0xe   :  { %609 = vst.msk [vmem:[%s1475_s3 + $0x10] sm:$0xf] %vm604_vm0, %v743_v45  ;;  %610 = vst.msk [vmem:[%s1475_s3 + $0x14] sm:$0xf] %vm604_vm0, %v744_v46  ;;  %v157_v56 = vmul.f32 %v821_v50, %v988_v1  ;;  %v158_v57 = vmul.f32 %v822_v51, %v988_v1  ;;  %v159_v60 = vmul.f32 %v825_v52, %v988_v1  ;;  %v837_v32 = vunpack.c.l.bf16 %v938_v18 }
   0xf   :  { %611 = vst.msk [vmem:[%s1475_s3 + $0x18] sm:$0xf] %vm604_vm0, %v745_v48  ;;  %612 = vst.msk [vmem:[%s1475_s3 + $0x1c] sm:$0xf] %vm604_vm0, %v746_v49  ;;  %v160_v61 = vmul.f32 %v826_v53, %v988_v1  ;;  %v161_v62 = vmul.f32 %v829_v54, %v988_v1  ;;  %v162_v63 = vmul.f32 %v830_v55, %v988_v1  ;;  %v838_v33 = vunpack.c.h.bf16 %v938_v18 }
  0x10   :  { %v228_v0 = vadd.f32 %v1002_v7, %v157_v56  ;;  %v229_v2 = vadd.f32 %v1002_v7, %v158_v57  ;;  %v163_v3 = vmul.f32 %v833_v58, %v988_v1  ;;  %v164_v4 = vmul.f32 %v834_v59, %v988_v1 }
  0x11   :  { %v230_v5 = vadd.f32 %v1002_v7, %v159_v60  ;;  %v231_v6 = vadd.f32 %v1002_v7, %v160_v61  ;;  %v232_v8 = vadd.f32 %v1002_v7, %v161_v62  ;;  %v233_v9 = vadd.f32 %v1002_v7, %v162_v63  ;;  %v942_v62 = vld [vmem:[%s1472_s0 + $0x60] sm:$0xff]  }
  0x12   :  { %v292_v10 = vmax.f32 %v228_v0, 0.0  ;;  %v293_v11 = vmax.f32 %v229_v2, 0.0  ;;  %v234_v12 = vadd.f32 %v1002_v7, %v163_v3  ;;  %v235_v13 = vadd.f32 %v1002_v7, %v164_v4  ;;  %v943_v4 = vld [vmem:[%s1472_s0 + $0x68] sm:$0xff]  }
  0x13   :  { %v294_v14 = vmax.f32 %v230_v5, 0.0  ;;  %v295_v15 = vmax.f32 %v231_v6, 0.0  ;;  %v296_v16 = vmax.f32 %v232_v8, 0.0  ;;  %v297_v17 = vmax.f32 %v233_v9, 0.0  ;;  %v944_v5 = vld [vmem:[%s1472_s0 + $0x70] sm:$0xff]  }
  0x14   :  { %v747_v19 = vpack.c.bf16 %v292_v10, %v292_v10  ;;  %v748_v20 = vpack.c.bf16 %v293_v11, %v293_v11  ;;  %v298_v21 = vmax.f32 %v234_v12, 0.0  ;;  %v299_v22 = vmax.f32 %v235_v13, 0.0  ;;  %v945_v11 = vld [vmem:[%s1472_s0 + $0x78] sm:$0xff]  }
  0x15   :  { %v749_v25 = vpack.c.bf16 %v294_v14, %v294_v14  ;;  %v750_v26 = vpack.c.bf16 %v295_v15, %v295_v15  ;;  %v751_v27 = vpack.c.bf16 %v296_v16, %v296_v16  ;;  %v752_v28 = vpack.c.bf16 %v297_v17, %v297_v17 }
  0x16   :  { %613 = vst.msk [vmem:[%s1475_s3 + $0x20] sm:$0xf] %vm604_vm0, %v747_v19  ;;  %614 = vst.msk [vmem:[%s1475_s3 + $0x24] sm:$0xf] %vm604_vm0, %v748_v20  ;;  %v753_v30 = vpack.c.bf16 %v298_v21, %v298_v21  ;;  %v754_v31 = vpack.c.bf16 %v299_v22, %v299_v22  ;;  %v841_v34 = vunpack.c.l.bf16 %v939_v23  ;;  %v842_v35 = vunpack.c.h.bf16 %v939_v23 }
  0x17   :  { %615 = vst.msk [vmem:[%s1475_s3 + $0x28] sm:$0xf] %vm604_vm0, %v749_v25  ;;  %616 = vst.msk [vmem:[%s1475_s3 + $0x2c] sm:$0xf] %vm604_vm0, %v750_v26  ;;  %v845_v36 = vunpack.c.l.bf16 %v940_v24  ;;  %v846_v37 = vunpack.c.h.bf16 %v940_v24  ;;  %v165_v38 = vmul.f32 %v837_v32, %v988_v1  ;;  %v166_v39 = vmul.f32 %v838_v33, %v988_v1 }
  0x18   :  { %617 = vst.msk [vmem:[%s1475_s3 + $0x30] sm:$0xf] %vm604_vm0, %v751_v27  ;;  %618 = vst.msk [vmem:[%s1475_s3 + $0x34] sm:$0xf] %vm604_vm0, %v752_v28  ;;  %v849_v40 = vunpack.c.l.bf16 %v941_v29  ;;  %v850_v41 = vunpack.c.h.bf16 %v941_v29  ;;  %v167_v42 = vmul.f32 %v841_v34, %v988_v1  ;;  %v168_v43 = vmul.f32 %v842_v35, %v988_v1 }
  0x19   :  { %619 = vst.msk [vmem:[%s1475_s3 + $0x38] sm:$0xf] %vm604_vm0, %v753_v30  ;;  %620 = vst.msk [vmem:[%s1475_s3 + $0x3c] sm:$0xf] %vm604_vm0, %v754_v31  ;;  %v169_v44 = vmul.f32 %v845_v36, %v988_v1  ;;  %v170_v45 = vmul.f32 %v846_v37, %v988_v1  ;;  %v236_v46 = vadd.f32 %v1002_v7, %v165_v38  ;;  %v853_v14 = vunpack.c.l.bf16 %v942_v62 }
  0x1a   :  { %v237_v47 = vadd.f32 %v1002_v7, %v166_v39  ;;  %v171_v48 = vmul.f32 %v849_v40, %v988_v1  ;;  %v172_v49 = vmul.f32 %v850_v41, %v988_v1  ;;  %v238_v50 = vadd.f32 %v1002_v7, %v167_v42 }
  0x1b   :  { %v239_v51 = vadd.f32 %v1002_v7, %v168_v43  ;;  %v240_v52 = vadd.f32 %v1002_v7, %v169_v44  ;;  %v241_v53 = vadd.f32 %v1002_v7, %v170_v45  ;;  %v300_v54 = vmax.f32 %v236_v46, 0.0  ;;  %v946_v44 = vld [vmem:[%s1472_s0 + $0x80] sm:$0xff]  }
  0x1c   :  { %v301_v55 = vmax.f32 %v237_v47, 0.0  ;;  %v242_v56 = vadd.f32 %v1002_v7, %v171_v48  ;;  %v243_v57 = vadd.f32 %v1002_v7, %v172_v49  ;;  %v302_v58 = vmax.f32 %v238_v50, 0.0  ;;  %v947_v49 = vld [vmem:[%s1472_s0 + $0x88] sm:$0xff]   ;;  %v948_v50 = vld [vmem:[%s1472_s0 + $0x90] sm:$0xff]  }
  0x1d   :  { %v303_v59 = vmax.f32 %v239_v51, 0.0  ;;  %v304_v60 = vmax.f32 %v240_v52, 0.0  ;;  %v305_v61 = vmax.f32 %v241_v53, 0.0  ;;  %v755_v63 = vpack.c.bf16 %v300_v54, %v300_v54 }
  0x1e   :  { %v756_v0 = vpack.c.bf16 %v301_v55, %v301_v55  ;;  %v306_v2 = vmax.f32 %v242_v56, 0.0  ;;  %v307_v3 = vmax.f32 %v243_v57, 0.0  ;;  %v757_v6 = vpack.c.bf16 %v302_v58, %v302_v58  ;;  %v949_v55 = vld [vmem:[%s1472_s0 + $0x98] sm:$0xff]  }
  0x1f   :  { %v758_v8 = vpack.c.bf16 %v303_v59, %v303_v59  ;;  %v759_v9 = vpack.c.bf16 %v304_v60, %v304_v60  ;;  %v760_v10 = vpack.c.bf16 %v305_v61, %v305_v61  ;;  %621 = vst.msk [vmem:[%s1475_s3 + $0x40] sm:$0xf] %vm604_vm0, %v755_v63  ;;  %v854_v15 = vunpack.c.h.bf16 %v942_v62 }
  0x20   :  { %622 = vst.msk [vmem:[%s1475_s3 + $0x44] sm:$0xf] %vm604_vm0, %v756_v0  ;;  %v761_v12 = vpack.c.bf16 %v306_v2, %v306_v2  ;;  %v762_v13 = vpack.c.bf16 %v307_v3, %v307_v3  ;;  %623 = vst.msk [vmem:[%s1475_s3 + $0x48] sm:$0xf] %vm604_vm0, %v757_v6  ;;  %v857_v16 = vunpack.c.l.bf16 %v943_v4  ;;  %v858_v17 = vunpack.c.h.bf16 %v943_v4 }
  0x21   :  { %624 = vst.msk [vmem:[%s1475_s3 + $0x4c] sm:$0xf] %vm604_vm0, %v758_v8  ;;  %625 = vst.msk [vmem:[%s1475_s3 + $0x50] sm:$0xf] %vm604_vm0, %v759_v9  ;;  %v861_v18 = vunpack.c.l.bf16 %v944_v5  ;;  %v862_v19 = vunpack.c.h.bf16 %v944_v5  ;;  %v173_v20 = vmul.f32 %v853_v14, %v988_v1  ;;  %v174_v21 = vmul.f32 %v854_v15, %v988_v1 }
  0x22   :  { %626 = vst.msk [vmem:[%s1475_s3 + $0x54] sm:$0xf] %vm604_vm0, %v760_v10  ;;  %627 = vst.msk [vmem:[%s1475_s3 + $0x58] sm:$0xf] %vm604_vm0, %v761_v12  ;;  %v865_v22 = vunpack.c.l.bf16 %v945_v11  ;;  %v866_v23 = vunpack.c.h.bf16 %v945_v11  ;;  %v175_v24 = vmul.f32 %v857_v16, %v988_v1  ;;  %v176_v25 = vmul.f32 %v858_v17, %v988_v1 }
  0x23   :  { %628 = vst.msk [vmem:[%s1475_s3 + $0x5c] sm:$0xf] %vm604_vm0, %v762_v13  ;;  %v177_v26 = vmul.f32 %v861_v18, %v988_v1  ;;  %v178_v27 = vmul.f32 %v862_v19, %v988_v1  ;;  %v244_v28 = vadd.f32 %v1002_v7, %v173_v20  ;;  %v245_v29 = vadd.f32 %v1002_v7, %v174_v21 }
  0x24   :  { %v179_v30 = vmul.f32 %v865_v22, %v988_v1  ;;  %v180_v31 = vmul.f32 %v866_v23, %v988_v1  ;;  %v246_v32 = vadd.f32 %v1002_v7, %v175_v24  ;;  %v247_v33 = vadd.f32 %v1002_v7, %v176_v25 }
  0x25   :  { %v248_v34 = vadd.f32 %v1002_v7, %v177_v26  ;;  %v249_v35 = vadd.f32 %v1002_v7, %v178_v27  ;;  %v308_v36 = vmax.f32 %v244_v28, 0.0  ;;  %v309_v37 = vmax.f32 %v245_v29, 0.0  ;;  %v950_v26 = vld [vmem:[%s1472_s0 + $0xa0] sm:$0xff]  }
  0x26   :  { %v250_v38 = vadd.f32 %v1002_v7, %v179_v30  ;;  %v251_v39 = vadd.f32 %v1002_v7, %v180_v31  ;;  %v310_v40 = vmax.f32 %v246_v32, 0.0  ;;  %v311_v41 = vmax.f32 %v247_v33, 0.0  ;;  %v951_v31 = vld [vmem:[%s1472_s0 + $0xa8] sm:$0xff]   ;;  %v952_v32 = vld [vmem:[%s1472_s0 + $0xb0] sm:$0xff]  }
  0x27   :  { %v312_v42 = vmax.f32 %v248_v34, 0.0  ;;  %v313_v43 = vmax.f32 %v249_v35, 0.0  ;;  %v763_v45 = vpack.c.bf16 %v308_v36, %v308_v36  ;;  %v764_v46 = vpack.c.bf16 %v309_v37, %v309_v37  ;;  %v953_v37 = vld [vmem:[%s1472_s0 + $0xb8] sm:$0xff]  }
  0x28   :  { %v314_v47 = vmax.f32 %v250_v38, 0.0  ;;  %v315_v48 = vmax.f32 %v251_v39, 0.0  ;;  %v765_v51 = vpack.c.bf16 %v310_v40, %v310_v40  ;;  %v766_v52 = vpack.c.bf16 %v311_v41, %v311_v41 }
  0x29   :  { %v767_v53 = vpack.c.bf16 %v312_v42, %v312_v42  ;;  %v768_v54 = vpack.c.bf16 %v313_v43, %v313_v43  ;;  %629 = vst.msk [vmem:[%s1475_s3 + $0x60] sm:$0xf] %vm604_vm0, %v763_v45  ;;  %630 = vst.msk [vmem:[%s1475_s3 + $0x64] sm:$0xf] %vm604_vm0, %v764_v46  ;;  %v869_v58 = vunpack.c.l.bf16 %v946_v44  ;;  %v870_v59 = vunpack.c.h.bf16 %v946_v44 }
  0x2a   :  { %v769_v56 = vpack.c.bf16 %v314_v47, %v314_v47  ;;  %v770_v57 = vpack.c.bf16 %v315_v48, %v315_v48  ;;  %631 = vst.msk [vmem:[%s1475_s3 + $0x68] sm:$0xf] %vm604_vm0, %v765_v51  ;;  %632 = vst.msk [vmem:[%s1475_s3 + $0x6c] sm:$0xf] %vm604_vm0, %v766_v52  ;;  %v873_v60 = vunpack.c.l.bf16 %v947_v49  ;;  %v874_v61 = vunpack.c.h.bf16 %v947_v49 }
  0x2b   :  { %633 = vst.msk [vmem:[%s1475_s3 + $0x70] sm:$0xf] %vm604_vm0, %v767_v53  ;;  %634 = vst.msk [vmem:[%s1475_s3 + $0x74] sm:$0xf] %vm604_vm0, %v768_v54  ;;  %v877_v62 = vunpack.c.l.bf16 %v948_v50  ;;  %v878_v63 = vunpack.c.h.bf16 %v948_v50  ;;  %v181_v0 = vmul.f32 %v869_v58, %v988_v1  ;;  %v182_v2 = vmul.f32 %v870_v59, %v988_v1 }
  0x2c   :  { %635 = vst.msk [vmem:[%s1475_s3 + $0x78] sm:$0xf] %vm604_vm0, %v769_v56  ;;  %636 = vst.msk [vmem:[%s1475_s3 + $0x7c] sm:$0xf] %vm604_vm0, %v770_v57  ;;  %v881_v3 = vunpack.c.l.bf16 %v949_v55  ;;  %v882_v4 = vunpack.c.h.bf16 %v949_v55  ;;  %v183_v5 = vmul.f32 %v873_v60, %v988_v1  ;;  %v184_v6 = vmul.f32 %v874_v61, %v988_v1 }
  0x2d   :  { %v185_v8 = vmul.f32 %v877_v62, %v988_v1  ;;  %v186_v9 = vmul.f32 %v878_v63, %v988_v1  ;;  %v252_v10 = vadd.f32 %v1002_v7, %v181_v0  ;;  %v253_v11 = vadd.f32 %v1002_v7, %v182_v2 }
  0x2e   :  { %v187_v12 = vmul.f32 %v881_v3, %v988_v1  ;;  %v188_v13 = vmul.f32 %v882_v4, %v988_v1  ;;  %v254_v14 = vadd.f32 %v1002_v7, %v183_v5  ;;  %v255_v15 = vadd.f32 %v1002_v7, %v184_v6 }
  0x2f   :  { %v256_v16 = vadd.f32 %v1002_v7, %v185_v8  ;;  %v257_v17 = vadd.f32 %v1002_v7, %v186_v9  ;;  %v316_v18 = vmax.f32 %v252_v10, 0.0  ;;  %v317_v19 = vmax.f32 %v253_v11, 0.0  ;;  %v954_v8 = vld [vmem:[%s1472_s0 + $0xc0] sm:$0xff]  }
  0x30   :  { %v258_v20 = vadd.f32 %v1002_v7, %v187_v12  ;;  %v259_v21 = vadd.f32 %v1002_v7, %v188_v13  ;;  %v318_v22 = vmax.f32 %v254_v14, 0.0  ;;  %v319_v23 = vmax.f32 %v255_v15, 0.0  ;;  %v955_v13 = vld [vmem:[%s1472_s0 + $0xc8] sm:$0xff]   ;;  %v956_v14 = vld [vmem:[%s1472_s0 + $0xd0] sm:$0xff]  }
  0x31   :  { %v320_v24 = vmax.f32 %v256_v16, 0.0  ;;  %v321_v25 = vmax.f32 %v257_v17, 0.0  ;;  %v771_v27 = vpack.c.bf16 %v316_v18, %v316_v18  ;;  %v772_v28 = vpack.c.bf16 %v317_v19, %v317_v19  ;;  %v957_v19 = vld [vmem:[%s1472_s0 + $0xd8] sm:$0xff]  }
  0x32   :  { %v322_v29 = vmax.f32 %v258_v20, 0.0  ;;  %v323_v30 = vmax.f32 %v259_v21, 0.0  ;;  %v773_v33 = vpack.c.bf16 %v318_v22, %v318_v22  ;;  %v774_v34 = vpack.c.bf16 %v319_v23, %v319_v23 }
  0x33   :  { %v775_v35 = vpack.c.bf16 %v320_v24, %v320_v24  ;;  %v776_v36 = vpack.c.bf16 %v321_v25, %v321_v25  ;;  %637 = vst.msk [vmem:[%s1475_s3 + $0x80] sm:$0xf] %vm604_vm0, %v771_v27  ;;  %638 = vst.msk [vmem:[%s1475_s3 + $0x84] sm:$0xf] %vm604_vm0, %v772_v28  ;;  %v885_v40 = vunpack.c.l.bf16 %v950_v26  ;;  %v886_v41 = vunpack.c.h.bf16 %v950_v26 }
  0x34   :  { %v777_v38 = vpack.c.bf16 %v322_v29, %v322_v29  ;;  %v778_v39 = vpack.c.bf16 %v323_v30, %v323_v30  ;;  %639 = vst.msk [vmem:[%s1475_s3 + $0x88] sm:$0xf] %vm604_vm0, %v773_v33  ;;  %640 = vst.msk [vmem:[%s1475_s3 + $0x8c] sm:$0xf] %vm604_vm0, %v774_v34  ;;  %v889_v42 = vunpack.c.l.bf16 %v951_v31  ;;  %v890_v43 = vunpack.c.h.bf16 %v951_v31 }
  0x35   :  { %641 = vst.msk [vmem:[%s1475_s3 + $0x90] sm:$0xf] %vm604_vm0, %v775_v35  ;;  %642 = vst.msk [vmem:[%s1475_s3 + $0x94] sm:$0xf] %vm604_vm0, %v776_v36  ;;  %v893_v44 = vunpack.c.l.bf16 %v952_v32  ;;  %v894_v45 = vunpack.c.h.bf16 %v952_v32  ;;  %v189_v46 = vmul.f32 %v885_v40, %v988_v1  ;;  %v190_v47 = vmul.f32 %v886_v41, %v988_v1 }
  0x36   :  { %643 = vst.msk [vmem:[%s1475_s3 + $0x98] sm:$0xf] %vm604_vm0, %v777_v38  ;;  %644 = vst.msk [vmem:[%s1475_s3 + $0x9c] sm:$0xf] %vm604_vm0, %v778_v39  ;;  %v897_v48 = vunpack.c.l.bf16 %v953_v37  ;;  %v898_v49 = vunpack.c.h.bf16 %v953_v37  ;;  %v191_v50 = vmul.f32 %v889_v42, %v988_v1  ;;  %v192_v51 = vmul.f32 %v890_v43, %v988_v1 }
  0x37   :  { %v193_v52 = vmul.f32 %v893_v44, %v988_v1  ;;  %v194_v53 = vmul.f32 %v894_v45, %v988_v1  ;;  %v260_v54 = vadd.f32 %v1002_v7, %v189_v46  ;;  %v261_v55 = vadd.f32 %v1002_v7, %v190_v47 }
  0x38   :  { %v195_v56 = vmul.f32 %v897_v48, %v988_v1  ;;  %v196_v57 = vmul.f32 %v898_v49, %v988_v1  ;;  %v262_v58 = vadd.f32 %v1002_v7, %v191_v50  ;;  %v263_v59 = vadd.f32 %v1002_v7, %v192_v51 }
  0x39   :  { %v264_v60 = vadd.f32 %v1002_v7, %v193_v52  ;;  %v265_v61 = vadd.f32 %v1002_v7, %v194_v53  ;;  %v324_v62 = vmax.f32 %v260_v54, 0.0  ;;  %v325_v63 = vmax.f32 %v261_v55, 0.0  ;;  %v958_v52 = vld [vmem:[%s1472_s0 + $0xe0] sm:$0xff]  }
  0x3a   :  { %v266_v0 = vadd.f32 %v1002_v7, %v195_v56  ;;  %v267_v2 = vadd.f32 %v1002_v7, %v196_v57  ;;  %v326_v3 = vmax.f32 %v262_v58, 0.0  ;;  %v327_v4 = vmax.f32 %v263_v59, 0.0  ;;  %v959_v57 = vld [vmem:[%s1472_s0 + $0xe8] sm:$0xff]   ;;  %v960_v58 = vld [vmem:[%s1472_s0 + $0xf0] sm:$0xff]  }
  0x3b   :  { %v328_v5 = vmax.f32 %v264_v60, 0.0  ;;  %v329_v6 = vmax.f32 %v265_v61, 0.0  ;;  %v779_v9 = vpack.c.bf16 %v324_v62, %v324_v62  ;;  %v780_v10 = vpack.c.bf16 %v325_v63, %v325_v63  ;;  %v961_v63 = vld [vmem:[%s1472_s0 + $0xf8] sm:$0xff]  }
  0x3c   :  { %v330_v11 = vmax.f32 %v266_v0, 0.0  ;;  %v331_v12 = vmax.f32 %v267_v2, 0.0  ;;  %v781_v15 = vpack.c.bf16 %v326_v3, %v326_v3  ;;  %v782_v16 = vpack.c.bf16 %v327_v4, %v327_v4 }
  0x3d   :  { %v783_v17 = vpack.c.bf16 %v328_v5, %v328_v5  ;;  %v784_v18 = vpack.c.bf16 %v329_v6, %v329_v6  ;;  %645 = vst.msk [vmem:[%s1475_s3 + $0xa0] sm:$0xf] %vm604_vm0, %v779_v9  ;;  %646 = vst.msk [vmem:[%s1475_s3 + $0xa4] sm:$0xf] %vm604_vm0, %v780_v10  ;;  %v901_v22 = vunpack.c.l.bf16 %v954_v8  ;;  %v902_v23 = vunpack.c.h.bf16 %v954_v8 }
  0x3e   :  { %v785_v20 = vpack.c.bf16 %v330_v11, %v330_v11  ;;  %v786_v21 = vpack.c.bf16 %v331_v12, %v331_v12  ;;  %647 = vst.msk [vmem:[%s1475_s3 + $0xa8] sm:$0xf] %vm604_vm0, %v781_v15  ;;  %648 = vst.msk [vmem:[%s1475_s3 + $0xac] sm:$0xf] %vm604_vm0, %v782_v16  ;;  %v905_v24 = vunpack.c.l.bf16 %v955_v13  ;;  %v906_v25 = vunpack.c.h.bf16 %v955_v13 }
  0x3f   :  { %649 = vst.msk [vmem:[%s1475_s3 + $0xb0] sm:$0xf] %vm604_vm0, %v783_v17  ;;  %650 = vst.msk [vmem:[%s1475_s3 + $0xb4] sm:$0xf] %vm604_vm0, %v784_v18  ;;  %v909_v26 = vunpack.c.l.bf16 %v956_v14  ;;  %v910_v27 = vunpack.c.h.bf16 %v956_v14  ;;  %v197_v28 = vmul.f32 %v901_v22, %v988_v1  ;;  %v198_v29 = vmul.f32 %v902_v23, %v988_v1 }
  0x40   :  { %651 = vst.msk [vmem:[%s1475_s3 + $0xb8] sm:$0xf] %vm604_vm0, %v785_v20  ;;  %652 = vst.msk [vmem:[%s1475_s3 + $0xbc] sm:$0xf] %vm604_vm0, %v786_v21  ;;  %v913_v30 = vunpack.c.l.bf16 %v957_v19  ;;  %v914_v31 = vunpack.c.h.bf16 %v957_v19  ;;  %v199_v32 = vmul.f32 %v905_v24, %v988_v1  ;;  %v200_v33 = vmul.f32 %v906_v25, %v988_v1 }
  0x41   :  { %v201_v34 = vmul.f32 %v909_v26, %v988_v1  ;;  %v202_v35 = vmul.f32 %v910_v27, %v988_v1  ;;  %v268_v36 = vadd.f32 %v1002_v7, %v197_v28  ;;  %v269_v37 = vadd.f32 %v1002_v7, %v198_v29 }
  0x42   :  { %v203_v38 = vmul.f32 %v913_v30, %v988_v1  ;;  %v204_v39 = vmul.f32 %v914_v31, %v988_v1  ;;  %v270_v40 = vadd.f32 %v1002_v7, %v199_v32  ;;  %v271_v41 = vadd.f32 %v1002_v7, %v200_v33 }
  0x43   :  { %v272_v42 = vadd.f32 %v1002_v7, %v201_v34  ;;  %v273_v43 = vadd.f32 %v1002_v7, %v202_v35  ;;  %v332_v44 = vmax.f32 %v268_v36, 0.0  ;;  %v333_v45 = vmax.f32 %v269_v37, 0.0 }
  0x44   :  { %v274_v46 = vadd.f32 %v1002_v7, %v203_v38  ;;  %v275_v47 = vadd.f32 %v1002_v7, %v204_v39  ;;  %v334_v48 = vmax.f32 %v270_v40, 0.0  ;;  %v335_v49 = vmax.f32 %v271_v41, 0.0 }
  0x45   :  { %v336_v50 = vmax.f32 %v272_v42, 0.0  ;;  %v337_v51 = vmax.f32 %v273_v43, 0.0  ;;  %v787_v53 = vpack.c.bf16 %v332_v44, %v332_v44  ;;  %v788_v54 = vpack.c.bf16 %v333_v45, %v333_v45 }
  0x46   :  { %v338_v55 = vmax.f32 %v274_v46, 0.0  ;;  %v339_v56 = vmax.f32 %v275_v47, 0.0  ;;  %v789_v59 = vpack.c.bf16 %v334_v48, %v334_v48  ;;  %v790_v60 = vpack.c.bf16 %v335_v49, %v335_v49 }
  0x47   :  { %v791_v61 = vpack.c.bf16 %v336_v50, %v336_v50  ;;  %v792_v62 = vpack.c.bf16 %v337_v51, %v337_v51  ;;  %653 = vst.msk [vmem:[%s1475_s3 + $0xc0] sm:$0xf] %vm604_vm0, %v787_v53  ;;  %654 = vst.msk [vmem:[%s1475_s3 + $0xc4] sm:$0xf] %vm604_vm0, %v788_v54  ;;  %v917_v3 = vunpack.c.l.bf16 %v958_v52  ;;  %v918_v4 = vunpack.c.h.bf16 %v958_v52 }
  0x48   :  { %v793_v0 = vpack.c.bf16 %v338_v55, %v338_v55  ;;  %v794_v2 = vpack.c.bf16 %v339_v56, %v339_v56  ;;  %655 = vst.msk [vmem:[%s1475_s3 + $0xc8] sm:$0xf] %vm604_vm0, %v789_v59  ;;  %656 = vst.msk [vmem:[%s1475_s3 + $0xcc] sm:$0xf] %vm604_vm0, %v790_v60  ;;  %v921_v5 = vunpack.c.l.bf16 %v959_v57  ;;  %v922_v6 = vunpack.c.h.bf16 %v959_v57 }
  0x49   :  { %657 = vst.msk [vmem:[%s1475_s3 + $0xd0] sm:$0xf] %vm604_vm0, %v791_v61  ;;  %658 = vst.msk [vmem:[%s1475_s3 + $0xd4] sm:$0xf] %vm604_vm0, %v792_v62  ;;  %v925_v8 = vunpack.c.l.bf16 %v960_v58  ;;  %v926_v9 = vunpack.c.h.bf16 %v960_v58  ;;  %v205_v10 = vmul.f32 %v917_v3, %v988_v1  ;;  %v206_v11 = vmul.f32 %v918_v4, %v988_v1 }
  0x4a   :  { %659 = vst.msk [vmem:[%s1475_s3 + $0xd8] sm:$0xf] %vm604_vm0, %v793_v0  ;;  %660 = vst.msk [vmem:[%s1475_s3 + $0xdc] sm:$0xf] %vm604_vm0, %v794_v2  ;;  %v929_v12 = vunpack.c.l.bf16 %v961_v63  ;;  %v930_v13 = vunpack.c.h.bf16 %v961_v63  ;;  %v207_v14 = vmul.f32 %v921_v5, %v988_v1  ;;  %v208_v15 = vmul.f32 %v922_v6, %v988_v1 }
  0x4b   :  { %v209_v16 = vmul.f32 %v925_v8, %v988_v1  ;;  %v210_v17 = vmul.f32 %v926_v9, %v988_v1  ;;  %v276_v18 = vadd.f32 %v1002_v7, %v205_v10  ;;  %v277_v19 = vadd.f32 %v1002_v7, %v206_v11 }
  0x4c   :  { %v211_v20 = vmul.f32 %v929_v12, %v988_v1  ;;  %v212_v21 = vmul.f32 %v930_v13, %v988_v1  ;;  %v278_v22 = vadd.f32 %v1002_v7, %v207_v14  ;;  %v279_v23 = vadd.f32 %v1002_v7, %v208_v15 }
  0x4d   :  { %v280_v24 = vadd.f32 %v1002_v7, %v209_v16  ;;  %v281_v25 = vadd.f32 %v1002_v7, %v210_v17  ;;  %v340_v26 = vmax.f32 %v276_v18, 0.0  ;;  %v341_v27 = vmax.f32 %v277_v19, 0.0 }
  0x4e   :  { %v282_v28 = vadd.f32 %v1002_v7, %v211_v20  ;;  %v283_v29 = vadd.f32 %v1002_v7, %v212_v21  ;;  %v342_v30 = vmax.f32 %v278_v22, 0.0  ;;  %v343_v31 = vmax.f32 %v279_v23, 0.0 }
  0x4f   :  { %v344_v32 = vmax.f32 %v280_v24, 0.0  ;;  %v345_v33 = vmax.f32 %v281_v25, 0.0  ;;  %v795_v34 = vpack.c.bf16 %v340_v26, %v340_v26  ;;  %v796_v1 = vpack.c.bf16 %v341_v27, %v341_v27 }
  0x50   :  { %v346_v35 = vmax.f32 %v282_v28, 0.0  ;;  %v347_v36 = vmax.f32 %v283_v29, 0.0  ;;  %v797_v37 = vpack.c.bf16 %v342_v30, %v342_v30  ;;  %v798_v38 = vpack.c.bf16 %v343_v31, %v343_v31 }
  0x51   :  { %v799_v39 = vpack.c.bf16 %v344_v32, %v344_v32  ;;  %v800_v40 = vpack.c.bf16 %v345_v33, %v345_v33  ;;  %661 = vst.msk [vmem:[%s1475_s3 + $0xe0] sm:$0xf] %vm604_vm0, %v795_v34  ;;  %662 = vst.msk [vmem:[%s1475_s3 + $0xe4] sm:$0xf] %vm604_vm0, %v796_v1 }
  0x52   :  { %v801_v7 = vpack.c.bf16 %v346_v35, %v346_v35  ;;  %v802_v41 = vpack.c.bf16 %v347_v36, %v347_v36  ;;  %663 = vst.msk [vmem:[%s1475_s3 + $0xe8] sm:$0xf] %vm604_vm0, %v797_v37  ;;  %664 = vst.msk [vmem:[%s1475_s3 + $0xec] sm:$0xf] %vm604_vm0, %v798_v38 }
  0x53   :  { %665 = vst.msk [vmem:[%s1475_s3 + $0xf0] sm:$0xf] %vm604_vm0, %v799_v39  ;;  %666 = vst.msk [vmem:[%s1475_s3 + $0xf4] sm:$0xf] %vm604_vm0, %v800_v40 }
  0x54   :  { %667 = vst.msk [vmem:[%s1475_s3 + $0xf8] sm:$0xf] %vm604_vm0, %v801_v7  ;;  %668 = vst.msk [vmem:[%s1475_s3 + $0xfc] sm:$0xf] %vm604_vm0, %v802_v41 }

// kernel: generator_forward.49
= control target key start
LH: loop header
LB: loop body
LE: loop exit
PB: predicated region body
PF: predicated region fallthrough
CT: control target
= control target key end

     0   :  { %10 = vsyncpa [#allocation4], 0  ;;  %s1445_s0 = inlined_call_operand.vmem [shape: bf16[2,9,9,256], index: 0, kind: input, shape index: {}]   ;;  %s1446_s1 = inlined_call_operand.vmem [shape: bf16[4,256,128], index: 1, kind: input, shape index: {}]   ;;  %s1447_s2 = inlined_call_operand.vmem [shape: f32[1,128], index: 2, kind: input, shape index: {}]   ;;  %s1448_s3 = inlined_call_operand.vmem [shape: bf16[2,8,8,128], index: 3, kind: output, shape index: {0}]   ;;  %s1449_s4 = inlined_call_operand.hbm [shape: f32[2,8,2,128], index: 4, kind: output, shape index: {1}]  }
   0x1   :  { %12 = vsyncpa [#allocation4 + $0x1], 0  ;;  %s1233_s15 = smov 0   ;;  %s1235_s16 = smov 0  }
   0x2   :  { %s1237_s17 = smov 0   ;;  %s1239_s18 = smov 0  }
   0x3   :  { %s1241_s19 = smov 0   ;;  %s1243_s20 = smov 0  }
   0x4   :  { %s1245_s21 = smov 0   ;;  %s1247_s22 = smov 0  }
   0x5   :  { %s1249_s23 = smov 0   ;;  %s1251_s24 = smov 0  }
   0x6 LB: > { %1457 = sst [smem:[#allocation6_spill]] %s1176_s17  ;;  %s833_s25 = sadd.s32 4294967295, %s1204_s24   ;;  %s1204_s24 = sphi %s1251_s24, %s18_s24   ;;  %s1200_s23 = sphi %s1249_s23, %s1475_s23   ;;  %s1196_s22 = sphi %s1247_s22, %s1474_s22   ;;  %s1192_s21 = sphi %s1245_s21, %s1473_s21   ;;  %s1188_s20 = sphi %s1243_s20, %s1472_s20   ;;  %s1184_s19 = sphi %s1241_s19, %s1471_s19   ;;  %s1180_s18 = sphi %s1239_s18, %s1478_s18   ;;  %s1176_s17 = sphi %s1237_s17, %s1469_s17   ;;  %s1172_s16 = sphi %s1235_s16, %s1477_s16   ;;  %s1168_s15 = sphi %s1233_s15, %s1476_s15  }
   0x7   : > { %1458 = sst [smem:[#allocation7_spill]] %s1192_s21  ;;  %s834_s26 = sadd.s32 4294967294, %s1204_s24  }
   0x8   : > { %1459 = sst [smem:[#allocation8_spill]] %s1196_s22  ;;  %s30_s27 = sadd.s32 1, %s1192_s21 }
   0x9   : > { %1460 = sst [smem:[#allocation9_spill]] %s1200_s23  ;;  %p31_p0 = scmp.ge.s32.totalorder %s30_s27, 2 }
   0xa   : > { %s33_s28 = sadd.s32 1, %s1196_s22  ;;  %s37_s29 = sadd.s32 1, %s1200_s23 }
   0xb   : > { %p156_p1 = scmp.ne.s32.totalorder %s1176_s17, %s1172_s16  ;;  %s1480_s27 = smov (%p31_p0, %s30_s27), 0 }
   0xc   : > { %1461 = sst [smem:[#allocation10_spill]] %s1480_s27  ;;  %s1482_s28 = smov (!%p31_p0, %s33_s28), %s1196_s22 }
   0xd   : > { %p157_p2 = scmp.eq.s32.totalorder %s833_s25, 31  ;;  %p162_p3 = scmp.ne.s32.totalorder %s1172_s16, %s1168_s15 }
   0xe   : > { %p35_p4 = scmp.ge.s32.totalorder %s1482_s28, 8  ;;  %p163_p5 = scmp.eq.s32.totalorder %s834_s26, 31 }
   0xf   : > { %p1295_p6 = por %p157_p2, %p156_p1  ;;  %p837_p8 = scmp.ge.s32.totalorder %s1204_s24, 1 }
  0x10   : > { %s1484_s28 = smov (%p35_p4, %s1482_s28), 0  ;;  %s1486_s29 = smov (!%p35_p4, %s37_s29), %s1200_s23 }
  0x11   : > { %1463 = sst [smem:[#allocation11_spill]] %s1484_s28  ;;  %p1302_p7 = por %p163_p5, %p162_p3 }
  0x12   : > { %p39_p9 = scmp.ge.s32.totalorder %s1486_s29, 2  ;;  %p201_p10 = scmp.lt.s32.totalorder %s1204_s24, 33 }
  0x13   : > { %s142_s6 = ssub.s32 %s1196_s22, %s1484_s28  ;;  %s146_s9 = sadd.s32 1, %s1176_s17 }
  0x14   : > { %s1488_s29 = smov (%p39_p9, %s1486_s29), 0  ;;  %p202_p11 = pnand %p837_p8, %p201_p10 }
  0x15   : > { %1465 = sst [smem:[#allocation12_spill]] %s1488_s29  ;;  %s141_s7 = ssub.s32 %s1200_s23, %s1488_s29 }
  0x16   : > { %s143_s8 = sor.u32 %s142_s6, %s141_s7  ;;  %s1455_s11 = sand.u32 (!%p202_p11), 1, %s1172_s16  }
  0x17   : > { %p144_p12 = scmp.eq.s32.totalorder %s143_s8, 0  ;;  %205 = sbr.rel (%p202_p11) target bundleno = 330 (0x14a), region = 32 }
  0x18   : > { %s240_s12 = sadd.s32 (!%p202_p11), %s1180_s18, %s1184_s19  ;;  %s838_s13 = sshll.u32 (!%p202_p11), %s1455_s11, 1 }
  0x19   : > { %s1316_s10 = scalar_select %p144_p12, %s1176_s17, %s146_s9  }
  0x1a   : > { %p241_p13 = scmp.lt.s32.totalorder (!%p202_p11), %s1188_s20, 1  ;;  %p243_p0 = scmp.lt.s32.totalorder (!%p202_p11), %s240_s12, 8 }
  0x1b   : > { %1466 = sst [smem:[#allocation13_spill]] %s1316_s10  ;;  %p253_p1 = scmp.lt.s32.totalorder (!%p202_p11), %s1184_s19, 7 }
  0x1c   : > { %s242_s14 = scalar_select %p241_p13, %s1188_s20, 1 }
  0x1d   : > { %s1490_s12 = smov (!%p243_p0, %s240_s12), 8  ;;  %s1335_s17 = scalar_lea.vmem [#allocation3], %s838_s13 }
  0x1e   : > { %s971_s25 = smul.u32 36, %s242_s14  ;;  %s839_s26 = sshll.u32 %s1490_s12, 2 }
  0x1f   : > { %s841_s28 = sshll.u32 %s242_s14, 3  ;;  %p843_p2 = scmp.ne.s32.totalorder %s1180_s18, 0 }
  0x20   : > { %s247_s6 = sadd.s32 %s971_s25, %s839_s26 }
  0x21   : > { %s840_s7 = sshll.u32 %s247_s6, 2 }
  0x22   : > { %s249_s29 = scalar_lea.vmem %s1445_s0, %s840_s7 }
  0x23   : > { %s254_s27 = scalar_select %p253_p1, %s1184_s19, 7 }
  0x24   : > { %263 = sbr.rel (%p843_p2) target bundleno = 43 (0x2b), region = 36 }
  0x25   : > { %s256_s23 = sadd.s32 %s841_s28, %s254_s27 }
  0x26   : > { %s842_s22 = sshll.u32 %s256_s23, 2 }
  0x27   : > { %s1333_s11 = scalar_lea.vmem %s1448_s3, %s842_s22 }
  0x29   : > { %v1206_v0 = vmov 0.0  }
  0x2a   : > { %264 = vst [vmem:[#allocation2] sm:$0xff] %v1206_v0 }
  0x2b PF: > { %s925_s12 = sshll.u32 %s1180_s18, 8  ;;  %v1339_v1 = vld [vmem:[%s249_s29] sm:$0xff]  ;;  %v448_v2 = vld [vmem:[%s249_s29 + $0x8] sm:$0x11]  ;;  %p917_p3 = scmp.ne.s32.totalorder %s1180_s18, 1 }
  0x2c   : > { %s1344_s28 = scalar_lea.vmem %s1446_s1, %s925_s12  ;;  %v848_v3 = vcombine.high %v1339_v1, %v1339_v1  ;;  %v900_v4 = vcombine.high %v1339_v1, %v448_v2  ;;  %v899_v30 = vcombine.low %v1339_v1, %v448_v2  ;;  %v847_v45 = vcombine.low %v1339_v1, %v1339_v1 }
  0x2d   : > { %v1060_v5 = vld [vmem:[%s1344_s28 + $0x78] sm:$0xff]   ;;  %v1064_v11 = vld [vmem:[%s1344_s28 + $0x70] sm:$0xff]   ;;  %v1068_v17 = vld [vmem:[%s1344_s28 + $0x68] sm:$0xff]  }
  0x2e   : > { %v1061_v6 = vld [vmem:[%s1344_s28 + $0xf8] sm:$0xff]   ;;  %438 = vmatprep.mubr.bf16.mxu0 %v848_v3  ;;  %v501_v7 = vshrl.u32 %v900_v4, 16  ;;  %927 = vmatprep.subr.bf16.mxu0 %v1060_v5  ;;  %v503_v9 = vshll.u32 %v900_v4, 16  ;;  %v1065_v13 = vld [vmem:[%s1344_s28 + $0xf0] sm:$0xff]   ;;  %v1069_v18 = vld [vmem:[%s1344_s28 + $0xe8] sm:$0xff]   ;;  %v496_v35 = vshll.u32 %v899_v30, 16 }
  0x2f   : > { %v1062_v8 = vld [vmem:[%s1344_s28 + $0x38] sm:$0xff]   ;;  %949 = vmatprep.subr.bf16.mxu1 %v1061_v6  ;;  %v1066_v14 = vld [vmem:[%s1344_s28 + $0x30] sm:$0xff]   ;;  %v1070_v19 = vld [vmem:[%s1344_s28 + $0x28] sm:$0xff]   ;;  %v494_v39 = vshrl.u32 %v899_v30, 16 }
  0x30   : > { %v1063_v10 = vld [vmem:[%s1344_s28 + $0xb8] sm:$0xff]   ;;  %928 = vmatpush3.bf16.msra.mxu0 %v1062_v8  ;;  %v505_v12 = vrot.slane %v503_v9, 1  ;;  %v1067_v16 = vld [vmem:[%s1344_s28 + $0xb0] sm:$0xff]   ;;  %v1071_v20 = vld [vmem:[%s1344_s28 + $0xa8] sm:$0xff]   ;;  %v498_v41 = vrot.slane %v496_v35, 1 }
  0x31   : > { %950 = vmatpush3.bf16.msra.mxu1 %v1063_v10  ;;  %929 = vmatprep.subr.bf16.mxu0 %v1064_v11  ;;  %v1072_v21 = vld [vmem:[%s1344_s28 + $0x60] sm:$0xff]   ;;  %v1076_v25 = vld [vmem:[%s1344_s28 + $0x58] sm:$0xff]   ;;  %v1080_v29 = vld [vmem:[%s1344_s28 + $0x50] sm:$0xff]  }
  0x32   : > { %v506_v15 = vor.u32 %v505_v12, %v501_v7  ;;  %951 = vmatprep.subr.bf16.mxu1 %v1065_v13  ;;  %v1073_v22 = vld [vmem:[%s1344_s28 + $0xe0] sm:$0xff]   ;;  %v1077_v26 = vld [vmem:[%s1344_s28 + $0xd8] sm:$0xff]   ;;  %v1081_v31 = vld [vmem:[%s1344_s28 + $0xd0] sm:$0xff]   ;;  %v499_v46 = vor.u32 %v498_v41, %v494_v39 }
  0x33   : > { %v1074_v23 = vld [vmem:[%s1344_s28 + $0x20] sm:$0xff]   ;;  %v1078_v27 = vld [vmem:[%s1344_s28 + $0x18] sm:$0xff]   ;;  %v1082_v32 = vld [vmem:[%s1344_s28 + $0x10] sm:$0xff]  }
  0x34   : > { %930 = vmatpush3.bf16.msra.mxu0 %v1066_v14  ;;  %637 = vmatprep.mubr.bf16.mxu1 %v506_v15  ;;  %v1075_v24 = vld [vmem:[%s1344_s28 + $0xa0] sm:$0xff]   ;;  %v1079_v28 = vld [vmem:[%s1344_s28 + $0x98] sm:$0xff]   ;;  %v1083_v33 = vld [vmem:[%s1344_s28 + $0x90] sm:$0xff]  }
  0x35   : > { %952 = vmatpush3.bf16.msra.mxu1 %v1067_v16  ;;  %931 = vmatprep.subr.bf16.mxu0 %v1068_v17  ;;  %v1084_v34 = vld [vmem:[%s1344_s28 + $0x48] sm:$0xff]   ;;  %v1088_v40 = vld [vmem:[%s1344_s28 + $0x40] sm:$0xff]  }
  0x36   : > { %953 = vmatprep.subr.bf16.mxu1 %v1069_v18  ;;  %v1085_v36 = vld [vmem:[%s1344_s28 + $0xc8] sm:$0xff]   ;;  %v1089_v42 = vld [vmem:[%s1344_s28 + $0xc0] sm:$0xff]  }
  0x37   : > { %v1086_v37 = vld [vmem:[%s1344_s28 + $0x8] sm:$0xff]   ;;  %v1090_v43 = vld [vmem:[%s1344_s28] sm:$0xff]  }
  0x38   : > { %932 = vmatpush3.bf16.msra.mxu0 %v1070_v19  ;;  %v1087_v38 = vld [vmem:[%s1344_s28 + $0x88] sm:$0xff]   ;;  %v1091_v44 = vld [vmem:[%s1344_s28 + $0x80] sm:$0xff]  }
  0x39   : > { %954 = vmatpush3.bf16.msra.mxu1 %v1071_v20  ;;  %933 = vmatprep.subr.bf16.mxu0 %v1072_v21  ;;  %v265_v49 = vld [vmem:[#allocation2] sm:$0xff] }
  0x3a   : > { %955 = vmatprep.subr.bf16.mxu1 %v1073_v22 }
  0x3c   : > { %934 = vmatpush3.bf16.msra.mxu0 %v1074_v23 }
  0x3d   : > { %956 = vmatpush3.bf16.msra.mxu1 %v1075_v24  ;;  %935 = vmatprep.subr.bf16.mxu0 %v1076_v25 }
  0x3e   : > { %957 = vmatprep.subr.bf16.mxu1 %v1077_v26 }
  0x40   : > { %936 = vmatpush3.bf16.msra.mxu0 %v1078_v27 }
  0x41   : > { %958 = vmatpush3.bf16.msra.mxu1 %v1079_v28  ;;  %937 = vmatprep.subr.bf16.mxu0 %v1080_v29 }
  0x42   : > { %959 = vmatprep.subr.bf16.mxu1 %v1081_v31 }
  0x44   : > { %938 = vmatpush3.bf16.msra.mxu0 %v1082_v32 }
  0x45   : > { %960 = vmatpush3.bf16.msra.mxu1 %v1083_v33  ;;  %939 = vmatprep.subr.bf16.mxu0 %v1084_v34 }
  0x46   : > { %961 = vmatprep.subr.bf16.mxu1 %v1085_v36 }
  0x48   : > { %940 = vmatpush3.bf16.msra.mxu0 %v1086_v37 }
  0x49   : > { %962 = vmatpush3.bf16.msra.mxu1 %v1087_v38  ;;  %941 = vmatprep.subr.bf16.mxu0 %v1088_v40 }
  0x4a   : > { %963 = vmatprep.subr.bf16.mxu1 %v1089_v42 }
  0x4c   : > { %942 = vmatpush3.bf16.msra.mxu0 %v1090_v43 }
  0x4d   : > { %964 = vmatpush3.bf16.msra.mxu1 %v1091_v44 }
  0x4f   : > { %439 = vmatmul.mubr.bf16.vlgmr.msra.gmra.mxu0 %v847_v45 }
  0x50   : > { %638 = vmatmul.mubr.bf16.vlgmr.msra.gmra.mxu1 %v499_v46 }
 0x10f   : > { %v943_v47 = vpop.f32.mrf.mxu0 }
 0x110   : > { %v965_v48 = vpop.f32.mrf.mxu1 }
 0x111   : > { %v944_v50 = vpop.f32.mrf.mxu0 }
 0x112   : > { %v945_v51 = vadd.f32 %v944_v50, %v943_v47  ;;  %v966_v52 = vpop.f32.mrf.mxu1 }
 0x113   : > { %v946_v53 = vpop.f32.mrf.mxu0  ;;  %v967_v55 = vadd.f32 %v966_v52, %v965_v48 }
 0x114   : > { %v446_v54 = vadd.f32 %v945_v51, %v265_v49  ;;  %v968_v56 = vpop.f32.mrf.mxu1  ;;  %650 = sbr.rel (%p917_p3) target bundleno = 305 (0x131), region = 40 }
 0x115   : > { %v947_v57 = vpop.f32.mrf.mxu0 }
 0x116   : > { %v645_v58 = vadd.f32 %v967_v55, %v446_v54  ;;  %v969_v59 = vpop.f32.mrf.mxu1 }
 0x118   : > { %646 = vst [vmem:[#allocation2] sm:$0xff] %v645_v58 }
 0x119   : > { %v918_v61 = vld [vmem:[%s1447_s2] ss:$0 sm:$0xff] }
 0x11f   : > { %v651_v60 = vld [vmem:[#allocation2] sm:$0xff] }
 0x120   : > { %v659_v62 = vadd.f32 %v918_v61, %v651_v60 }
 0x122   : > { %v660_v63 = vrot.slane %v659_v62, 4  ;;  %v667_v0 = vmul.f32 %v659_v62, %v659_v62  ;;  %v675_v1 = vpack.c.bf16 %v659_v62, %v659_v62 }
 0x124   : > { %v661_v2 = vadd.f32 %v660_v63, %v659_v62  ;;  %v668_v3 = vrot.slane %v667_v0, 4  ;;  %676 = vst [vmem:[%s1333_s11] sm:$0xf] %v675_v1 }
 0x126   : > { %v662_v4 = vrot.slane %v661_v2, 2  ;;  %v669_v5 = vadd.f32 %v668_v3, %v667_v0 }
 0x128   : > { %v663_v6 = vadd.f32 %v662_v4, %v661_v2  ;;  %v670_v7 = vrot.slane %v669_v5, 2 }
 0x12a   : > { %v664_v8 = vrot.slane %v663_v6, 1  ;;  %v671_v9 = vadd.f32 %v670_v7, %v669_v5 }
 0x12c   : > { %v665_v10 = vadd.f32 %v664_v8, %v663_v6  ;;  %v672_v11 = vrot.slane %v671_v9, 1 }
 0x12e   : > { %666 = vst [vmem:[%s1335_s17] sm:$0x1] %v665_v10  ;;  %v673_v12 = vadd.f32 %v672_v11, %v671_v9 }
 0x130   : > { %674 = vst [vmem:[%s1335_s17 + $0x1] sm:$0x1] %v673_v12 }
 0x131 PF: > { %s920_s18 = sshll.u32 %s1188_s20, 3  ;;  %s704_s10 = sshll.u32 %s1335_s17, 4  ;;  %s705_s10 = int_to_ptr.vmem [resolvable:$true] %s704_s10 }
 0x132   : > { %s700_s29 = sadd.s32 %s1184_s19, %s920_s18  ;;  %s1467_s26 = sand.u32 1, %s1172_s16  }
 0x133   : > { %s921_s11 = sshll.u32 %s700_s29, 5  ;;  %s686_s6 = scalar_lea.sflag [#allocation4], %s1467_s26 }
 0x134   : > { %s702_s25 = scalar_lea.hbm %s1449_s4, %s921_s11  ;;  %s1096_s7 = scalar_lea.vmem %s705_s10, 32 }
 0x135   : > { %p1097_p4 = scmp.ne.s32.totalorder %s705_s10, %s1096_s7  ;;  %s1207_s8 = smov [#allocation3]  }
 0x136   : > { %s1100_s9 = sshll.u32 %s1207_s8, 4  ;;  %s1101_s9 = int_to_ptr.vmem [resolvable:$false] %s1100_s9 }
 0x137   : > { %p1098_p5 = pnand %p1097_p4, %p1295_p6  ;;  %s1102_s12 = scalar_lea.vmem %s1101_s9, 64 }
 0x138   : > { %p1103_p9 = scmp.lt.s32.totalorder %s705_s10, %s1101_s9  ;;  %p1104_p10 = scmp.lt.s32.totalorder %s1102_s12, %s1096_s7 }
 0x139   : > { %p1099_p8 = pneg %p1098_p5 }
 0x13a   : > { %p1105_p11 = por %p1104_p10, %p1103_p9 }
 0x13c   : > { %p1106_p12 = pnand %p1105_p11, %p1099_p8 }
 0x13e   : > { %1109 = shalt.err (!%p1106_p12)
}
 0x13f   : > { %s1110_s17 = scalar_lea.hbm %s702_s25, 32  ;;  %s1114_s27 = scalar_lea.hbm %s1449_s4, 512 }
 0x140   : > { %p1111_p13 = scmp.ne.s32.totalorder %s702_s25, %s1110_s17  ;;  %p1115_p2 = scmp.lt.s32.totalorder %s702_s25, %s1449_s4 }
 0x141   : > { %p1116_p3 = scmp.lt.s32.totalorder %s1114_s27, %s1110_s17 }
 0x142   : > { %p1112_p0 = pnand %p1111_p13, %p1295_p6 }
 0x143   : > { %p1117_p4 = por %p1116_p3, %p1115_p2 }
 0x144   : > { %p1113_p1 = pneg %p1112_p0 }
 0x146   : > { %p1118_p5 = pnand %p1117_p4, %p1113_p1 }
 0x148   : > { %1121 = shalt.err (!%p1118_p5)
}
 0x149   : > { %972 = dma.vmem_to_hbm [thread:$0]  (%p1295_p6), %s705_s10, 32, %s702_s25, %s686_s6  }
 0x14a PF: > { %p978_p8 = scmp.ge.s32.totalorder %s1204_s24, 2  ;;  %s727_s21 = sand.u32 1, %s1168_s15  }
 0x14b   : > { %s728_s22 = scalar_lea.sflag [#allocation4], %s727_s21 }
 0x14c   : > { %p975_p9 = pnand %p978_p8, %p1302_p7 }
 0x14e   : > { %p976_p10 = pneg %p975_p9 }
 0x150   : > { %1163 = dma.done.wait (%p976_p10), %s728_s22, 32  }
 0x151   : > { %1165 = vsyncadd (%p976_p10), %s728_s22, 4294967264  ;;  %s18_s24 = sadd.s32 1, %s1204_s24   ;;  %s1468_s18 = sld [smem:[#allocation6_spill]] }
 0x152   : > { %p15_p11 = scmp.ge.s32.totalorder %s18_s24, 34   ;;  %s1469_s17 = sld [smem:[#allocation13_spill]] }
 0x153   : > { %s1470_s30 = sld [smem:[#allocation7_spill]]  ;;  %s1476_s15 = smov %s1172_s16 }
 0x154   : > { %s1471_s19 = sld [smem:[#allocation8_spill]] }
 0x155   : > { %s1472_s20 = sld [smem:[#allocation9_spill]]  ;;  %17 = sbr.rel (!%p15_p11) target bundleno = 6 (0x6), region = 89 }
 0x156   : > { %s1473_s21 = sld [smem:[#allocation10_spill]] }
 0x157   : > { %s1474_s22 = sld [smem:[#allocation11_spill]]  ;;  %s1477_s16 = smov %s1468_s18 }
 0x158   : > { %s1475_s23 = sld [smem:[#allocation12_spill]] }
 0x159   : > { %s1478_s18 = smov %s1470_s30 }
 0x15a   :  { %733 = vsyncpa [#allocation4], 1 }
 0x15b   :  { %735 = vsyncpa [#allocation4 + $0x1], 1 }

// kernel: generator_forward.50
= control target key start
LH: loop header
LB: loop body
LE: loop exit
PB: predicated region body
PF: predicated region fallthrough
CT: control target
= control target key end

     0   :  { %s1142_s15 = smov 0   ;;  %s1144_s16 = smov 0   ;;  %s1300_s0 = inlined_call_operand.vmem [shape: bf16[2,10,10,128], index: 0, kind: input, shape index: {}]   ;;  %s1301_s1 = inlined_call_operand.vmem [shape: bf16[9,128,128], index: 1, kind: input, shape index: {}]   ;;  %s1302_s2 = inlined_call_operand.vmem [shape: f32[1,128], index: 2, kind: input, shape index: {}]   ;;  %s1303_s3 = inlined_call_operand.vmem [shape: bf16[2,8,8,128], index: 3, kind: output, shape index: {0}]   ;;  %s1304_s4 = inlined_call_operand.vmem [shape: f32[2,8,2,128], index: 4, kind: output, shape index: {1}]  }
   0x1   :  { %s1146_s17 = smov 0   ;;  %s1148_s18 = smov 0  }
   0x2   :  { %s1150_s19 = smov 0   ;;  %s1152_s20 = smov 0  }
   0x3   :  { %s1154_s21 = smov 0  }
   0x4 LB: > { %s27_s22 = sadd.s32 1, %s1100_s18  ;;  %s30_s23 = sadd.s32 1, %s1104_s19  ;;  %s1112_s21 = sphi %s1154_s21, %s15_s21   ;;  %s1108_s20 = sphi %s1152_s20, %s1310_s20   ;;  %s1104_s19 = sphi %s1150_s19, %s1309_s19   ;;  %s1100_s18 = sphi %s1148_s18, %s1308_s18   ;;  %s1096_s17 = sphi %s1146_s17, %s1307_s17   ;;  %s1092_s16 = sphi %s1144_s16, %s1306_s16   ;;  %s1088_s15 = sphi %s1142_s15, %s1305_s15  }
   0x5   : > { %p28_p0 = scmp.ge.s32.totalorder %s27_s22, 3  ;;  %p810_p1 = scmp.ge.s32.totalorder %s1112_s21, 1 }
   0x6   : > { %p198_p2 = scmp.lt.s32.totalorder %s1112_s21, 49  ;;  %s34_s24 = sadd.s32 1, %s1108_s20 }
   0x7   : > { %s1312_s22 = smov (%p28_p0, %s27_s22), 0  ;;  %s1314_s23 = smov (!%p28_p0, %s30_s23), %s1104_s19 }
   0x8   : > { %p199_p3 = pnand %p810_p1, %p198_p2  ;;  %p32_p4 = scmp.ge.s32.totalorder %s1314_s23, 8 }
   0x9   : > { %s240_s25 = sadd.s32 (!%p199_p3), %s1088_s15, %s1092_s16  ;;  %p241_p6 = scmp.lt.s32.totalorder (!%p199_p3), %s1096_s17, 1 }
   0xa   : > { %s1316_s23 = smov (%p32_p4, %s1314_s23), 0  ;;  %s1318_s24 = smov (!%p32_p4, %s34_s24), %s1108_s20 }
   0xb   : > { %p36_p5 = scmp.ge.s32.totalorder %s1318_s24, 2  ;;  %202 = sbr.rel (%p199_p3) target bundleno = 317 (0x13d), region = 32 }
   0xc   : > { %p243_p7 = scmp.lt.s32.totalorder (!%p199_p3), %s240_s25, 9  ;;  %p253_p8 = scmp.lt.s32.totalorder (!%p199_p3), %s1092_s16, 7 }
   0xd   : > { %s1320_s24 = smov (%p36_p5, %s1318_s24), 0  ;;  %p817_p9 = scmp.ne.s32.totalorder (!%p199_p3), %s1088_s15, 0 }
  0x10   : > { %s1322_s17 = smov (!%p241_p6, %s1096_s17), 1  ;;  %s1324_s25 = smov (!%p243_p7, %s240_s25), 9 }
  0x11   : > { %s972_s26 = smul.u32 20, %s1322_s17  ;;  %s811_s27 = sshll.u32 %s1324_s25, 1 }
  0x12   : > { %s813_s7 = sshll.u32 %s1322_s17, 3  ;;  %s1326_s16 = smov (!%p253_p8, %s1092_s16), 7 }
  0x13   : > { %s247_s28 = sadd.s32 %s972_s26, %s811_s27  ;;  %s256_s8 = sadd.s32 %s813_s7, %s1326_s16 }
  0x14   : > { %s812_s29 = sshll.u32 %s247_s28, 2  ;;  %s814_s9 = sshll.u32 %s256_s8, 2 }
  0x15   : > { %s1194_s6 = scalar_lea.vmem %s1300_s0, %s812_s29  ;;  %s816_s10 = sshll.u32 %s256_s8, 1 }
  0x16   : > { %s1200_s13 = scalar_lea.vmem %s1303_s3, %s814_s9  ;;  %s1205_s26 = scalar_lea.vmem %s1304_s4, %s816_s10 }
  0x17   : > { %271 = sbr.rel (%p817_p9) target bundleno = 30 (0x1e), region = 36 }
  0x1c   : > { %v1114_v0 = vmov 0.0  }
  0x1d   : > { %272 = vst [vmem:[#allocation2] sm:$0xff] %v1114_v0 }
  0x1e PF: > { %s884_s16 = smul.u32 192, %s1088_s15  ;;  %v1115_v1 = vmov 0.0   ;;  %vm1116_vm0 = vmmov 0   ;;  %v384_v10 = vld [vmem:[%s1194_s6] sm:$0xf]  ;;  %p880_p10 = scmp.ne.s32.totalorder %s1088_s15, 2 }
  0x1f   : > { %912 = vmatprep.subr.bf16.mxu0 %v1115_v1  ;;  %932 = vmatprep.subr.bf16.mxu1 %v1115_v1  ;;  %v385_v11 = vld [vmem:[%s1194_s6 + $0x4] sm:$0x1]  ;;  %v274_v24 = vld [vmem:[%s1194_s6] sm:$0xf] }
  0x20   : > { %s1214_s28 = scalar_lea.vmem %s1301_s1, %s884_s16  ;;  %928 = vmatprep.mubr.msk.bf16.mxu0 %vm1116_vm0, %v1115_v1  ;;  %948 = vmatprep.mubr.msk.bf16.mxu1 %vm1116_vm0, %v1115_v1  ;;  %v845_v15 = vcombine.low %v384_v10, %v385_v11  ;;  %v508_v33 = vld [vmem:[%s1194_s6] sm:$0xe] }
  0x21   : > { %v1032_v2 = vld [vmem:[%s1214_s28 + $0x38] sm:$0xff]   ;;  %v1034_v4 = vld [vmem:[%s1214_s28 + $0x30] sm:$0xff]   ;;  %v1036_v6 = vld [vmem:[%s1214_s28 + $0x28] sm:$0xff]   ;;  %v871_v34 = vcombine.low %v508_v33, %v385_v11 }
  0x22   : > { %v1033_v3 = vld [vmem:[%s1214_s28 + $0x78] sm:$0xff]   ;;  %913 = vmatpush3.bf16.msra.mxu0 %v1032_v2  ;;  %v1035_v5 = vld [vmem:[%s1214_s28 + $0x70] sm:$0xff]   ;;  %v1037_v7 = vld [vmem:[%s1214_s28 + $0x68] sm:$0xff]   ;;  %v414_v18 = vshll.u32 %v845_v15, 16  ;;  %v412_v21 = vshrl.u32 %v845_v15, 16 }
  0x23   : > { %914 = vmatprep.subr.bf16.mxu0 %v1115_v1  ;;  %933 = vmatpush3.bf16.msra.mxu1 %v1033_v3  ;;  %v1038_v8 = vld [vmem:[%s1214_s28 + $0x20] sm:$0xff]   ;;  %v1040_v12 = vld [vmem:[%s1214_s28 + $0x18] sm:$0xff]   ;;  %v1042_v14 = vld [vmem:[%s1214_s28 + $0x10] sm:$0xff]   ;;  %v532_v36 = vrot.slane %v871_v34, 1 }
  0x24   : > { %934 = vmatprep.subr.bf16.mxu1 %v1115_v1  ;;  %v1039_v9 = vld [vmem:[%s1214_s28 + $0x60] sm:$0xff]   ;;  %v1041_v13 = vld [vmem:[%s1214_s28 + $0x58] sm:$0xff]   ;;  %v1043_v16 = vld [vmem:[%s1214_s28 + $0x50] sm:$0xff]   ;;  %v416_v22 = vrot.slane %v414_v18, 1 }
  0x25   : > { %v1044_v17 = vld [vmem:[%s1214_s28 + $0x8] sm:$0xff]   ;;  %v1046_v20 = vld [vmem:[%s1214_s28] sm:$0xff]   ;;  %v1048_v25 = vld [vmem:[%s1214_s28 + $0xb8] sm:$0xff]  }
  0x26   : > { %915 = vmatpush3.bf16.msra.mxu0 %v1034_v4  ;;  %v1045_v19 = vld [vmem:[%s1214_s28 + $0x48] sm:$0xff]   ;;  %v1047_v23 = vld [vmem:[%s1214_s28 + $0x40] sm:$0xff]   ;;  %v417_v26 = vor.u32 %v416_v22, %v412_v21  ;;  %v1050_v27 = vld [vmem:[%s1214_s28 + $0xb0] sm:$0xff]  }
  0x27   : > { %916 = vmatprep.subr.bf16.mxu0 %v1115_v1  ;;  %935 = vmatpush3.bf16.msra.mxu1 %v1035_v5  ;;  %v1051_v28 = vld [vmem:[%s1214_s28 + $0xa8] sm:$0xff]   ;;  %v1052_v29 = vld [vmem:[%s1214_s28 + $0xa0] sm:$0xff]   ;;  %v1053_v30 = vld [vmem:[%s1214_s28 + $0x98] sm:$0xff]  }
  0x28   : > { %936 = vmatprep.subr.bf16.mxu1 %v1115_v1  ;;  %v1054_v31 = vld [vmem:[%s1214_s28 + $0x90] sm:$0xff]   ;;  %v1055_v32 = vld [vmem:[%s1214_s28 + $0x88] sm:$0xff]   ;;  %v1056_v35 = vld [vmem:[%s1214_s28 + $0x80] sm:$0xff]  }
  0x29   : > { %v273_v45 = vld [vmem:[#allocation2] sm:$0xff] }
  0x2a   : > { %917 = vmatpush3.bf16.msra.mxu0 %v1036_v6 }
  0x2b   : > { %918 = vmatprep.subr.bf16.mxu0 %v1115_v1  ;;  %937 = vmatpush3.bf16.msra.mxu1 %v1037_v7 }
  0x2c   : > { %938 = vmatprep.subr.bf16.mxu1 %v1115_v1 }
  0x2e   : > { %919 = vmatpush3.bf16.msra.mxu0 %v1038_v8 }
  0x2f   : > { %920 = vmatprep.subr.bf16.mxu0 %v1115_v1  ;;  %939 = vmatpush3.bf16.msra.mxu1 %v1039_v9 }
  0x30   : > { %940 = vmatprep.subr.bf16.mxu1 %v1115_v1 }
  0x32   : > { %921 = vmatpush3.bf16.msra.mxu0 %v1040_v12 }
  0x33   : > { %922 = vmatprep.subr.bf16.mxu0 %v1115_v1  ;;  %941 = vmatpush3.bf16.msra.mxu1 %v1041_v13 }
  0x34   : > { %942 = vmatprep.subr.bf16.mxu1 %v1115_v1 }
  0x36   : > { %923 = vmatpush3.bf16.msra.mxu0 %v1042_v14 }
  0x37   : > { %924 = vmatprep.subr.bf16.mxu0 %v1115_v1  ;;  %943 = vmatpush3.bf16.msra.mxu1 %v1043_v16 }
  0x38   : > { %944 = vmatprep.subr.bf16.mxu1 %v1115_v1 }
  0x3a   : > { %925 = vmatpush3.bf16.msra.mxu0 %v1044_v17 }
  0x3b   : > { %926 = vmatprep.subr.bf16.mxu0 %v1115_v1  ;;  %945 = vmatpush3.bf16.msra.mxu1 %v1045_v19 }
  0x3c   : > { %946 = vmatprep.subr.bf16.mxu1 %v1115_v1 }
  0x3e   : > { %927 = vmatpush3.bf16.msra.mxu0 %v1046_v20 }
  0x3f   : > { %947 = vmatpush3.bf16.msra.mxu1 %v1047_v23  ;;  %952 = vmatprep.subr.bf16.mxu0 %v1115_v1 }
  0x41   : > { %929 = vmatmul.mubr.bf16.vlgmr.msra.gmra.mxu0 %v274_v24 }
  0x42   : > { %953 = vmatpush3.bf16.msra.mxu0 %v1048_v25  ;;  %949 = vmatmul.mubr.bf16.vlgmr.msra.gmra.mxu1 %v417_v26 }
  0x43   : > { %954 = vmatprep.subr.bf16.mxu0 %v1115_v1  ;;  %968 = vmatprep.mubr.msk.bf16.mxu0 %vm1116_vm0, %v1115_v1 }
  0x46   : > { %955 = vmatpush3.bf16.msra.mxu0 %v1050_v27 }
  0x47   : > { %956 = vmatprep.subr.bf16.mxu0 %v1115_v1 }
  0x4a   : > { %957 = vmatpush3.bf16.msra.mxu0 %v1051_v28 }
  0x4b   : > { %958 = vmatprep.subr.bf16.mxu0 %v1115_v1 }
  0x4e   : > { %959 = vmatpush3.bf16.msra.mxu0 %v1052_v29 }
  0x4f   : > { %960 = vmatprep.subr.bf16.mxu0 %v1115_v1 }
  0x52   : > { %961 = vmatpush3.bf16.msra.mxu0 %v1053_v30 }
  0x53   : > { %962 = vmatprep.subr.bf16.mxu0 %v1115_v1 }
  0x56   : > { %963 = vmatpush3.bf16.msra.mxu0 %v1054_v31 }
  0x57   : > { %964 = vmatprep.subr.bf16.mxu0 %v1115_v1 }
  0x5a   : > { %965 = vmatpush3.bf16.msra.mxu0 %v1055_v32 }
  0x5b   : > { %966 = vmatprep.subr.bf16.mxu0 %v1115_v1 }
  0x5e   : > { %967 = vmatpush3.bf16.msra.mxu0 %v1056_v35 }
  0x61   : > { %969 = vmatmul.mubr.bf16.vlgmr.msra.gmra.mxu0 %v532_v36 }
 0x101   : > { %v377_v37 = vpop.f32.mrf.mxu0 }
 0x102   : > { %v501_v38 = vpop.f32.mrf.mxu1  ;;  %v383_v46 = vadd.f32 %v377_v37, %v273_v45 }
 0x103   : > { %v930_v39 = vpop.f32.mrf.mxu0 }
 0x104   : > { %v950_v40 = vpop.f32.mrf.mxu1  ;;  %v507_v47 = vadd.f32 %v501_v38, %v383_v46 }
 0x105   : > { %v380_v41 = vpop.f32.mrf.mxu0 }
 0x106   : > { %v504_v42 = vpop.f32.mrf.mxu1 }
 0x107   : > { %v931_v43 = vpop.f32.mrf.mxu0 }
 0x108   : > { %v951_v44 = vpop.f32.mrf.mxu1 }
 0x121   : > { %v616_v48 = vpop.f32.mrf.mxu0 }
 0x122   : > { %v622_v49 = vadd.f32 %v616_v48, %v507_v47 }
 0x123   : > { %v970_v50 = vpop.f32.mrf.mxu0  ;;  %627 = sbr.rel (%p880_p10) target bundleno = 317 (0x13d), region = 40 }
 0x124   : > { %623 = vst [vmem:[#allocation2] sm:$0xff] %v622_v49 }
 0x125   : > { %v619_v51 = vpop.f32.mrf.mxu0 }
 0x127   : > { %v971_v52 = vpop.f32.mrf.mxu0 }
 0x128   : > { %v881_v54 = vld [vmem:[%s1302_s2] ss:$0 sm:$0xff] }
 0x12b   : > { %v628_v53 = vld [vmem:[#allocation2] sm:$0xff] }
 0x12c   : > { %v636_v55 = vadd.f32 %v881_v54, %v628_v53 }
 0x12e   : > { %v637_v56 = vrot.slane %v636_v55, 4  ;;  %v644_v57 = vmul.f32 %v636_v55, %v636_v55  ;;  %v652_v58 = vpack.c.bf16 %v636_v55, %v636_v55 }
 0x130   : > { %v638_v59 = vadd.f32 %v637_v56, %v636_v55  ;;  %v645_v60 = vrot.slane %v644_v57, 4  ;;  %653 = vst [vmem:[%s1200_s13] sm:$0xf] %v652_v58 }
 0x132   : > { %v639_v61 = vrot.slane %v638_v59, 2  ;;  %v646_v62 = vadd.f32 %v645_v60, %v644_v57 }
 0x134   : > { %v640_v63 = vadd.f32 %v639_v61, %v638_v59  ;;  %v647_v0 = vrot.slane %v646_v62, 2 }
 0x136   : > { %v641_v1 = vrot.slane %v640_v63, 1  ;;  %v648_v2 = vadd.f32 %v647_v0, %v646_v62 }
 0x138   : > { %v642_v3 = vadd.f32 %v641_v1, %v640_v63  ;;  %v649_v4 = vrot.slane %v648_v2, 1 }
 0x13a   : > { %643 = vst [vmem:[%s1205_s26] sm:$0x1] %v642_v3  ;;  %v650_v5 = vadd.f32 %v649_v4, %v648_v2 }
 0x13c   : > { %651 = vst [vmem:[%s1205_s26 + $0x1] sm:$0x1] %v650_v5 }
 0x13d PF: > { %s15_s21 = sadd.s32 1, %s1112_s21   ;;  %s1305_s15 = smov %s1100_s18 }
 0x13e   : > { %p12_p11 = scmp.ge.s32.totalorder %s15_s21, 50   ;;  %s1306_s16 = smov %s1104_s19 }
 0x13f   : > { %s1307_s17 = smov %s1108_s20  ;;  %s1308_s18 = smov %s1312_s22 }
 0x140   : > { %s1309_s19 = smov %s1316_s23  ;;  %s1310_s20 = smov %s1320_s24 }
 0x141   :  { %14 = sbr.rel (!%p12_p11) target bundleno = 4 (0x4), region = 85 }

// kernel: generator_forward.51
= control target key start
LH: loop header
LB: loop body
LE: loop exit
PB: predicated region body
PF: predicated region fallthrough
CT: control target
= control target key end

     0   :  { %s422_s0 = inlined_call_operand.vmem [shape: bf16[128,128], index: 0, kind: input, shape index: {}]   ;;  %s423_s1 = inlined_call_operand.vmem [shape: f32[1,128], index: 1, kind: input, shape index: {}]   ;;  %s424_s2 = inlined_call_operand.vmem [shape: f32[1,128], index: 2, kind: input, shape index: {}]   ;;  %s425_s3 = inlined_call_operand.vmem [shape: bf16[128,128], index: 3, kind: output, shape index: {}]  }
   0x1   :  { %v227_v0 = vld [vmem:[%s422_s0] sm:$0xff]   ;;  %v298_v4 = vld [vmem:[%s422_s0 + $0x8] sm:$0xff]   ;;  %v299_v5 = vld [vmem:[%s422_s0 + $0x10] sm:$0xff]  }
   0x2   :  { %v338_v1 = vld [vmem:[%s423_s1] ss:$0 sm:$0xff]  ;;  %v228_v2 = vunpack.c.l.bf16 %v227_v0  ;;  %v229_v3 = vunpack.c.h.bf16 %v227_v0  ;;  %v300_v6 = vld [vmem:[%s422_s0 + $0x18] sm:$0xff]   ;;  %v232_v8 = vunpack.c.l.bf16 %v298_v4  ;;  %v233_v9 = vunpack.c.h.bf16 %v298_v4  ;;  %v302_v33 = vld [vmem:[%s422_s0 + $0x28] sm:$0xff]  }
   0x3   :  { %v352_v7 = vld [vmem:[%s424_s2] ss:$0 sm:$0xff]  ;;  %v236_v10 = vunpack.c.l.bf16 %v299_v5  ;;  %v237_v11 = vunpack.c.h.bf16 %v299_v5  ;;  %v240_v14 = vunpack.c.l.bf16 %v300_v6  ;;  %v241_v15 = vunpack.c.h.bf16 %v300_v6  ;;  %v303_v38 = vld [vmem:[%s422_s0 + $0x30] sm:$0xff]   ;;  %v304_v43 = vld [vmem:[%s422_s0 + $0x38] sm:$0xff]  }
   0x4   :  { %v53_v12 = vmul.f32 %v228_v2, %v338_v1  ;;  %v54_v13 = vmul.f32 %v229_v3, %v338_v1  ;;  %v55_v16 = vmul.f32 %v232_v8, %v338_v1  ;;  %v56_v17 = vmul.f32 %v233_v9, %v338_v1  ;;  %v301_v28 = vld [vmem:[%s422_s0 + $0x20] sm:$0xff]  }
   0x5   :  { %v57_v18 = vmul.f32 %v236_v10, %v338_v1  ;;  %v58_v19 = vmul.f32 %v237_v11, %v338_v1  ;;  %v59_v22 = vmul.f32 %v240_v14, %v338_v1  ;;  %v60_v23 = vmul.f32 %v241_v15, %v338_v1 }
   0x6   :  { %v76_v20 = vadd.f32 %v352_v7, %v53_v12  ;;  %v77_v21 = vadd.f32 %v352_v7, %v54_v13  ;;  %v78_v24 = vadd.f32 %v352_v7, %v55_v16  ;;  %v79_v25 = vadd.f32 %v352_v7, %v56_v17 }
   0x7   :  { %v80_v26 = vadd.f32 %v352_v7, %v57_v18  ;;  %v81_v27 = vadd.f32 %v352_v7, %v58_v19  ;;  %v82_v31 = vadd.f32 %v352_v7, %v59_v22  ;;  %v83_v32 = vadd.f32 %v352_v7, %v60_v23 }
   0x8   :  { %v92_v29 = vmax.f32 %v76_v20, 0.0  ;;  %v93_v30 = vmax.f32 %v77_v21, 0.0  ;;  %v94_v34 = vmax.f32 %v78_v24, 0.0  ;;  %v95_v35 = vmax.f32 %v79_v25, 0.0 }
   0x9   :  { %v96_v36 = vmax.f32 %v80_v26, 0.0  ;;  %v97_v37 = vmax.f32 %v81_v27, 0.0  ;;  %v98_v40 = vmax.f32 %v82_v31, 0.0  ;;  %v99_v41 = vmax.f32 %v83_v32, 0.0 }
   0xa   :  { %v261_v39 = vpack.c.bf16 %v93_v30, %v92_v29  ;;  %v244_v42 = vunpack.c.l.bf16 %v301_v28  ;;  %v266_v44 = vpack.c.bf16 %v95_v35, %v94_v34  ;;  %v245_v46 = vunpack.c.h.bf16 %v301_v28 }
   0xb   :  { %v271_v45 = vpack.c.bf16 %v97_v37, %v96_v36  ;;  %v248_v47 = vunpack.c.l.bf16 %v302_v33  ;;  %v276_v48 = vpack.c.bf16 %v99_v41, %v98_v40  ;;  %v249_v50 = vunpack.c.h.bf16 %v302_v33 }
   0xc   :  { %262 = vst [vmem:[%s425_s3] sm:$0xff] %v261_v39   ;;  %v61_v49 = vmul.f32 %v244_v42, %v338_v1  ;;  %v252_v51 = vunpack.c.l.bf16 %v303_v38  ;;  %305 = vst [vmem:[%s425_s3 + $0x8] sm:$0xff] %v266_v44   ;;  %v62_v52 = vmul.f32 %v245_v46, %v338_v1  ;;  %v253_v54 = vunpack.c.h.bf16 %v303_v38 }
   0xd   :  { %306 = vst [vmem:[%s425_s3 + $0x10] sm:$0xff] %v271_v45   ;;  %v63_v53 = vmul.f32 %v248_v47, %v338_v1  ;;  %v256_v55 = vunpack.c.l.bf16 %v304_v43  ;;  %307 = vst [vmem:[%s425_s3 + $0x18] sm:$0xff] %v276_v48   ;;  %v64_v57 = vmul.f32 %v249_v50, %v338_v1  ;;  %v257_v59 = vunpack.c.h.bf16 %v304_v43 }
   0xe   :  { %v84_v56 = vadd.f32 %v352_v7, %v61_v49  ;;  %v65_v58 = vmul.f32 %v252_v51, %v338_v1  ;;  %v85_v60 = vadd.f32 %v352_v7, %v62_v52  ;;  %v66_v62 = vmul.f32 %v253_v54, %v338_v1 }
   0xf   :  { %v86_v61 = vadd.f32 %v352_v7, %v63_v53  ;;  %v67_v63 = vmul.f32 %v256_v55, %v338_v1  ;;  %v87_v2 = vadd.f32 %v352_v7, %v64_v57  ;;  %v68_v4 = vmul.f32 %v257_v59, %v338_v1 }
  0x10   :  { %v100_v0 = vmax.f32 %v84_v56, 0.0  ;;  %v88_v3 = vadd.f32 %v352_v7, %v65_v58  ;;  %v101_v5 = vmax.f32 %v85_v60, 0.0  ;;  %v89_v8 = vadd.f32 %v352_v7, %v66_v62 }
  0x11   :  { %v102_v6 = vmax.f32 %v86_v61, 0.0  ;;  %v90_v9 = vadd.f32 %v352_v7, %v67_v63  ;;  %v103_v10 = vmax.f32 %v87_v2, 0.0  ;;  %v91_v12 = vadd.f32 %v352_v7, %v68_v4 }
  0x12   :  { %v104_v11 = vmax.f32 %v88_v3, 0.0  ;;  %v281_v13 = vpack.c.bf16 %v101_v5, %v100_v0  ;;  %v105_v14 = vmax.f32 %v89_v8, 0.0 }
  0x13   :  { %v106_v15 = vmax.f32 %v90_v9, 0.0  ;;  %v286_v16 = vpack.c.bf16 %v103_v10, %v102_v6  ;;  %v107_v17 = vmax.f32 %v91_v12, 0.0 }
  0x14   :  { %308 = vst [vmem:[%s425_s3 + $0x20] sm:$0xff] %v281_v13   ;;  %v291_v1 = vpack.c.bf16 %v105_v14, %v104_v11 }
  0x15   :  { %309 = vst [vmem:[%s425_s3 + $0x28] sm:$0xff] %v286_v16   ;;  %v296_v18 = vpack.c.bf16 %v107_v17, %v106_v15 }
  0x16   :  { %310 = vst [vmem:[%s425_s3 + $0x30] sm:$0xff] %v291_v1  }
  0x17   :  { %311 = vst [vmem:[%s425_s3 + $0x38] sm:$0xff] %v296_v18  }

// kernel: generator_forward.52
= control target key start
LH: loop header
LB: loop body
LE: loop exit
PB: predicated region body
PF: predicated region fallthrough
CT: control target
= control target key end

     0   :  { %10 = vsyncpa [#allocation4], 0  ;;  %s2541_s0 = inlined_call_operand.vmem [shape: bf16[2,5,5,512], index: 0, kind: input, shape index: {}]   ;;  %s2542_s1 = inlined_call_operand.vmem [shape: bf16[4,512,256], index: 1, kind: input, shape index: {}]   ;;  %s2543_s2 = inlined_call_operand.vmem [shape: f32[1,256], index: 2, kind: input, shape index: {}]   ;;  %s2544_s3 = inlined_call_operand.vmem [shape: bf16[2,4,4,256], index: 3, kind: output, shape index: {0}]   ;;  %s2545_s4 = inlined_call_operand.hbm [shape: f32[2,4,2,256], index: 4, kind: output, shape index: {1}]  }
   0x1   :  { %12 = vsyncpa [#allocation4 + $0x1], 0  ;;  %s2211_s15 = smov 0   ;;  %s2213_s16 = smov 0  }
   0x2   :  { %s2215_s17 = smov 0   ;;  %s2217_s18 = smov 0  }
   0x3   :  { %s2219_s19 = smov 0   ;;  %s2221_s20 = smov 0  }
   0x4   :  { %s2223_s21 = smov 0   ;;  %s2225_s22 = smov 0  }
   0x5   :  { %s2227_s23 = smov 0   ;;  %s2229_s24 = smov 0  }
   0x6 LB: > { %2554 = sst [smem:[#allocation6_spill]] %s2153_s17  ;;  %s1553_s25 = sadd.s32 4294967295, %s2181_s24   ;;  %s2181_s24 = sphi %s2229_s24, %s18_s24   ;;  %s2177_s23 = sphi %s2227_s23, %s2574_s23   ;;  %s2173_s22 = sphi %s2225_s22, %s2573_s22   ;;  %s2169_s21 = sphi %s2223_s21, %s2572_s21   ;;  %s2165_s20 = sphi %s2221_s20, %s2571_s20   ;;  %s2161_s19 = sphi %s2219_s19, %s2570_s19   ;;  %s2157_s18 = sphi %s2217_s18, %s2577_s18   ;;  %s2153_s17 = sphi %s2215_s17, %s2568_s17   ;;  %s2149_s16 = sphi %s2213_s16, %s2576_s16   ;;  %s2145_s15 = sphi %s2211_s15, %s2575_s15  }
   0x7   : > { %2555 = sst [smem:[#allocation7_spill]] %s2169_s21  ;;  %s1554_s26 = sadd.s32 4294967294, %s2181_s24  }
   0x8   : > { %2556 = sst [smem:[#allocation8_spill]] %s2173_s22  ;;  %s30_s27 = sadd.s32 1, %s2169_s21 }
   0x9   : > { %2557 = sst [smem:[#allocation9_spill]] %s2177_s23  ;;  %p31_p0 = scmp.ge.s32.totalorder %s30_s27, 2 }
   0xa   : > { %s33_s28 = sadd.s32 1, %s2173_s22  ;;  %s37_s29 = sadd.s32 1, %s2177_s23 }
   0xb   : > { %p156_p1 = scmp.ne.s32.totalorder %s2153_s17, %s2149_s16  ;;  %s2579_s27 = smov (%p31_p0, %s30_s27), 0 }
   0xc   : > { %2558 = sst [smem:[#allocation10_spill]] %s2579_s27  ;;  %s2581_s28 = smov (!%p31_p0, %s33_s28), %s2173_s22 }
   0xd   : > { %p157_p2 = scmp.eq.s32.totalorder %s1553_s25, 15  ;;  %p162_p3 = scmp.ne.s32.totalorder %s2149_s16, %s2145_s15 }
   0xe   : > { %p35_p4 = scmp.ge.s32.totalorder %s2581_s28, 4  ;;  %p163_p5 = scmp.eq.s32.totalorder %s1554_s26, 15 }
   0xf   : > { %p2273_p6 = por %p157_p2, %p156_p1  ;;  %p1557_p8 = scmp.ge.s32.totalorder %s2181_s24, 1 }
  0x10   : > { %s2583_s28 = smov (%p35_p4, %s2581_s28), 0  ;;  %s2585_s29 = smov (!%p35_p4, %s37_s29), %s2177_s23 }
  0x11   : > { %2560 = sst [smem:[#allocation11_spill]] %s2583_s28  ;;  %p2280_p7 = por %p163_p5, %p162_p3 }
  0x12   : > { %p39_p9 = scmp.ge.s32.totalorder %s2585_s29, 2  ;;  %p201_p10 = scmp.lt.s32.totalorder %s2181_s24, 17 }
  0x13   : > { %s2561_s5 = scalar_select %p2280_p7, 1, 0 }
  0x14   : > { %s142_s6 = ssub.s32 %s2173_s22, %s2583_s28  ;;  %s2587_s29 = smov (%p39_p9, %s2585_s29), 0 }
  0x15   : > { %2562 = sst [smem:[#allocation12_spill]] %s2561_s5  ;;  %p202_p11 = pnand %p1557_p8, %p201_p10 }
  0x16   : > { %2563 = sst [smem:[#allocation13_spill]] %s2587_s29  ;;  %s141_s7 = ssub.s32 %s2177_s23, %s2587_s29 }
  0x17   : > { %s143_s8 = sor.u32 %s142_s6, %s141_s7  ;;  %s146_s9 = sadd.s32 1, %s2153_s17 }
  0x18   : > { %p144_p12 = scmp.eq.s32.totalorder %s143_s8, 0  ;;  %205 = sbr.rel (%p202_p11) target bundleno = 439 (0x1b7), region = 32 }
  0x19   : > { %s2551_s11 = sand.u32 (!%p202_p11), 1, %s2149_s16   ;;  %s241_s12 = sadd.s32 (!%p202_p11), %s2157_s18, %s2161_s19 }
  0x1a   : > { %s2294_s10 = scalar_select %p144_p12, %s2153_s17, %s146_s9  }
  0x1b   : > { %s1558_s13 = sshll.u32 (!%p202_p11), %s2551_s11, 2  ;;  %p242_p13 = scmp.lt.s32.totalorder (!%p202_p11), %s2165_s20, 1 }
  0x1c   : > { %2564 = sst [smem:[#allocation14_spill]] %s2294_s10  ;;  %p244_p0 = scmp.lt.s32.totalorder (!%p202_p11), %s241_s12, 4 }
  0x1d   : > { %s243_s14 = scalar_select %p242_p13, %s2165_s20, 1 }
  0x1e   : > { %s2589_s12 = smov (!%p244_p0, %s241_s12), 4  ;;  %p254_p1 = scmp.lt.s32.totalorder %s2161_s19, 3 }
  0x1f   : > { %s1783_s25 = smul.u32 20, %s243_s14  ;;  %s1559_s26 = sshll.u32 %s2589_s12, 2 }
  0x20   : > { %s1562_s28 = sshll.u32 %s243_s14, 3  ;;  %s2315_s5 = scalar_lea.vmem [#allocation3], %s1558_s13 }
  0x21   : > { %s248_s6 = sadd.s32 %s1783_s25, %s1559_s26  ;;  %p1564_p2 = scmp.ne.s32.totalorder %s2157_s18, 0 }
  0x22   : > { %s1560_s7 = sshll.u32 %s248_s6, 2 }
  0x23   : > { %s2307_s29 = scalar_lea.vmem %s2541_s0, %s1560_s7 }
  0x24   : > { %s255_s27 = scalar_select %p254_p1, %s2161_s19, 3 }
  0x25   : > { %264 = sbr.rel (%p1564_p2) target bundleno = 44 (0x2c), region = 36 }
  0x26   : > { %s1561_s23 = sshll.u32 %s255_s27, 1 }
  0x27   : > { %s258_s22 = sadd.s32 %s1562_s28, %s1561_s23 }
  0x28   : > { %s1563_s21 = sshll.u32 %s258_s22, 1 }
  0x29   : > { %s2313_s17 = scalar_lea.vmem %s2544_s3, %s1563_s21 }
  0x2a   : > { %v2183_v0 = vmov 0.0  }
  0x2b   : > { %265 = vst [vmem:[#allocation2] sm:$0xff] %v2183_v0 }
  0x2c PF: > { %s1781_s12 = sshll.u32 %s2157_s18, 10  ;;  %v2320_v1 = vld [vmem:[%s2307_s29] sm:$0x33]  ;;  %v2323_v2 = vld [vmem:[%s2307_s29 + $0x8] sm:$0x33]  ;;  %p1770_p3 = scmp.ne.s32.totalorder %s2157_s18, 1 }
  0x2d   : > { %s2328_s21 = scalar_lea.vmem %s2542_s1, %s1781_s12  ;;  %v1569_v3 = vcombine.high %v2320_v1, %v2320_v1  ;;  %v1571_v4 = vcombine.high %v2323_v2, %v2323_v2  ;;  %v2389_v59 = vld [vmem:[%s2307_s29] sm:$0x77]  ;;  %v2392_v60 = vld [vmem:[%s2307_s29 + $0x8] sm:$0x77] }
  0x2e   : > { %v1873_v5 = vld [vmem:[%s2328_s21 + $0x74] ss:$8 sps:$4 sm:$0xff]   ;;  %v1877_v7 = vld [vmem:[%s2328_s21 + $0x70] ss:$8 sps:$4 sm:$0xff]   ;;  %v1879_v9 = vld [vmem:[%s2328_s21 + $0x64] ss:$8 sps:$4 sm:$0xff]  }
  0x2f   : > { %v1875_v6 = vld [vmem:[%s2328_s21 + $0x174] ss:$8 sps:$4 sm:$0xff]   ;;  %703 = vmatprep.mubr.bf16.mxu0 %v1569_v3  ;;  %744 = vmatprep.mubr.bf16.mxu1 %v1571_v4  ;;  %v1878_v8 = vld [vmem:[%s2328_s21 + $0x170] ss:$8 sps:$4 sm:$0xff]   ;;  %v1881_v10 = vld [vmem:[%s2328_s21 + $0x164] ss:$8 sps:$4 sm:$0xff]   ;;  %v1703_v3 = vcombine.high %v2389_v59, %v2389_v59  ;;  %v1705_v4 = vcombine.high %v2392_v60, %v2392_v60 }
  0x30   : > { %671 = vmatprep.subr.bf16.mxu0 %v1873_v5  ;;  %712 = vmatprep.subr.bf16.mxu1 %v1875_v6  ;;  %v1883_v11 = vld [vmem:[%s2328_s21 + $0x60] ss:$8 sps:$4 sm:$0xff]   ;;  %v1885_v13 = vld [vmem:[%s2328_s21 + $0x54] ss:$8 sps:$4 sm:$0xff]   ;;  %v1889_v15 = vld [vmem:[%s2328_s21 + $0x50] ss:$8 sps:$4 sm:$0xff]  }
  0x31   : > { %672 = vmatpush1.bf16.msra.mxu0 %v1877_v7  ;;  %713 = vmatpush1.bf16.msra.mxu1 %v1878_v8  ;;  %v1884_v12 = vld [vmem:[%s2328_s21 + $0x160] ss:$8 sps:$4 sm:$0xff]   ;;  %v1887_v14 = vld [vmem:[%s2328_s21 + $0x154] ss:$8 sps:$4 sm:$0xff]   ;;  %v1890_v16 = vld [vmem:[%s2328_s21 + $0x150] ss:$8 sps:$4 sm:$0xff]  }
  0x32   : > { %673 = vmatprep.subr.bf16.mxu0 %v1879_v9  ;;  %714 = vmatprep.subr.bf16.mxu1 %v1881_v10  ;;  %v1891_v17 = vld [vmem:[%s2328_s21 + $0x44] ss:$8 sps:$4 sm:$0xff]   ;;  %v1895_v19 = vld [vmem:[%s2328_s21 + $0x40] ss:$8 sps:$4 sm:$0xff]   ;;  %v1897_v21 = vld [vmem:[%s2328_s21 + $0x34] ss:$8 sps:$4 sm:$0xff]  }
  0x33   : > { %v1893_v18 = vld [vmem:[%s2328_s21 + $0x144] ss:$8 sps:$4 sm:$0xff]   ;;  %v1896_v20 = vld [vmem:[%s2328_s21 + $0x140] ss:$8 sps:$4 sm:$0xff]   ;;  %v1899_v22 = vld [vmem:[%s2328_s21 + $0x134] ss:$8 sps:$4 sm:$0xff]  }
  0x34   : > { %v1901_v23 = vld [vmem:[%s2328_s21 + $0x30] ss:$8 sps:$4 sm:$0xff]   ;;  %v1903_v25 = vld [vmem:[%s2328_s21 + $0x24] ss:$8 sps:$4 sm:$0xff]   ;;  %v1907_v27 = vld [vmem:[%s2328_s21 + $0x20] ss:$8 sps:$4 sm:$0xff]  }
  0x35   : > { %674 = vmatpush1.bf16.msra.mxu0 %v1883_v11  ;;  %715 = vmatpush1.bf16.msra.mxu1 %v1884_v12  ;;  %v1902_v24 = vld [vmem:[%s2328_s21 + $0x130] ss:$8 sps:$4 sm:$0xff]   ;;  %v1905_v26 = vld [vmem:[%s2328_s21 + $0x124] ss:$8 sps:$4 sm:$0xff]   ;;  %v1908_v28 = vld [vmem:[%s2328_s21 + $0x120] ss:$8 sps:$4 sm:$0xff]  }
  0x36   : > { %675 = vmatprep.subr.bf16.mxu0 %v1885_v13  ;;  %716 = vmatprep.subr.bf16.mxu1 %v1887_v14  ;;  %v1909_v29 = vld [vmem:[%s2328_s21 + $0x14] ss:$8 sps:$4 sm:$0xff]   ;;  %v1913_v31 = vld [vmem:[%s2328_s21 + $0x10] ss:$8 sps:$4 sm:$0xff]   ;;  %v1915_v33 = vld [vmem:[%s2328_s21 + $0x4] ss:$8 sps:$4 sm:$0xff]  }
  0x37   : > { %v1911_v30 = vld [vmem:[%s2328_s21 + $0x114] ss:$8 sps:$4 sm:$0xff]   ;;  %v1914_v32 = vld [vmem:[%s2328_s21 + $0x110] ss:$8 sps:$4 sm:$0xff]   ;;  %v1917_v34 = vld [vmem:[%s2328_s21 + $0x104] ss:$8 sps:$4 sm:$0xff]  }
  0x38   : > { %v1919_v35 = vld [vmem:[%s2328_s21] ss:$8 sps:$4 sm:$0xff]   ;;  %v1921_v37 = vld [vmem:[%s2328_s21 + $0xf4] ss:$8 sps:$4 sm:$0xff]   ;;  %v1925_v39 = vld [vmem:[%s2328_s21 + $0xf0] ss:$8 sps:$4 sm:$0xff]  }
  0x39   : > { %676 = vmatpush1.bf16.msra.mxu0 %v1889_v15  ;;  %717 = vmatpush1.bf16.msra.mxu1 %v1890_v16  ;;  %v1920_v36 = vld [vmem:[%s2328_s21 + $0x100] ss:$8 sps:$4 sm:$0xff]   ;;  %v1923_v38 = vld [vmem:[%s2328_s21 + $0x1f4] ss:$8 sps:$4 sm:$0xff]   ;;  %v1926_v40 = vld [vmem:[%s2328_s21 + $0x1f0] ss:$8 sps:$4 sm:$0xff]  }
  0x3a   : > { %677 = vmatprep.subr.bf16.mxu0 %v1891_v17  ;;  %718 = vmatprep.subr.bf16.mxu1 %v1893_v18  ;;  %v1927_v41 = vld [vmem:[%s2328_s21 + $0xe4] ss:$8 sps:$4 sm:$0xff]   ;;  %v1931_v43 = vld [vmem:[%s2328_s21 + $0xe0] ss:$8 sps:$4 sm:$0xff]   ;;  %v1933_v45 = vld [vmem:[%s2328_s21 + $0xd4] ss:$8 sps:$4 sm:$0xff]  }
  0x3b   : > { %v1929_v42 = vld [vmem:[%s2328_s21 + $0x1e4] ss:$8 sps:$4 sm:$0xff]   ;;  %v1932_v44 = vld [vmem:[%s2328_s21 + $0x1e0] ss:$8 sps:$4 sm:$0xff]   ;;  %v1935_v46 = vld [vmem:[%s2328_s21 + $0x1d4] ss:$8 sps:$4 sm:$0xff]  }
  0x3c   : > { %v1937_v47 = vld [vmem:[%s2328_s21 + $0xd0] ss:$8 sps:$4 sm:$0xff]   ;;  %v1939_v49 = vld [vmem:[%s2328_s21 + $0xc4] ss:$8 sps:$4 sm:$0xff]   ;;  %v1943_v51 = vld [vmem:[%s2328_s21 + $0xc0] ss:$8 sps:$4 sm:$0xff]  }
  0x3d   : > { %678 = vmatpush1.bf16.msra.mxu0 %v1895_v19  ;;  %719 = vmatpush1.bf16.msra.mxu1 %v1896_v20  ;;  %v1938_v48 = vld [vmem:[%s2328_s21 + $0x1d0] ss:$8 sps:$4 sm:$0xff]   ;;  %v1941_v50 = vld [vmem:[%s2328_s21 + $0x1c4] ss:$8 sps:$4 sm:$0xff]   ;;  %v1944_v52 = vld [vmem:[%s2328_s21 + $0x1c0] ss:$8 sps:$4 sm:$0xff]   ;;  %v1568_v19 = vcombine.low %v2320_v1, %v2320_v1  ;;  %v1570_v20 = vcombine.low %v2323_v2, %v2323_v2 }
  0x3e   : > { %679 = vmatprep.subr.bf16.mxu0 %v1897_v21  ;;  %720 = vmatprep.subr.bf16.mxu1 %v1899_v22  ;;  %v1945_v53 = vld [vmem:[%s2328_s21 + $0xb4] ss:$8 sps:$4 sm:$0xff]   ;;  %v1949_v55 = vld [vmem:[%s2328_s21 + $0xb0] ss:$8 sps:$4 sm:$0xff]   ;;  %v1951_v57 = vld [vmem:[%s2328_s21 + $0xa4] ss:$8 sps:$4 sm:$0xff]  }
  0x3f   : > { %v1947_v54 = vld [vmem:[%s2328_s21 + $0x1b4] ss:$8 sps:$4 sm:$0xff]   ;;  %v1950_v56 = vld [vmem:[%s2328_s21 + $0x1b0] ss:$8 sps:$4 sm:$0xff]   ;;  %v1953_v58 = vld [vmem:[%s2328_s21 + $0x1a4] ss:$8 sps:$4 sm:$0xff]  }
  0x40   : > { %v1955_v61 = vld [vmem:[%s2328_s21 + $0xa0] ss:$8 sps:$4 sm:$0xff]   ;;  %v1957_v63 = vld [vmem:[%s2328_s21 + $0x94] ss:$8 sps:$4 sm:$0xff]   ;;  %v1961_v5 = vld [vmem:[%s2328_s21 + $0x90] ss:$8 sps:$4 sm:$0xff]  }
  0x41   : > { %680 = vmatpush1.bf16.msra.mxu0 %v1901_v23  ;;  %721 = vmatpush1.bf16.msra.mxu1 %v1902_v24  ;;  %v1956_v62 = vld [vmem:[%s2328_s21 + $0x1a0] ss:$8 sps:$4 sm:$0xff]   ;;  %v1959_v0 = vld [vmem:[%s2328_s21 + $0x194] ss:$8 sps:$4 sm:$0xff]   ;;  %v1962_v6 = vld [vmem:[%s2328_s21 + $0x190] ss:$8 sps:$4 sm:$0xff]  }
  0x42   : > { %681 = vmatprep.subr.bf16.mxu0 %v1903_v25  ;;  %722 = vmatprep.subr.bf16.mxu1 %v1905_v26  ;;  %v1963_v7 = vld [vmem:[%s2328_s21 + $0x84] ss:$8 sps:$4 sm:$0xff]   ;;  %v848_v9 = vshll.u32 %v1703_v3, 16  ;;  %v862_v10 = vshll.u32 %v1705_v4, 16  ;;  %v1967_v11 = vld [vmem:[%s2328_s21 + $0x80] ss:$8 sps:$4 sm:$0xff]  }
  0x43   : > { %v1965_v8 = vld [vmem:[%s2328_s21 + $0x184] ss:$8 sps:$4 sm:$0xff]   ;;  %v1968_v12 = vld [vmem:[%s2328_s21 + $0x180] ss:$8 sps:$4 sm:$0xff]   ;;  %v1975_v13 = vld [vmem:[%s2328_s21 + $0x274] ss:$8 sps:$4 sm:$0xff]  }
  0x44   : > { %v1978_v14 = vld [vmem:[%s2328_s21 + $0x374] ss:$8 sps:$4 sm:$0xff]   ;;  %v846_v15 = vshrl.u32 %v1703_v3, 16  ;;  %v850_v16 = vrot.slane %v848_v9, 1  ;;  %v860_v17 = vshrl.u32 %v1705_v4, 16  ;;  %v864_v18 = vrot.slane %v862_v10, 1 }
  0x45   : > { %682 = vmatpush1.bf16.msra.mxu0 %v1907_v27  ;;  %723 = vmatpush1.bf16.msra.mxu1 %v1908_v28  ;;  %v1973_v21 = vld [vmem:[%s2328_s21 + $0x270] ss:$8 sps:$4 sm:$0xff]   ;;  %v1981_v23 = vld [vmem:[%s2328_s21 + $0x264] ss:$8 sps:$4 sm:$0xff]   ;;  %v1979_v1 = vld [vmem:[%s2328_s21 + $0x260] ss:$8 sps:$4 sm:$0xff]  }
  0x46   : > { %683 = vmatprep.subr.bf16.mxu0 %v1909_v29  ;;  %724 = vmatprep.subr.bf16.mxu1 %v1911_v30  ;;  %v1976_v22 = vld [vmem:[%s2328_s21 + $0x370] ss:$8 sps:$4 sm:$0xff]   ;;  %v1984_v24 = vld [vmem:[%s2328_s21 + $0x364] ss:$8 sps:$4 sm:$0xff]   ;;  %v851_v25 = vor.u32 %v850_v16, %v846_v15  ;;  %v865_v26 = vor.u32 %v864_v18, %v860_v17  ;;  %v1982_v27 = vld [vmem:[%s2328_s21 + $0x360] ss:$8 sps:$4 sm:$0xff]  }
  0x47   : > { %v1987_v2 = vld [vmem:[%s2328_s21 + $0x254] ss:$8 sps:$4 sm:$0xff]   ;;  %v1985_v29 = vld [vmem:[%s2328_s21 + $0x250] ss:$8 sps:$4 sm:$0xff]   ;;  %v2041_v3 = vld [vmem:[%s2328_s21 + $0x2c4] ss:$8 sps:$4 sm:$0xff]  }
  0x48   : > { %v1990_v28 = vld [vmem:[%s2328_s21 + $0x354] ss:$8 sps:$4 sm:$0xff]   ;;  %v1988_v30 = vld [vmem:[%s2328_s21 + $0x350] ss:$8 sps:$4 sm:$0xff]   ;;  %v2044_v4 = vld [vmem:[%s2328_s21 + $0x3c4] ss:$8 sps:$4 sm:$0xff]  }
  0x49   : > { %684 = vmatpush1.bf16.msra.mxu0 %v1913_v31  ;;  %725 = vmatpush1.bf16.msra.mxu1 %v1914_v32  ;;  %v1993_v31 = vld [vmem:[%s2328_s21 + $0x244] ss:$8 sps:$4 sm:$0xff]   ;;  %v2045_v9 = vld [vmem:[%s2328_s21 + $0x2b0] ss:$8 sps:$4 sm:$0xff]   ;;  %v2051_v15 = vld [vmem:[%s2328_s21 + $0x2a0] ss:$8 sps:$4 sm:$0xff]  }
  0x4a   : > { %685 = vmatprep.subr.bf16.mxu0 %v1915_v33  ;;  %726 = vmatprep.subr.bf16.mxu1 %v1917_v34  ;;  %v1996_v32 = vld [vmem:[%s2328_s21 + $0x344] ss:$8 sps:$4 sm:$0xff]   ;;  %v1991_v33 = vld [vmem:[%s2328_s21 + $0x240] ss:$8 sps:$4 sm:$0xff]   ;;  %v2048_v10 = vld [vmem:[%s2328_s21 + $0x3b0] ss:$8 sps:$4 sm:$0xff]  }
  0x4b   : > { %v1994_v34 = vld [vmem:[%s2328_s21 + $0x340] ss:$8 sps:$4 sm:$0xff]   ;;  %v2059_v17 = vld [vmem:[%s2328_s21 + $0x294] ss:$8 sps:$4 sm:$0xff]  }
  0x4c   : > { %v2054_v16 = vld [vmem:[%s2328_s21 + $0x3a0] ss:$8 sps:$4 sm:$0xff]   ;;  %v2062_v18 = vld [vmem:[%s2328_s21 + $0x394] ss:$8 sps:$4 sm:$0xff]  }
  0x4d   : > { %686 = vmatpush1.bf16.msra.mxu0 %v1919_v35  ;;  %727 = vmatpush1.bf16.msra.mxu1 %v1920_v36  ;;  %v1999_v35 = vld [vmem:[%s2328_s21 + $0x234] ss:$8 sps:$4 sm:$0xff]  }
  0x4e   : > { %687 = vmatprep.subr.bf16.mxu0 %v1921_v37  ;;  %728 = vmatprep.subr.bf16.mxu1 %v1923_v38  ;;  %v2002_v36 = vld [vmem:[%s2328_s21 + $0x334] ss:$8 sps:$4 sm:$0xff]   ;;  %v1997_v37 = vld [vmem:[%s2328_s21 + $0x230] ss:$8 sps:$4 sm:$0xff]  }
  0x4f   : > { %v2000_v38 = vld [vmem:[%s2328_s21 + $0x330] ss:$8 sps:$4 sm:$0xff]  }
  0x51   : > { %688 = vmatpush2.bf16.msra.mxu0 %v1925_v39  ;;  %729 = vmatpush2.bf16.msra.mxu1 %v1926_v40  ;;  %v2005_v39 = vld [vmem:[%s2328_s21 + $0x224] ss:$8 sps:$4 sm:$0xff]  }
  0x52   : > { %689 = vmatprep.subr.bf16.mxu0 %v1927_v41  ;;  %730 = vmatprep.subr.bf16.mxu1 %v1929_v42  ;;  %v2008_v40 = vld [vmem:[%s2328_s21 + $0x324] ss:$8 sps:$4 sm:$0xff]   ;;  %v2003_v41 = vld [vmem:[%s2328_s21 + $0x220] ss:$8 sps:$4 sm:$0xff]  }
  0x53   : > { %v2006_v42 = vld [vmem:[%s2328_s21 + $0x320] ss:$8 sps:$4 sm:$0xff]  }
  0x55   : > { %690 = vmatpush2.bf16.msra.mxu0 %v1931_v43  ;;  %731 = vmatpush2.bf16.msra.mxu1 %v1932_v44  ;;  %v2011_v43 = vld [vmem:[%s2328_s21 + $0x214] ss:$8 sps:$4 sm:$0xff]  }
  0x56   : > { %691 = vmatprep.subr.bf16.mxu0 %v1933_v45  ;;  %732 = vmatprep.subr.bf16.mxu1 %v1935_v46  ;;  %v2014_v44 = vld [vmem:[%s2328_s21 + $0x314] ss:$8 sps:$4 sm:$0xff]   ;;  %v2009_v45 = vld [vmem:[%s2328_s21 + $0x210] ss:$8 sps:$4 sm:$0xff]  }
  0x57   : > { %v2012_v46 = vld [vmem:[%s2328_s21 + $0x310] ss:$8 sps:$4 sm:$0xff]  }
  0x59   : > { %692 = vmatpush2.bf16.msra.mxu0 %v1937_v47  ;;  %733 = vmatpush2.bf16.msra.mxu1 %v1938_v48  ;;  %v2017_v47 = vld [vmem:[%s2328_s21 + $0x204] ss:$8 sps:$4 sm:$0xff]  }
  0x5a   : > { %693 = vmatprep.subr.bf16.mxu0 %v1939_v49  ;;  %734 = vmatprep.subr.bf16.mxu1 %v1941_v50  ;;  %v2020_v48 = vld [vmem:[%s2328_s21 + $0x304] ss:$8 sps:$4 sm:$0xff]   ;;  %v2015_v49 = vld [vmem:[%s2328_s21 + $0x200] ss:$8 sps:$4 sm:$0xff]  }
  0x5b   : > { %v2018_v50 = vld [vmem:[%s2328_s21 + $0x300] ss:$8 sps:$4 sm:$0xff]  }
  0x5d   : > { %694 = vmatpush2.bf16.msra.mxu0 %v1943_v51  ;;  %735 = vmatpush2.bf16.msra.mxu1 %v1944_v52  ;;  %v2023_v51 = vld [vmem:[%s2328_s21 + $0x2f4] ss:$8 sps:$4 sm:$0xff]  }
  0x5e   : > { %695 = vmatprep.subr.bf16.mxu0 %v1945_v53  ;;  %736 = vmatprep.subr.bf16.mxu1 %v1947_v54  ;;  %v2026_v52 = vld [vmem:[%s2328_s21 + $0x3f4] ss:$8 sps:$4 sm:$0xff]   ;;  %v2021_v53 = vld [vmem:[%s2328_s21 + $0x2f0] ss:$8 sps:$4 sm:$0xff]  }
  0x5f   : > { %v2024_v54 = vld [vmem:[%s2328_s21 + $0x3f0] ss:$8 sps:$4 sm:$0xff]  }
  0x61   : > { %696 = vmatpush2.bf16.msra.mxu0 %v1949_v55  ;;  %737 = vmatpush2.bf16.msra.mxu1 %v1950_v56  ;;  %v2029_v55 = vld [vmem:[%s2328_s21 + $0x2e4] ss:$8 sps:$4 sm:$0xff]  }
  0x62   : > { %697 = vmatprep.subr.bf16.mxu0 %v1951_v57  ;;  %738 = vmatprep.subr.bf16.mxu1 %v1953_v58  ;;  %v2032_v56 = vld [vmem:[%s2328_s21 + $0x3e4] ss:$8 sps:$4 sm:$0xff]   ;;  %v2027_v57 = vld [vmem:[%s2328_s21 + $0x2e0] ss:$8 sps:$4 sm:$0xff]  }
  0x63   : > { %v2030_v58 = vld [vmem:[%s2328_s21 + $0x3e0] ss:$8 sps:$4 sm:$0xff]  }
  0x65   : > { %698 = vmatpush2.bf16.msra.mxu0 %v1955_v61  ;;  %739 = vmatpush2.bf16.msra.mxu1 %v1956_v62  ;;  %v2035_v61 = vld [vmem:[%s2328_s21 + $0x2d4] ss:$8 sps:$4 sm:$0xff]  }
  0x66   : > { %699 = vmatprep.subr.bf16.mxu0 %v1957_v63  ;;  %740 = vmatprep.subr.bf16.mxu1 %v1959_v0  ;;  %v2038_v62 = vld [vmem:[%s2328_s21 + $0x3d4] ss:$8 sps:$4 sm:$0xff]   ;;  %v2033_v63 = vld [vmem:[%s2328_s21 + $0x2d0] ss:$8 sps:$4 sm:$0xff]  }
  0x67   : > { %v2036_v0 = vld [vmem:[%s2328_s21 + $0x3d0] ss:$8 sps:$4 sm:$0xff]  }
  0x69   : > { %700 = vmatpush2.bf16.msra.mxu0 %v1961_v5  ;;  %741 = vmatpush2.bf16.msra.mxu1 %v1962_v6  ;;  %v2039_v5 = vld [vmem:[%s2328_s21 + $0x2c0] ss:$8 sps:$4 sm:$0xff]  }
  0x6a   : > { %701 = vmatprep.subr.bf16.mxu0 %v1963_v7  ;;  %742 = vmatprep.subr.bf16.mxu1 %v1965_v8  ;;  %v2042_v6 = vld [vmem:[%s2328_s21 + $0x3c0] ss:$8 sps:$4 sm:$0xff]   ;;  %v2047_v7 = vld [vmem:[%s2328_s21 + $0x2b4] ss:$8 sps:$4 sm:$0xff]  }
  0x6b   : > { %v2050_v8 = vld [vmem:[%s2328_s21 + $0x3b4] ss:$8 sps:$4 sm:$0xff]  }
  0x6d   : > { %702 = vmatpush2.bf16.msra.mxu0 %v1967_v11  ;;  %743 = vmatpush2.bf16.msra.mxu1 %v1968_v12  ;;  %v2053_v11 = vld [vmem:[%s2328_s21 + $0x2a4] ss:$8 sps:$4 sm:$0xff]  }
  0x6e   : > { %1190 = vmatprep.subr.bf16.mxu0 %v1975_v13  ;;  %1231 = vmatprep.subr.bf16.mxu1 %v1978_v14  ;;  %v2056_v12 = vld [vmem:[%s2328_s21 + $0x3a4] ss:$8 sps:$4 sm:$0xff]   ;;  %v1702_v13 = vcombine.low %v2389_v59, %v2389_v59  ;;  %v1704_v14 = vcombine.low %v2392_v60, %v2392_v60  ;;  %v2057_v59 = vld [vmem:[%s2328_s21 + $0x290] ss:$8 sps:$4 sm:$0xff]  }
  0x6f   : > { %v2065_v60 = vld [vmem:[%s2328_s21 + $0x284] ss:$8 sps:$4 sm:$0xff]  }
  0x70   : > { %704 = vmatmul.mubr.bf16.vlgmr.msra.gmra.mxu0 %v1568_v19  ;;  %745 = vmatmul.mubr.bf16.vlgmr.msra.gmra.mxu1 %v1570_v20  ;;  %v841_v19 = vshll.u32 %v1702_v13, 16  ;;  %v855_v20 = vshll.u32 %v1704_v14, 16 }
  0x71   : > { %1191 = vmatpush1.bf16.msra.mxu0 %v1973_v21  ;;  %1232 = vmatpush1.bf16.msra.mxu1 %v1976_v22  ;;  %v2060_v21 = vld [vmem:[%s2328_s21 + $0x390] ss:$8 sps:$4 sm:$0xff]   ;;  %v2068_v22 = vld [vmem:[%s2328_s21 + $0x384] ss:$8 sps:$4 sm:$0xff]  }
  0x72   : > { %1192 = vmatprep.subr.bf16.mxu0 %v1981_v23  ;;  %1233 = vmatprep.subr.bf16.mxu1 %v1984_v24  ;;  %v839_v23 = vshrl.u32 %v1702_v13, 16  ;;  %v843_v24 = vrot.slane %v841_v19, 1 }
  0x73   : > { %1222 = vmatprep.mubr.bf16.mxu0 %v851_v25  ;;  %1263 = vmatprep.mubr.bf16.mxu1 %v865_v26  ;;  %v853_v25 = vshrl.u32 %v1704_v14, 16  ;;  %v857_v26 = vrot.slane %v855_v20, 1 }
  0x75   : > { %1193 = vmatpush1.bf16.msra.mxu0 %v1979_v1  ;;  %1234 = vmatpush1.bf16.msra.mxu1 %v1982_v27  ;;  %v2063_v1 = vld [vmem:[%s2328_s21 + $0x280] ss:$8 sps:$4 sm:$0xff]  }
  0x76   : > { %1194 = vmatprep.subr.bf16.mxu0 %v1987_v2  ;;  %1235 = vmatprep.subr.bf16.mxu1 %v1990_v28  ;;  %v2066_v27 = vld [vmem:[%s2328_s21 + $0x380] ss:$8 sps:$4 sm:$0xff]   ;;  %v844_v2 = vor.u32 %v843_v24, %v839_v23  ;;  %v858_v28 = vor.u32 %v857_v26, %v853_v25 }
  0x79   : > { %1195 = vmatpush1.bf16.msra.mxu0 %v1985_v29  ;;  %1236 = vmatpush1.bf16.msra.mxu1 %v1988_v30 }
  0x7a   : > { %1196 = vmatprep.subr.bf16.mxu0 %v1993_v31  ;;  %1237 = vmatprep.subr.bf16.mxu1 %v1996_v32 }
  0x7d   : > { %1197 = vmatpush1.bf16.msra.mxu0 %v1991_v33  ;;  %1238 = vmatpush1.bf16.msra.mxu1 %v1994_v34 }
  0x7e   : > { %1198 = vmatprep.subr.bf16.mxu0 %v1999_v35  ;;  %1239 = vmatprep.subr.bf16.mxu1 %v2002_v36 }
  0x81   : > { %1199 = vmatpush1.bf16.msra.mxu0 %v1997_v37  ;;  %1240 = vmatpush1.bf16.msra.mxu1 %v2000_v38 }
  0x82   : > { %1200 = vmatprep.subr.bf16.mxu0 %v2005_v39  ;;  %1241 = vmatprep.subr.bf16.mxu1 %v2008_v40 }
  0x85   : > { %1201 = vmatpush1.bf16.msra.mxu0 %v2003_v41  ;;  %1242 = vmatpush1.bf16.msra.mxu1 %v2006_v42  ;;  %v266_v42 = vld [vmem:[#allocation2] sm:$0xff] }
  0x86   : > { %1202 = vmatprep.subr.bf16.mxu0 %v2011_v43  ;;  %1243 = vmatprep.subr.bf16.mxu1 %v2014_v44 }
  0x89   : > { %1203 = vmatpush1.bf16.msra.mxu0 %v2009_v45  ;;  %1244 = vmatpush1.bf16.msra.mxu1 %v2012_v46 }
  0x8a   : > { %1204 = vmatprep.subr.bf16.mxu0 %v2017_v47  ;;  %1245 = vmatprep.subr.bf16.mxu1 %v2020_v48 }
  0x8d   : > { %1205 = vmatpush1.bf16.msra.mxu0 %v2015_v49  ;;  %1246 = vmatpush1.bf16.msra.mxu1 %v2018_v50 }
  0x8e   : > { %1206 = vmatprep.subr.bf16.mxu0 %v2023_v51  ;;  %1247 = vmatprep.subr.bf16.mxu1 %v2026_v52 }
  0x91   : > { %1207 = vmatpush2.bf16.msra.mxu0 %v2021_v53  ;;  %1248 = vmatpush2.bf16.msra.mxu1 %v2024_v54 }
  0x92   : > { %1208 = vmatprep.subr.bf16.mxu0 %v2029_v55  ;;  %1249 = vmatprep.subr.bf16.mxu1 %v2032_v56 }
  0x95   : > { %1209 = vmatpush2.bf16.msra.mxu0 %v2027_v57  ;;  %1250 = vmatpush2.bf16.msra.mxu1 %v2030_v58 }
  0x96   : > { %1210 = vmatprep.subr.bf16.mxu0 %v2035_v61  ;;  %1251 = vmatprep.subr.bf16.mxu1 %v2038_v62 }
  0x99   : > { %1211 = vmatpush2.bf16.msra.mxu0 %v2033_v63  ;;  %1252 = vmatpush2.bf16.msra.mxu1 %v2036_v0 }
  0x9a   : > { %1212 = vmatprep.subr.bf16.mxu0 %v2041_v3  ;;  %1253 = vmatprep.subr.bf16.mxu1 %v2044_v4 }
  0x9d   : > { %1213 = vmatpush2.bf16.msra.mxu0 %v2039_v5  ;;  %1254 = vmatpush2.bf16.msra.mxu1 %v2042_v6 }
  0x9e   : > { %1214 = vmatprep.subr.bf16.mxu0 %v2047_v7  ;;  %1255 = vmatprep.subr.bf16.mxu1 %v2050_v8 }
  0xa1   : > { %1215 = vmatpush2.bf16.msra.mxu0 %v2045_v9  ;;  %1256 = vmatpush2.bf16.msra.mxu1 %v2048_v10 }
  0xa2   : > { %1216 = vmatprep.subr.bf16.mxu0 %v2053_v11  ;;  %1257 = vmatprep.subr.bf16.mxu1 %v2056_v12 }
  0xa5   : > { %1217 = vmatpush2.bf16.msra.mxu0 %v2051_v15  ;;  %1258 = vmatpush2.bf16.msra.mxu1 %v2054_v16 }
  0xa6   : > { %1218 = vmatprep.subr.bf16.mxu0 %v2059_v17  ;;  %1259 = vmatprep.subr.bf16.mxu1 %v2062_v18 }
  0xa9   : > { %1219 = vmatpush2.bf16.msra.mxu0 %v2057_v59  ;;  %1260 = vmatpush2.bf16.msra.mxu1 %v2060_v21 }
  0xaa   : > { %1220 = vmatprep.subr.bf16.mxu0 %v2065_v60  ;;  %1261 = vmatprep.subr.bf16.mxu1 %v2068_v22 }
  0xad   : > { %1221 = vmatpush2.bf16.msra.mxu0 %v2063_v1  ;;  %1262 = vmatpush2.bf16.msra.mxu1 %v2066_v27 }
  0xb0   : > { %1223 = vmatmul.mubr.bf16.vlgmr.msra.gmra.mxu0 %v844_v2  ;;  %1264 = vmatmul.mubr.bf16.vlgmr.msra.gmra.mxu1 %v858_v28 }
 0x130   : > { %v705_v29 = vpop.f32.mrf.mxu0  ;;  %v746_v30 = vpop.f32.mrf.mxu1 }
 0x131   : > { %v747_v31 = vadd.f32 %v746_v30, %v705_v29 }
 0x132   : > { %v707_v32 = vpop.f32.mrf.mxu0  ;;  %v748_v33 = vpop.f32.mrf.mxu1 }
 0x133   : > { %v749_v38 = vadd.f32 %v748_v33, %v707_v32 }
 0x134   : > { %v709_v34 = vpop.f32.mrf.mxu0  ;;  %v750_v35 = vpop.f32.mrf.mxu1 }
 0x135   : > { %v755_v41 = vcombine.low %v747_v31, %v749_v38 }
 0x136   : > { %v710_v36 = vpop.f32.mrf.mxu0  ;;  %v751_v37 = vpop.f32.mrf.mxu1 }
 0x137   : > { %v757_v49 = vadd.f32 %v755_v41, %v266_v42 }
 0x170   : > { %v1224_v39 = vpop.f32.mrf.mxu0  ;;  %v1265_v40 = vpop.f32.mrf.mxu1 }
 0x171   : > { %v1266_v45 = vadd.f32 %v1265_v40, %v1224_v39 }
 0x172   : > { %v1226_v43 = vpop.f32.mrf.mxu0  ;;  %v1267_v44 = vpop.f32.mrf.mxu1 }
 0x173   : > { %v1268_v46 = vadd.f32 %v1267_v44, %v1226_v43 }
 0x174   : > { %v1228_v47 = vpop.f32.mrf.mxu0  ;;  %v1269_v48 = vpop.f32.mrf.mxu1 }
 0x175   : > { %v1274_v50 = vcombine.low %v1266_v45, %v1268_v46  ;;  %1281 = sbr.rel (%p1770_p3) target bundleno = 414 (0x19e), region = 40 }
 0x176   : > { %v1229_v51 = vpop.f32.mrf.mxu0  ;;  %v1270_v52 = vpop.f32.mrf.mxu1 }
 0x177   : > { %v1276_v53 = vadd.f32 %v1274_v50, %v757_v49 }
 0x179   : > { %1277 = vst [vmem:[#allocation2] sm:$0xff] %v1276_v53 }
 0x17a   : > { %v1285_v54 = vlaneseq  ;;  %v1283_v56 = vld [vmem:[%s2543_s2] sm:$0x3]  ;;  %vm1299_vm0 = vcmask 1043456   ;;  %v2184_v15 = vmov 1966171168  }
 0x17b   : > { %v1318_v16 = vunpack.c.l.s4 %v2184_v15 }
 0x17c   : > { %v1286_v55 = vshrl.u32 %v1285_v54, 7  ;;  %vm1334_vm1 = vcmp.lt.s32.totalorder %v1285_v54, 256 }
 0x17d   : > { %v1319_v24 = vunpack.c.0.s8 %v1318_v16 }
 0x17e   : > { %v1287_v57 = vsub.s32 0, %v1286_v55  ;;  %v1291_v58 = vsub.s32 1, %v1286_v55 }
 0x17f   : > { %v1322_v32 = vsub.s32 %v1319_v24, %v1286_v55 }
 0x180   : > { %v1288_v61 = vrot.slane %v1283_v56, %v1287_v57  ;;  %v1292_v62 = vrot.slane %v1283_v56, %v1291_v58  ;;  %v1282_v63 = vld [vmem:[#allocation2] sm:$0xff] }
 0x182   : > { %v1293_v0 = vcombine.low %v1288_v61, %v1292_v62 }
 0x184   : > { %v1295_v3 = vadd.f32 %v1293_v0, %v1282_v63 }
 0x186   : > { %v1297_v4 = vcombine.high %v1295_v3, %v1295_v3  ;;  %v1300_v5 = vsel %vm1299_vm0, %v1295_v3, 0.0  ;;  %v1337_v6 = vmul.f32 %v1295_v3, %v1295_v3 }
 0x187   : > { %v1301_v7 = vrot.slane %v1300_v5, 4 }
 0x188   : > { %v1307_v8 = vsel %vm1299_vm0, %v1297_v4, 0.0  ;;  %v1339_v9 = vcombine.high %v1337_v6, %v1337_v6  ;;  %v1341_v10 = vsel %vm1299_vm0, %v1337_v6, 0.0  ;;  %v1772_v11 = vpack.c.bf16 %v1297_v4, %v1295_v3 }
 0x189   : > { %v1302_v12 = vadd.f32 %v1301_v7, %v1300_v5  ;;  %v1308_v13 = vrot.slane %v1307_v8, 4  ;;  %v1342_v14 = vrot.slane %v1341_v10, 4 }
 0x18a   : > { %v1348_v17 = vsel %vm1299_vm0, %v1339_v9, 0.0  ;;  %1773 = vst.sshfl [vmem:[%s2313_s17] sm:$0x33 pattern:$0x76325410] %v1772_v11 }
 0x18b   : > { %v1303_v18 = vrot.slane %v1302_v12, 2  ;;  %v1309_v19 = vadd.f32 %v1308_v13, %v1307_v8  ;;  %v1343_v20 = vadd.f32 %v1342_v14, %v1341_v10  ;;  %v1349_v59 = vrot.slane %v1348_v17, 4 }
 0x18d   : > { %v1304_v21 = vadd.f32 %v1303_v18, %v1302_v12  ;;  %v1310_v60 = vrot.slane %v1309_v19, 2  ;;  %v1344_v22 = vrot.slane %v1343_v20, 2  ;;  %v1350_v23 = vadd.f32 %v1349_v59, %v1348_v17 }
 0x18f   : > { %v1305_v25 = vrot.slane %v1304_v21, 1  ;;  %v1311_v26 = vadd.f32 %v1310_v60, %v1309_v19  ;;  %v1345_v1 = vadd.f32 %v1344_v22, %v1343_v20  ;;  %v1351_v27 = vrot.slane %v1350_v23, 2 }
 0x191   : > { %v1306_v2 = vadd.f32 %v1305_v25, %v1304_v21  ;;  %v1312_v28 = vrot.slane %v1311_v26, 1  ;;  %v1346_v29 = vrot.slane %v1345_v1, 1  ;;  %v1352_v30 = vadd.f32 %v1351_v27, %v1350_v23 }
 0x193   : > { %v1313_v31 = vadd.f32 %v1312_v28, %v1311_v26  ;;  %v1347_v33 = vadd.f32 %v1346_v29, %v1345_v1  ;;  %v1353_v34 = vrot.slane %v1352_v30, 1 }
 0x195   : > { %v1316_v35 = vcombine.low %v1306_v2, %v1313_v31  ;;  %v1354_v36 = vadd.f32 %v1353_v34, %v1352_v30 }
 0x197   : > { %v1323_v37 = vrot.slane %v1316_v35, %v1322_v32  ;;  %v1357_v38 = vcombine.low %v1347_v33, %v1354_v36 }
 0x199   : > { %v1330_v39 = vrot.slane %v1323_v37, %v1322_v32  ;;  %v1364_v40 = vrot.slane %v1357_v38, %v1322_v32 }
 0x19b   : > { %1336 = vst.msk [vmem:[%s2315_s5] ss:$2 sm:$0x3] %vm1334_vm1, %v1330_v39  ;;  %v1371_v41 = vrot.slane %v1364_v40, %v1322_v32 }
 0x19d   : > { %1771 = vst.msk [vmem:[%s2315_s5 + $0x1] ss:$2 sm:$0x3] %vm1334_vm1, %v1371_v41 }
 0x19e PF: > { %s1775_s17 = sshll.u32 %s2161_s19, 1  ;;  %s1776_s18 = sshll.u32 %s2165_s20, 3 }
 0x19f   : > { %s1418_s29 = sshll.u32 %s2315_s5, 4  ;;  %s1414_s10 = sadd.s32 %s1776_s18, %s1775_s17  ;;  %s1419_s29 = int_to_ptr.vmem [resolvable:$true] %s1418_s29 }
 0x1a0   : > { %s1777_s11 = sshll.u32 %s1414_s10, 5  ;;  %s2565_s26 = sand.u32 1, %s2149_s16  }
 0x1a1   : > { %s1416_s25 = scalar_lea.hbm %s2545_s4, %s1777_s11  ;;  %s1399_s6 = scalar_lea.sflag [#allocation4], %s2565_s26 }
 0x1a2   : > { %s2073_s7 = scalar_lea.vmem %s1419_s29, 64  ;;  %s2185_s8 = smov [#allocation3]  }
 0x1a3   : > { %p2074_p4 = scmp.ne.s32.totalorder %s1419_s29, %s2073_s7  ;;  %s2077_s9 = sshll.u32 %s2185_s8, 4  ;;  %s2078_s9 = int_to_ptr.vmem [resolvable:$false] %s2077_s9 }
 0x1a4   : > { %s2079_s19 = scalar_lea.vmem %s2078_s9, 128  ;;  %p2080_p9 = scmp.lt.s32.totalorder %s1419_s29, %s2078_s9 }
 0x1a5   : > { %p2075_p5 = pnand %p2074_p4, %p2273_p6  ;;  %p2081_p10 = scmp.lt.s32.totalorder %s2079_s19, %s2073_s7 }
 0x1a7   : > { %p2076_p8 = pneg %p2075_p5  ;;  %p2082_p11 = por %p2081_p10, %p2080_p9 }
 0x1a9   : > { %p2083_p12 = pnand %p2082_p11, %p2076_p8 }
 0x1ab   : > { %2086 = shalt.err (!%p2083_p12)
}
 0x1ac   : > { %s2087_s20 = scalar_lea.hbm %s1416_s25, 64  ;;  %s2091_s22 = scalar_lea.hbm %s2545_s4, 512 }
 0x1ad   : > { %p2088_p13 = scmp.ne.s32.totalorder %s1416_s25, %s2087_s20  ;;  %p2092_p2 = scmp.lt.s32.totalorder %s1416_s25, %s2545_s4 }
 0x1ae   : > { %p2093_p3 = scmp.lt.s32.totalorder %s2091_s22, %s2087_s20 }
 0x1af   : > { %p2089_p0 = pnand %p2088_p13, %p2273_p6 }
 0x1b0   : > { %p2094_p4 = por %p2093_p3, %p2092_p2 }
 0x1b1   : > { %p2090_p1 = pneg %p2089_p0 }
 0x1b3   : > { %p2095_p5 = pnand %p2094_p4, %p2090_p1 }
 0x1b5   : > { %2098 = shalt.err (!%p2095_p5)
}
 0x1b6   : > { %1784 = dma.vmem_to_hbm [thread:$0]  (%p2273_p6), %s1419_s29, 64, %s1416_s25, %s1399_s6  }
 0x1b7 PF: > { %p1790_p8 = scmp.ge.s32.totalorder %s2181_s24, 2  ;;  %s1442_s28 = sand.u32 1, %s2145_s15  }
 0x1b8   : > { %s1443_s17 = scalar_lea.sflag [#allocation4], %s1442_s28 }
 0x1b9   : > { %p1787_p9 = pnand %p1790_p8, %p2280_p7 }
 0x1bb   : > { %p1788_p10 = pneg %p1787_p9 }
 0x1bd   : > { %2140 = dma.done.wait (%p1788_p10), %s1443_s17, 64  }
 0x1be   : > { %2142 = vsyncadd (%p1788_p10), %s1443_s17, 4294967232  ;;  %s18_s24 = sadd.s32 1, %s2181_s24   ;;  %s2567_s18 = sld [smem:[#allocation6_spill]] }
 0x1bf   : > { %p15_p11 = scmp.ge.s32.totalorder %s18_s24, 18   ;;  %s2568_s17 = sld [smem:[#allocation14_spill]] }
 0x1c0   : > { %s2569_s30 = sld [smem:[#allocation7_spill]]  ;;  %s2575_s15 = smov %s2149_s16 }
 0x1c1   : > { %s2570_s19 = sld [smem:[#allocation8_spill]] }
 0x1c2   : > { %s2571_s20 = sld [smem:[#allocation9_spill]]  ;;  %17 = sbr.rel (!%p15_p11) target bundleno = 6 (0x6), region = 90 }
 0x1c3   : > { %s2572_s21 = sld [smem:[#allocation10_spill]] }
 0x1c4   : > { %s2573_s22 = sld [smem:[#allocation11_spill]]  ;;  %s2576_s16 = smov %s2567_s18 }
 0x1c5   : > { %s2574_s23 = sld [smem:[#allocation13_spill]] }
 0x1c6   : > { %s2577_s18 = smov %s2569_s30 }
 0x1c7   :  { %1448 = vsyncpa [#allocation4], 1 }
 0x1c8   :  { %1450 = vsyncpa [#allocation4 + $0x1], 1 }

// kernel: generator_forward.54
= control target key start
LH: loop header
LB: loop body
LE: loop exit
PB: predicated region body
PF: predicated region fallthrough
CT: control target
= control target key end

     0   :  { %v28_v0 = vlaneseq  ;;  %s164_s0 = inlined_call_operand.vmem [shape: bf16[32,256], index: 0, kind: input, shape index: {}]   ;;  %s165_s1 = inlined_call_operand.vmem [shape: f32[1,256], index: 1, kind: input, shape index: {}]   ;;  %s166_s2 = inlined_call_operand.vmem [shape: f32[1,256], index: 2, kind: input, shape index: {}]   ;;  %s167_s3 = inlined_call_operand.vmem [shape: bf16[32,256], index: 3, kind: output, shape index: {}]  }
   0x1   :  { %v14_v1 = vld [vmem:[%s164_s0] sm:$0xff]  ;;  %v15_v3 = vld [vmem:[%s164_s0 + $0x8] sm:$0xff]  ;;  %v16_v4 = vld [vmem:[%s164_s0 + $0x10] sm:$0xff] }
   0x2   :  { %v29_v2 = vshrl.u32 %v28_v0, 7  ;;  %v17_v5 = vld [vmem:[%s164_s0 + $0x18] sm:$0xff]  ;;  %v18_v6 = vunpack.c.l.bf16 %v14_v1  ;;  %v19_v7 = vunpack.c.h.bf16 %v14_v1  ;;  %v26_v8 = vld [vmem:[%s165_s1] sm:$0x3]  ;;  %v20_v12 = vunpack.c.l.bf16 %v15_v3 }
   0x3   :  { %v46_v9 = vld [vmem:[%s166_s2] sm:$0x3]  ;;  %v21_v13 = vunpack.c.h.bf16 %v15_v3  ;;  %v22_v14 = vunpack.c.l.bf16 %v16_v4  ;;  %v23_v15 = vunpack.c.h.bf16 %v16_v4  ;;  %v24_v16 = vunpack.c.l.bf16 %v17_v5 }
   0x4   :  { %v30_v10 = vsub.s32 0, %v29_v2  ;;  %v34_v11 = vsub.s32 1, %v29_v2  ;;  %v25_v17 = vunpack.c.h.bf16 %v17_v5 }
   0x6   :  { %v31_v18 = vrot.slane %v26_v8, %v30_v10  ;;  %v35_v19 = vrot.slane %v26_v8, %v34_v11  ;;  %v51_v20 = vrot.slane %v46_v9, %v30_v10  ;;  %v55_v21 = vrot.slane %v46_v9, %v34_v11 }
   0x8   :  { %v38_v22 = vmul.f32 %v31_v18, %v18_v6  ;;  %v39_v23 = vmul.f32 %v35_v19, %v19_v7  ;;  %v40_v24 = vmul.f32 %v31_v18, %v20_v12  ;;  %v41_v25 = vmul.f32 %v35_v19, %v21_v13 }
   0x9   :  { %v42_v26 = vmul.f32 %v31_v18, %v22_v14  ;;  %v43_v27 = vmul.f32 %v35_v19, %v23_v15  ;;  %v44_v28 = vmul.f32 %v31_v18, %v24_v16  ;;  %v45_v29 = vmul.f32 %v35_v19, %v25_v17 }
   0xa   :  { %v58_v30 = vadd.f32 %v51_v20, %v38_v22  ;;  %v59_v31 = vadd.f32 %v55_v21, %v39_v23  ;;  %v60_v32 = vadd.f32 %v51_v20, %v40_v24  ;;  %v61_v33 = vadd.f32 %v55_v21, %v41_v25 }
   0xb   :  { %v62_v34 = vadd.f32 %v51_v20, %v42_v26  ;;  %v63_v35 = vadd.f32 %v55_v21, %v43_v27  ;;  %v64_v36 = vadd.f32 %v51_v20, %v44_v28  ;;  %v65_v37 = vadd.f32 %v55_v21, %v45_v29 }
   0xc   :  { %v66_v38 = vmax.f32 %v58_v30, 0.0  ;;  %v67_v39 = vmax.f32 %v59_v31, 0.0  ;;  %v68_v40 = vmax.f32 %v60_v32, 0.0  ;;  %v69_v41 = vmax.f32 %v61_v33, 0.0 }
   0xd   :  { %v70_v42 = vmax.f32 %v62_v34, 0.0  ;;  %v71_v43 = vmax.f32 %v63_v35, 0.0  ;;  %v72_v44 = vmax.f32 %v64_v36, 0.0  ;;  %v73_v45 = vmax.f32 %v65_v37, 0.0 }
   0xe   :  { %v110_v46 = vpack.c.bf16 %v67_v39, %v66_v38  ;;  %v111_v47 = vpack.c.bf16 %v69_v41, %v68_v40 }
   0xf   :  { %v112_v48 = vpack.c.bf16 %v71_v43, %v70_v42  ;;  %v113_v49 = vpack.c.bf16 %v73_v45, %v72_v44 }
  0x10   :  { %98 = vst [vmem:[%s167_s3] sm:$0xff] %v110_v46  ;;  %99 = vst [vmem:[%s167_s3 + $0x8] sm:$0xff] %v111_v47 }
  0x11   :  { %100 = vst [vmem:[%s167_s3 + $0x10] sm:$0xff] %v112_v48  ;;  %101 = vst [vmem:[%s167_s3 + $0x18] sm:$0xff] %v113_v49 }

// kernel: generator_forward.53
= control target key start
LH: loop header
LB: loop body
LE: loop exit
PB: predicated region body
PF: predicated region fallthrough
CT: control target
= control target key end

     0   :  { %s1802_s15 = smov 0   ;;  %s1804_s16 = smov 0   ;;  %s2019_s0 = inlined_call_operand.vmem [shape: bf16[2,6,6,256], index: 0, kind: input, shape index: {}]   ;;  %s2020_s1 = inlined_call_operand.vmem [shape: bf16[9,256,256], index: 1, kind: input, shape index: {}]   ;;  %s2021_s2 = inlined_call_operand.vmem [shape: f32[1,256], index: 2, kind: input, shape index: {}]   ;;  %s2022_s3 = inlined_call_operand.vmem [shape: bf16[2,4,4,256], index: 3, kind: output, shape index: {0}]   ;;  %s2023_s4 = inlined_call_operand.vmem [shape: f32[2,4,2,256], index: 4, kind: output, shape index: {1}]  }
   0x1   :  { %s1806_s17 = smov 0   ;;  %s1808_s18 = smov 0  }
   0x2   :  { %s1810_s19 = smov 0   ;;  %s1812_s20 = smov 0  }
   0x3   :  { %s1814_s21 = smov 0  }
   0x4 LB: > { %s27_s22 = sadd.s32 1, %s1761_s18  ;;  %s30_s23 = sadd.s32 1, %s1765_s19  ;;  %s1773_s21 = sphi %s1814_s21, %s15_s21   ;;  %s1769_s20 = sphi %s1812_s20, %s2029_s20   ;;  %s1765_s19 = sphi %s1810_s19, %s2028_s19   ;;  %s1761_s18 = sphi %s1808_s18, %s2027_s18   ;;  %s1757_s17 = sphi %s1806_s17, %s2026_s17   ;;  %s1753_s16 = sphi %s1804_s16, %s2025_s16   ;;  %s1749_s15 = sphi %s1802_s15, %s2024_s15  }
   0x5   : > { %p28_p0 = scmp.ge.s32.totalorder %s27_s22, 3  ;;  %p1323_p1 = scmp.ge.s32.totalorder %s1773_s21, 1 }
   0x6   : > { %p198_p2 = scmp.lt.s32.totalorder %s1773_s21, 25  ;;  %s34_s24 = sadd.s32 1, %s1769_s20 }
   0x7   : > { %s2031_s22 = smov (%p28_p0, %s27_s22), 0  ;;  %s2033_s23 = smov (!%p28_p0, %s30_s23), %s1765_s19 }
   0x8   : > { %p199_p3 = pnand %p1323_p1, %p198_p2  ;;  %p32_p4 = scmp.ge.s32.totalorder %s2033_s23, 4 }
   0x9   : > { %s242_s25 = sadd.s32 (!%p199_p3), %s1749_s15, %s1753_s16  ;;  %p243_p6 = scmp.lt.s32.totalorder (!%p199_p3), %s1757_s17, 1 }
   0xa   : > { %s2035_s23 = smov (%p32_p4, %s2033_s23), 0  ;;  %s2037_s24 = smov (!%p32_p4, %s34_s24), %s1769_s20 }
   0xb   : > { %p36_p5 = scmp.ge.s32.totalorder %s2037_s24, 2  ;;  %202 = sbr.rel (%p199_p3) target bundleno = 398 (0x18e), region = 32 }
   0xc   : > { %p245_p7 = scmp.lt.s32.totalorder (!%p199_p3), %s242_s25, 5  ;;  %p255_p8 = scmp.lt.s32.totalorder (!%p199_p3), %s1753_s16, 3 }
   0xd   : > { %s2039_s24 = smov (%p36_p5, %s2037_s24), 0  ;;  %p1332_p9 = scmp.ne.s32.totalorder (!%p199_p3), %s1749_s15, 0 }
  0x10   : > { %s2041_s17 = smov (!%p243_p6, %s1757_s17), 1  ;;  %s2043_s25 = smov (!%p245_p7, %s242_s25), 5 }
  0x11   : > { %s1510_s26 = smul.u32 12, %s2041_s17  ;;  %s1324_s27 = sshll.u32 %s2043_s25, 1 }
  0x12   : > { %s1327_s7 = sshll.u32 %s2041_s17, 3  ;;  %s2045_s16 = smov (!%p255_p8, %s1753_s16), 3 }
  0x13   : > { %s249_s28 = sadd.s32 %s1510_s26, %s1324_s27  ;;  %s1326_s8 = sshll.u32 %s2045_s16, 1 }
  0x14   : > { %s1325_s29 = sshll.u32 %s249_s28, 2  ;;  %s259_s9 = sadd.s32 %s1327_s7, %s1326_s8 }
  0x15   : > { %s1854_s6 = scalar_lea.vmem %s2019_s0, %s1325_s29  ;;  %s1328_s10 = sshll.u32 %s259_s9, 1 }
  0x16   : > { %s1860_s13 = scalar_lea.vmem %s2022_s3, %s1328_s10  ;;  %s1865_s26 = scalar_lea.vmem %s2023_s4, %s1328_s10 }
  0x17   : > { %274 = sbr.rel (%p1332_p9) target bundleno = 30 (0x1e), region = 36 }
  0x1c   : > { %v1775_v0 = vmov 0.0  }
  0x1d   : > { %275 = vst [vmem:[#allocation2] sm:$0xff] %v1775_v0 }
  0x1e PF: > { %s1509_s16 = smul.u32 768, %s1749_s15  ;;  %v1870_v1 = vld [vmem:[%s1854_s6] sm:$0x33]  ;;  %p1503_p10 = scmp.ne.s32.totalorder %s1749_s15, 2 }
  0x1f   : > { %v1873_v2 = vld [vmem:[%s1854_s6] sm:$0x77]  ;;  %v1336_v3 = vcombine.high %v1870_v1, %v1870_v1 }
  0x20   : > { %v1403_v4 = vcombine.high %v1873_v2, %v1873_v2  ;;  %s1882_s28 = scalar_lea.vmem %s2020_s1, %s1509_s16 }
  0x21   : > { %v1569_v5 = vld [vmem:[%s1882_s28 + $0x74] ss:$8 sps:$4 sm:$0xff]   ;;  %513 = vmatprep.mubr.bf16.mxu0 %v1336_v3  ;;  %v1571_v8 = vld [vmem:[%s1882_s28 + $0x70] ss:$8 sps:$4 sm:$0xff]   ;;  %v1575_v12 = vld [vmem:[%s1882_s28 + $0x64] ss:$8 sps:$4 sm:$0xff]   ;;  %v1402_v3 = vcombine.low %v1873_v2, %v1873_v2 }
  0x22   : > { %v577_v6 = vshrl.u32 %v1403_v4, 16  ;;  %v579_v7 = vshll.u32 %v1403_v4, 16  ;;  %481 = vmatprep.subr.bf16.mxu0 %v1569_v5  ;;  %v1572_v9 = vld [vmem:[%s1882_s28 + $0x174] ss:$8 sps:$4 sm:$0xff]   ;;  %v1574_v10 = vld [vmem:[%s1882_s28 + $0x170] ss:$8 sps:$4 sm:$0xff]  }
  0x23   : > { %482 = vmatpush1.bf16.msra.mxu0 %v1571_v8  ;;  %v1577_v13 = vld [vmem:[%s1882_s28 + $0x60] ss:$8 sps:$4 sm:$0xff]   ;;  %745 = vmatprep.subr.bf16.mxu1 %v1572_v9  ;;  %v1578_v14 = vld [vmem:[%s1882_s28 + $0x164] ss:$8 sps:$4 sm:$0xff]   ;;  %v1581_v17 = vld [vmem:[%s1882_s28 + $0x54] ss:$8 sps:$4 sm:$0xff]  }
  0x24   : > { %v581_v11 = vrot.slane %v579_v7, 1  ;;  %746 = vmatpush1.bf16.msra.mxu1 %v1574_v10  ;;  %483 = vmatprep.subr.bf16.mxu0 %v1575_v12  ;;  %v1580_v16 = vld [vmem:[%s1882_s28 + $0x160] ss:$8 sps:$4 sm:$0xff]   ;;  %v1583_v18 = vld [vmem:[%s1882_s28 + $0x50] ss:$8 sps:$4 sm:$0xff]   ;;  %v572_v9 = vshll.u32 %v1402_v3, 16 }
  0x25   : > { %747 = vmatprep.subr.bf16.mxu1 %v1578_v14  ;;  %v1584_v19 = vld [vmem:[%s1882_s28 + $0x154] ss:$8 sps:$4 sm:$0xff]   ;;  %v1587_v20 = vld [vmem:[%s1882_s28 + $0x44] ss:$8 sps:$4 sm:$0xff]   ;;  %v1586_v21 = vld [vmem:[%s1882_s28 + $0x150] ss:$8 sps:$4 sm:$0xff]  }
  0x26   : > { %v582_v15 = vor.u32 %v581_v11, %v577_v6  ;;  %v1590_v22 = vld [vmem:[%s1882_s28 + $0x144] ss:$8 sps:$4 sm:$0xff]   ;;  %v1589_v23 = vld [vmem:[%s1882_s28 + $0x40] ss:$8 sps:$4 sm:$0xff]   ;;  %v1593_v24 = vld [vmem:[%s1882_s28 + $0x34] ss:$8 sps:$4 sm:$0xff]  }
  0x27   : > { %484 = vmatpush1.bf16.msra.mxu0 %v1577_v13  ;;  %v1592_v25 = vld [vmem:[%s1882_s28 + $0x140] ss:$8 sps:$4 sm:$0xff]   ;;  %v1596_v26 = vld [vmem:[%s1882_s28 + $0x134] ss:$8 sps:$4 sm:$0xff]   ;;  %v1595_v27 = vld [vmem:[%s1882_s28 + $0x30] ss:$8 sps:$4 sm:$0xff]  }
  0x28   : > { %777 = vmatprep.mubr.bf16.mxu1 %v582_v15  ;;  %485 = vmatprep.subr.bf16.mxu0 %v1581_v17  ;;  %v1599_v28 = vld [vmem:[%s1882_s28 + $0x24] ss:$8 sps:$4 sm:$0xff]   ;;  %v1598_v29 = vld [vmem:[%s1882_s28 + $0x130] ss:$8 sps:$4 sm:$0xff]   ;;  %v1601_v31 = vld [vmem:[%s1882_s28 + $0x20] ss:$8 sps:$4 sm:$0xff]   ;;  %v1335_v17 = vcombine.low %v1870_v1, %v1870_v1 }
  0x29   : > { %748 = vmatpush1.bf16.msra.mxu1 %v1580_v16  ;;  %v1602_v30 = vld [vmem:[%s1882_s28 + $0x124] ss:$8 sps:$4 sm:$0xff]   ;;  %v1605_v32 = vld [vmem:[%s1882_s28 + $0x14] ss:$8 sps:$4 sm:$0xff]   ;;  %v1604_v33 = vld [vmem:[%s1882_s28 + $0x120] ss:$8 sps:$4 sm:$0xff]  }
  0x2a   : > { %749 = vmatprep.subr.bf16.mxu1 %v1584_v19  ;;  %v1608_v34 = vld [vmem:[%s1882_s28 + $0x114] ss:$8 sps:$4 sm:$0xff]   ;;  %v1607_v35 = vld [vmem:[%s1882_s28 + $0x10] ss:$8 sps:$4 sm:$0xff]   ;;  %v1611_v36 = vld [vmem:[%s1882_s28 + $0x4] ss:$8 sps:$4 sm:$0xff]  }
  0x2b   : > { %486 = vmatpush1.bf16.msra.mxu0 %v1583_v18  ;;  %v1610_v37 = vld [vmem:[%s1882_s28 + $0x110] ss:$8 sps:$4 sm:$0xff]   ;;  %v1614_v38 = vld [vmem:[%s1882_s28 + $0x104] ss:$8 sps:$4 sm:$0xff]   ;;  %v1613_v39 = vld [vmem:[%s1882_s28] ss:$8 sps:$4 sm:$0xff]  }
  0x2c   : > { %487 = vmatprep.subr.bf16.mxu0 %v1587_v20  ;;  %v1617_v40 = vld [vmem:[%s1882_s28 + $0xf4] ss:$8 sps:$4 sm:$0xff]   ;;  %v1616_v41 = vld [vmem:[%s1882_s28 + $0x100] ss:$8 sps:$4 sm:$0xff]   ;;  %v1619_v43 = vld [vmem:[%s1882_s28 + $0xf0] ss:$8 sps:$4 sm:$0xff]  }
  0x2d   : > { %750 = vmatpush1.bf16.msra.mxu1 %v1586_v21  ;;  %v1620_v42 = vld [vmem:[%s1882_s28 + $0x1f4] ss:$8 sps:$4 sm:$0xff]   ;;  %v1623_v44 = vld [vmem:[%s1882_s28 + $0xe4] ss:$8 sps:$4 sm:$0xff]   ;;  %v1622_v45 = vld [vmem:[%s1882_s28 + $0x1f0] ss:$8 sps:$4 sm:$0xff]  }
  0x2e   : > { %751 = vmatprep.subr.bf16.mxu1 %v1590_v22  ;;  %v1626_v46 = vld [vmem:[%s1882_s28 + $0x1e4] ss:$8 sps:$4 sm:$0xff]   ;;  %v1625_v47 = vld [vmem:[%s1882_s28 + $0xe0] ss:$8 sps:$4 sm:$0xff]   ;;  %v1629_v48 = vld [vmem:[%s1882_s28 + $0xd4] ss:$8 sps:$4 sm:$0xff]  }
  0x2f   : > { %488 = vmatpush1.bf16.msra.mxu0 %v1589_v23  ;;  %v1628_v49 = vld [vmem:[%s1882_s28 + $0x1e0] ss:$8 sps:$4 sm:$0xff]   ;;  %v1632_v50 = vld [vmem:[%s1882_s28 + $0x1d4] ss:$8 sps:$4 sm:$0xff]   ;;  %v1631_v51 = vld [vmem:[%s1882_s28 + $0xd0] ss:$8 sps:$4 sm:$0xff]  }
  0x30   : > { %489 = vmatprep.subr.bf16.mxu0 %v1593_v24  ;;  %v1635_v52 = vld [vmem:[%s1882_s28 + $0xc4] ss:$8 sps:$4 sm:$0xff]   ;;  %v1634_v53 = vld [vmem:[%s1882_s28 + $0x1d0] ss:$8 sps:$4 sm:$0xff]   ;;  %v1637_v55 = vld [vmem:[%s1882_s28 + $0xc0] ss:$8 sps:$4 sm:$0xff]  }
  0x31   : > { %752 = vmatpush1.bf16.msra.mxu1 %v1592_v25  ;;  %v1638_v54 = vld [vmem:[%s1882_s28 + $0x1c4] ss:$8 sps:$4 sm:$0xff]   ;;  %v1641_v56 = vld [vmem:[%s1882_s28 + $0xb4] ss:$8 sps:$4 sm:$0xff]   ;;  %v1640_v57 = vld [vmem:[%s1882_s28 + $0x1c0] ss:$8 sps:$4 sm:$0xff]  }
  0x32   : > { %753 = vmatprep.subr.bf16.mxu1 %v1596_v26  ;;  %v1644_v58 = vld [vmem:[%s1882_s28 + $0x1b4] ss:$8 sps:$4 sm:$0xff]   ;;  %v1643_v59 = vld [vmem:[%s1882_s28 + $0xb0] ss:$8 sps:$4 sm:$0xff]   ;;  %v1647_v60 = vld [vmem:[%s1882_s28 + $0xa4] ss:$8 sps:$4 sm:$0xff]  }
  0x33   : > { %490 = vmatpush1.bf16.msra.mxu0 %v1595_v27  ;;  %v1646_v61 = vld [vmem:[%s1882_s28 + $0x1b0] ss:$8 sps:$4 sm:$0xff]   ;;  %v1650_v62 = vld [vmem:[%s1882_s28 + $0x1a4] ss:$8 sps:$4 sm:$0xff]   ;;  %v1649_v63 = vld [vmem:[%s1882_s28 + $0xa0] ss:$8 sps:$4 sm:$0xff]  }
  0x34   : > { %491 = vmatprep.subr.bf16.mxu0 %v1599_v28  ;;  %v1653_v0 = vld [vmem:[%s1882_s28 + $0x94] ss:$8 sps:$4 sm:$0xff]   ;;  %v1652_v4 = vld [vmem:[%s1882_s28 + $0x1a0] ss:$8 sps:$4 sm:$0xff]   ;;  %v1655_v6 = vld [vmem:[%s1882_s28 + $0x90] ss:$8 sps:$4 sm:$0xff]  }
  0x35   : > { %754 = vmatpush1.bf16.msra.mxu1 %v1598_v29  ;;  %v1656_v5 = vld [vmem:[%s1882_s28 + $0x194] ss:$8 sps:$4 sm:$0xff]   ;;  %v1946_v7 = vld [vmem:[%s1854_s6] sm:$0x66]  ;;  %v1658_v10 = vld [vmem:[%s1882_s28 + $0x190] ss:$8 sps:$4 sm:$0xff]  }
  0x36   : > { %755 = vmatprep.subr.bf16.mxu1 %v1602_v30  ;;  %v1659_v8 = vld [vmem:[%s1882_s28 + $0x84] ss:$8 sps:$4 sm:$0xff]   ;;  %v1661_v2 = vld [vmem:[%s1882_s28 + $0x80] ss:$8 sps:$4 sm:$0xff]   ;;  %v1470_v12 = vcombine.high %v1946_v7, %v1946_v7  ;;  %v1669_v13 = vld [vmem:[%s1882_s28 + $0x274] ss:$8 sps:$4 sm:$0xff]  }
  0x37   : > { %492 = vmatpush1.bf16.msra.mxu0 %v1601_v31  ;;  %v1662_v11 = vld [vmem:[%s1882_s28 + $0x184] ss:$8 sps:$4 sm:$0xff]   ;;  %v570_v14 = vshrl.u32 %v1402_v3, 16  ;;  %v574_v15 = vrot.slane %v572_v9, 1  ;;  %v1666_v16 = vld [vmem:[%s1882_s28 + $0x180] ss:$8 sps:$4 sm:$0xff]  }
  0x38   : > { %493 = vmatprep.subr.bf16.mxu0 %v1605_v32  ;;  %v1667_v18 = vld [vmem:[%s1882_s28 + $0x270] ss:$8 sps:$4 sm:$0xff]   ;;  %v834_v19 = vrot.slane %v1470_v12, 1  ;;  %v1674_v21 = vld [vmem:[%s1882_s28 + $0x264] ss:$8 sps:$4 sm:$0xff]  }
  0x39   : > { %756 = vmatpush1.bf16.msra.mxu1 %v1604_v33  ;;  %v575_v20 = vor.u32 %v574_v15, %v570_v14  ;;  %v1672_v22 = vld [vmem:[%s1882_s28 + $0x260] ss:$8 sps:$4 sm:$0xff]   ;;  %v1677_v1 = vld [vmem:[%s1882_s28 + $0x254] ss:$8 sps:$4 sm:$0xff]   ;;  %v1675_v23 = vld [vmem:[%s1882_s28 + $0x250] ss:$8 sps:$4 sm:$0xff]  }
  0x3a   : > { %757 = vmatprep.subr.bf16.mxu1 %v1608_v34  ;;  %v1680_v24 = vld [vmem:[%s1882_s28 + $0x244] ss:$8 sps:$4 sm:$0xff]   ;;  %v1678_v25 = vld [vmem:[%s1882_s28 + $0x240] ss:$8 sps:$4 sm:$0xff]   ;;  %v1683_v26 = vld [vmem:[%s1882_s28 + $0x234] ss:$8 sps:$4 sm:$0xff]  }
  0x3b   : > { %494 = vmatpush1.bf16.msra.mxu0 %v1607_v35  ;;  %v1681_v27 = vld [vmem:[%s1882_s28 + $0x230] ss:$8 sps:$4 sm:$0xff]   ;;  %v1686_v28 = vld [vmem:[%s1882_s28 + $0x224] ss:$8 sps:$4 sm:$0xff]   ;;  %v1684_v29 = vld [vmem:[%s1882_s28 + $0x220] ss:$8 sps:$4 sm:$0xff]  }
  0x3c   : > { %495 = vmatprep.subr.bf16.mxu0 %v1611_v36  ;;  %v1689_v30 = vld [vmem:[%s1882_s28 + $0x214] ss:$8 sps:$4 sm:$0xff]   ;;  %v1687_v31 = vld [vmem:[%s1882_s28 + $0x210] ss:$8 sps:$4 sm:$0xff]   ;;  %v1692_v32 = vld [vmem:[%s1882_s28 + $0x204] ss:$8 sps:$4 sm:$0xff]  }
  0x3d   : > { %758 = vmatpush1.bf16.msra.mxu1 %v1610_v37  ;;  %v1690_v33 = vld [vmem:[%s1882_s28 + $0x200] ss:$8 sps:$4 sm:$0xff]   ;;  %v1695_v34 = vld [vmem:[%s1882_s28 + $0x2f4] ss:$8 sps:$4 sm:$0xff]   ;;  %v1693_v35 = vld [vmem:[%s1882_s28 + $0x2f0] ss:$8 sps:$4 sm:$0xff]  }
  0x3e   : > { %759 = vmatprep.subr.bf16.mxu1 %v1614_v38  ;;  %v1698_v36 = vld [vmem:[%s1882_s28 + $0x2e4] ss:$8 sps:$4 sm:$0xff]   ;;  %v1696_v37 = vld [vmem:[%s1882_s28 + $0x2e0] ss:$8 sps:$4 sm:$0xff]   ;;  %v1701_v38 = vld [vmem:[%s1882_s28 + $0x2d4] ss:$8 sps:$4 sm:$0xff]  }
  0x3f   : > { %496 = vmatpush1.bf16.msra.mxu0 %v1613_v39  ;;  %v1699_v39 = vld [vmem:[%s1882_s28 + $0x2d0] ss:$8 sps:$4 sm:$0xff]  }
  0x40   : > { %497 = vmatprep.subr.bf16.mxu0 %v1617_v40  ;;  %v1704_v40 = vld [vmem:[%s1882_s28 + $0x2c4] ss:$8 sps:$4 sm:$0xff]  }
  0x41   : > { %760 = vmatpush1.bf16.msra.mxu1 %v1616_v41  ;;  %v1702_v41 = vld [vmem:[%s1882_s28 + $0x2c0] ss:$8 sps:$4 sm:$0xff]  }
  0x42   : > { %761 = vmatprep.subr.bf16.mxu1 %v1620_v42  ;;  %v1707_v42 = vld [vmem:[%s1882_s28 + $0x2b4] ss:$8 sps:$4 sm:$0xff]  }
  0x43   : > { %498 = vmatpush2.bf16.msra.mxu0 %v1619_v43  ;;  %v1705_v43 = vld [vmem:[%s1882_s28 + $0x2b0] ss:$8 sps:$4 sm:$0xff]  }
  0x44   : > { %499 = vmatprep.subr.bf16.mxu0 %v1623_v44  ;;  %v1710_v44 = vld [vmem:[%s1882_s28 + $0x2a4] ss:$8 sps:$4 sm:$0xff]  }
  0x45   : > { %762 = vmatpush2.bf16.msra.mxu1 %v1622_v45  ;;  %v1708_v45 = vld [vmem:[%s1882_s28 + $0x2a0] ss:$8 sps:$4 sm:$0xff]  }
  0x46   : > { %763 = vmatprep.subr.bf16.mxu1 %v1626_v46  ;;  %v1713_v46 = vld [vmem:[%s1882_s28 + $0x294] ss:$8 sps:$4 sm:$0xff]  }
  0x47   : > { %500 = vmatpush2.bf16.msra.mxu0 %v1625_v47  ;;  %v1711_v47 = vld [vmem:[%s1882_s28 + $0x290] ss:$8 sps:$4 sm:$0xff]  }
  0x48   : > { %501 = vmatprep.subr.bf16.mxu0 %v1629_v48  ;;  %v1716_v48 = vld [vmem:[%s1882_s28 + $0x284] ss:$8 sps:$4 sm:$0xff]  }
  0x49   : > { %764 = vmatpush2.bf16.msra.mxu1 %v1628_v49  ;;  %v1469_v49 = vcombine.low %v1946_v7, %v1946_v7 }
  0x4a   : > { %765 = vmatprep.subr.bf16.mxu1 %v1632_v50  ;;  %v1714_v50 = vld [vmem:[%s1882_s28 + $0x280] ss:$8 sps:$4 sm:$0xff]  }
  0x4b   : > { %502 = vmatpush2.bf16.msra.mxu0 %v1631_v51  ;;  %v833_v51 = vrot.slane %v1469_v49, 1 }
  0x4c   : > { %503 = vmatprep.subr.bf16.mxu0 %v1635_v52 }
  0x4d   : > { %766 = vmatpush2.bf16.msra.mxu1 %v1634_v53 }
  0x4e   : > { %767 = vmatprep.subr.bf16.mxu1 %v1638_v54 }
  0x4f   : > { %504 = vmatpush2.bf16.msra.mxu0 %v1637_v55 }
  0x50   : > { %505 = vmatprep.subr.bf16.mxu0 %v1641_v56 }
  0x51   : > { %768 = vmatpush2.bf16.msra.mxu1 %v1640_v57 }
  0x52   : > { %769 = vmatprep.subr.bf16.mxu1 %v1644_v58 }
  0x53   : > { %506 = vmatpush2.bf16.msra.mxu0 %v1643_v59 }
  0x54   : > { %507 = vmatprep.subr.bf16.mxu0 %v1647_v60 }
  0x55   : > { %770 = vmatpush2.bf16.msra.mxu1 %v1646_v61  ;;  %v276_v61 = vld [vmem:[#allocation2] sm:$0xff] }
  0x56   : > { %771 = vmatprep.subr.bf16.mxu1 %v1650_v62 }
  0x57   : > { %508 = vmatpush2.bf16.msra.mxu0 %v1649_v63 }
  0x58   : > { %509 = vmatprep.subr.bf16.mxu0 %v1653_v0 }
  0x59   : > { %772 = vmatpush2.bf16.msra.mxu1 %v1652_v4 }
  0x5a   : > { %773 = vmatprep.subr.bf16.mxu1 %v1656_v5 }
  0x5b   : > { %510 = vmatpush2.bf16.msra.mxu0 %v1655_v6 }
  0x5c   : > { %511 = vmatprep.subr.bf16.mxu0 %v1659_v8 }
  0x5d   : > { %774 = vmatpush2.bf16.msra.mxu1 %v1658_v10 }
  0x5e   : > { %775 = vmatprep.subr.bf16.mxu1 %v1662_v11 }
  0x5f   : > { %512 = vmatpush2.bf16.msra.mxu0 %v1661_v2 }
  0x60   : > { %997 = vmatprep.subr.bf16.mxu0 %v1669_v13 }
  0x61   : > { %776 = vmatpush2.bf16.msra.mxu1 %v1666_v16 }
  0x62   : > { %514 = vmatmul.mubr.bf16.vlgmr.msra.gmra.mxu0 %v1335_v17 }
  0x63   : > { %998 = vmatpush1.bf16.msra.mxu0 %v1667_v18  ;;  %1029 = vmatprep.mubr.bf16.mxu0 %v834_v19 }
  0x64   : > { %778 = vmatmul.mubr.bf16.vlgmr.msra.gmra.mxu1 %v575_v20  ;;  %999 = vmatprep.subr.bf16.mxu0 %v1674_v21 }
  0x67   : > { %1000 = vmatpush1.bf16.msra.mxu0 %v1672_v22 }
  0x68   : > { %1001 = vmatprep.subr.bf16.mxu0 %v1677_v1 }
  0x6b   : > { %1002 = vmatpush1.bf16.msra.mxu0 %v1675_v23 }
  0x6c   : > { %1003 = vmatprep.subr.bf16.mxu0 %v1680_v24 }
  0x6f   : > { %1004 = vmatpush1.bf16.msra.mxu0 %v1678_v25 }
  0x70   : > { %1005 = vmatprep.subr.bf16.mxu0 %v1683_v26 }
  0x73   : > { %1006 = vmatpush1.bf16.msra.mxu0 %v1681_v27 }
  0x74   : > { %1007 = vmatprep.subr.bf16.mxu0 %v1686_v28 }
  0x77   : > { %1008 = vmatpush1.bf16.msra.mxu0 %v1684_v29 }
  0x78   : > { %1009 = vmatprep.subr.bf16.mxu0 %v1689_v30 }
  0x7b   : > { %1010 = vmatpush1.bf16.msra.mxu0 %v1687_v31 }
  0x7c   : > { %1011 = vmatprep.subr.bf16.mxu0 %v1692_v32 }
  0x7f   : > { %1012 = vmatpush1.bf16.msra.mxu0 %v1690_v33 }
  0x80   : > { %1013 = vmatprep.subr.bf16.mxu0 %v1695_v34 }
  0x83   : > { %1014 = vmatpush2.bf16.msra.mxu0 %v1693_v35 }
  0x84   : > { %1015 = vmatprep.subr.bf16.mxu0 %v1698_v36 }
  0x87   : > { %1016 = vmatpush2.bf16.msra.mxu0 %v1696_v37 }
  0x88   : > { %1017 = vmatprep.subr.bf16.mxu0 %v1701_v38 }
  0x8b   : > { %1018 = vmatpush2.bf16.msra.mxu0 %v1699_v39 }
  0x8c   : > { %1019 = vmatprep.subr.bf16.mxu0 %v1704_v40 }
  0x8f   : > { %1020 = vmatpush2.bf16.msra.mxu0 %v1702_v41 }
  0x90   : > { %1021 = vmatprep.subr.bf16.mxu0 %v1707_v42 }
  0x93   : > { %1022 = vmatpush2.bf16.msra.mxu0 %v1705_v43 }
  0x94   : > { %1023 = vmatprep.subr.bf16.mxu0 %v1710_v44 }
  0x97   : > { %1024 = vmatpush2.bf16.msra.mxu0 %v1708_v45 }
  0x98   : > { %1025 = vmatprep.subr.bf16.mxu0 %v1713_v46 }
  0x9b   : > { %1026 = vmatpush2.bf16.msra.mxu0 %v1711_v47 }
  0x9c   : > { %1027 = vmatprep.subr.bf16.mxu0 %v1716_v48 }
  0x9f   : > { %1028 = vmatpush2.bf16.msra.mxu0 %v1714_v50 }
  0xa2   : > { %1030 = vmatmul.mubr.bf16.vlgmr.msra.gmra.mxu0 %v833_v51 }
 0x122   : > { %v515_v52 = vpop.f32.mrf.mxu0 }
 0x124   : > { %v517_v53 = vpop.f32.mrf.mxu0  ;;  %v779_v54 = vpop.f32.mrf.mxu1 }
 0x125   : > { %v524_v60 = vcombine.low %v515_v52, %v517_v53 }
 0x126   : > { %v519_v55 = vpop.f32.mrf.mxu0  ;;  %v781_v56 = vpop.f32.mrf.mxu1 }
 0x127   : > { %v526_v62 = vadd.f32 %v524_v60, %v276_v61  ;;  %v788_v63 = vcombine.low %v779_v54, %v781_v56 }
 0x128   : > { %v520_v57 = vpop.f32.mrf.mxu0  ;;  %v783_v58 = vpop.f32.mrf.mxu1 }
 0x129   : > { %v790_v4 = vadd.f32 %v788_v63, %v526_v62 }
 0x12a   : > { %v784_v59 = vpop.f32.mrf.mxu1 }
 0x162   : > { %v1031_v0 = vpop.f32.mrf.mxu0 }
 0x164   : > { %v1033_v3 = vpop.f32.mrf.mxu0 }
 0x165   : > { %v1040_v5 = vcombine.low %v1031_v0, %v1033_v3  ;;  %1047 = sbr.rel (%p1503_p10) target bundleno = 398 (0x18e), region = 40 }
 0x166   : > { %v1035_v6 = vpop.f32.mrf.mxu0 }
 0x167   : > { %v1042_v7 = vadd.f32 %v1040_v5, %v790_v4 }
 0x168   : > { %v1036_v8 = vpop.f32.mrf.mxu0 }
 0x169   : > { %1043 = vst [vmem:[#allocation2] sm:$0xff] %v1042_v7 }
 0x16a   : > { %v1051_v9 = vlaneseq  ;;  %v1049_v11 = vld [vmem:[%s2021_s2] sm:$0x3]  ;;  %vm1065_vm0 = vcmask 1043456   ;;  %v1776_v28 = vmov 1966171168  }
 0x16b   : > { %v1084_v29 = vunpack.c.l.s4 %v1776_v28 }
 0x16c   : > { %v1052_v10 = vshrl.u32 %v1051_v9, 7  ;;  %vm1100_vm1 = vcmp.lt.s32.totalorder %v1051_v9, 256 }
 0x16d   : > { %v1085_v39 = vunpack.c.0.s8 %v1084_v29 }
 0x16e   : > { %v1053_v2 = vsub.s32 0, %v1052_v10  ;;  %v1057_v12 = vsub.s32 1, %v1052_v10 }
 0x16f   : > { %v1088_v49 = vsub.s32 %v1085_v39, %v1052_v10 }
 0x170   : > { %v1054_v13 = vrot.slane %v1049_v11, %v1053_v2  ;;  %v1058_v14 = vrot.slane %v1049_v11, %v1057_v12  ;;  %v1048_v15 = vld [vmem:[#allocation2] sm:$0xff] }
 0x172   : > { %v1059_v16 = vcombine.low %v1054_v13, %v1058_v14 }
 0x174   : > { %v1061_v17 = vadd.f32 %v1059_v16, %v1048_v15 }
 0x176   : > { %v1063_v18 = vcombine.high %v1061_v17, %v1061_v17  ;;  %v1066_v19 = vsel %vm1065_vm0, %v1061_v17, 0.0  ;;  %v1103_v20 = vmul.f32 %v1061_v17, %v1061_v17 }
 0x177   : > { %v1067_v21 = vrot.slane %v1066_v19, 4 }
 0x178   : > { %v1073_v22 = vsel %vm1065_vm0, %v1063_v18, 0.0  ;;  %v1105_v1 = vcombine.high %v1103_v20, %v1103_v20  ;;  %v1107_v23 = vsel %vm1065_vm0, %v1103_v20, 0.0  ;;  %v1505_v24 = vpack.c.bf16 %v1063_v18, %v1061_v17 }
 0x179   : > { %v1068_v25 = vadd.f32 %v1067_v21, %v1066_v19  ;;  %v1074_v26 = vrot.slane %v1073_v22, 4  ;;  %v1108_v27 = vrot.slane %v1107_v23, 4 }
 0x17a   : > { %v1114_v30 = vsel %vm1065_vm0, %v1105_v1, 0.0  ;;  %1506 = vst.sshfl [vmem:[%s1860_s13] sm:$0x33 pattern:$0x76325410] %v1505_v24 }
 0x17b   : > { %v1069_v31 = vrot.slane %v1068_v25, 2  ;;  %v1075_v32 = vadd.f32 %v1074_v26, %v1073_v22  ;;  %v1109_v33 = vadd.f32 %v1108_v27, %v1107_v23  ;;  %v1115_v34 = vrot.slane %v1114_v30, 4 }
 0x17d   : > { %v1070_v35 = vadd.f32 %v1069_v31, %v1068_v25  ;;  %v1076_v36 = vrot.slane %v1075_v32, 2  ;;  %v1110_v37 = vrot.slane %v1109_v33, 2  ;;  %v1116_v38 = vadd.f32 %v1115_v34, %v1114_v30 }
 0x17f   : > { %v1071_v40 = vrot.slane %v1070_v35, 1  ;;  %v1077_v41 = vadd.f32 %v1076_v36, %v1075_v32  ;;  %v1111_v42 = vadd.f32 %v1110_v37, %v1109_v33  ;;  %v1117_v43 = vrot.slane %v1116_v38, 2 }
 0x181   : > { %v1072_v44 = vadd.f32 %v1071_v40, %v1070_v35  ;;  %v1078_v45 = vrot.slane %v1077_v41, 1  ;;  %v1112_v46 = vrot.slane %v1111_v42, 1  ;;  %v1118_v47 = vadd.f32 %v1117_v43, %v1116_v38 }
 0x183   : > { %v1079_v48 = vadd.f32 %v1078_v45, %v1077_v41  ;;  %v1113_v50 = vadd.f32 %v1112_v46, %v1111_v42  ;;  %v1119_v51 = vrot.slane %v1118_v47, 1 }
 0x185   : > { %v1082_v52 = vcombine.low %v1072_v44, %v1079_v48  ;;  %v1120_v53 = vadd.f32 %v1119_v51, %v1118_v47 }
 0x187   : > { %v1089_v54 = vrot.slane %v1082_v52, %v1088_v49  ;;  %v1123_v55 = vcombine.low %v1113_v50, %v1120_v53 }
 0x189   : > { %v1096_v56 = vrot.slane %v1089_v54, %v1088_v49  ;;  %v1130_v57 = vrot.slane %v1123_v55, %v1088_v49 }
 0x18b   : > { %1102 = vst.msk [vmem:[%s1865_s26] ss:$2 sm:$0x3] %vm1100_vm1, %v1096_v56  ;;  %v1137_v58 = vrot.slane %v1130_v57, %v1088_v49 }
 0x18d   : > { %1504 = vst.msk [vmem:[%s1865_s26 + $0x1] ss:$2 sm:$0x3] %vm1100_vm1, %v1137_v58 }
 0x18e PF: > { %s15_s21 = sadd.s32 1, %s1773_s21   ;;  %s2024_s15 = smov %s1761_s18 }
 0x18f   : > { %p12_p11 = scmp.ge.s32.totalorder %s15_s21, 26   ;;  %s2025_s16 = smov %s1765_s19 }
 0x190   : > { %s2026_s17 = smov %s1769_s20  ;;  %s2027_s18 = smov %s2031_s22 }
 0x191   : > { %s2028_s19 = smov %s2035_s23  ;;  %s2029_s20 = smov %s2039_s24 }
 0x192   :  { %14 = sbr.rel (!%p12_p11) target bundleno = 4 (0x4), region = 86 }

// kernel: generator_forward.58
= control target key start
LH: loop header
LB: loop body
LE: loop exit
PB: predicated region body
PF: predicated region fallthrough
CT: control target
= control target key end

     0   :  { %v31_v0 = vlaneseq  ;;  %s196_s0 = inlined_call_operand.vmem [shape: bf16[32,256], index: 0, kind: input, shape index: {}]   ;;  %s197_s1 = inlined_call_operand.vmem [shape: f32[1,256], index: 1, kind: input, shape index: {}]   ;;  %s198_s2 = inlined_call_operand.vmem [shape: f32[1,256], index: 2, kind: input, shape index: {}]   ;;  %s199_s3 = inlined_call_operand.vmem [shape: bf16[32,256], index: 3, kind: input, shape index: {}]   ;;  %s200_s4 = inlined_call_operand.vmem [shape: bf16[32,256], index: 4, kind: output, shape index: {}]  }
   0x1   :  { %v17_v1 = vld [vmem:[%s196_s0] sm:$0xff]  ;;  %v18_v7 = vld [vmem:[%s196_s0 + $0x8] sm:$0xff]  ;;  %v19_v14 = vld [vmem:[%s196_s0 + $0x10] sm:$0xff] }
   0x2   :  { %v29_v2 = vld [vmem:[%s197_s1] sm:$0x3]  ;;  %v21_v3 = vunpack.c.l.bf16 %v17_v1  ;;  %v22_v4 = vunpack.c.h.bf16 %v17_v1  ;;  %v32_v5 = vshrl.u32 %v31_v0, 7  ;;  %v70_v8 = vld [vmem:[%s199_s3 + $0x8] sm:$0xff]  ;;  %v23_v12 = vunpack.c.l.bf16 %v18_v7  ;;  %v71_v15 = vld [vmem:[%s199_s3 + $0x10] sm:$0xff] }
   0x3   :  { %v69_v6 = vld [vmem:[%s199_s3] sm:$0xff]  ;;  %v24_v13 = vunpack.c.h.bf16 %v18_v7  ;;  %v75_v18 = vunpack.c.l.bf16 %v70_v8  ;;  %v76_v19 = vunpack.c.h.bf16 %v70_v8  ;;  %v20_v20 = vld [vmem:[%s196_s0 + $0x18] sm:$0xff]  ;;  %v25_v22 = vunpack.c.l.bf16 %v19_v14 }
   0x4   :  { %v49_v9 = vld [vmem:[%s198_s2] sm:$0x3]  ;;  %v73_v10 = vunpack.c.l.bf16 %v69_v6  ;;  %v74_v11 = vunpack.c.h.bf16 %v69_v6  ;;  %v33_v16 = vsub.s32 0, %v32_v5  ;;  %v37_v17 = vsub.s32 1, %v32_v5  ;;  %v72_v21 = vld [vmem:[%s199_s3 + $0x18] sm:$0xff] }
   0x5   :  { %v26_v23 = vunpack.c.h.bf16 %v19_v14  ;;  %v77_v24 = vunpack.c.l.bf16 %v71_v15  ;;  %v78_v25 = vunpack.c.h.bf16 %v71_v15  ;;  %v27_v30 = vunpack.c.l.bf16 %v20_v20 }
   0x6   :  { %v34_v26 = vrot.slane %v29_v2, %v33_v16  ;;  %v38_v27 = vrot.slane %v29_v2, %v37_v17  ;;  %v54_v28 = vrot.slane %v49_v9, %v33_v16  ;;  %v58_v29 = vrot.slane %v49_v9, %v37_v17 }
   0x7   :  { %v28_v31 = vunpack.c.h.bf16 %v20_v20  ;;  %v79_v32 = vunpack.c.l.bf16 %v72_v21  ;;  %v80_v33 = vunpack.c.h.bf16 %v72_v21 }
   0x8   :  { %v41_v34 = vmul.f32 %v34_v26, %v21_v3  ;;  %v42_v35 = vmul.f32 %v38_v27, %v22_v4  ;;  %v43_v36 = vmul.f32 %v34_v26, %v23_v12  ;;  %v44_v37 = vmul.f32 %v38_v27, %v24_v13 }
   0x9   :  { %v45_v38 = vmul.f32 %v34_v26, %v25_v22  ;;  %v46_v39 = vmul.f32 %v38_v27, %v26_v23  ;;  %v47_v40 = vmul.f32 %v34_v26, %v27_v30  ;;  %v48_v41 = vmul.f32 %v38_v27, %v28_v31 }
   0xa   :  { %v61_v42 = vadd.f32 %v54_v28, %v41_v34  ;;  %v62_v43 = vadd.f32 %v58_v29, %v42_v35  ;;  %v63_v44 = vadd.f32 %v54_v28, %v43_v36  ;;  %v64_v45 = vadd.f32 %v58_v29, %v44_v37 }
   0xb   :  { %v65_v46 = vadd.f32 %v54_v28, %v45_v38  ;;  %v66_v47 = vadd.f32 %v58_v29, %v46_v39  ;;  %v67_v48 = vadd.f32 %v54_v28, %v47_v40  ;;  %v68_v49 = vadd.f32 %v58_v29, %v48_v41 }
   0xc   :  { %v81_v50 = vadd.f32 %v73_v10, %v61_v42  ;;  %v82_v51 = vadd.f32 %v74_v11, %v62_v43  ;;  %v83_v52 = vadd.f32 %v75_v18, %v63_v44  ;;  %v84_v53 = vadd.f32 %v76_v19, %v64_v45 }
   0xd   :  { %v85_v54 = vadd.f32 %v77_v24, %v65_v46  ;;  %v86_v55 = vadd.f32 %v78_v25, %v66_v47  ;;  %v87_v56 = vadd.f32 %v79_v32, %v67_v48  ;;  %v88_v57 = vadd.f32 %v80_v33, %v68_v49 }
   0xe   :  { %v125_v58 = vpack.c.bf16 %v82_v51, %v81_v50  ;;  %v126_v59 = vpack.c.bf16 %v84_v53, %v83_v52 }
   0xf   :  { %v127_v60 = vpack.c.bf16 %v86_v55, %v85_v54  ;;  %v128_v61 = vpack.c.bf16 %v88_v57, %v87_v56 }
  0x10   :  { %113 = vst [vmem:[%s200_s4] sm:$0xff] %v125_v58  ;;  %114 = vst [vmem:[%s200_s4 + $0x8] sm:$0xff] %v126_v59 }
  0x11   :  { %115 = vst [vmem:[%s200_s4 + $0x10] sm:$0xff] %v127_v60  ;;  %116 = vst [vmem:[%s200_s4 + $0x18] sm:$0xff] %v128_v61 }

// kernel: generator_forward.87
= control target key start
LH: loop header
LB: loop body
LE: loop exit
PB: predicated region body
PF: predicated region fallthrough
CT: control target
= control target key end

     0   :  { %10 = vsyncpa [#allocation4], 0  ;;  %s1750_s0 = inlined_call_operand.vmem [shape: bf16[2,10,10,256], index: 0, kind: input, shape index: {}]   ;;  %s1751_s1 = inlined_call_operand.vmem [shape: bf16[9,256,128], index: 1, kind: input, shape index: {}]   ;;  %s1752_s2 = inlined_call_operand.vmem [shape: f32[1,128], index: 2, kind: input, shape index: {}]   ;;  %s1753_s3 = inlined_call_operand.vmem [shape: bf16[2,8,8,128], index: 3, kind: output, shape index: {0}]   ;;  %s1754_s4 = inlined_call_operand.hbm [shape: f32[2,8,2,128], index: 4, kind: output, shape index: {1}]  }
   0x1   :  { %12 = vsyncpa [#allocation4 + $0x1], 0  ;;  %s1507_s15 = smov 0   ;;  %s1509_s16 = smov 0  }
   0x2   :  { %s1511_s17 = smov 0   ;;  %s1513_s18 = smov 0  }
   0x3   :  { %s1515_s19 = smov 0   ;;  %s1517_s20 = smov 0  }
   0x4   :  { %s1519_s21 = smov 0   ;;  %s1521_s22 = smov 0  }
   0x5   :  { %s1523_s23 = smov 0   ;;  %s1525_s24 = smov 0  }
   0x6 LB: > { %1762 = sst [smem:[#allocation6_spill]] %s1450_s17  ;;  %s1020_s25 = sadd.s32 4294967295, %s1478_s24   ;;  %s1478_s24 = sphi %s1525_s24, %s18_s24   ;;  %s1474_s23 = sphi %s1523_s23, %s1780_s23   ;;  %s1470_s22 = sphi %s1521_s22, %s1779_s22   ;;  %s1466_s21 = sphi %s1519_s21, %s1778_s21   ;;  %s1462_s20 = sphi %s1517_s20, %s1777_s20   ;;  %s1458_s19 = sphi %s1515_s19, %s1776_s19   ;;  %s1454_s18 = sphi %s1513_s18, %s1783_s18   ;;  %s1450_s17 = sphi %s1511_s17, %s1774_s17   ;;  %s1446_s16 = sphi %s1509_s16, %s1782_s16   ;;  %s1442_s15 = sphi %s1507_s15, %s1781_s15  }
   0x7   : > { %1763 = sst [smem:[#allocation7_spill]] %s1466_s21  ;;  %s1021_s26 = sadd.s32 4294967294, %s1478_s24  }
   0x8   : > { %1764 = sst [smem:[#allocation8_spill]] %s1470_s22  ;;  %s30_s27 = sadd.s32 1, %s1466_s21 }
   0x9   : > { %1765 = sst [smem:[#allocation9_spill]] %s1474_s23  ;;  %p31_p0 = scmp.ge.s32.totalorder %s30_s27, 3 }
   0xa   : > { %s33_s28 = sadd.s32 1, %s1470_s22  ;;  %s37_s29 = sadd.s32 1, %s1474_s23 }
   0xb   : > { %p156_p1 = scmp.ne.s32.totalorder %s1450_s17, %s1446_s16  ;;  %s1785_s27 = smov (%p31_p0, %s30_s27), 0 }
   0xc   : > { %1766 = sst [smem:[#allocation10_spill]] %s1785_s27  ;;  %s1787_s28 = smov (!%p31_p0, %s33_s28), %s1470_s22 }
   0xd   : > { %p157_p2 = scmp.eq.s32.totalorder %s1020_s25, 47  ;;  %p162_p3 = scmp.ne.s32.totalorder %s1446_s16, %s1442_s15 }
   0xe   : > { %p35_p4 = scmp.ge.s32.totalorder %s1787_s28, 8  ;;  %p163_p5 = scmp.eq.s32.totalorder %s1021_s26, 47 }
   0xf   : > { %p1569_p6 = por %p157_p2, %p156_p1  ;;  %p1024_p8 = scmp.ge.s32.totalorder %s1478_s24, 1 }
  0x10   : > { %s1789_s28 = smov (%p35_p4, %s1787_s28), 0  ;;  %s1791_s29 = smov (!%p35_p4, %s37_s29), %s1474_s23 }
  0x11   : > { %1768 = sst [smem:[#allocation11_spill]] %s1789_s28  ;;  %p1576_p7 = por %p163_p5, %p162_p3 }
  0x12   : > { %p39_p9 = scmp.ge.s32.totalorder %s1791_s29, 2  ;;  %p201_p10 = scmp.lt.s32.totalorder %s1478_s24, 49 }
  0x13   : > { %s142_s6 = ssub.s32 %s1470_s22, %s1789_s28  ;;  %s146_s9 = sadd.s32 1, %s1450_s17 }
  0x14   : > { %s1793_s29 = smov (%p39_p9, %s1791_s29), 0  ;;  %p202_p11 = pnand %p1024_p8, %p201_p10 }
  0x15   : > { %1770 = sst [smem:[#allocation12_spill]] %s1793_s29  ;;  %s141_s7 = ssub.s32 %s1474_s23, %s1793_s29 }
  0x16   : > { %s143_s8 = sor.u32 %s142_s6, %s141_s7  ;;  %s1760_s11 = sand.u32 (!%p202_p11), 1, %s1446_s16  }
  0x17   : > { %p144_p12 = scmp.eq.s32.totalorder %s143_s8, 0  ;;  %205 = sbr.rel (%p202_p11) target bundleno = 360 (0x168), region = 32 }
  0x18   : > { %s240_s12 = sadd.s32 (!%p202_p11), %s1454_s18, %s1458_s19  ;;  %s1025_s13 = sshll.u32 (!%p202_p11), %s1760_s11, 1 }
  0x19   : > { %s1590_s10 = scalar_select %p144_p12, %s1450_s17, %s146_s9  }
  0x1a   : > { %p241_p13 = scmp.lt.s32.totalorder (!%p202_p11), %s1462_s20, 1  ;;  %p243_p0 = scmp.lt.s32.totalorder (!%p202_p11), %s240_s12, 9 }
  0x1b   : > { %1771 = sst [smem:[#allocation13_spill]] %s1590_s10  ;;  %p253_p1 = scmp.lt.s32.totalorder (!%p202_p11), %s1458_s19, 7 }
  0x1c   : > { %s242_s14 = scalar_select %p241_p13, %s1462_s20, 1 }
  0x1d   : > { %s1795_s12 = smov (!%p243_p0, %s240_s12), 9  ;;  %s1611_s17 = scalar_lea.vmem [#allocation3], %s1025_s13 }
  0x1e   : > { %s1227_s25 = smul.u32 40, %s242_s14  ;;  %s1026_s26 = sshll.u32 %s1795_s12, 2 }
  0x1f   : > { %s1028_s28 = sshll.u32 %s242_s14, 3  ;;  %p1030_p2 = scmp.ne.s32.totalorder %s1454_s18, 0 }
  0x20   : > { %s247_s6 = sadd.s32 %s1227_s25, %s1026_s26 }
  0x21   : > { %s1027_s7 = sshll.u32 %s247_s6, 2 }
  0x22   : > { %s1603_s29 = scalar_lea.vmem %s1750_s0, %s1027_s7 }
  0x23   : > { %s254_s27 = scalar_select %p253_p1, %s1458_s19, 7 }
  0x24   : > { %263 = sbr.rel (%p1030_p2) target bundleno = 43 (0x2b), region = 36 }
  0x25   : > { %s256_s23 = sadd.s32 %s1028_s28, %s254_s27 }
  0x26   : > { %s1029_s22 = sshll.u32 %s256_s23, 2 }
  0x27   : > { %s1609_s10 = scalar_lea.vmem %s1753_s3, %s1029_s22 }
  0x29   : > { %v1480_v0 = vmov 0.0  }
  0x2a   : > { %264 = vst [vmem:[#allocation2] sm:$0xff] %v1480_v0 }
  0x2b PF: > { %s1160_s12 = smul.u32 384, %s1454_s18  ;;  %v1616_v1 = vld [vmem:[%s1603_s29] sm:$0xff]  ;;  %v1619_v2 = vld [vmem:[%s1603_s29 + $0x8] sm:$0x11]  ;;  %p1153_p3 = scmp.ne.s32.totalorder %s1454_s18, 2 }
  0x2c   : > { %v1034_v3 = vcombine.high %v1616_v1, %v1616_v1  ;;  %v1085_v4 = vcombine.high %v1616_v1, %v1619_v2  ;;  %v1084_v30 = vcombine.low %v1616_v1, %v1619_v2  ;;  %v1656_v33 = vld [vmem:[%s1603_s29] sm:$0xee]  ;;  %v1033_v46 = vcombine.low %v1616_v1, %v1616_v1 }
  0x2d   : > { %s1628_s23 = scalar_lea.vmem %s1751_s1, %s1160_s12  ;;  %v1136_v41 = vcombine.high %v1656_v33, %v1619_v2  ;;  %v1135_v1 = vcombine.low %v1656_v33, %v1619_v2 }
  0x2e   : > { %v1316_v5 = vld [vmem:[%s1628_s23 + $0x78] sm:$0xff]   ;;  %438 = vmatprep.mubr.bf16.mxu0 %v1034_v3  ;;  %v501_v6 = vshrl.u32 %v1085_v4, 16  ;;  %v503_v8 = vshll.u32 %v1085_v4, 16  ;;  %v1320_v12 = vld [vmem:[%s1628_s23 + $0x70] sm:$0xff]   ;;  %v1324_v17 = vld [vmem:[%s1628_s23 + $0x68] sm:$0xff]   ;;  %v496_v36 = vshll.u32 %v1084_v30, 16 }
  0x2f   : > { %v1317_v7 = vld [vmem:[%s1628_s23 + $0x38] sm:$0xff]   ;;  %1161 = vmatprep.subr.bf16.mxu0 %v1316_v5  ;;  %v1321_v13 = vld [vmem:[%s1628_s23 + $0x30] sm:$0xff]   ;;  %v1325_v18 = vld [vmem:[%s1628_s23 + $0x28] sm:$0xff]   ;;  %v494_v40 = vshrl.u32 %v1084_v30, 16  ;;  %v689_v48 = vrot.slane %v1136_v41, 1  ;;  %v688_v4 = vrot.slane %v1135_v1, 1 }
  0x30   : > { %v1318_v9 = vld [vmem:[%s1628_s23 + $0xf8] sm:$0xff]   ;;  %1162 = vmatpush3.bf16.msra.mxu0 %v1317_v7  ;;  %v505_v11 = vrot.slane %v503_v8, 1  ;;  %v1322_v15 = vld [vmem:[%s1628_s23 + $0xf0] sm:$0xff]   ;;  %v1326_v19 = vld [vmem:[%s1628_s23 + $0xe8] sm:$0xff]   ;;  %v498_v43 = vrot.slane %v496_v36, 1 }
  0x31   : > { %v1319_v10 = vld [vmem:[%s1628_s23 + $0xb8] sm:$0xff]   ;;  %1183 = vmatprep.subr.bf16.mxu1 %v1318_v9  ;;  %1163 = vmatprep.subr.bf16.mxu0 %v1320_v12  ;;  %v1323_v16 = vld [vmem:[%s1628_s23 + $0xb0] sm:$0xff]   ;;  %v1327_v20 = vld [vmem:[%s1628_s23 + $0xa8] sm:$0xff]  }
  0x32   : > { %1184 = vmatpush3.bf16.msra.mxu1 %v1319_v10  ;;  %v506_v14 = vor.u32 %v505_v11, %v501_v6  ;;  %v1328_v21 = vld [vmem:[%s1628_s23 + $0x60] sm:$0xff]   ;;  %v1332_v25 = vld [vmem:[%s1628_s23 + $0x58] sm:$0xff]   ;;  %v1336_v29 = vld [vmem:[%s1628_s23 + $0x50] sm:$0xff]   ;;  %v499_v50 = vor.u32 %v498_v43, %v494_v40 }
  0x33   : > { %1185 = vmatprep.subr.bf16.mxu1 %v1322_v15  ;;  %v1329_v22 = vld [vmem:[%s1628_s23 + $0x20] sm:$0xff]   ;;  %v1333_v26 = vld [vmem:[%s1628_s23 + $0x18] sm:$0xff]   ;;  %v1337_v31 = vld [vmem:[%s1628_s23 + $0x10] sm:$0xff]  }
  0x34   : > { %1164 = vmatpush3.bf16.msra.mxu0 %v1321_v13  ;;  %637 = vmatprep.mubr.bf16.mxu1 %v506_v14  ;;  %v1330_v23 = vld [vmem:[%s1628_s23 + $0xe0] sm:$0xff]   ;;  %v1334_v27 = vld [vmem:[%s1628_s23 + $0xd8] sm:$0xff]   ;;  %v1338_v32 = vld [vmem:[%s1628_s23 + $0xd0] sm:$0xff]  }
  0x35   : > { %1165 = vmatprep.subr.bf16.mxu0 %v1324_v17  ;;  %v1331_v24 = vld [vmem:[%s1628_s23 + $0xa0] sm:$0xff]   ;;  %v1335_v28 = vld [vmem:[%s1628_s23 + $0x98] sm:$0xff]   ;;  %v1339_v34 = vld [vmem:[%s1628_s23 + $0x90] sm:$0xff]  }
  0x36   : > { %1186 = vmatpush3.bf16.msra.mxu1 %v1323_v16  ;;  %v1340_v35 = vld [vmem:[%s1628_s23 + $0x48] sm:$0xff]   ;;  %v1344_v42 = vld [vmem:[%s1628_s23 + $0x40] sm:$0xff]   ;;  %v1350_v49 = vld [vmem:[%s1628_s23 + $0x178] sm:$0xff]  }
  0x37   : > { %1187 = vmatprep.subr.bf16.mxu1 %v1326_v19  ;;  %v1341_v37 = vld [vmem:[%s1628_s23 + $0x8] sm:$0xff]   ;;  %v1345_v44 = vld [vmem:[%s1628_s23] sm:$0xff]   ;;  %v1353_v51 = vld [vmem:[%s1628_s23 + $0x138] sm:$0xff]  }
  0x38   : > { %1166 = vmatpush3.bf16.msra.mxu0 %v1325_v18  ;;  %v1342_v38 = vld [vmem:[%s1628_s23 + $0xc8] sm:$0xff]   ;;  %v1346_v45 = vld [vmem:[%s1628_s23 + $0xc0] sm:$0xff]   ;;  %v1354_v52 = vld [vmem:[%s1628_s23 + $0x170] sm:$0xff]  }
  0x39   : > { %1167 = vmatprep.subr.bf16.mxu0 %v1328_v21  ;;  %v1343_v39 = vld [vmem:[%s1628_s23 + $0x88] sm:$0xff]   ;;  %v1349_v47 = vld [vmem:[%s1628_s23 + $0x80] sm:$0xff]   ;;  %v1355_v53 = vld [vmem:[%s1628_s23 + $0x130] sm:$0xff]  }
  0x3a   : > { %1188 = vmatpush3.bf16.msra.mxu1 %v1327_v20  ;;  %v1356_v54 = vld [vmem:[%s1628_s23 + $0x168] sm:$0xff]   ;;  %v1358_v56 = vld [vmem:[%s1628_s23 + $0x160] sm:$0xff]   ;;  %v1360_v58 = vld [vmem:[%s1628_s23 + $0x158] sm:$0xff]  }
  0x3b   : > { %1189 = vmatprep.subr.bf16.mxu1 %v1330_v23  ;;  %v1357_v55 = vld [vmem:[%s1628_s23 + $0x128] sm:$0xff]   ;;  %v1359_v57 = vld [vmem:[%s1628_s23 + $0x120] sm:$0xff]   ;;  %v1361_v59 = vld [vmem:[%s1628_s23 + $0x118] sm:$0xff]  }
  0x3c   : > { %1168 = vmatpush3.bf16.msra.mxu0 %v1329_v22  ;;  %v1362_v60 = vld [vmem:[%s1628_s23 + $0x150] sm:$0xff]   ;;  %v1364_v62 = vld [vmem:[%s1628_s23 + $0x148] sm:$0xff]   ;;  %v1366_v0 = vld [vmem:[%s1628_s23 + $0x140] sm:$0xff]  }
  0x3d   : > { %1169 = vmatprep.subr.bf16.mxu0 %v1332_v25  ;;  %v1363_v61 = vld [vmem:[%s1628_s23 + $0x110] sm:$0xff]   ;;  %v1365_v63 = vld [vmem:[%s1628_s23 + $0x108] sm:$0xff]   ;;  %v1367_v3 = vld [vmem:[%s1628_s23 + $0x100] sm:$0xff]  }
  0x3e   : > { %1190 = vmatpush3.bf16.msra.mxu1 %v1331_v24  ;;  %v265_v14 = vld [vmem:[#allocation2] sm:$0xff] }
  0x3f   : > { %1191 = vmatprep.subr.bf16.mxu1 %v1334_v27 }
  0x40   : > { %1170 = vmatpush3.bf16.msra.mxu0 %v1333_v26 }
  0x41   : > { %1171 = vmatprep.subr.bf16.mxu0 %v1336_v29 }
  0x42   : > { %1192 = vmatpush3.bf16.msra.mxu1 %v1335_v28 }
  0x43   : > { %1193 = vmatprep.subr.bf16.mxu1 %v1338_v32 }
  0x44   : > { %1172 = vmatpush3.bf16.msra.mxu0 %v1337_v31 }
  0x45   : > { %1173 = vmatprep.subr.bf16.mxu0 %v1340_v35 }
  0x46   : > { %1194 = vmatpush3.bf16.msra.mxu1 %v1339_v34 }
  0x47   : > { %1195 = vmatprep.subr.bf16.mxu1 %v1342_v38 }
  0x48   : > { %1174 = vmatpush3.bf16.msra.mxu0 %v1341_v37 }
  0x49   : > { %1175 = vmatprep.subr.bf16.mxu0 %v1344_v42 }
  0x4a   : > { %1196 = vmatpush3.bf16.msra.mxu1 %v1343_v39 }
  0x4b   : > { %1197 = vmatprep.subr.bf16.mxu1 %v1346_v45 }
  0x4c   : > { %1176 = vmatpush3.bf16.msra.mxu0 %v1345_v44 }
  0x4d   : > { %1205 = vmatprep.subr.bf16.mxu0 %v1350_v49 }
  0x4e   : > { %1198 = vmatpush3.bf16.msra.mxu1 %v1349_v47 }
  0x4f   : > { %439 = vmatmul.mubr.bf16.vlgmr.msra.gmra.mxu0 %v1033_v46 }
  0x50   : > { %1206 = vmatpush3.bf16.msra.mxu0 %v1353_v51  ;;  %820 = vmatprep.mubr.bf16.mxu0 %v689_v48 }
  0x51   : > { %638 = vmatmul.mubr.bf16.vlgmr.msra.gmra.mxu1 %v499_v50  ;;  %1207 = vmatprep.subr.bf16.mxu0 %v1354_v52 }
  0x54   : > { %1208 = vmatpush3.bf16.msra.mxu0 %v1355_v53 }
  0x55   : > { %1209 = vmatprep.subr.bf16.mxu0 %v1356_v54 }
  0x58   : > { %1210 = vmatpush3.bf16.msra.mxu0 %v1357_v55 }
  0x59   : > { %1211 = vmatprep.subr.bf16.mxu0 %v1358_v56 }
  0x5c   : > { %1212 = vmatpush3.bf16.msra.mxu0 %v1359_v57 }
  0x5d   : > { %1213 = vmatprep.subr.bf16.mxu0 %v1360_v58 }
  0x60   : > { %1214 = vmatpush3.bf16.msra.mxu0 %v1361_v59 }
  0x61   : > { %1215 = vmatprep.subr.bf16.mxu0 %v1362_v60 }
  0x64   : > { %1216 = vmatpush3.bf16.msra.mxu0 %v1363_v61 }
  0x65   : > { %1217 = vmatprep.subr.bf16.mxu0 %v1364_v62 }
  0x68   : > { %1218 = vmatpush3.bf16.msra.mxu0 %v1365_v63 }
  0x69   : > { %1219 = vmatprep.subr.bf16.mxu0 %v1366_v0 }
  0x6c   : > { %1220 = vmatpush3.bf16.msra.mxu0 %v1367_v3 }
  0x6f   : > { %821 = vmatmul.mubr.bf16.vlgmr.msra.gmra.mxu0 %v688_v4 }
 0x10f   : > { %v1177_v5 = vpop.f32.mrf.mxu0 }
 0x111   : > { %v1178_v6 = vpop.f32.mrf.mxu0  ;;  %v1199_v7 = vpop.f32.mrf.mxu1 }
 0x112   : > { %v1179_v13 = vadd.f32 %v1178_v6, %v1177_v5 }
 0x113   : > { %v1180_v8 = vpop.f32.mrf.mxu0  ;;  %v1200_v9 = vpop.f32.mrf.mxu1 }
 0x114   : > { %v446_v15 = vadd.f32 %v1179_v13, %v265_v14  ;;  %v1201_v16 = vadd.f32 %v1200_v9, %v1199_v7 }
 0x115   : > { %v1181_v10 = vpop.f32.mrf.mxu0  ;;  %v1202_v11 = vpop.f32.mrf.mxu1 }
 0x116   : > { %v645_v18 = vadd.f32 %v1201_v16, %v446_v15 }
 0x117   : > { %v1203_v12 = vpop.f32.mrf.mxu1 }
 0x12f   : > { %v1221_v17 = vpop.f32.mrf.mxu0 }
 0x131   : > { %v1222_v2 = vpop.f32.mrf.mxu0 }
 0x132   : > { %v1223_v19 = vadd.f32 %v1222_v2, %v1221_v17  ;;  %833 = sbr.rel (%p1153_p3) target bundleno = 335 (0x14f), region = 40 }
 0x133   : > { %v1224_v20 = vpop.f32.mrf.mxu0 }
 0x134   : > { %v828_v21 = vadd.f32 %v1223_v19, %v645_v18 }
 0x135   : > { %v1225_v22 = vpop.f32.mrf.mxu0 }
 0x136   : > { %829 = vst [vmem:[#allocation2] sm:$0xff] %v828_v21 }
 0x137   : > { %v1154_v24 = vld [vmem:[%s1752_s2] ss:$0 sm:$0xff] }
 0x13d   : > { %v834_v23 = vld [vmem:[#allocation2] sm:$0xff] }
 0x13e   : > { %v842_v25 = vadd.f32 %v1154_v24, %v834_v23 }
 0x140   : > { %v843_v26 = vrot.slane %v842_v25, 4  ;;  %v850_v27 = vmul.f32 %v842_v25, %v842_v25  ;;  %v858_v28 = vpack.c.bf16 %v842_v25, %v842_v25 }
 0x142   : > { %v844_v29 = vadd.f32 %v843_v26, %v842_v25  ;;  %v851_v30 = vrot.slane %v850_v27, 4  ;;  %859 = vst [vmem:[%s1609_s10] sm:$0xf] %v858_v28 }
 0x144   : > { %v845_v31 = vrot.slane %v844_v29, 2  ;;  %v852_v32 = vadd.f32 %v851_v30, %v850_v27 }
 0x146   : > { %v846_v33 = vadd.f32 %v845_v31, %v844_v29  ;;  %v853_v34 = vrot.slane %v852_v32, 2 }
 0x148   : > { %v847_v35 = vrot.slane %v846_v33, 1  ;;  %v854_v36 = vadd.f32 %v853_v34, %v852_v32 }
 0x14a   : > { %v848_v37 = vadd.f32 %v847_v35, %v846_v33  ;;  %v855_v38 = vrot.slane %v854_v36, 1 }
 0x14c   : > { %849 = vst [vmem:[%s1611_s17] sm:$0x1] %v848_v37  ;;  %v856_v39 = vadd.f32 %v855_v38, %v854_v36 }
 0x14e   : > { %857 = vst [vmem:[%s1611_s17 + $0x1] sm:$0x1] %v856_v39 }
 0x14f PF: > { %s1156_s18 = sshll.u32 %s1462_s20, 3  ;;  %s887_s10 = sshll.u32 %s1611_s17, 4  ;;  %s888_s10 = int_to_ptr.vmem [resolvable:$true] %s887_s10 }
 0x150   : > { %s883_s29 = sadd.s32 %s1458_s19, %s1156_s18  ;;  %s1772_s26 = sand.u32 1, %s1446_s16  }
 0x151   : > { %s1157_s11 = sshll.u32 %s883_s29, 5  ;;  %s869_s6 = scalar_lea.sflag [#allocation4], %s1772_s26 }
 0x152   : > { %s885_s25 = scalar_lea.hbm %s1754_s4, %s1157_s11  ;;  %s1370_s7 = scalar_lea.vmem %s888_s10, 32 }
 0x153   : > { %p1371_p4 = scmp.ne.s32.totalorder %s888_s10, %s1370_s7  ;;  %s1481_s8 = smov [#allocation3]  }
 0x154   : > { %s1374_s9 = sshll.u32 %s1481_s8, 4  ;;  %s1375_s9 = int_to_ptr.vmem [resolvable:$false] %s1374_s9 }
 0x155   : > { %p1372_p5 = pnand %p1371_p4, %p1569_p6  ;;  %s1376_s12 = scalar_lea.vmem %s1375_s9, 64 }
 0x156   : > { %p1377_p9 = scmp.lt.s32.totalorder %s888_s10, %s1375_s9  ;;  %p1378_p10 = scmp.lt.s32.totalorder %s1376_s12, %s1370_s7 }
 0x157   : > { %p1373_p8 = pneg %p1372_p5 }
 0x158   : > { %p1379_p11 = por %p1378_p10, %p1377_p9 }
 0x15a   : > { %p1380_p12 = pnand %p1379_p11, %p1373_p8 }
 0x15c   : > { %1383 = shalt.err (!%p1380_p12)
}
 0x15d   : > { %s1384_s17 = scalar_lea.hbm %s885_s25, 32  ;;  %s1388_s21 = scalar_lea.hbm %s1754_s4, 512 }
 0x15e   : > { %p1385_p13 = scmp.ne.s32.totalorder %s885_s25, %s1384_s17  ;;  %p1389_p2 = scmp.lt.s32.totalorder %s885_s25, %s1754_s4 }
 0x15f   : > { %p1390_p3 = scmp.lt.s32.totalorder %s1388_s21, %s1384_s17 }
 0x160   : > { %p1386_p0 = pnand %p1385_p13, %p1569_p6 }
 0x161   : > { %p1391_p4 = por %p1390_p3, %p1389_p2 }
 0x162   : > { %p1387_p1 = pneg %p1386_p0 }
 0x164   : > { %p1392_p5 = pnand %p1391_p4, %p1387_p1 }
 0x166   : > { %1395 = shalt.err (!%p1392_p5)
}
 0x167   : > { %1228 = dma.vmem_to_hbm [thread:$0]  (%p1569_p6), %s888_s10, 32, %s885_s25, %s869_s6  }
 0x168 PF: > { %p1234_p8 = scmp.ge.s32.totalorder %s1478_s24, 2  ;;  %s910_s27 = sand.u32 1, %s1442_s15  }
 0x169   : > { %s911_s28 = scalar_lea.sflag [#allocation4], %s910_s27 }
 0x16a   : > { %p1231_p9 = pnand %p1234_p8, %p1576_p7 }
 0x16c   : > { %p1232_p10 = pneg %p1231_p9 }
 0x16e   : > { %1437 = dma.done.wait (%p1232_p10), %s911_s28, 32  }
 0x16f   : > { %1439 = vsyncadd (%p1232_p10), %s911_s28, 4294967264  ;;  %s18_s24 = sadd.s32 1, %s1478_s24   ;;  %s1773_s18 = sld [smem:[#allocation6_spill]] }
 0x170   : > { %p15_p11 = scmp.ge.s32.totalorder %s18_s24, 50   ;;  %s1774_s17 = sld [smem:[#allocation13_spill]] }
 0x171   : > { %s1775_s30 = sld [smem:[#allocation7_spill]]  ;;  %s1781_s15 = smov %s1446_s16 }
 0x172   : > { %s1776_s19 = sld [smem:[#allocation8_spill]] }
 0x173   : > { %s1777_s20 = sld [smem:[#allocation9_spill]]  ;;  %17 = sbr.rel (!%p15_p11) target bundleno = 6 (0x6), region = 90 }
 0x174   : > { %s1778_s21 = sld [smem:[#allocation10_spill]] }
 0x175   : > { %s1779_s22 = sld [smem:[#allocation11_spill]]  ;;  %s1782_s16 = smov %s1773_s18 }
 0x176   : > { %s1780_s23 = sld [smem:[#allocation12_spill]] }
 0x177   : > { %s1783_s18 = smov %s1775_s30 }
 0x178   :  { %916 = vsyncpa [#allocation4], 1 }
 0x179   :  { %918 = vsyncpa [#allocation4 + $0x1], 1 }

// kernel: generator_forward.90
= control target key start
LH: loop header
LB: loop body
LE: loop exit
PB: predicated region body
PF: predicated region fallthrough
CT: control target
= control target key end

     0   :  { %10 = vsyncpa [#allocation4], 0  ;;  %s1545_s0 = inlined_call_operand.vmem [shape: bf16[2,18,18,128], index: 0, kind: input, shape index: {}]   ;;  %s1546_s1 = inlined_call_operand.vmem [shape: bf16[9,128,64], index: 1, kind: input, shape index: {}]   ;;  %s1547_s2 = inlined_call_operand.vmem [shape: f32[1,64], index: 2, kind: input, shape index: {}]   ;;  %s1548_s3 = inlined_call_operand.vmem [shape: bf16[2,16,16,64], index: 3, kind: output, shape index: {0}]   ;;  %s1549_s4 = inlined_call_operand.hbm [shape: f32[2,16,2,64], index: 4, kind: output, shape index: {1}]  }
   0x1   :  { %12 = vsyncpa [#allocation4 + $0x1], 0  ;;  %s1297_s15 = smov 0   ;;  %s1299_s16 = smov 0  }
   0x2   :  { %s1301_s17 = smov 0   ;;  %s1303_s18 = smov 0  }
   0x3   :  { %s1305_s19 = smov 0   ;;  %s1307_s20 = smov 0  }
   0x4   :  { %s1309_s21 = smov 0   ;;  %s1311_s22 = smov 0  }
   0x5   :  { %s1313_s23 = smov 0   ;;  %s1315_s24 = smov 0  }
   0x6 LB: > { %1558 = sst [smem:[#allocation6_spill]] %s1238_s17  ;;  %s864_s25 = sadd.s32 4294967295, %s1266_s24   ;;  %s1266_s24 = sphi %s1315_s24, %s18_s24   ;;  %s1262_s23 = sphi %s1313_s23, %s1578_s23   ;;  %s1258_s22 = sphi %s1311_s22, %s1577_s22   ;;  %s1254_s21 = sphi %s1309_s21, %s1576_s21   ;;  %s1250_s20 = sphi %s1307_s20, %s1575_s20   ;;  %s1246_s19 = sphi %s1305_s19, %s1574_s19   ;;  %s1242_s18 = sphi %s1303_s18, %s1582_s18   ;;  %s1238_s17 = sphi %s1301_s17, %s1581_s17   ;;  %s1234_s16 = sphi %s1299_s16, %s1580_s16   ;;  %s1230_s15 = sphi %s1297_s15, %s1579_s15  }
   0x7   : > { %1559 = sst [smem:[#allocation7_spill]] %s1254_s21  ;;  %s865_s26 = sadd.s32 4294967294, %s1266_s24  }
   0x8   : > { %1560 = sst [smem:[#allocation8_spill]] %s1258_s22  ;;  %s30_s27 = sadd.s32 1, %s1254_s21 }
   0x9   : > { %1561 = sst [smem:[#allocation9_spill]] %s1262_s23  ;;  %p31_p0 = scmp.ge.s32.totalorder %s30_s27, 3 }
   0xa   : > { %s33_s28 = sadd.s32 1, %s1258_s22  ;;  %s37_s29 = sadd.s32 1, %s1262_s23 }
   0xb   : > { %p156_p1 = scmp.ne.s32.totalorder %s1238_s17, %s1234_s16  ;;  %s1584_s27 = smov (%p31_p0, %s30_s27), 0 }
   0xc   : > { %1562 = sst [smem:[#allocation10_spill]] %s1584_s27  ;;  %s1586_s28 = smov (!%p31_p0, %s33_s28), %s1258_s22 }
   0xd   : > { %p157_p2 = scmp.eq.s32.totalorder %s864_s25, 95  ;;  %p162_p3 = scmp.ne.s32.totalorder %s1234_s16, %s1230_s15 }
   0xe   : > { %p35_p4 = scmp.ge.s32.totalorder %s1586_s28, 16  ;;  %p163_p5 = scmp.eq.s32.totalorder %s865_s26, 95 }
   0xf   : > { %p1359_p6 = por %p157_p2, %p156_p1  ;;  %p868_p8 = scmp.ge.s32.totalorder %s1266_s24, 1 }
  0x10   : > { %s1588_s28 = smov (%p35_p4, %s1586_s28), 0  ;;  %s1590_s29 = smov (!%p35_p4, %s37_s29), %s1262_s23 }
  0x11   : > { %1564 = sst [smem:[#allocation11_spill]] %s1588_s28  ;;  %p1366_p7 = por %p163_p5, %p162_p3 }
  0x12   : > { %p39_p9 = scmp.ge.s32.totalorder %s1590_s29, 2  ;;  %p201_p10 = scmp.lt.s32.totalorder %s1266_s24, 97 }
  0x13   : > { %s1565_s5 = scalar_select %p1366_p7, 1, 0 }
  0x14   : > { %s142_s6 = ssub.s32 %s1258_s22, %s1588_s28  ;;  %s1592_s29 = smov (%p39_p9, %s1590_s29), 0 }
  0x15   : > { %1566 = sst [smem:[#allocation12_spill]] %s1565_s5  ;;  %p202_p11 = pnand %p868_p8, %p201_p10 }
  0x16   : > { %1567 = sst [smem:[#allocation13_spill]] %s1592_s29  ;;  %s141_s7 = ssub.s32 %s1262_s23, %s1592_s29 }
  0x17   : > { %s143_s8 = sor.u32 %s142_s6, %s141_s7  ;;  %s146_s9 = sadd.s32 1, %s1238_s17 }
  0x18   : > { %p144_p12 = scmp.eq.s32.totalorder %s143_s8, 0  ;;  %205 = sbr.rel (%p202_p11) target bundleno = 363 (0x16b), region = 32 }
  0x19   : > { %s1555_s11 = sand.u32 (!%p202_p11), 1, %s1234_s16   ;;  %s241_s12 = sadd.s32 (!%p202_p11), %s1242_s18, %s1246_s19 }
  0x1a   : > { %s1380_s10 = scalar_select %p144_p12, %s1238_s17, %s146_s9  }
  0x1b   : > { %s869_s13 = sshll.u32 (!%p202_p11), %s1555_s11, 1  ;;  %p242_p13 = scmp.lt.s32.totalorder (!%p202_p11), %s1250_s20, 1 }
  0x1c   : > { %1568 = sst [smem:[#allocation14_spill]] %s1380_s10  ;;  %p244_p0 = scmp.lt.s32.totalorder (!%p202_p11), %s241_s12, 17 }
  0x1d   : > { %s243_s14 = scalar_select %p242_p13, %s1250_s20, 1 }
  0x1e   : > { %s1594_s12 = smov (!%p244_p0, %s241_s12), 17  ;;  %p254_p1 = scmp.lt.s32.totalorder %s1246_s19, 15 }
  0x1f   : > { %s1039_s25 = smul.u32 54, %s243_s14  ;;  %s872_s6 = sshll.u32 %s243_s14, 5 }
  0x20   : > { %s1038_s26 = smul.u32 3, %s1594_s12  ;;  %s1401_s5 = scalar_lea.vmem [#allocation3], %s869_s13 }
  0x21   : > { %s255_s7 = scalar_select %p254_p1, %s1246_s19, 15 }
  0x22   : > { %s248_s8 = sadd.s32 %s1039_s25, %s1038_s26  ;;  %p874_p2 = scmp.ne.s32.totalorder %s1242_s18, 0 }
  0x23   : > { %s870_s9 = sshll.u32 %s248_s8, 2  ;;  %s871_s29 = sshll.u32 %s255_s7, 1 }
  0x24   : > { %s1394_s23 = scalar_lea.vmem %s1545_s0, %s870_s9  ;;  %s258_s22 = sadd.s32 %s872_s6, %s871_s29 }
  0x25   : > { %s873_s21 = sshll.u32 %s258_s22, 2  ;;  %265 = sbr.rel (%p874_p2) target bundleno = 44 (0x2c), region = 36 }
  0x26   : > { %s1399_s17 = scalar_lea.vmem %s1548_s3, %s873_s21 }
  0x2a   : > { %vm266_vm0 = vcmask 523264   ;;  %v1268_v0 = vmov 0.0  }
  0x2b   : > { %267 = vst.msk [vmem:[#allocation2] sm:$0xff] %vm266_vm0, %v1268_v0  ;;  %268 = vst.msk [vmem:[#allocation2 + $0x8] sm:$0xff] %vm266_vm0, %v1268_v0 }
  0x2c PF: > { %s948_s27 = smul.u32 192, %s1242_s18  ;;  %v1269_v1 = vmov 0.0   ;;  %vm1270_vm1 = vmmov 0   ;;  %v390_v9 = vld [vmem:[%s1394_s23] sm:$0xf]  ;;  %vm550_vm3 = vcmask 1046528  }
  0x2d   : > { %978 = vmatprep.subr.bf16.mxu0 %v1269_v1  ;;  %998 = vmatprep.subr.bf16.mxu1 %v1269_v1  ;;  %v1432_v11 = vld [vmem:[%s1394_s23 + $0x4] sm:$0xf]  ;;  %v1440_v15 = vld [vmem:[%s1394_s23 + $0x8] ss:$0 sps:$4 sm:$0x11]   ;;  %vm646_vm4 = vcmask 523264  }
  0x2e   : > { %s1410_s28 = scalar_lea.vmem %s1546_s1, %s948_s27  ;;  %994 = vmatprep.mubr.msk.bf16.mxu0 %vm1270_vm1, %v1269_v1  ;;  %1014 = vmatprep.mubr.msk.bf16.mxu1 %vm1270_vm1, %v1269_v1  ;;  %v903_v14 = vcombine.low %v390_v9, %v1432_v11  ;;  %v430_v21 = vshll.u32 %v1440_v15, 16  ;;  %vm421_vm2 = vsmask.f32 7424  ;;  %v1146_v28 = vld [vmem:[%s1394_s23] sm:$0xff]   ;;  %v552_v41 = vrot.slane %v1440_v15, 1  ;;  %p939_p3 = scmp.ne.s32.totalorder %s1242_s18, 2 }
  0x2f   : > { %v1130_v2 = vld [vmem:[%s1410_s28 + $0x38] sm:$0xff]   ;;  %v1132_v4 = vld [vmem:[%s1410_s28 + $0x30] sm:$0xff]   ;;  %v1134_v6 = vld [vmem:[%s1410_s28 + $0x28] sm:$0xff]  }
  0x30   : > { %v1131_v3 = vld [vmem:[%s1410_s28 + $0x78] sm:$0xff]   ;;  %979 = vmatpush3.bf16.msra.mxu0 %v1130_v2  ;;  %v1133_v5 = vld [vmem:[%s1410_s28 + $0x70] sm:$0xff]   ;;  %v1135_v7 = vld [vmem:[%s1410_s28 + $0x68] sm:$0xff]   ;;  %v425_v18 = vshll.u32 %v903_v14, 16  ;;  %v423_v19 = vshrl.u32 %v903_v14, 16  ;;  %v432_v27 = vrot.slane %v430_v21, 1 }
  0x31   : > { %999 = vmatpush3.bf16.msra.mxu1 %v1131_v3  ;;  %980 = vmatprep.subr.bf16.mxu0 %v1269_v1  ;;  %v1136_v8 = vld [vmem:[%s1410_s28 + $0x20] sm:$0xff]   ;;  %v1138_v12 = vld [vmem:[%s1410_s28 + $0x18] sm:$0xff]   ;;  %v1140_v16 = vld [vmem:[%s1410_s28 + $0x10] sm:$0xff]  }
  0x32   : > { %1000 = vmatprep.subr.bf16.mxu1 %v1269_v1  ;;  %v1137_v10 = vld [vmem:[%s1410_s28 + $0x60] sm:$0xff]   ;;  %v1139_v13 = vld [vmem:[%s1410_s28 + $0x58] sm:$0xff]   ;;  %v1141_v17 = vld [vmem:[%s1410_s28 + $0x50] sm:$0xff]   ;;  %v427_v23 = vrot.slane %v425_v18, 1 }
  0x33   : > { %v1142_v20 = vld [vmem:[%s1410_s28 + $0x8] sm:$0xff]   ;;  %v1144_v24 = vld [vmem:[%s1410_s28] sm:$0xff]   ;;  %v1147_v29 = vld [vmem:[%s1410_s28 + $0xb8] sm:$0xff]  }
  0x34   : > { %981 = vmatpush3.bf16.msra.mxu0 %v1132_v4  ;;  %v1143_v22 = vld [vmem:[%s1410_s28 + $0x48] sm:$0xff]   ;;  %v1145_v25 = vld [vmem:[%s1410_s28 + $0x40] sm:$0xff]   ;;  %v428_v26 = vor.u32 %v427_v23, %v423_v19  ;;  %v1150_v31 = vld [vmem:[%s1410_s28 + $0xb0] sm:$0xff]  }
  0x35   : > { %1001 = vmatpush3.bf16.msra.mxu1 %v1133_v5  ;;  %982 = vmatprep.subr.bf16.mxu0 %v1269_v1  ;;  %v1151_v32 = vld [vmem:[%s1410_s28 + $0xa8] sm:$0xff]   ;;  %v1152_v33 = vld [vmem:[%s1410_s28 + $0xa0] sm:$0xff]   ;;  %v1153_v34 = vld [vmem:[%s1410_s28 + $0x98] sm:$0xff]  }
  0x36   : > { %1002 = vmatprep.subr.bf16.mxu1 %v1269_v1  ;;  %v433_v30 = vsel %vm421_vm2, %v428_v26, %v432_v27  ;;  %v1154_v35 = vld [vmem:[%s1410_s28 + $0x90] sm:$0xff]   ;;  %v526_v36 = vld [vmem:[%s1394_s23] sm:$0xe]  ;;  %v1155_v37 = vld [vmem:[%s1410_s28 + $0x88] sm:$0xff]  }
  0x37   : > { %v930_v38 = vcombine.low %v526_v36, %v1432_v11  ;;  %v1156_v39 = vld [vmem:[%s1410_s28 + $0x80] sm:$0xff]   ;;  %v270_v53 = vld [vmem:[#allocation2 + $0x8] sm:$0xff] }
  0x38   : > { %983 = vmatpush3.bf16.msra.mxu0 %v1134_v6  ;;  %v269_v51 = vld [vmem:[#allocation2] sm:$0xff] }
  0x39   : > { %1003 = vmatpush3.bf16.msra.mxu1 %v1135_v7  ;;  %984 = vmatprep.subr.bf16.mxu0 %v1269_v1  ;;  %v551_v40 = vrot.slane %v930_v38, 1 }
  0x3a   : > { %1004 = vmatprep.subr.bf16.mxu1 %v1269_v1 }
  0x3b   : > { %v553_v42 = vsel %vm550_vm3, %v551_v40, %v552_v41 }
  0x3c   : > { %985 = vmatpush3.bf16.msra.mxu0 %v1136_v8 }
  0x3d   : > { %1005 = vmatpush3.bf16.msra.mxu1 %v1137_v10  ;;  %986 = vmatprep.subr.bf16.mxu0 %v1269_v1 }
  0x3e   : > { %1006 = vmatprep.subr.bf16.mxu1 %v1269_v1 }
  0x40   : > { %987 = vmatpush3.bf16.msra.mxu0 %v1138_v12 }
  0x41   : > { %1007 = vmatpush3.bf16.msra.mxu1 %v1139_v13  ;;  %988 = vmatprep.subr.bf16.mxu0 %v1269_v1 }
  0x42   : > { %1008 = vmatprep.subr.bf16.mxu1 %v1269_v1 }
  0x44   : > { %989 = vmatpush3.bf16.msra.mxu0 %v1140_v16 }
  0x45   : > { %1009 = vmatpush3.bf16.msra.mxu1 %v1141_v17  ;;  %990 = vmatprep.subr.bf16.mxu0 %v1269_v1 }
  0x46   : > { %1010 = vmatprep.subr.bf16.mxu1 %v1269_v1 }
  0x48   : > { %991 = vmatpush3.bf16.msra.mxu0 %v1142_v20 }
  0x49   : > { %1011 = vmatpush3.bf16.msra.mxu1 %v1143_v22  ;;  %992 = vmatprep.subr.bf16.mxu0 %v1269_v1 }
  0x4a   : > { %1012 = vmatprep.subr.bf16.mxu1 %v1269_v1 }
  0x4c   : > { %993 = vmatpush3.bf16.msra.mxu0 %v1144_v24 }
  0x4d   : > { %1013 = vmatpush3.bf16.msra.mxu1 %v1145_v25  ;;  %1018 = vmatprep.subr.bf16.mxu0 %v1269_v1 }
  0x4f   : > { %995 = vmatmul.mubr.bf16.vlgmr.msra.gmra.mxu0 %v1146_v28 }
  0x50   : > { %1019 = vmatpush3.bf16.msra.mxu0 %v1147_v29  ;;  %1015 = vmatmul.mubr.bf16.vlgmr.msra.gmra.mxu1 %v433_v30 }
  0x51   : > { %1020 = vmatprep.subr.bf16.mxu0 %v1269_v1  ;;  %1034 = vmatprep.mubr.msk.bf16.mxu0 %vm1270_vm1, %v1269_v1 }
  0x54   : > { %1021 = vmatpush3.bf16.msra.mxu0 %v1150_v31 }
  0x55   : > { %1022 = vmatprep.subr.bf16.mxu0 %v1269_v1 }
  0x58   : > { %1023 = vmatpush3.bf16.msra.mxu0 %v1151_v32 }
  0x59   : > { %1024 = vmatprep.subr.bf16.mxu0 %v1269_v1 }
  0x5c   : > { %1025 = vmatpush3.bf16.msra.mxu0 %v1152_v33 }
  0x5d   : > { %1026 = vmatprep.subr.bf16.mxu0 %v1269_v1 }
  0x60   : > { %1027 = vmatpush3.bf16.msra.mxu0 %v1153_v34 }
  0x61   : > { %1028 = vmatprep.subr.bf16.mxu0 %v1269_v1 }
  0x64   : > { %1029 = vmatpush3.bf16.msra.mxu0 %v1154_v35 }
  0x65   : > { %1030 = vmatprep.subr.bf16.mxu0 %v1269_v1 }
  0x68   : > { %1031 = vmatpush3.bf16.msra.mxu0 %v1155_v37 }
  0x69   : > { %1032 = vmatprep.subr.bf16.mxu0 %v1269_v1 }
  0x6c   : > { %1033 = vmatpush3.bf16.msra.mxu0 %v1156_v39 }
  0x6f   : > { %1035 = vmatmul.mubr.bf16.vlgmr.msra.gmra.mxu0 %v553_v42 }
 0x10f   : > { %v381_v43 = vpop.f32.mrf.mxu0 }
 0x110   : > { %v517_v44 = vpop.f32.mrf.mxu1  ;;  %v388_v52 = vadd.f32 %v381_v43, %v269_v51 }
 0x111   : > { %v996_v45 = vpop.f32.mrf.mxu0 }
 0x112   : > { %v1016_v46 = vpop.f32.mrf.mxu1  ;;  %v524_v54 = vadd.f32 %v517_v44, %v388_v52 }
 0x113   : > { %v384_v47 = vpop.f32.mrf.mxu0 }
 0x114   : > { %v520_v48 = vpop.f32.mrf.mxu1  ;;  %v389_v55 = vadd.f32 %v384_v47, %v270_v53 }
 0x115   : > { %v997_v49 = vpop.f32.mrf.mxu0 }
 0x116   : > { %v1017_v50 = vpop.f32.mrf.mxu1  ;;  %v525_v59 = vadd.f32 %v520_v48, %v389_v55 }
 0x12f   : > { %v637_v56 = vpop.f32.mrf.mxu0 }
 0x130   : > { %v644_v57 = vadd.f32 %v637_v56, %v524_v54 }
 0x131   : > { %v1036_v58 = vpop.f32.mrf.mxu0 }
 0x132   : > { %647 = vst.msk [vmem:[#allocation2] sm:$0xff] %vm646_vm4, %v644_v57  ;;  %652 = sbr.rel (%p939_p3) target bundleno = 338 (0x152), region = 40 }
 0x133   : > { %v640_v60 = vpop.f32.mrf.mxu0 }
 0x134   : > { %v645_v61 = vadd.f32 %v640_v60, %v525_v59 }
 0x135   : > { %v1037_v62 = vpop.f32.mrf.mxu0 }
 0x136   : > { %648 = vst.msk [vmem:[#allocation2 + $0x8] sm:$0xff] %vm646_vm4, %v645_v61 }
 0x137   : > { %v940_v1 = vld [vmem:[%s1547_s2] ss:$0 sm:$0xff]  ;;  %vm695_vm5 = vcmask 519168   ;;  %vm673_vm6 = vcmask 516096  }
 0x139   : > { %v653_v63 = vld [vmem:[#allocation2] sm:$0xff] }
 0x13a   : > { %v662_v2 = vadd.f32 %v940_v1, %v653_v63 }
 0x13c   : > { %v664_v4 = vsel %vm646_vm4, %v662_v2, 0.0  ;;  %v675_v6 = vmul.f32 %v662_v2, %v662_v2  ;;  %v949_v9 = vpack.c.bf16 %v662_v2, %v662_v2 }
 0x13d   : > { %v654_v0 = vld [vmem:[#allocation2 + $0x8] sm:$0xff] }
 0x13e   : > { %v663_v3 = vadd.f32 %v940_v1, %v654_v0  ;;  %v677_v11 = vsel %vm646_vm4, %v675_v6, 0.0  ;;  %696 = vst.msk [vmem:[%s1399_s17] sm:$0xf] %vm695_vm5, %v949_v9 }
 0x140   : > { %v665_v5 = vsel %vm646_vm4, %v663_v3, 0.0  ;;  %v676_v7 = vmul.f32 %v663_v3, %v663_v3  ;;  %v950_v10 = vpack.c.bf16 %v663_v3, %v663_v3 }
 0x141   : > { %v666_v8 = vadd.f32 %v665_v5, %v664_v4 }
 0x142   : > { %v678_v12 = vsel %vm646_vm4, %v676_v7, 0.0  ;;  %697 = vst.msk [vmem:[%s1399_s17 + $0x4] sm:$0xf] %vm695_vm5, %v950_v10 }
 0x143   : > { %v667_v13 = vrot.slane %v666_v8, 4  ;;  %v679_v14 = vadd.f32 %v678_v12, %v677_v11 }
 0x145   : > { %v668_v15 = vadd.f32 %v667_v13, %v666_v8  ;;  %v680_v16 = vrot.slane %v679_v14, 4 }
 0x147   : > { %v669_v17 = vrot.slane %v668_v15, 2  ;;  %v681_v18 = vadd.f32 %v680_v16, %v679_v14 }
 0x149   : > { %v670_v19 = vadd.f32 %v669_v17, %v668_v15  ;;  %v682_v20 = vrot.slane %v681_v18, 2 }
 0x14b   : > { %v671_v21 = vrot.slane %v670_v19, 1  ;;  %v683_v22 = vadd.f32 %v682_v20, %v681_v18 }
 0x14d   : > { %v672_v23 = vadd.f32 %v671_v21, %v670_v19  ;;  %v684_v24 = vrot.slane %v683_v22, 1 }
 0x14f   : > { %674 = vst.msk [vmem:[%s1401_s5] sm:$0x1] %vm673_vm6, %v672_v23  ;;  %v685_v25 = vadd.f32 %v684_v24, %v683_v22 }
 0x151   : > { %686 = vst.msk [vmem:[%s1401_s5 + $0x1] sm:$0x1] %vm673_vm6, %v685_v25 }
 0x152 PF: > { %s944_s17 = sshll.u32 %s1250_s20, 4  ;;  %s726_s10 = sshll.u32 %s1401_s5, 4  ;;  %s727_s10 = int_to_ptr.vmem [resolvable:$true] %s726_s10 }
 0x153   : > { %s722_s18 = sadd.s32 %s1246_s19, %s944_s17  ;;  %s1569_s25 = sand.u32 1, %s1234_s16  }
 0x154   : > { %s945_s11 = sshll.u32 %s722_s18, 5  ;;  %s708_s26 = scalar_lea.sflag [#allocation4], %s1569_s25 }
 0x155   : > { %s724_s14 = scalar_lea.hbm %s1549_s4, %s945_s11  ;;  %s1158_s6 = scalar_lea.vmem %s727_s10, 32 }
 0x156   : > { %p1159_p4 = scmp.ne.s32.totalorder %s727_s10, %s1158_s6  ;;  %s1271_s7 = smov [#allocation3]  }
 0x157   : > { %s1162_s8 = sshll.u32 %s1271_s7, 4  ;;  %s1163_s8 = int_to_ptr.vmem [resolvable:$false] %s1162_s8 }
 0x158   : > { %p1160_p5 = pnand %p1159_p4, %p1359_p6  ;;  %s1164_s9 = scalar_lea.vmem %s1163_s8, 64 }
 0x159   : > { %p1165_p9 = scmp.lt.s32.totalorder %s727_s10, %s1163_s8  ;;  %p1166_p10 = scmp.lt.s32.totalorder %s1164_s9, %s1158_s6 }
 0x15a   : > { %p1161_p8 = pneg %p1160_p5 }
 0x15b   : > { %p1167_p11 = por %p1166_p10, %p1165_p9 }
 0x15d   : > { %p1168_p12 = pnand %p1167_p11, %p1161_p8 }
 0x15f   : > { %1171 = shalt.err (!%p1168_p12)
}
 0x160   : > { %s1172_s19 = scalar_lea.hbm %s724_s14, 32  ;;  %s1176_s27 = scalar_lea.hbm %s1549_s4, 1024 }
 0x161   : > { %p1173_p13 = scmp.ne.s32.totalorder %s724_s14, %s1172_s19  ;;  %p1177_p2 = scmp.lt.s32.totalorder %s724_s14, %s1549_s4 }
 0x162   : > { %p1178_p3 = scmp.lt.s32.totalorder %s1176_s27, %s1172_s19 }
 0x163   : > { %p1174_p0 = pnand %p1173_p13, %p1359_p6 }
 0x164   : > { %p1179_p4 = por %p1178_p3, %p1177_p2 }
 0x165   : > { %p1175_p1 = pneg %p1174_p0 }
 0x167   : > { %p1180_p5 = pnand %p1179_p4, %p1175_p1 }
 0x169   : > { %1183 = shalt.err (!%p1180_p5)
}
 0x16a   : > { %1040 = dma.vmem_to_hbm [thread:$0]  (%p1359_p6), %s727_s10, 32, %s724_s14, %s708_s26  }
 0x16b PF: > { %p1046_p8 = scmp.ge.s32.totalorder %s1266_s24, 2  ;;  %s750_s23 = sand.u32 1, %s1230_s15  }
 0x16c   : > { %s751_s29 = scalar_lea.sflag [#allocation4], %s750_s23 }
 0x16d   : > { %p1043_p9 = pnand %p1046_p8, %p1366_p7 }
 0x16f   : > { %p1044_p10 = pneg %p1043_p9 }
 0x171   : > { %1225 = dma.done.wait (%p1044_p10), %s751_s29, 32  }
 0x172   : > { %1227 = vsyncadd (%p1044_p10), %s751_s29, 4294967264  ;;  %s18_s24 = sadd.s32 1, %s1266_s24   ;;  %s1571_s17 = sld [smem:[#allocation6_spill]] }
 0x173   : > { %p15_p11 = scmp.ge.s32.totalorder %s18_s24, 98   ;;  %s1572_s18 = sld [smem:[#allocation14_spill]] }
 0x174   : > { %s1573_s30 = sld [smem:[#allocation7_spill]]  ;;  %s1579_s15 = smov %s1234_s16 }
 0x175   : > { %s1574_s19 = sld [smem:[#allocation8_spill]] }
 0x176   : > { %s1575_s20 = sld [smem:[#allocation9_spill]]  ;;  %17 = sbr.rel (!%p15_p11) target bundleno = 6 (0x6), region = 90 }
 0x177   : > { %s1576_s21 = sld [smem:[#allocation10_spill]] }
 0x178   : > { %s1577_s22 = sld [smem:[#allocation11_spill]]  ;;  %s1580_s16 = smov %s1571_s17 }
 0x179   : > { %s1578_s23 = sld [smem:[#allocation13_spill]]  ;;  %s1581_s17 = smov %s1572_s18 }
 0x17a   : > { %s1582_s18 = smov %s1573_s30 }
 0x17b   :  { %756 = vsyncpa [#allocation4], 1 }
 0x17c   :  { %758 = vsyncpa [#allocation4 + $0x1], 1 }

// kernel: generator_forward.91
= control target key start
LH: loop header
LB: loop body
LE: loop exit
PB: predicated region body
PF: predicated region fallthrough
CT: control target
= control target key end

     0   :  { %s1046_s15 = smov 0   ;;  %s1048_s16 = smov 0   ;;  %s1176_s0 = inlined_call_operand.vmem [shape: bf16[2,18,18,64], index: 0, kind: input, shape index: {}]   ;;  %s1177_s1 = inlined_call_operand.vmem [shape: bf16[9,64,64], index: 1, kind: input, shape index: {}]   ;;  %s1178_s2 = inlined_call_operand.vmem [shape: f32[1,64], index: 2, kind: input, shape index: {}]   ;;  %s1179_s3 = inlined_call_operand.vmem [shape: bf16[2,16,16,64], index: 3, kind: output, shape index: {0}]   ;;  %s1180_s4 = inlined_call_operand.vmem [shape: f32[2,16,2,64], index: 4, kind: output, shape index: {1}]  }
   0x1   :  { %s1050_s17 = smov 0   ;;  %s1052_s18 = smov 0  }
   0x2   :  { %s1054_s19 = smov 0   ;;  %s1056_s20 = smov 0  }
   0x3   :  { %s1058_s21 = smov 0  }
   0x4 LB: > { %s27_s22 = sadd.s32 1, %s1004_s18  ;;  %s30_s23 = sadd.s32 1, %s1008_s19  ;;  %s1016_s21 = sphi %s1058_s21, %s15_s21   ;;  %s1012_s20 = sphi %s1056_s20, %s1192_s20   ;;  %s1008_s19 = sphi %s1054_s19, %s1191_s19   ;;  %s1004_s18 = sphi %s1052_s18, %s1190_s18   ;;  %s1000_s17 = sphi %s1050_s17, %s1189_s17   ;;  %s996_s16 = sphi %s1048_s16, %s1188_s16   ;;  %s992_s15 = sphi %s1046_s15, %s1187_s15  }
   0x5   : > { %p28_p0 = scmp.ge.s32.totalorder %s27_s22, 3  ;;  %p778_p1 = scmp.ge.s32.totalorder %s1016_s21, 1 }
   0x6   : > { %p198_p2 = scmp.lt.s32.totalorder %s1016_s21, 97  ;;  %s34_s24 = sadd.s32 1, %s1012_s20 }
   0x7   : > { %s1194_s22 = smov (%p28_p0, %s27_s22), 0  ;;  %s1196_s23 = smov (!%p28_p0, %s30_s23), %s1008_s19 }
   0x8   : > { %1181 = sst [smem:[#allocation3_spill]] %s1194_s22  ;;  %p199_p3 = pnand %p778_p1, %p198_p2 }
   0x9   : > { %p32_p4 = scmp.ge.s32.totalorder %s1196_s23, 16  ;;  %s241_s25 = sadd.s32 (!%p199_p3), %s992_s15, %s996_s16 }
   0xa   : > { %p242_p6 = scmp.lt.s32.totalorder (!%p199_p3), %s1000_s17, 1  ;;  %p244_p7 = scmp.lt.s32.totalorder (!%p199_p3), %s241_s25, 17 }
   0xb   : > { %s1198_s23 = smov (%p32_p4, %s1196_s23), 0  ;;  %s1200_s24 = smov (!%p32_p4, %s34_s24), %s1012_s20 }
   0xc   : > { %1182 = sst [smem:[#allocation4_spill]] %s1198_s23  ;;  %p36_p5 = scmp.ge.s32.totalorder %s1200_s24, 2 }
   0xd   : > { %202 = sbr.rel (%p199_p3) target bundleno = 295 (0x127), region = 32  ;;  %p254_p8 = scmp.lt.s32.totalorder (!%p199_p3), %s996_s16, 15 }
   0xe   : > { %s1202_s24 = smov (%p36_p5, %s1200_s24), 0  ;;  %p785_p9 = scmp.ne.s32.totalorder (!%p199_p3), %s992_s15, 0 }
   0xf   : > { %1183 = sst [smem:[#allocation5_spill]] %s1202_s24 }
  0x12   : > { %s1204_s17 = smov (!%p242_p6, %s1000_s17), 1  ;;  %s1206_s25 = smov (!%p244_p7, %s241_s25), 17 }
  0x13   : > { %s886_s26 = smul.u32 54, %s1204_s17  ;;  %s781_s28 = sshll.u32 %s1204_s17, 5 }
  0x14   : > { %s885_s27 = smul.u32 3, %s1206_s25  ;;  %s1208_s16 = smov (!%p254_p8, %s996_s16), 15 }
  0x15   : > { %s783_s30 = sshll.u32 %s1204_s17, 4  ;;  %s780_s6 = sshll.u32 %s1208_s16, 1 }
  0x16   : > { %s248_s29 = sadd.s32 %s886_s26, %s885_s27  ;;  %s258_s10 = sadd.s32 %s781_s28, %s780_s6 }
  0x17   : > { %s779_s5 = sshll.u32 %s248_s29, 2  ;;  %s782_s11 = sshll.u32 %s258_s10, 2 }
  0x18   : > { %s1099_s9 = scalar_lea.vmem %s1176_s0, %s779_s5  ;;  %s266_s12 = sadd.s32 %s783_s30, %s1208_s16 }
  0x19   : > { %s1104_s24 = scalar_lea.vmem %s1179_s3, %s782_s11  ;;  %s784_s25 = sshll.u32 %s266_s12, 1 }
  0x1a   : > { %s1109_s17 = scalar_lea.vmem %s1180_s4, %s784_s25  ;;  %273 = sbr.rel (%p785_p9) target bundleno = 33 (0x21), region = 36 }
  0x1f   : > { %vm274_vm0 = vcmask 523264   ;;  %v1018_v0 = vmov 0.0  }
  0x20   : > { %275 = vst.msk [vmem:[#allocation2] sm:$0xff] %vm274_vm0, %v1018_v0  ;;  %276 = vst.msk [vmem:[#allocation2 + $0x8] sm:$0xff] %vm274_vm0, %v1018_v0 }
  0x21 PF: > { %s831_s16 = smul.u32 96, %s992_s15  ;;  %v1019_v1 = vmov 0.0   ;;  %v369_v2 = vld [vmem:[%s1099_s9] sm:$0xf]  ;;  %vm1020_vm1 = vmmov 0   ;;  %vm322_vm3 = vcmask 523264  }
  0x22   : > { %849 = vmatprep.subr.bf16.mxu0 %v1019_v1  ;;  %861 = vmatprep.subr.bf16.mxu1 %v1019_v1  ;;  %v370_v3 = vld [vmem:[%s1099_s9 + $0x4] sm:$0xf]  ;;  %v957_v15 = vld [vmem:[%s1099_s9 + $0x8] ss:$0 sps:$4 sm:$0x11]   ;;  %vm491_vm4 = vcmask 1046528  }
  0x23   : > { %s1117_s23 = scalar_lea.vmem %s1177_s1, %s831_s16  ;;  %857 = vmatprep.mubr.msk.bf16.mxu0 %vm1020_vm1, %v1019_v1  ;;  %869 = vmatprep.mubr.msk.bf16.mxu1 %vm1020_vm1, %v1019_v1  ;;  %v803_v5 = vcombine.low %v369_v2, %v370_v3  ;;  %v401_v18 = vshll.u32 %v957_v15, 16  ;;  %vm392_vm2 = vsmask.f32 7424  ;;  %v954_v19 = vld [vmem:[%s1099_s9] sm:$0xff]   ;;  %v493_v29 = vrot.slane %v957_v15, 1  ;;  %p825_p10 = scmp.ne.s32.totalorder %s992_s15, 2 }
  0x24   : > { %v946_v4 = vld [vmem:[%s1117_s23 + $0x18] sm:$0xff]   ;;  %v948_v7 = vld [vmem:[%s1117_s23 + $0x10] sm:$0xff]   ;;  %v950_v10 = vld [vmem:[%s1117_s23 + $0x8] sm:$0xff]  }
  0x25   : > { %v947_v6 = vld [vmem:[%s1117_s23 + $0x38] sm:$0xff]   ;;  %850 = vmatpush3.bf16.msra.mxu0 %v946_v4  ;;  %v949_v8 = vld [vmem:[%s1117_s23 + $0x30] sm:$0xff]   ;;  %v396_v9 = vshll.u32 %v803_v5, 16  ;;  %v394_v11 = vshrl.u32 %v803_v5, 16  ;;  %v951_v12 = vld [vmem:[%s1117_s23 + $0x28] sm:$0xff]   ;;  %v403_v20 = vrot.slane %v401_v18, 1 }
  0x26   : > { %862 = vmatpush3.bf16.msra.mxu1 %v947_v6  ;;  %851 = vmatprep.subr.bf16.mxu0 %v1019_v1  ;;  %v952_v14 = vld [vmem:[%s1117_s23] sm:$0xff]   ;;  %v955_v21 = vld [vmem:[%s1117_s23 + $0x58] sm:$0xff]   ;;  %v958_v23 = vld [vmem:[%s1117_s23 + $0x50] sm:$0xff]  }
  0x27   : > { %863 = vmatprep.subr.bf16.mxu1 %v1019_v1  ;;  %v398_v13 = vrot.slane %v396_v9, 1  ;;  %v953_v16 = vld [vmem:[%s1117_s23 + $0x20] sm:$0xff]   ;;  %v959_v25 = vld [vmem:[%s1117_s23 + $0x48] sm:$0xff]  }
  0x28   : > { %v475_v24 = vld [vmem:[%s1099_s9] sm:$0xe]  ;;  %v278_v41 = vld [vmem:[#allocation2 + $0x8] sm:$0xff] }
  0x29   : > { %852 = vmatpush3.bf16.msra.mxu0 %v948_v7  ;;  %v399_v17 = vor.u32 %v398_v13, %v394_v11  ;;  %v819_v26 = vcombine.low %v475_v24, %v370_v3  ;;  %v960_v27 = vld [vmem:[%s1117_s23 + $0x40] sm:$0xff]  }
  0x2a   : > { %864 = vmatpush3.bf16.msra.mxu1 %v949_v8  ;;  %853 = vmatprep.subr.bf16.mxu0 %v1019_v1  ;;  %v277_v39 = vld [vmem:[#allocation2] sm:$0xff] }
  0x2b   : > { %865 = vmatprep.subr.bf16.mxu1 %v1019_v1  ;;  %v404_v22 = vsel %vm392_vm2, %v399_v17, %v403_v20  ;;  %v492_v28 = vrot.slane %v819_v26, 1 }
  0x2d   : > { %854 = vmatpush3.bf16.msra.mxu0 %v950_v10  ;;  %v494_v30 = vsel %vm491_vm4, %v492_v28, %v493_v29 }
  0x2e   : > { %866 = vmatpush3.bf16.msra.mxu1 %v951_v12  ;;  %855 = vmatprep.subr.bf16.mxu0 %v1019_v1 }
  0x2f   : > { %867 = vmatprep.subr.bf16.mxu1 %v1019_v1 }
  0x31   : > { %856 = vmatpush3.bf16.msra.mxu0 %v952_v14 }
  0x32   : > { %868 = vmatpush3.bf16.msra.mxu1 %v953_v16  ;;  %873 = vmatprep.subr.bf16.mxu0 %v1019_v1 }
  0x34   : > { %858 = vmatmul.mubr.msk.bf16.vlgmr.msra.gmra.mxu0 %vm322_vm3, %v954_v19 }
  0x35   : > { %874 = vmatpush3.bf16.msra.mxu0 %v955_v21  ;;  %870 = vmatmul.mubr.msk.bf16.vlgmr.msra.gmra.mxu1 %vm322_vm3, %v404_v22 }
  0x36   : > { %875 = vmatprep.subr.bf16.mxu0 %v1019_v1  ;;  %881 = vmatprep.mubr.msk.bf16.mxu0 %vm1020_vm1, %v1019_v1 }
  0x39   : > { %876 = vmatpush3.bf16.msra.mxu0 %v958_v23 }
  0x3a   : > { %877 = vmatprep.subr.bf16.mxu0 %v1019_v1 }
  0x3d   : > { %878 = vmatpush3.bf16.msra.mxu0 %v959_v25 }
  0x3e   : > { %879 = vmatprep.subr.bf16.mxu0 %v1019_v1 }
  0x41   : > { %880 = vmatpush3.bf16.msra.mxu0 %v960_v27 }
  0x44   : > { %882 = vmatmul.mubr.msk.bf16.vlgmr.msra.gmra.mxu0 %vm322_vm3, %v494_v30 }
  0xf4   : > { %v360_v31 = vpop.f32.mrf.mxu0 }
  0xf5   : > { %v466_v32 = vpop.f32.mrf.mxu1  ;;  %v367_v40 = vadd.f32 %v360_v31, %v277_v39 }
  0xf6   : > { %v859_v33 = vpop.f32.mrf.mxu0 }
  0xf7   : > { %v871_v34 = vpop.f32.mrf.mxu1  ;;  %v473_v42 = vadd.f32 %v466_v32, %v367_v40 }
  0xf8   : > { %v363_v35 = vpop.f32.mrf.mxu0 }
  0xf9   : > { %v469_v36 = vpop.f32.mrf.mxu1  ;;  %v368_v43 = vadd.f32 %v363_v35, %v278_v41 }
  0xfa   : > { %v860_v37 = vpop.f32.mrf.mxu0 }
  0xfb   : > { %v872_v38 = vpop.f32.mrf.mxu1  ;;  %v474_v47 = vadd.f32 %v469_v36, %v368_v43 }
 0x104   : > { %v556_v44 = vpop.f32.mrf.mxu0 }
 0x105   : > { %v563_v45 = vadd.f32 %v556_v44, %v473_v42 }
 0x106   : > { %v883_v46 = vpop.f32.mrf.mxu0 }
 0x107   : > { %565 = vst.msk [vmem:[#allocation2] sm:$0xff] %vm322_vm3, %v563_v45  ;;  %570 = sbr.rel (%p825_p10) target bundleno = 295 (0x127), region = 40 }
 0x108   : > { %v559_v48 = vpop.f32.mrf.mxu0 }
 0x109   : > { %v564_v49 = vadd.f32 %v559_v48, %v474_v47 }
 0x10a   : > { %v884_v50 = vpop.f32.mrf.mxu0 }
 0x10b   : > { %566 = vst.msk [vmem:[#allocation2 + $0x8] sm:$0xff] %vm322_vm3, %v564_v49 }
 0x10c   : > { %v826_v53 = vld [vmem:[%s1178_s2] ss:$0 sm:$0xff]  ;;  %vm613_vm5 = vcmask 519168   ;;  %vm591_vm6 = vcmask 516096  }
 0x10e   : > { %v571_v51 = vld [vmem:[#allocation2] sm:$0xff] }
 0x10f   : > { %v580_v54 = vadd.f32 %v826_v53, %v571_v51 }
 0x111   : > { %v582_v56 = vsel %vm322_vm3, %v580_v54, 0.0  ;;  %v593_v58 = vmul.f32 %v580_v54, %v580_v54  ;;  %v832_v61 = vpack.c.bf16 %v580_v54, %v580_v54 }
 0x112   : > { %v572_v52 = vld [vmem:[#allocation2 + $0x8] sm:$0xff] }
 0x113   : > { %v581_v55 = vadd.f32 %v826_v53, %v572_v52  ;;  %v595_v63 = vsel %vm322_vm3, %v593_v58, 0.0  ;;  %614 = vst.msk [vmem:[%s1104_s24] sm:$0xf] %vm613_vm5, %v832_v61 }
 0x115   : > { %v583_v57 = vsel %vm322_vm3, %v581_v55, 0.0  ;;  %v594_v59 = vmul.f32 %v581_v55, %v581_v55  ;;  %v833_v62 = vpack.c.bf16 %v581_v55, %v581_v55 }
 0x116   : > { %v584_v60 = vadd.f32 %v583_v57, %v582_v56 }
 0x117   : > { %v596_v0 = vsel %vm322_vm3, %v594_v59, 0.0  ;;  %615 = vst.msk [vmem:[%s1104_s24 + $0x4] sm:$0xf] %vm613_vm5, %v833_v62 }
 0x118   : > { %v585_v1 = vrot.slane %v584_v60, 4  ;;  %v597_v2 = vadd.f32 %v596_v0, %v595_v63 }
 0x11a   : > { %v586_v3 = vadd.f32 %v585_v1, %v584_v60  ;;  %v598_v4 = vrot.slane %v597_v2, 4 }
 0x11c   : > { %v587_v5 = vrot.slane %v586_v3, 2  ;;  %v599_v6 = vadd.f32 %v598_v4, %v597_v2 }
 0x11e   : > { %v588_v7 = vadd.f32 %v587_v5, %v586_v3  ;;  %v600_v8 = vrot.slane %v599_v6, 2 }
 0x120   : > { %v589_v9 = vrot.slane %v588_v7, 1  ;;  %v601_v10 = vadd.f32 %v600_v8, %v599_v6 }
 0x122   : > { %v590_v11 = vadd.f32 %v589_v9, %v588_v7  ;;  %v602_v12 = vrot.slane %v601_v10, 1 }
 0x124   : > { %592 = vst.msk [vmem:[%s1109_s17] sm:$0x1] %vm591_vm6, %v590_v11  ;;  %v603_v13 = vadd.f32 %v602_v12, %v601_v10 }
 0x126   : > { %604 = vst.msk [vmem:[%s1109_s17 + $0x1] sm:$0x1] %vm591_vm6, %v603_v13 }
 0x127 PF: > { %s15_s21 = sadd.s32 1, %s1016_s21   ;;  %s1184_s24 = sld [smem:[#allocation3_spill]] }
 0x128   : > { %p12_p11 = scmp.ge.s32.totalorder %s15_s21, 98   ;;  %s1185_s29 = sld [smem:[#allocation4_spill]] }
 0x129   : > { %s1186_s30 = sld [smem:[#allocation5_spill]]  ;;  %s1187_s15 = smov %s1004_s18 }
 0x12a   : > { %s1188_s16 = smov %s1008_s19  ;;  %s1189_s17 = smov %s1012_s20 }
 0x12b   :  { %14 = sbr.rel (!%p12_p11) target bundleno = 4 (0x4), region = 85 }
 0x12d   : > { %s1190_s18 = smov %s1184_s24 }
 0x12e   : > { %s1191_s19 = smov %s1185_s29 }
 0x12f   : > { %s1192_s20 = smov %s1186_s30 }

// kernel: generator_forward.93
= control target key start
LH: loop header
LB: loop body
LE: loop exit
PB: predicated region body
PF: predicated region fallthrough
CT: control target
= control target key end

     0   :  { %10 = vsyncpa [#allocation4], 0  ;;  %s1970_s0 = inlined_call_operand.vmem [shape: bf16[2,22,22,64], index: 0, kind: input, shape index: {}]   ;;  %s1971_s1 = inlined_call_operand.vmem [shape: bf16[49,64,128], index: 1, kind: input, shape index: {}]   ;;  %s1972_s2 = inlined_call_operand.vmem [shape: f32[1,128], index: 2, kind: input, shape index: {}]   ;;  %s1973_s3 = inlined_call_operand.vmem [shape: f32[2,16,16,128], index: 3, kind: output, shape index: {0}]   ;;  %s1974_s4 = inlined_call_operand.hbm [shape: f32[2,16,2,128], index: 4, kind: output, shape index: {1}]  }
   0x1   :  { %12 = vsyncpa [#allocation4 + $0x1], 0  ;;  %s1689_s15 = smov 0   ;;  %s1691_s16 = smov 0  }
   0x2   :  { %s1693_s17 = smov 0   ;;  %s1695_s18 = smov 0  }
   0x3   :  { %s1697_s19 = smov 0   ;;  %s1699_s20 = smov 0  }
   0x4   :  { %s1701_s21 = smov 0   ;;  %s1703_s22 = smov 0  }
   0x5   :  { %s1705_s23 = smov 0   ;;  %s1707_s24 = smov 0  }
   0x6 LB: > { %1983 = sst [smem:[#allocation6_spill]] %s1630_s17  ;;  %s1175_s25 = sadd.s32 4294967295, %s1658_s24   ;;  %s1658_s24 = sphi %s1707_s24, %s18_s24   ;;  %s1654_s23 = sphi %s1705_s23, %s2003_s23   ;;  %s1650_s22 = sphi %s1703_s22, %s2002_s22   ;;  %s1646_s21 = sphi %s1701_s21, %s2001_s21   ;;  %s1642_s20 = sphi %s1699_s20, %s2000_s20   ;;  %s1638_s19 = sphi %s1697_s19, %s1999_s19   ;;  %s1634_s18 = sphi %s1695_s18, %s2006_s18   ;;  %s1630_s17 = sphi %s1693_s17, %s1997_s17   ;;  %s1626_s16 = sphi %s1691_s16, %s2005_s16   ;;  %s1622_s15 = sphi %s1689_s15, %s2004_s15  }
   0x7   : > { %1984 = sst [smem:[#allocation7_spill]] %s1646_s21  ;;  %s1176_s26 = sadd.s32 4294967294, %s1658_s24  }
   0x8   : > { %1985 = sst [smem:[#allocation8_spill]] %s1650_s22  ;;  %s30_s27 = sadd.s32 1, %s1646_s21 }
   0x9   : > { %1986 = sst [smem:[#allocation9_spill]] %s1654_s23  ;;  %p31_p0 = scmp.ge.s32.totalorder %s30_s27, 7 }
   0xa   : > { %s33_s28 = sadd.s32 1, %s1650_s22  ;;  %s37_s29 = sadd.s32 1, %s1654_s23 }
   0xb   : > { %p156_p1 = scmp.ne.s32.totalorder %s1630_s17, %s1626_s16  ;;  %s2008_s27 = smov (%p31_p0, %s30_s27), 0 }
   0xc   : > { %1987 = sst [smem:[#allocation10_spill]] %s2008_s27  ;;  %s2010_s28 = smov (!%p31_p0, %s33_s28), %s1650_s22 }
   0xd   : > { %p157_p2 = scmp.eq.s32.totalorder %s1175_s25, 223  ;;  %p162_p3 = scmp.ne.s32.totalorder %s1626_s16, %s1622_s15 }
   0xe   : > { %p35_p4 = scmp.ge.s32.totalorder %s2010_s28, 16  ;;  %p163_p5 = scmp.eq.s32.totalorder %s1176_s26, 223 }
   0xf   : > { %p1751_p6 = por %p157_p2, %p156_p1  ;;  %p1179_p8 = scmp.ge.s32.totalorder %s1658_s24, 1 }
  0x10   : > { %s2012_s28 = smov (%p35_p4, %s2010_s28), 0  ;;  %s2014_s29 = smov (!%p35_p4, %s37_s29), %s1654_s23 }
  0x11   : > { %1989 = sst [smem:[#allocation11_spill]] %s2012_s28  ;;  %p1758_p7 = por %p163_p5, %p162_p3 }
  0x12   : > { %p39_p9 = scmp.ge.s32.totalorder %s2014_s29, 2  ;;  %p201_p10 = scmp.lt.s32.totalorder %s1658_s24, 225 }
  0x13   : > { %s1990_s5 = scalar_select %p1758_p7, 1, 0 }
  0x14   : > { %s142_s6 = ssub.s32 %s1650_s22, %s2012_s28  ;;  %s2016_s29 = smov (%p39_p9, %s2014_s29), 0 }
  0x15   : > { %1991 = sst [smem:[#allocation12_spill]] %s1990_s5  ;;  %p202_p11 = pnand %p1179_p8, %p201_p10 }
  0x16   : > { %1992 = sst [smem:[#allocation13_spill]] %s2016_s29  ;;  %s141_s7 = ssub.s32 %s1654_s23, %s2016_s29 }
  0x17   : > { %s143_s8 = sor.u32 %s142_s6, %s141_s7  ;;  %s146_s9 = sadd.s32 1, %s1630_s17 }
  0x18   : > { %p144_p12 = scmp.eq.s32.totalorder %s143_s8, 0  ;;  %205 = sbr.rel (%p202_p11) target bundleno = 378 (0x17a), region = 32 }
  0x19   : > { %s1980_s11 = sand.u32 (!%p202_p11), 1, %s1626_s16   ;;  %s241_s12 = sadd.s32 (!%p202_p11), %s1634_s18, %s1638_s19 }
  0x1a   : > { %s1772_s10 = scalar_select %p144_p12, %s1630_s17, %s146_s9  }
  0x1b   : > { %s1180_s13 = sshll.u32 (!%p202_p11), %s1980_s11, 1  ;;  %p242_p13 = scmp.lt.s32.totalorder (!%p202_p11), %s1642_s20, 1 }
  0x1c   : > { %1993 = sst [smem:[#allocation14_spill]] %s1772_s10  ;;  %p244_p0 = scmp.lt.s32.totalorder (!%p202_p11), %s241_s12, 21 }
  0x1d   : > { %s243_s14 = scalar_select %p242_p13, %s1642_s20, 1 }
  0x1e   : > { %s2018_s12 = smov (!%p244_p0, %s241_s12), 21  ;;  %p254_p1 = scmp.lt.s32.totalorder %s1638_s19, 15 }
  0x1f   : > { %s1415_s25 = smul.u32 66, %s243_s14  ;;  %s1183_s6 = sshll.u32 %s243_s14, 5 }
  0x20   : > { %s1414_s26 = smul.u32 3, %s2018_s12  ;;  %s1793_s5 = scalar_lea.vmem [#allocation3], %s1180_s13 }
  0x21   : > { %s255_s7 = scalar_select %p254_p1, %s1638_s19, 15 }
  0x22   : > { %s248_s8 = sadd.s32 %s1415_s25, %s1414_s26  ;;  %p1185_p2 = scmp.ne.s32.totalorder %s1634_s18, 0 }
  0x23   : > { %s1181_s9 = sshll.u32 %s248_s8, 2  ;;  %s1182_s29 = sshll.u32 %s255_s7, 1 }
  0x24   : > { %s1786_s23 = scalar_lea.vmem %s1970_s0, %s1181_s9  ;;  %s258_s22 = sadd.s32 %s1183_s6, %s1182_s29 }
  0x25   : > { %s1184_s21 = sshll.u32 %s258_s22, 3  ;;  %265 = sbr.rel (%p1185_p2) target bundleno = 44 (0x2c), region = 36 }
  0x26   : > { %s1791_s17 = scalar_lea.vmem %s1973_s3, %s1184_s21 }
  0x2a   : > { %v1660_v0 = vmov 0.0  }
  0x2b   : > { %266 = vst [vmem:[#allocation2] sm:$0xff] %v1660_v0  ;;  %267 = vst [vmem:[#allocation2 + $0x8] sm:$0xff] %v1660_v0 }
  0x2c PF: > { %s1294_s27 = smul.u32 224, %s1634_s18  ;;  %v1661_v1 = vmov 0.0   ;;  %v360_v2 = vld [vmem:[%s1786_s23] sm:$0xf]  ;;  %vm1662_vm0 = vmmov 0   ;;  %vm313_vm2 = vcmask 523264  }
  0x2d   : > { %1330 = vmatprep.subr.bf16.mxu0 %v1661_v1  ;;  %1342 = vmatprep.subr.bf16.mxu1 %v1661_v1  ;;  %v1810_v3 = vld [vmem:[%s1786_s23 + $0x4] sm:$0xf]  ;;  %v1825_v15 = vld [vmem:[%s1786_s23 + $0x8] ss:$0 sps:$4 sm:$0x11]   ;;  %vm482_vm3 = vcmask 1046528  }
  0x2e   : > { %s1803_s28 = scalar_lea.vmem %s1971_s1, %s1294_s27  ;;  %1338 = vmatprep.mubr.msk.bf16.mxu0 %vm1662_vm0, %v1661_v1  ;;  %1350 = vmatprep.mubr.msk.bf16.mxu1 %vm1662_vm0, %v1661_v1  ;;  %v1203_v5 = vcombine.low %v360_v2, %v1810_v3  ;;  %v392_v18 = vshll.u32 %v1825_v15, 16  ;;  %vm383_vm1 = vsmask.f32 7424  ;;  %v1514_v19 = vld [vmem:[%s1786_s23] sm:$0xff]   ;;  %v484_v41 = vrot.slane %v1825_v15, 1  ;;  %p1285_p3 = scmp.ne.s32.totalorder %s1634_s18, 6 }
  0x2f   : > { %v1506_v4 = vld [vmem:[%s1803_s28 + $0x18] sm:$0xff]   ;;  %v1508_v7 = vld [vmem:[%s1803_s28 + $0x10] sm:$0xff]   ;;  %v1510_v10 = vld [vmem:[%s1803_s28 + $0x8] sm:$0xff]   ;;  %vm572_vm4 = vsmask.f32 6400  ;;  %vm676_vm5 = vcmask 1045504  }
  0x30   : > { %v1507_v6 = vld [vmem:[%s1803_s28 + $0x38] sm:$0xff]   ;;  %1331 = vmatpush3.bf16.msra.mxu0 %v1506_v4  ;;  %v1509_v8 = vld [vmem:[%s1803_s28 + $0x30] sm:$0xff]   ;;  %v387_v9 = vshll.u32 %v1203_v5, 16  ;;  %v385_v11 = vshrl.u32 %v1203_v5, 16  ;;  %v1511_v12 = vld [vmem:[%s1803_s28 + $0x28] sm:$0xff]   ;;  %v394_v20 = vrot.slane %v392_v18, 1 }
  0x31   : > { %1343 = vmatpush3.bf16.msra.mxu1 %v1507_v6  ;;  %1332 = vmatprep.subr.bf16.mxu0 %v1661_v1  ;;  %v1512_v14 = vld [vmem:[%s1803_s28] sm:$0xff]   ;;  %v1515_v21 = vld [vmem:[%s1803_s28 + $0x58] sm:$0xff]   ;;  %v1519_v26 = vld [vmem:[%s1803_s28 + $0x50] sm:$0xff]   ;;  %vm766_vm6 = vsmask.f32 5376  ;;  %vm870_vm7 = vcmask 1044480  }
  0x32   : > { %1344 = vmatprep.subr.bf16.mxu1 %v1661_v1  ;;  %v389_v13 = vrot.slane %v387_v9, 1  ;;  %v1513_v16 = vld [vmem:[%s1803_s28 + $0x20] sm:$0xff]   ;;  %v1518_v23 = vld [vmem:[%s1803_s28 + $0x78] sm:$0xff]   ;;  %v1842_v27 = vld [vmem:[%s1786_s23 + $0x8] ss:$0 sps:$4 sm:$0x33]  }
  0x33   : > { %v466_v24 = vld [vmem:[%s1786_s23] sm:$0xe]  ;;  %v1520_v28 = vld [vmem:[%s1803_s28 + $0x70] sm:$0xff]   ;;  %v1521_v31 = vld [vmem:[%s1803_s28 + $0x48] sm:$0xff]   ;;  %v582_v32 = vshrl.u32 %v1842_v27, 16  ;;  %v585_v33 = vshll.u32 %v1842_v27, 16 }
  0x34   : > { %1333 = vmatpush3.bf16.msra.mxu0 %v1508_v7  ;;  %v390_v17 = vor.u32 %v389_v13, %v385_v11  ;;  %v1219_v25 = vcombine.low %v466_v24, %v1810_v3  ;;  %v1522_v34 = vld [vmem:[%s1803_s28 + $0x68] sm:$0xff]   ;;  %v1523_v39 = vld [vmem:[%s1803_s28 + $0x40] sm:$0xff]   ;;  %v1526_v48 = vld [vmem:[%s1803_s28 + $0x98] sm:$0xff]   ;;  %v678_v4 = vrot.slane %v1842_v27, 2 }
  0x35   : > { %1345 = vmatpush3.bf16.msra.mxu1 %v1509_v8  ;;  %1334 = vmatprep.subr.bf16.mxu0 %v1661_v1  ;;  %v584_v37 = vrot.slane %v582_v32, 1  ;;  %v587_v38 = vrot.slane %v585_v33, 2  ;;  %v1524_v42 = vld [vmem:[%s1803_s28 + $0x60] sm:$0xff]   ;;  %v1864_v46 = vld [vmem:[%s1786_s23 + $0x8] ss:$0 sps:$4 sm:$0x77]  }
  0x36   : > { %1346 = vmatprep.subr.bf16.mxu1 %v1661_v1  ;;  %v395_v22 = vsel %vm383_vm1, %v390_v17, %v394_v20  ;;  %v574_v29 = vshrl.u32 %v1219_v25, 16  ;;  %v577_v30 = vshll.u32 %v1219_v25, 16  ;;  %v483_v40 = vrot.slane %v1219_v25, 1  ;;  %v660_v45 = vld [vmem:[%s1786_s23] sm:$0xc]  ;;  %v1528_v50 = vld [vmem:[%s1803_s28 + $0xb8] sm:$0xff]  }
  0x37   : > { %v588_v44 = vor.u32 %v587_v38, %v584_v37  ;;  %v1249_v51 = vcombine.low %v660_v45, %v1810_v3  ;;  %v1529_v52 = vld [vmem:[%s1803_s28 + $0x90] sm:$0xff]   ;;  %v776_v56 = vshrl.u32 %v1864_v46, 16  ;;  %v779_v57 = vshll.u32 %v1864_v46, 16  ;;  %v1531_v58 = vld [vmem:[%s1803_s28 + $0x88] sm:$0xff]   ;;  %v1533_v0 = vld [vmem:[%s1803_s28 + $0x80] sm:$0xff]  }
  0x38   : > { %1335 = vmatpush3.bf16.msra.mxu0 %v1510_v10  ;;  %v576_v35 = vrot.slane %v574_v29, 1  ;;  %v579_v36 = vrot.slane %v577_v30, 2  ;;  %v485_v47 = vsel %vm482_vm3, %v483_v40, %v484_v41  ;;  %v1530_v53 = vld [vmem:[%s1803_s28 + $0xb0] sm:$0xff]   ;;  %v1532_v59 = vld [vmem:[%s1803_s28 + $0xa8] sm:$0xff]   ;;  %v1534_v5 = vld [vmem:[%s1803_s28 + $0xa0] sm:$0xff]   ;;  %v872_v17 = vrot.slane %v1864_v46, 3 }
  0x39   : > { %1347 = vmatpush3.bf16.msra.mxu1 %v1511_v12  ;;  %1336 = vmatprep.subr.bf16.mxu0 %v1661_v1  ;;  %v768_v54 = vshrl.u32 %v1249_v51, 16  ;;  %v771_v55 = vshll.u32 %v1249_v51, 16  ;;  %v778_v62 = vrot.slane %v776_v56, 2  ;;  %v781_v63 = vrot.slane %v779_v57, 3  ;;  %v1536_v9 = vld [vmem:[%s1803_s28 + $0xd8] sm:$0xff]   ;;  %v1538_v11 = vld [vmem:[%s1803_s28 + $0xd0] sm:$0xff]  }
  0x3a   : > { %1348 = vmatprep.subr.bf16.mxu1 %v1661_v1  ;;  %v580_v43 = vor.u32 %v579_v36, %v576_v35  ;;  %v677_v2 = vrot.slane %v1249_v51, 2  ;;  %v854_v12 = vld [vmem:[%s1786_s23] sm:$0x8]  ;;  %v1539_v13 = vld [vmem:[%s1803_s28 + $0xc8] sm:$0xff]  }
  0x3b   : > { %v770_v60 = vrot.slane %v768_v54, 2  ;;  %v773_v61 = vrot.slane %v771_v55, 3  ;;  %v782_v7 = vor.u32 %v781_v63, %v778_v62  ;;  %v1540_v15 = vld [vmem:[%s1803_s28 + $0xc0] sm:$0xff]   ;;  %v269_v35 = vld [vmem:[#allocation2 + $0x8] sm:$0xff] }
  0x3c   : > { %1337 = vmatpush3.bf16.msra.mxu0 %v1512_v14  ;;  %v589_v49 = vsel %vm572_vm4, %v580_v43, %v588_v44  ;;  %v679_v8 = vsel %vm676_vm5, %v677_v2, %v678_v4  ;;  %v1279_v14 = vcombine.low %v854_v12, %v1810_v3  ;;  %v268_v33 = vld [vmem:[#allocation2] sm:$0xff] }
  0x3d   : > { %1349 = vmatpush3.bf16.msra.mxu1 %v1513_v16  ;;  %1354 = vmatprep.subr.bf16.mxu0 %v1661_v1  ;;  %v774_v6 = vor.u32 %v773_v61, %v770_v60 }
  0x3e   : > { %1366 = vmatprep.subr.bf16.mxu1 %v1661_v1  ;;  %v871_v16 = vrot.slane %v1279_v14, 3 }
  0x3f   : > { %1339 = vmatmul.mubr.msk.bf16.vlgmr.msra.gmra.mxu0 %vm313_vm2, %v1514_v19  ;;  %v783_v10 = vsel %vm766_vm6, %v774_v6, %v782_v7 }
  0x40   : > { %1355 = vmatpush3.bf16.msra.mxu0 %v1515_v21  ;;  %1351 = vmatmul.mubr.msk.bf16.vlgmr.msra.gmra.mxu1 %vm313_vm2, %v395_v22  ;;  %v873_v18 = vsel %vm870_vm7, %v871_v16, %v872_v17 }
  0x41   : > { %1367 = vmatpush3.bf16.msra.mxu1 %v1518_v23  ;;  %1356 = vmatprep.subr.bf16.mxu0 %v1661_v1 }
  0x42   : > { %1368 = vmatprep.subr.bf16.mxu1 %v1661_v1  ;;  %1362 = vmatprep.mubr.msk.bf16.mxu0 %vm1662_vm0, %v1661_v1 }
  0x43   : > { %1374 = vmatprep.mubr.msk.bf16.mxu1 %vm1662_vm0, %v1661_v1 }
  0x44   : > { %1357 = vmatpush3.bf16.msra.mxu0 %v1519_v26 }
  0x45   : > { %1369 = vmatpush3.bf16.msra.mxu1 %v1520_v28  ;;  %1358 = vmatprep.subr.bf16.mxu0 %v1661_v1 }
  0x46   : > { %1370 = vmatprep.subr.bf16.mxu1 %v1661_v1 }
  0x48   : > { %1359 = vmatpush3.bf16.msra.mxu0 %v1521_v31 }
  0x49   : > { %1371 = vmatpush3.bf16.msra.mxu1 %v1522_v34  ;;  %1360 = vmatprep.subr.bf16.mxu0 %v1661_v1 }
  0x4a   : > { %1372 = vmatprep.subr.bf16.mxu1 %v1661_v1 }
  0x4c   : > { %1361 = vmatpush3.bf16.msra.mxu0 %v1523_v39 }
  0x4d   : > { %1373 = vmatpush3.bf16.msra.mxu1 %v1524_v42  ;;  %1378 = vmatprep.subr.bf16.mxu0 %v1661_v1 }
  0x4e   : > { %1390 = vmatprep.subr.bf16.mxu1 %v1661_v1 }
  0x4f   : > { %1363 = vmatmul.mubr.msk.bf16.vlgmr.msra.gmra.mxu0 %vm313_vm2, %v485_v47 }
  0x50   : > { %1379 = vmatpush3.bf16.msra.mxu0 %v1526_v48  ;;  %1375 = vmatmul.mubr.msk.bf16.vlgmr.msra.gmra.mxu1 %vm313_vm2, %v589_v49 }
  0x51   : > { %1391 = vmatpush3.bf16.msra.mxu1 %v1528_v50  ;;  %1380 = vmatprep.subr.bf16.mxu0 %v1661_v1 }
  0x52   : > { %1392 = vmatprep.subr.bf16.mxu1 %v1661_v1  ;;  %1386 = vmatprep.mubr.msk.bf16.mxu0 %vm1662_vm0, %v1661_v1 }
  0x53   : > { %1398 = vmatprep.mubr.msk.bf16.mxu1 %vm1662_vm0, %v1661_v1 }
  0x54   : > { %1381 = vmatpush3.bf16.msra.mxu0 %v1529_v52 }
  0x55   : > { %1393 = vmatpush3.bf16.msra.mxu1 %v1530_v53  ;;  %1382 = vmatprep.subr.bf16.mxu0 %v1661_v1 }
  0x56   : > { %1394 = vmatprep.subr.bf16.mxu1 %v1661_v1 }
  0x58   : > { %1383 = vmatpush3.bf16.msra.mxu0 %v1531_v58 }
  0x59   : > { %1395 = vmatpush3.bf16.msra.mxu1 %v1532_v59  ;;  %1384 = vmatprep.subr.bf16.mxu0 %v1661_v1 }
  0x5a   : > { %1396 = vmatprep.subr.bf16.mxu1 %v1661_v1 }
  0x5c   : > { %1385 = vmatpush3.bf16.msra.mxu0 %v1533_v0 }
  0x5d   : > { %1397 = vmatpush3.bf16.msra.mxu1 %v1534_v5  ;;  %1402 = vmatprep.subr.bf16.mxu0 %v1661_v1 }
  0x5f   : > { %1387 = vmatmul.mubr.msk.bf16.vlgmr.msra.gmra.mxu0 %vm313_vm2, %v679_v8 }
  0x60   : > { %1403 = vmatpush3.bf16.msra.mxu0 %v1536_v9  ;;  %1399 = vmatmul.mubr.msk.bf16.vlgmr.msra.gmra.mxu1 %vm313_vm2, %v783_v10 }
  0x61   : > { %1404 = vmatprep.subr.bf16.mxu0 %v1661_v1  ;;  %1410 = vmatprep.mubr.msk.bf16.mxu0 %vm1662_vm0, %v1661_v1 }
  0x64   : > { %1405 = vmatpush3.bf16.msra.mxu0 %v1538_v11 }
  0x65   : > { %1406 = vmatprep.subr.bf16.mxu0 %v1661_v1 }
  0x68   : > { %1407 = vmatpush3.bf16.msra.mxu0 %v1539_v13 }
  0x69   : > { %1408 = vmatprep.subr.bf16.mxu0 %v1661_v1 }
  0x6c   : > { %1409 = vmatpush3.bf16.msra.mxu0 %v1540_v15 }
  0x6f   : > { %1411 = vmatmul.mubr.msk.bf16.vlgmr.msra.gmra.mxu0 %vm313_vm2, %v873_v18 }
  0xff   : > { %v351_v19 = vpop.f32.mrf.mxu0 }
 0x100   : > { %v457_v20 = vpop.f32.mrf.mxu1  ;;  %v358_v34 = vadd.f32 %v351_v19, %v268_v33 }
 0x101   : > { %v1340_v21 = vpop.f32.mrf.mxu0 }
 0x102   : > { %v1352_v22 = vpop.f32.mrf.mxu1  ;;  %v464_v39 = vadd.f32 %v457_v20, %v358_v34 }
 0x103   : > { %v354_v23 = vpop.f32.mrf.mxu0 }
 0x104   : > { %v460_v3 = vpop.f32.mrf.mxu1  ;;  %v359_v40 = vadd.f32 %v354_v23, %v269_v35 }
 0x105   : > { %v1341_v24 = vpop.f32.mrf.mxu0 }
 0x106   : > { %v1353_v25 = vpop.f32.mrf.mxu1  ;;  %v465_v46 = vadd.f32 %v460_v3, %v359_v40 }
 0x10f   : > { %v547_v26 = vpop.f32.mrf.mxu0 }
 0x110   : > { %v651_v27 = vpop.f32.mrf.mxu1  ;;  %v554_v43 = vadd.f32 %v547_v26, %v464_v39 }
 0x111   : > { %v1364_v28 = vpop.f32.mrf.mxu0 }
 0x112   : > { %v1376_v29 = vpop.f32.mrf.mxu1  ;;  %v658_v48 = vadd.f32 %v651_v27, %v554_v43 }
 0x113   : > { %v550_v30 = vpop.f32.mrf.mxu0 }
 0x114   : > { %v654_v31 = vpop.f32.mrf.mxu1  ;;  %v555_v49 = vadd.f32 %v550_v30, %v465_v46 }
 0x115   : > { %v1365_v1 = vpop.f32.mrf.mxu0 }
 0x116   : > { %v1377_v32 = vpop.f32.mrf.mxu1  ;;  %v659_v51 = vadd.f32 %v654_v31, %v555_v49 }
 0x11f   : > { %v741_v36 = vpop.f32.mrf.mxu0 }
 0x120   : > { %v845_v37 = vpop.f32.mrf.mxu1  ;;  %v748_v50 = vadd.f32 %v741_v36, %v658_v48 }
 0x121   : > { %v1388_v38 = vpop.f32.mrf.mxu0 }
 0x122   : > { %v1400_v41 = vpop.f32.mrf.mxu1  ;;  %v852_v52 = vadd.f32 %v845_v37, %v748_v50 }
 0x123   : > { %v744_v42 = vpop.f32.mrf.mxu0 }
 0x124   : > { %v848_v44 = vpop.f32.mrf.mxu1  ;;  %v749_v53 = vadd.f32 %v744_v42, %v659_v51 }
 0x125   : > { %v1389_v45 = vpop.f32.mrf.mxu0 }
 0x126   : > { %v1401_v47 = vpop.f32.mrf.mxu1  ;;  %v853_v57 = vadd.f32 %v848_v44, %v749_v53 }
 0x12f   : > { %v935_v54 = vpop.f32.mrf.mxu0 }
 0x130   : > { %v942_v55 = vadd.f32 %v935_v54, %v852_v52 }
 0x131   : > { %v1412_v56 = vpop.f32.mrf.mxu0 }
 0x132   : > { %944 = vst [vmem:[#allocation2] sm:$0xff] %v942_v55  ;;  %949 = sbr.rel (%p1285_p3) target bundleno = 353 (0x161), region = 40 }
 0x133   : > { %v938_v58 = vpop.f32.mrf.mxu0 }
 0x134   : > { %v943_v59 = vadd.f32 %v938_v58, %v853_v57 }
 0x135   : > { %v1413_v60 = vpop.f32.mrf.mxu0 }
 0x136   : > { %945 = vst [vmem:[#allocation2 + $0x8] sm:$0xff] %v943_v59 }
 0x137   : > { %v1286_v63 = vld [vmem:[%s1972_s2] ss:$0 sm:$0xff] }
 0x139   : > { %v950_v61 = vld [vmem:[#allocation2] sm:$0xff] }
 0x13a   : > { %v959_v0 = vadd.f32 %v1286_v63, %v950_v61 }
 0x13c   : > { %v969_v5 = vmul.f32 %v959_v0, %v959_v0  ;;  %v1287_v7 = vmul.f32 -1.442695, %v959_v0 }
 0x13d   : > { %v951_v62 = vld [vmem:[#allocation2 + $0x8] sm:$0xff] }
 0x13e   : > { %v960_v2 = vadd.f32 %v1286_v63, %v951_v62  ;;  %1542 = vpow2.f32 %v1287_v7 }
 0x140   : > { %v961_v4 = vadd.f32 %v960_v2, %v959_v0  ;;  %v970_v6 = vmul.f32 %v960_v2, %v960_v2  ;;  %v1288_v8 = vmul.f32 -1.442695, %v960_v2 }
 0x142   : > { %v962_v9 = vrot.slane %v961_v4, 4  ;;  %v971_v10 = vadd.f32 %v970_v6, %v969_v5  ;;  %1544 = vpow2.f32 %v1288_v8 }
 0x144   : > { %v963_v11 = vadd.f32 %v962_v9, %v961_v4  ;;  %v972_v12 = vrot.slane %v971_v10, 4 }
 0x146   : > { %v964_v13 = vrot.slane %v963_v11, 2  ;;  %v973_v14 = vadd.f32 %v972_v12, %v971_v10 }
 0x148   : > { %v965_v15 = vadd.f32 %v964_v13, %v963_v11  ;;  %v974_v16 = vrot.slane %v973_v14, 2 }
 0x14a   : > { %v966_v17 = vrot.slane %v965_v15, 1  ;;  %v975_v18 = vadd.f32 %v974_v16, %v973_v14 }
 0x14b   : > { %v1543_v22 = vpop.eup %1542 }
 0x14c   : > { %v967_v19 = vadd.f32 %v966_v17, %v965_v15  ;;  %v976_v20 = vrot.slane %v975_v18, 1  ;;  %v985_v3 = vadd.f32 1.0, %v1543_v22 }
 0x14e   : > { %968 = vst [vmem:[%s1793_s5] sm:$0x1] %v967_v19  ;;  %v977_v21 = vadd.f32 %v976_v20, %v975_v18  ;;  %1546 = vrcp.f32 %v985_v3 }
 0x14f   : > { %v1545_v23 = vpop.eup %1544 }
 0x150   : > { %978 = vst [vmem:[%s1793_s5 + $0x1] sm:$0x1] %v977_v21  ;;  %v986_v24 = vadd.f32 1.0, %v1545_v23 }
 0x152   : > { %1548 = vrcp.f32 %v986_v24 }
 0x15b   : > { %v1547_v25 = vpop.eup %1546 }
 0x15c   : > { %991 = vst [vmem:[%s1791_s17] sm:$0xff] %v1547_v25 }
 0x15f   : > { %v1549_v26 = vpop.eup %1548 }
 0x160   : > { %992 = vst [vmem:[%s1791_s17 + $0x8] sm:$0xff] %v1549_v26 }
 0x161 PF: > { %s1290_s18 = sshll.u32 %s1642_s20, 4  ;;  %s1021_s11 = sshll.u32 %s1793_s5, 4  ;;  %s1022_s11 = int_to_ptr.vmem [resolvable:$true] %s1021_s11 }
 0x162   : > { %s1017_s10 = sadd.s32 %s1638_s19, %s1290_s18  ;;  %s1994_s26 = sand.u32 1, %s1626_s16  }
 0x163   : > { %s1291_s12 = sshll.u32 %s1017_s10, 5  ;;  %s1003_s6 = scalar_lea.sflag [#allocation4], %s1994_s26 }
 0x164   : > { %s1019_s25 = scalar_lea.hbm %s1974_s4, %s1291_s12  ;;  %s1550_s7 = scalar_lea.vmem %s1022_s11, 32 }
 0x165   : > { %p1551_p4 = scmp.ne.s32.totalorder %s1022_s11, %s1550_s7  ;;  %s1663_s17 = smov [#allocation3]  }
 0x166   : > { %s1554_s8 = sshll.u32 %s1663_s17, 4  ;;  %s1555_s8 = int_to_ptr.vmem [resolvable:$false] %s1554_s8 }
 0x167   : > { %p1552_p5 = pnand %p1551_p4, %p1751_p6  ;;  %s1556_s9 = scalar_lea.vmem %s1555_s8, 64 }
 0x168   : > { %p1557_p9 = scmp.lt.s32.totalorder %s1022_s11, %s1555_s8  ;;  %p1558_p10 = scmp.lt.s32.totalorder %s1556_s9, %s1550_s7 }
 0x169   : > { %p1553_p8 = pneg %p1552_p5 }
 0x16a   : > { %p1559_p11 = por %p1558_p10, %p1557_p9 }
 0x16c   : > { %p1560_p12 = pnand %p1559_p11, %p1553_p8 }
 0x16e   : > { %1563 = shalt.err (!%p1560_p12)
}
 0x16f   : > { %s1564_s19 = scalar_lea.hbm %s1019_s25, 32  ;;  %s1568_s27 = scalar_lea.hbm %s1974_s4, 1024 }
 0x170   : > { %p1565_p13 = scmp.ne.s32.totalorder %s1019_s25, %s1564_s19  ;;  %p1569_p2 = scmp.lt.s32.totalorder %s1019_s25, %s1974_s4 }
 0x171   : > { %p1570_p3 = scmp.lt.s32.totalorder %s1568_s27, %s1564_s19 }
 0x172   : > { %p1566_p0 = pnand %p1565_p13, %p1751_p6 }
 0x173   : > { %p1571_p4 = por %p1570_p3, %p1569_p2 }
 0x174   : > { %p1567_p1 = pneg %p1566_p0 }
 0x176   : > { %p1572_p5 = pnand %p1571_p4, %p1567_p1 }
 0x178   : > { %1575 = shalt.err (!%p1572_p5)
}
 0x179   : > { %1416 = dma.vmem_to_hbm [thread:$0]  (%p1751_p6), %s1022_s11, 32, %s1019_s25, %s1003_s6  }
 0x17a PF: > { %p1422_p8 = scmp.ge.s32.totalorder %s1658_s24, 2  ;;  %s1045_s23 = sand.u32 1, %s1622_s15  }
 0x17b   : > { %s1046_s29 = scalar_lea.sflag [#allocation4], %s1045_s23 }
 0x17c   : > { %p1419_p9 = pnand %p1422_p8, %p1758_p7 }
 0x17e   : > { %p1420_p10 = pneg %p1419_p9 }
 0x180   : > { %1617 = dma.done.wait (%p1420_p10), %s1046_s29, 32  }
 0x181   : > { %1619 = vsyncadd (%p1420_p10), %s1046_s29, 4294967264  ;;  %s18_s24 = sadd.s32 1, %s1658_s24   ;;  %s1996_s18 = sld [smem:[#allocation6_spill]] }
 0x182   : > { %p15_p11 = scmp.ge.s32.totalorder %s18_s24, 226   ;;  %s1997_s17 = sld [smem:[#allocation14_spill]] }
 0x183   : > { %s1998_s30 = sld [smem:[#allocation7_spill]]  ;;  %s2004_s15 = smov %s1626_s16 }
 0x184   : > { %s1999_s19 = sld [smem:[#allocation8_spill]] }
 0x185   : > { %s2000_s20 = sld [smem:[#allocation9_spill]]  ;;  %17 = sbr.rel (!%p15_p11) target bundleno = 6 (0x6), region = 94 }
 0x186   : > { %s2001_s21 = sld [smem:[#allocation10_spill]] }
 0x187   : > { %s2002_s22 = sld [smem:[#allocation11_spill]]  ;;  %s2005_s16 = smov %s1996_s18 }
 0x188   : > { %s2003_s23 = sld [smem:[#allocation13_spill]] }
 0x189   : > { %s2006_s18 = smov %s1998_s30 }
 0x18a   :  { %1051 = vsyncpa [#allocation4], 1 }
 0x18b   :  { %1053 = vsyncpa [#allocation4 + $0x1], 1 }

</bundles_post_ra>
